<compile_context>
chip_gen: v7x
topology: tpu7x:2x2x1
jax: 0.10.0
libtpu: 0.0.40
codegen_flags: <defaults>
</compile_context>

<pallas_src>
import functools

import numpy as np

import jax
import jax.numpy as jnp
from jax.experimental import pallas as pl
from jax.experimental.pallas import tpu as pltpu

_C_MID = 128           # middle_chans are fixed at 128 by the module
_NEG_SLOPE = 0.01      # PyTorch LeakyReLU default


def _leaky(x):
    return jnp.where(x >= 0.0, x, _NEG_SLOPE * x)


def _s2d_conv(ypad, w_ref, b_ref, n, act):
    """Stride-1 3x3 'conv' over a space-to-depth grid as ONE matmul.

    ypad:  f32 value (n+2, n+2, 4*C) -- zero-bordered s2d input.
    w_ref: (36*C, c_out) bf16 weights, contraction ordered (a, b, r, s, ci).
    Returns (n*n, c_out) f32 with rows in raster (i, j) order.
    """
    c4 = ypad.shape[-1]
    taps = []
    for a in range(3):
        for b in range(3):
            t = ypad[a:a + n, b:b + n, :]                 # contiguous slice
            taps.append(t.reshape(n * n, c4))
    patches = jnp.concatenate(taps, axis=-1).astype(jnp.bfloat16)  # (n*n, 36C)
    out = jnp.dot(patches, w_ref[...], preferred_element_type=jnp.float32)
    out = out + b_ref[...].astype(jnp.float32)
    if act:
        out = _leaky(out)
    return out


def _store_s2d(rows_pq, dst_ref, m, c):
    """Write phase-ordered rows (p, q, i, j) of a (4*m*m, c) value into the
    zero-bordered space-to-depth scratch dst_ref of shape (m+2, m+2, 4c)."""
    for pq in range(4):
        blk = rows_pq[pq * m * m:(pq + 1) * m * m, :].reshape(m, m, c)
        dst_ref[1:m + 1, 1:m + 1, pq * c:(pq + 1) * c] = blk


def _img2embed_kernel(p1_ref, w1_ref, b1_ref, w2_ref, b2_ref, w3_ref, b3_ref,
                      w4_ref, b4_ref, perm2_ref, perm3_ref, o_ref,
                      y1_ref, y2_ref, y3_ref, *, n2, n3, n4):
    C = _C_MID

    # Zero the padded s2d scratch (only the 1-wide border must stay zero; the
    # interiors are fully overwritten below).  Cheap: ~300 KB of VMEM stores.
    y1_ref[...] = jnp.zeros_like(y1_ref)
    y2_ref[...] = jnp.zeros_like(y2_ref)
    y3_ref[...] = jnp.zeros_like(y3_ref)

    # ---- layer 1: single matmul over the wrapper-built im2col -------------
    # Rows are pre-ordered (p, q, i, j), so the output phase blocks are
    # contiguous row blocks (no permutation needed).
    a1 = jnp.dot(p1_ref[0], w1_ref[...], preferred_element_type=jnp.float32)
    a1 = _leaky(a1 + b1_ref[...].astype(jnp.float32))          # (n1*n1, C)
    _store_s2d(a1, y1_ref, n2, C)

    # ---- layer 2 -----------------------------------------------------------
    out2 = _s2d_conv(y1_ref[...], w2_ref, b2_ref, n2, act=True)   # (n2^2, C)
    out2 = jnp.dot(perm2_ref[...], out2.astype(jnp.bfloat16),     # raster ->
                   preferred_element_type=jnp.float32)            # phase order
    _store_s2d(out2, y2_ref, n3, C)

    # ---- layer 3 -----------------------------------------------------------
    out3 = _s2d_conv(y2_ref[...], w3_ref, b3_ref, n3, act=True)   # (n3^2, C)
    out3 = jnp.dot(perm3_ref[...], out3.astype(jnp.bfloat16),
                   preferred_element_type=jnp.float32)
    _store_s2d(out3, y3_ref, n4, C)

    # ---- layer 4 (no activation); raster rows == final patch order --------
    out4 = _s2d_conv(y3_ref[...], w4_ref, b4_ref, n4, act=False)  # (n4^2, E)
    o_ref[0] = out4.astype(o_ref.dtype)


def _s2d_weight(w_oihw):
    """(C_out, C_in, 5, 5) conv weight -> (36*C_in, C_out) matmul weight whose
    contraction order matches the in-kernel im2col (a, b, r, s, ci)."""
    co, ci = w_oihw.shape[0], w_oihw.shape[1]
    wp = jnp.pad(w_oihw, ((0, 0), (0, 0), (0, 1), (0, 1)))    # kh, kw: 5 -> 6
    wp = wp.reshape(co, ci, 3, 2, 3, 2)                        # (co,ci,a,r,b,s)
    wp = jnp.transpose(wp, (2, 4, 3, 5, 1, 0))                 # (a,b,r,s,ci,co)
    return wp.reshape(36 * ci, co).astype(jnp.bfloat16)


def _phase_perm(n):
    """(n^2, n^2) 0/1 matrix reordering raster rows (oh, ow) -> (p, q, i, j)."""
    m = n // 2
    src = np.empty((n * n,), np.int64)
    d = 0
    for p in range(2):
        for q in range(2):
            for i in range(m):
                for j in range(m):
                    src[d] = (2 * i + p) * n + (2 * j + q)
                    d += 1
    P = np.zeros((n * n, n * n), np.float32)
    P[np.arange(n * n), src] = 1.0
    return jnp.asarray(P, dtype=jnp.bfloat16)


def img2embed_forward(x_nchw, weights, biases):
    """Img2Embed.forward: 4 stride-2 k5 convs (LeakyReLU after the first 3),
    then flatten(2).transpose(1, 2) -> (B, num_patches, embed_dim).
    The whole network runs in ONE pallas_call."""
    B, c_in, H, W = x_nchw.shape
    assert H == W and H % 16 == 0, "expects square images, multiple of 16"
    C = _C_MID
    n1, n2, n3, n4 = H // 2, H // 4, H // 8, H // 16
    embed = weights[3].shape[0]
    f32, bf16 = jnp.float32, jnp.bfloat16

    # ------------- wrapper-side layout plumbing (no conv FLOPs) -------------
    # Layer-1 im2col, rows ordered (p, q, i, j); K = 25*c_in zero-padded to a
    # lane multiple so the kernel sees a lane-dense, 128-aligned operand.
    x_nhwc = jnp.transpose(x_nchw, (0, 2, 3, 1)).astype(f32)
    xp = jnp.pad(x_nhwc, ((0, 0), (2, 2), (2, 2), (0, 0)))
    taps = [xp[:, kh:kh + 2 * n1:2, kw:kw + 2 * n1:2, :]
            for kh in range(5) for kw in range(5)]
    k1 = 25 * c_in
    k1p = -(-k1 // 128) * 128
    p1 = jnp.concatenate(taps, axis=-1)                       # (B, n1, n1, k1)
    p1 = p1.reshape(B, n2, 2, n2, 2, k1)
    p1 = jnp.transpose(p1, (0, 2, 4, 1, 3, 5)).reshape(B, n1 * n1, k1)
    p1 = jnp.pad(p1, ((0, 0), (0, 0), (0, k1p - k1))).astype(bf16)

    w1m = jnp.transpose(weights[0], (2, 3, 1, 0)).reshape(k1, C)
    w1m = jnp.pad(w1m, ((0, k1p - k1), (0, 0))).astype(bf16)
    w2m, w3m, w4m = (_s2d_weight(w) for w in weights[1:])
    b1, b2, b3 = (b.reshape(1, C).astype(f32) for b in biases[:3])
    b4 = biases[3].reshape(1, embed).astype(f32)
    perm2, perm3 = _phase_perm(n2), _phase_perm(n3)

    kernel = functools.partial(_img2embed_kernel, n2=n2, n3=n3, n4=n4)

    grid_spec = pltpu.PrefetchScalarGridSpec(
        num_scalar_prefetch=0,
        grid=(B,),
        in_specs=[
            pl.BlockSpec((1, n1 * n1, k1p), lambda b: (b, 0, 0)),   # p1
            pl.BlockSpec((k1p, C), lambda b: (0, 0)),               # w1
            pl.BlockSpec((1, C), lambda b: (0, 0)),                 # b1
            pl.BlockSpec((36 * C, C), lambda b: (0, 0)),            # w2
            pl.BlockSpec((1, C), lambda b: (0, 0)),                 # b2
            pl.BlockSpec((36 * C, C), lambda b: (0, 0)),            # w3
            pl.BlockSpec((1, C), lambda b: (0, 0)),                 # b3
            pl.BlockSpec((36 * C, embed), lambda b: (0, 0)),        # w4
            pl.BlockSpec((1, embed), lambda b: (0, 0)),             # b4
            pl.BlockSpec((n2 * n2, n2 * n2), lambda b: (0, 0)),     # perm2
            pl.BlockSpec((n3 * n3, n3 * n3), lambda b: (0, 0)),     # perm3
        ],
        out_specs=pl.BlockSpec((1, n4 * n4, embed), lambda b: (b, 0, 0)),
        scratch_shapes=[
            pltpu.VMEM((n2 + 2, n2 + 2, 4 * C), f32),   # s2d of layer-1 out
            pltpu.VMEM((n3 + 2, n3 + 2, 4 * C), f32),   # s2d of layer-2 out
            pltpu.VMEM((n4 + 2, n4 + 2, 4 * C), f32),   # s2d of layer-3 out
        ],
    )

    return pl.pallas_call(
        kernel,
        out_shape=jax.ShapeDtypeStruct((B, n4 * n4, embed), x_nchw.dtype),
        grid_spec=grid_spec,
        compiler_params=pltpu.CompilerParams(
            dimension_semantics=("parallel",)),
    )(p1, w1m, b1, w2m, b2, w3m, b3, w4m, b4, perm2, perm3)


def _reference(x, ws, bs):
    """Pure-JAX reference (matches the PyTorch module), f32 HIGHEST precision."""
    h = x
    for i in range(4):
        h = jax.lax.conv_general_dilated(
            h, ws[i], window_strides=(2, 2), padding=((2, 2), (2, 2)),
            dimension_numbers=("NCHW", "OIHW", "NCHW"),
            precision=jax.lax.Precision.HIGHEST)
        h = h + bs[i].reshape(1, -1, 1, 1)
        if i < 3:
            h = jnp.where(h >= 0, h, _NEG_SLOPE * h)
    B, C, H, W = h.shape
    return jnp.transpose(h.reshape(B, C, H * W), (0, 2, 1))


if __name__ == "__main__":
    # Small config consistent with Img2Embed: img_size=32, patch_size=16,
    # in_chans=3, middle_chans=[128,128,128], embed_dim=128
    # -> 4 stride-2 convs, (32/16)^2 = 4 patches of dim 128.
    B, C_IN, IMG, EMBED = 2, 3, 32, 128
    chans = [C_IN, 128, 128, 128, EMBED]

    key = jax.random.PRNGKey(0)
    kx, key = jax.random.split(key)
    x = jax.random.normal(kx, (B, C_IN, IMG, IMG), dtype=jnp.float32)

    weights, biases = [], []
    for i in range(4):
        kw_, kb_, key = jax.random.split(key, 3)
        fan_in = chans[i] * 25
        w = jax.random.normal(kw_, (chans[i + 1], chans[i], 5, 5),
                              jnp.float32) * (fan_in ** -0.5)
        b = jax.random.normal(kb_, (chans[i + 1],), jnp.float32) * 0.1
        weights.append(w)
        biases.append(b)

    fwd = jax.jit(img2embed_forward)
    out = jax.block_until_ready(fwd(x, weights, biases))

    # Reference uses the same bf16-rounded weights as the kernel (activations
    # stay f32) so the comparison isolates the kernel's own numerics.
    wq = [w.astype(jnp.bfloat16).astype(jnp.float32) for w in weights]
    ref = _reference(x, wq, biases)

    assert out.shape == (B, (IMG // 16) ** 2, EMBED), out.shape
    err = float(jnp.max(jnp.abs(out - ref)))
    assert jnp.allclose(out, ref, atol=5e-2, rtol=5e-2), f"mismatch, max err={err}"

    print("KERNEL_OK")
</pallas_src>

<mosaic_0001>
module attributes {stable_mosaic.version = 11 : i64} {
  func.func @_img2embed_kernel(%arg0: i32, %arg1: memref<1x256x128xbf16, #tpu.memory_space<vmem>>, %arg2: memref<128x128xbf16, #tpu.memory_space<vmem>>, %arg3: memref<1x128xf32, #tpu.memory_space<vmem>>, %arg4: memref<4608x128xbf16, #tpu.memory_space<vmem>>, %arg5: memref<1x128xf32, #tpu.memory_space<vmem>>, %arg6: memref<4608x128xbf16, #tpu.memory_space<vmem>>, %arg7: memref<1x128xf32, #tpu.memory_space<vmem>>, %arg8: memref<4608x128xbf16, #tpu.memory_space<vmem>>, %arg9: memref<1x128xf32, #tpu.memory_space<vmem>>, %arg10: memref<64x64xbf16, #tpu.memory_space<vmem>>, %arg11: memref<16x16xbf16, #tpu.memory_space<vmem>>, %arg12: memref<1x4x128xf32, #tpu.memory_space<vmem>>, %arg13: memref<10x10x512xf32, #tpu.memory_space<vmem>>, %arg14: memref<6x6x512xf32, #tpu.memory_space<vmem>>, %arg15: memref<4x4x512xf32, #tpu.memory_space<vmem>>) attributes {dimension_semantics = [#tpu.dimension_semantics<parallel>], iteration_bounds = array<i64: 2>, scalar_prefetch = 0 : i64, scratch_operands = 3 : i64, tpu.core_type = #tpu.core_type<tc>, window_params = [{transform_indices = @transform_0, window_bounds = array<i64: 1, 256, 128>}, {pipeline_mode = #tpu.pipeline_mode<synchronous>, transform_indices = @transform_1, window_bounds = array<i64: 128, 128>}, {pipeline_mode = #tpu.pipeline_mode<synchronous>, transform_indices = @transform_2, window_bounds = array<i64: 1, 128>}, {pipeline_mode = #tpu.pipeline_mode<synchronous>, transform_indices = @transform_3, window_bounds = array<i64: 4608, 128>}, {pipeline_mode = #tpu.pipeline_mode<synchronous>, transform_indices = @transform_4, window_bounds = array<i64: 1, 128>}, {pipeline_mode = #tpu.pipeline_mode<synchronous>, transform_indices = @transform_5, window_bounds = array<i64: 4608, 128>}, {pipeline_mode = #tpu.pipeline_mode<synchronous>, transform_indices = @transform_6, window_bounds = array<i64: 1, 128>}, {pipeline_mode = #tpu.pipeline_mode<synchronous>, transform_indices = @transform_7, window_bounds = array<i64: 4608, 128>}, {pipeline_mode = #tpu.pipeline_mode<synchronous>, transform_indices = @transform_8, window_bounds = array<i64: 1, 128>}, {pipeline_mode = #tpu.pipeline_mode<synchronous>, transform_indices = @transform_9, window_bounds = array<i64: 64, 64>}, {pipeline_mode = #tpu.pipeline_mode<synchronous>, transform_indices = @transform_10, window_bounds = array<i64: 16, 16>}, {transform_indices = @transform_11, window_bounds = array<i64: 1, 4, 128>}]} {
    %cst = arith.constant 0.000000e+00 : f32
    %0 = vector.broadcast %cst : f32 to vector<10x10x512xf32>
    %c0 = arith.constant 0 : index
    %c0_0 = arith.constant 0 : index
    %c0_1 = arith.constant 0 : index
    %1 = vector.load %arg13[%c0, %c0_0, %c0_1] : memref<10x10x512xf32, #tpu.memory_space<vmem>>, vector<10x10x512xf32>
    tpu.vector_store %arg13[%c0, %c0_0, %c0_1], %0 {strides = array<i32>} : memref<10x10x512xf32, #tpu.memory_space<vmem>>, vector<10x10x512xf32>,
    %cst_2 = arith.constant 0.000000e+00 : f32
    %2 = vector.broadcast %cst_2 : f32 to vector<6x6x512xf32>
    %c0_3 = arith.constant 0 : index
    %c0_4 = arith.constant 0 : index
    %c0_5 = arith.constant 0 : index
    %3 = vector.load %arg14[%c0_3, %c0_4, %c0_5] : memref<6x6x512xf32, #tpu.memory_space<vmem>>, vector<6x6x512xf32>
    tpu.vector_store %arg14[%c0_3, %c0_4, %c0_5], %2 {strides = array<i32>} : memref<6x6x512xf32, #tpu.memory_space<vmem>>, vector<6x6x512xf32>,
    %cst_6 = arith.constant 0.000000e+00 : f32
    %4 = vector.broadcast %cst_6 : f32 to vector<4x4x512xf32>
    %c0_7 = arith.constant 0 : index
    %c0_8 = arith.constant 0 : index
    %c0_9 = arith.constant 0 : index
    %5 = vector.load %arg15[%c0_7, %c0_8, %c0_9] : memref<4x4x512xf32, #tpu.memory_space<vmem>>, vector<4x4x512xf32>
    tpu.vector_store %arg15[%c0_7, %c0_8, %c0_9], %4 {strides = array<i32>} : memref<4x4x512xf32, #tpu.memory_space<vmem>>, vector<4x4x512xf32>,
    %c0_10 = arith.constant 0 : index
    %c0_11 = arith.constant 0 : index
    %c0_12 = arith.constant 0 : index
    %6 = vector.load %arg1[%c0_10, %c0_11, %c0_12] : memref<1x256x128xbf16, #tpu.memory_space<vmem>>, vector<1x256x128xbf16>
    %7 = vector.shape_cast %6 : vector<1x256x128xbf16> to vector<256x128xbf16>
    %c0_13 = arith.constant 0 : index
    %c0_14 = arith.constant 0 : index
    %8 = vector.load %arg2[%c0_13, %c0_14] : memref<128x128xbf16, #tpu.memory_space<vmem>>, vector<128x128xbf16>
    %cst_15 = arith.constant dense<0.000000e+00> : vector<256x128xf32>
    %9 = tpu.matmul %7, %8, %cst_15 {dimension_numbers = #tpu.dot_dimension_numbers<[1], [0], [0], [1], [0, 0, 1, 1], [], []>} : vector<256x128xbf16>, vector<128x128xbf16>, vector<256x128xf32> -> vector<256x128xf32>
    %c0_16 = arith.constant 0 : index
    %c0_17 = arith.constant 0 : index
    %10 = vector.load %arg3[%c0_16, %c0_17] : memref<1x128xf32, #tpu.memory_space<vmem>>, vector<1x128xf32>
    %11 = vector.broadcast %10 : vector<1x128xf32> to vector<256x128xf32>
    %12 = arith.addf %9, %11 : vector<256x128xf32>
    %cst_18 = arith.constant 0.000000e+00 : f32
    %13 = vector.broadcast %cst_18 : f32 to vector<256x128xf32>
    %14 = arith.cmpf oge, %12, %13 : vector<256x128xf32>
    %cst_19 = arith.constant 0.00999999977 : f32
    %15 = vector.broadcast %cst_19 : f32 to vector<256x128xf32>
    %16 = arith.mulf %15, %12 : vector<256x128xf32>
    %17 = arith.select %14, %12, %16 : vector<256x128xi1>, vector<256x128xf32>
    %18 = vector.extract_strided_slice %17 {offsets = [0, 0], sizes = [64, 128], strides = [1, 1]} : vector<256x128xf32> to vector<64x128xf32>
    %19 = vector.shape_cast %18 : vector<64x128xf32> to vector<8x8x128xf32>
    %c1 = arith.constant 1 : index
    %c1_20 = arith.constant 1 : index
    %c0_21 = arith.constant 0 : index
    %20 = vector.load %arg13[%c1, %c1_20, %c0_21] : memref<10x10x512xf32, #tpu.memory_space<vmem>>, vector<8x8x128xf32>
    tpu.vector_store %arg13[%c1, %c1_20, %c0_21], %19 {strides = array<i32>} : memref<10x10x512xf32, #tpu.memory_space<vmem>>, vector<8x8x128xf32>,
    %21 = vector.extract_strided_slice %17 {offsets = [64, 0], sizes = [64, 128], strides = [1, 1]} : vector<256x128xf32> to vector<64x128xf32>
    %22 = vector.shape_cast %21 : vector<64x128xf32> to vector<8x8x128xf32>
    %c1_22 = arith.constant 1 : index
    %c1_23 = arith.constant 1 : index
    %c128 = arith.constant 128 : index
    %23 = vector.load %arg13[%c1_22, %c1_23, %c128] : memref<10x10x512xf32, #tpu.memory_space<vmem>>, vector<8x8x128xf32>
    tpu.vector_store %arg13[%c1_22, %c1_23, %c128], %22 {strides = array<i32>} : memref<10x10x512xf32, #tpu.memory_space<vmem>>, vector<8x8x128xf32>,
    %24 = vector.extract_strided_slice %17 {offsets = [128, 0], sizes = [64, 128], strides = [1, 1]} : vector<256x128xf32> to vector<64x128xf32>
    %25 = vector.shape_cast %24 : vector<64x128xf32> to vector<8x8x128xf32>
    %c1_24 = arith.constant 1 : index
    %c1_25 = arith.constant 1 : index
    %c256 = arith.constant 256 : index
    %26 = vector.load %arg13[%c1_24, %c1_25, %c256] : memref<10x10x512xf32, #tpu.memory_space<vmem>>, vector<8x8x128xf32>
    tpu.vector_store %arg13[%c1_24, %c1_25, %c256], %25 {strides = array<i32>} : memref<10x10x512xf32, #tpu.memory_space<vmem>>, vector<8x8x128xf32>,
    %27 = vector.extract_strided_slice %17 {offsets = [192, 0], sizes = [64, 128], strides = [1, 1]} : vector<256x128xf32> to vector<64x128xf32>
    %28 = vector.shape_cast %27 : vector<64x128xf32> to vector<8x8x128xf32>
    %c1_26 = arith.constant 1 : index
    %c1_27 = arith.constant 1 : index
    %c384 = arith.constant 384 : index
    %29 = vector.load %arg13[%c1_26, %c1_27, %c384] : memref<10x10x512xf32, #tpu.memory_space<vmem>>, vector<8x8x128xf32>
    tpu.vector_store %arg13[%c1_26, %c1_27, %c384], %28 {strides = array<i32>} : memref<10x10x512xf32, #tpu.memory_space<vmem>>, vector<8x8x128xf32>,
    %c0_28 = arith.constant 0 : index
    %c0_29 = arith.constant 0 : index
    %c0_30 = arith.constant 0 : index
    %30 = vector.load %arg13[%c0_28, %c0_29, %c0_30] : memref<10x10x512xf32, #tpu.memory_space<vmem>>, vector<10x10x512xf32>
    %31 = vector.extract_strided_slice %30 {offsets = [0, 0, 0], sizes = [8, 8, 512], strides = [1, 1, 1]} : vector<10x10x512xf32> to vector<8x8x512xf32>
    %32 = vector.shape_cast %31 : vector<8x8x512xf32> to vector<64x512xf32>
    %33 = vector.extract_strided_slice %30 {offsets = [0, 1, 0], sizes = [8, 8, 512], strides = [1, 1, 1]} : vector<10x10x512xf32> to vector<8x8x512xf32>
    %34 = vector.shape_cast %33 : vector<8x8x512xf32> to vector<64x512xf32>
    %35 = vector.extract_strided_slice %30 {offsets = [0, 2, 0], sizes = [8, 8, 512], strides = [1, 1, 1]} : vector<10x10x512xf32> to vector<8x8x512xf32>
    %36 = vector.shape_cast %35 : vector<8x8x512xf32> to vector<64x512xf32>
    %37 = vector.extract_strided_slice %30 {offsets = [1, 0, 0], sizes = [8, 8, 512], strides = [1, 1, 1]} : vector<10x10x512xf32> to vector<8x8x512xf32>
    %38 = vector.shape_cast %37 : vector<8x8x512xf32> to vector<64x512xf32>
    %39 = vector.extract_strided_slice %30 {offsets = [1, 1, 0], sizes = [8, 8, 512], strides = [1, 1, 1]} : vector<10x10x512xf32> to vector<8x8x512xf32>
    %40 = vector.shape_cast %39 : vector<8x8x512xf32> to vector<64x512xf32>
    %41 = vector.extract_strided_slice %30 {offsets = [1, 2, 0], sizes = [8, 8, 512], strides = [1, 1, 1]} : vector<10x10x512xf32> to vector<8x8x512xf32>
    %42 = vector.shape_cast %41 : vector<8x8x512xf32> to vector<64x512xf32>
    %43 = vector.extract_strided_slice %30 {offsets = [2, 0, 0], sizes = [8, 8, 512], strides = [1, 1, 1]} : vector<10x10x512xf32> to vector<8x8x512xf32>
    %44 = vector.shape_cast %43 : vector<8x8x512xf32> to vector<64x512xf32>
    %45 = vector.extract_strided_slice %30 {offsets = [2, 1, 0], sizes = [8, 8, 512], strides = [1, 1, 1]} : vector<10x10x512xf32> to vector<8x8x512xf32>
    %46 = vector.shape_cast %45 : vector<8x8x512xf32> to vector<64x512xf32>
    %47 = vector.extract_strided_slice %30 {offsets = [2, 2, 0], sizes = [8, 8, 512], strides = [1, 1, 1]} : vector<10x10x512xf32> to vector<8x8x512xf32>
    %48 = vector.shape_cast %47 : vector<8x8x512xf32> to vector<64x512xf32>
    %49 = tpu.concatenate %32, %34, %36, %38, %40, %42, %44, %46, %48 in 1 : vector<64x512xf32>, vector<64x512xf32>, vector<64x512xf32>, vector<64x512xf32>, vector<64x512xf32>, vector<64x512xf32>, vector<64x512xf32>, vector<64x512xf32>, vector<64x512xf32> -> vector<64x4608xf32>
    %50 = arith.truncf %49 : vector<64x4608xf32> to vector<64x4608xbf16>
    %c0_31 = arith.constant 0 : index
    %c0_32 = arith.constant 0 : index
    %51 = vector.load %arg4[%c0_31, %c0_32] : memref<4608x128xbf16, #tpu.memory_space<vmem>>, vector<4608x128xbf16>
    %cst_33 = arith.constant dense<0.000000e+00> : vector<64x128xf32>
    %52 = tpu.matmul %50, %51, %cst_33 {dimension_numbers = #tpu.dot_dimension_numbers<[1], [0], [0], [1], [0, 0, 1, 1], [], []>} : vector<64x4608xbf16>, vector<4608x128xbf16>, vector<64x128xf32> -> vector<64x128xf32>
    %c0_34 = arith.constant 0 : index
    %c0_35 = arith.constant 0 : index
    %53 = vector.load %arg5[%c0_34, %c0_35] : memref<1x128xf32, #tpu.memory_space<vmem>>, vector<1x128xf32>
    %54 = vector.broadcast %53 : vector<1x128xf32> to vector<64x128xf32>
    %55 = arith.addf %52, %54 : vector<64x128xf32>
    %cst_36 = arith.constant 0.000000e+00 : f32
    %56 = vector.broadcast %cst_36 : f32 to vector<64x128xf32>
    %57 = arith.cmpf oge, %55, %56 : vector<64x128xf32>
    %cst_37 = arith.constant 0.00999999977 : f32
    %58 = vector.broadcast %cst_37 : f32 to vector<64x128xf32>
    %59 = arith.mulf %58, %55 : vector<64x128xf32>
    %60 = arith.select %57, %55, %59 : vector<64x128xi1>, vector<64x128xf32>
    %c0_38 = arith.constant 0 : index
    %c0_39 = arith.constant 0 : index
    %61 = vector.load %arg10[%c0_38, %c0_39] : memref<64x64xbf16, #tpu.memory_space<vmem>>, vector<64x64xbf16>
    %62 = arith.truncf %60 : vector<64x128xf32> to vector<64x128xbf16>
    %cst_40 = arith.constant dense<0.000000e+00> : vector<64x128xf32>
    %63 = tpu.matmul %61, %62, %cst_40 {dimension_numbers = #tpu.dot_dimension_numbers<[1], [0], [0], [1], [0, 0, 1, 1], [], []>} : vector<64x64xbf16>, vector<64x128xbf16>, vector<64x128xf32> -> vector<64x128xf32>
    %64 = vector.extract_strided_slice %63 {offsets = [0, 0], sizes = [16, 128], strides = [1, 1]} : vector<64x128xf32> to vector<16x128xf32>
    %65 = vector.shape_cast %64 : vector<16x128xf32> to vector<4x4x128xf32>
    %c1_41 = arith.constant 1 : index
    %c1_42 = arith.constant 1 : index
    %c0_43 = arith.constant 0 : index
    %66 = vector.load %arg14[%c1_41, %c1_42, %c0_43] : memref<6x6x512xf32, #tpu.memory_space<vmem>>, vector<4x4x128xf32>
    tpu.vector_store %arg14[%c1_41, %c1_42, %c0_43], %65 {strides = array<i32>} : memref<6x6x512xf32, #tpu.memory_space<vmem>>, vector<4x4x128xf32>,
    %67 = vector.extract_strided_slice %63 {offsets = [16, 0], sizes = [16, 128], strides = [1, 1]} : vector<64x128xf32> to vector<16x128xf32>
    %68 = vector.shape_cast %67 : vector<16x128xf32> to vector<4x4x128xf32>
    %c1_44 = arith.constant 1 : index
    %c1_45 = arith.constant 1 : index
    %c128_46 = arith.constant 128 : index
    %69 = vector.load %arg14[%c1_44, %c1_45, %c128_46] : memref<6x6x512xf32, #tpu.memory_space<vmem>>, vector<4x4x128xf32>
    tpu.vector_store %arg14[%c1_44, %c1_45, %c128_46], %68 {strides = array<i32>} : memref<6x6x512xf32, #tpu.memory_space<vmem>>, vector<4x4x128xf32>,
    %70 = vector.extract_strided_slice %63 {offsets = [32, 0], sizes = [16, 128], strides = [1, 1]} : vector<64x128xf32> to vector<16x128xf32>
    %71 = vector.shape_cast %70 : vector<16x128xf32> to vector<4x4x128xf32>
    %c1_47 = arith.constant 1 : index
    %c1_48 = arith.constant 1 : index
    %c256_49 = arith.constant 256 : index
    %72 = vector.load %arg14[%c1_47, %c1_48, %c256_49] : memref<6x6x512xf32, #tpu.memory_space<vmem>>, vector<4x4x128xf32>
    tpu.vector_store %arg14[%c1_47, %c1_48, %c256_49], %71 {strides = array<i32>} : memref<6x6x512xf32, #tpu.memory_space<vmem>>, vector<4x4x128xf32>,
    %73 = vector.extract_strided_slice %63 {offsets = [48, 0], sizes = [16, 128], strides = [1, 1]} : vector<64x128xf32> to vector<16x128xf32>
    %74 = vector.shape_cast %73 : vector<16x128xf32> to vector<4x4x128xf32>
    %c1_50 = arith.constant 1 : index
    %c1_51 = arith.constant 1 : index
    %c384_52 = arith.constant 384 : index
    %75 = vector.load %arg14[%c1_50, %c1_51, %c384_52] : memref<6x6x512xf32, #tpu.memory_space<vmem>>, vector<4x4x128xf32>
    tpu.vector_store %arg14[%c1_50, %c1_51, %c384_52], %74 {strides = array<i32>} : memref<6x6x512xf32, #tpu.memory_space<vmem>>, vector<4x4x128xf32>,
    %c0_53 = arith.constant 0 : index
    %c0_54 = arith.constant 0 : index
    %c0_55 = arith.constant 0 : index
    %76 = vector.load %arg14[%c0_53, %c0_54, %c0_55] : memref<6x6x512xf32, #tpu.memory_space<vmem>>, vector<6x6x512xf32>
    %77 = vector.extract_strided_slice %76 {offsets = [0, 0, 0], sizes = [4, 4, 512], strides = [1, 1, 1]} : vector<6x6x512xf32> to vector<4x4x512xf32>
    %78 = vector.shape_cast %77 : vector<4x4x512xf32> to vector<16x512xf32>
    %79 = vector.extract_strided_slice %76 {offsets = [0, 1, 0], sizes = [4, 4, 512], strides = [1, 1, 1]} : vector<6x6x512xf32> to vector<4x4x512xf32>
    %80 = vector.shape_cast %79 : vector<4x4x512xf32> to vector<16x512xf32>
    %81 = vector.extract_strided_slice %76 {offsets = [0, 2, 0], sizes = [4, 4, 512], strides = [1, 1, 1]} : vector<6x6x512xf32> to vector<4x4x512xf32>
    %82 = vector.shape_cast %81 : vector<4x4x512xf32> to vector<16x512xf32>
    %83 = vector.extract_strided_slice %76 {offsets = [1, 0, 0], sizes = [4, 4, 512], strides = [1, 1, 1]} : vector<6x6x512xf32> to vector<4x4x512xf32>
    %84 = vector.shape_cast %83 : vector<4x4x512xf32> to vector<16x512xf32>
    %85 = vector.extract_strided_slice %76 {offsets = [1, 1, 0], sizes = [4, 4, 512], strides = [1, 1, 1]} : vector<6x6x512xf32> to vector<4x4x512xf32>
    %86 = vector.shape_cast %85 : vector<4x4x512xf32> to vector<16x512xf32>
    %87 = vector.extract_strided_slice %76 {offsets = [1, 2, 0], sizes = [4, 4, 512], strides = [1, 1, 1]} : vector<6x6x512xf32> to vector<4x4x512xf32>
    %88 = vector.shape_cast %87 : vector<4x4x512xf32> to vector<16x512xf32>
    %89 = vector.extract_strided_slice %76 {offsets = [2, 0, 0], sizes = [4, 4, 512], strides = [1, 1, 1]} : vector<6x6x512xf32> to vector<4x4x512xf32>
    %90 = vector.shape_cast %89 : vector<4x4x512xf32> to vector<16x512xf32>
    %91 = vector.extract_strided_slice %76 {offsets = [2, 1, 0], sizes = [4, 4, 512], strides = [1, 1, 1]} : vector<6x6x512xf32> to vector<4x4x512xf32>
    %92 = vector.shape_cast %91 : vector<4x4x512xf32> to vector<16x512xf32>
    %93 = vector.extract_strided_slice %76 {offsets = [2, 2, 0], sizes = [4, 4, 512], strides = [1, 1, 1]} : vector<6x6x512xf32> to vector<4x4x512xf32>
    %94 = vector.shape_cast %93 : vector<4x4x512xf32> to vector<16x512xf32>
    %95 = tpu.concatenate %78, %80, %82, %84, %86, %88, %90, %92, %94 in 1 : vector<16x512xf32>, vector<16x512xf32>, vector<16x512xf32>, vector<16x512xf32>, vector<16x512xf32>, vector<16x512xf32>, vector<16x512xf32>, vector<16x512xf32>, vector<16x512xf32> -> vector<16x4608xf32>
    %96 = arith.truncf %95 : vector<16x4608xf32> to vector<16x4608xbf16>
    %c0_56 = arith.constant 0 : index
    %c0_57 = arith.constant 0 : index
    %97 = vector.load %arg6[%c0_56, %c0_57] : memref<4608x128xbf16, #tpu.memory_space<vmem>>, vector<4608x128xbf16>
    %cst_58 = arith.constant dense<0.000000e+00> : vector<16x128xf32>
    %98 = tpu.matmul %96, %97, %cst_58 {dimension_numbers = #tpu.dot_dimension_numbers<[1], [0], [0], [1], [0, 0, 1, 1], [], []>} : vector<16x4608xbf16>, vector<4608x128xbf16>, vector<16x128xf32> -> vector<16x128xf32>
    %c0_59 = arith.constant 0 : index
    %c0_60 = arith.constant 0 : index
    %99 = vector.load %arg7[%c0_59, %c0_60] : memref<1x128xf32, #tpu.memory_space<vmem>>, vector<1x128xf32>
    %100 = vector.broadcast %99 : vector<1x128xf32> to vector<16x128xf32>
    %101 = arith.addf %98, %100 : vector<16x128xf32>
    %cst_61 = arith.constant 0.000000e+00 : f32
    %102 = vector.broadcast %cst_61 : f32 to vector<16x128xf32>
    %103 = arith.cmpf oge, %101, %102 : vector<16x128xf32>
    %cst_62 = arith.constant 0.00999999977 : f32
    %104 = vector.broadcast %cst_62 : f32 to vector<16x128xf32>
    %105 = arith.mulf %104, %101 : vector<16x128xf32>
    %106 = arith.select %103, %101, %105 : vector<16x128xi1>, vector<16x128xf32>
    %c0_63 = arith.constant 0 : index
    %c0_64 = arith.constant 0 : index
    %107 = vector.load %arg11[%c0_63, %c0_64] : memref<16x16xbf16, #tpu.memory_space<vmem>>, vector<16x16xbf16>
    %108 = arith.truncf %106 : vector<16x128xf32> to vector<16x128xbf16>
    %cst_65 = arith.constant dense<0.000000e+00> : vector<16x128xf32>
    %109 = tpu.matmul %107, %108, %cst_65 {dimension_numbers = #tpu.dot_dimension_numbers<[1], [0], [0], [1], [0, 0, 1, 1], [], []>} : vector<16x16xbf16>, vector<16x128xbf16>, vector<16x128xf32> -> vector<16x128xf32>
    %110 = vector.extract_strided_slice %109 {offsets = [0, 0], sizes = [4, 128], strides = [1, 1]} : vector<16x128xf32> to vector<4x128xf32>
    %111 = vector.shape_cast %110 : vector<4x128xf32> to vector<2x2x128xf32>
    %c1_66 = arith.constant 1 : index
    %c1_67 = arith.constant 1 : index
    %c0_68 = arith.constant 0 : index
    %112 = vector.load %arg15[%c1_66, %c1_67, %c0_68] : memref<4x4x512xf32, #tpu.memory_space<vmem>>, vector<2x2x128xf32>
    tpu.vector_store %arg15[%c1_66, %c1_67, %c0_68], %111 {strides = array<i32>} : memref<4x4x512xf32, #tpu.memory_space<vmem>>, vector<2x2x128xf32>,
    %113 = vector.extract_strided_slice %109 {offsets = [4, 0], sizes = [4, 128], strides = [1, 1]} : vector<16x128xf32> to vector<4x128xf32>
    %114 = vector.shape_cast %113 : vector<4x128xf32> to vector<2x2x128xf32>
    %c1_69 = arith.constant 1 : index
    %c1_70 = arith.constant 1 : index
    %c128_71 = arith.constant 128 : index
    %115 = vector.load %arg15[%c1_69, %c1_70, %c128_71] : memref<4x4x512xf32, #tpu.memory_space<vmem>>, vector<2x2x128xf32>
    tpu.vector_store %arg15[%c1_69, %c1_70, %c128_71], %114 {strides = array<i32>} : memref<4x4x512xf32, #tpu.memory_space<vmem>>, vector<2x2x128xf32>,
    %116 = vector.extract_strided_slice %109 {offsets = [8, 0], sizes = [4, 128], strides = [1, 1]} : vector<16x128xf32> to vector<4x128xf32>
    %117 = vector.shape_cast %116 : vector<4x128xf32> to vector<2x2x128xf32>
    %c1_72 = arith.constant 1 : index
    %c1_73 = arith.constant 1 : index
    %c256_74 = arith.constant 256 : index
    %118 = vector.load %arg15[%c1_72, %c1_73, %c256_74] : memref<4x4x512xf32, #tpu.memory_space<vmem>>, vector<2x2x128xf32>
    tpu.vector_store %arg15[%c1_72, %c1_73, %c256_74], %117 {strides = array<i32>} : memref<4x4x512xf32, #tpu.memory_space<vmem>>, vector<2x2x128xf32>,
    %119 = vector.extract_strided_slice %109 {offsets = [12, 0], sizes = [4, 128], strides = [1, 1]} : vector<16x128xf32> to vector<4x128xf32>
    %120 = vector.shape_cast %119 : vector<4x128xf32> to vector<2x2x128xf32>
    %c1_75 = arith.constant 1 : index
    %c1_76 = arith.constant 1 : index
    %c384_77 = arith.constant 384 : index
    %121 = vector.load %arg15[%c1_75, %c1_76, %c384_77] : memref<4x4x512xf32, #tpu.memory_space<vmem>>, vector<2x2x128xf32>
    tpu.vector_store %arg15[%c1_75, %c1_76, %c384_77], %120 {strides = array<i32>} : memref<4x4x512xf32, #tpu.memory_space<vmem>>, vector<2x2x128xf32>,
    %c0_78 = arith.constant 0 : index
    %c0_79 = arith.constant 0 : index
    %c0_80 = arith.constant 0 : index
    %122 = vector.load %arg15[%c0_78, %c0_79, %c0_80] : memref<4x4x512xf32, #tpu.memory_space<vmem>>, vector<4x4x512xf32>
    %123 = vector.extract_strided_slice %122 {offsets = [0, 0, 0], sizes = [2, 2, 512], strides = [1, 1, 1]} : vector<4x4x512xf32> to vector<2x2x512xf32>
    %124 = vector.shape_cast %123 : vector<2x2x512xf32> to vector<4x512xf32>
    %125 = vector.extract_strided_slice %122 {offsets = [0, 1, 0], sizes = [2, 2, 512], strides = [1, 1, 1]} : vector<4x4x512xf32> to vector<2x2x512xf32>
    %126 = vector.shape_cast %125 : vector<2x2x512xf32> to vector<4x512xf32>
    %127 = vector.extract_strided_slice %122 {offsets = [0, 2, 0], sizes = [2, 2, 512], strides = [1, 1, 1]} : vector<4x4x512xf32> to vector<2x2x512xf32>
    %128 = vector.shape_cast %127 : vector<2x2x512xf32> to vector<4x512xf32>
    %129 = vector.extract_strided_slice %122 {offsets = [1, 0, 0], sizes = [2, 2, 512], strides = [1, 1, 1]} : vector<4x4x512xf32> to vector<2x2x512xf32>
    %130 = vector.shape_cast %129 : vector<2x2x512xf32> to vector<4x512xf32>
    %131 = vector.extract_strided_slice %122 {offsets = [1, 1, 0], sizes = [2, 2, 512], strides = [1, 1, 1]} : vector<4x4x512xf32> to vector<2x2x512xf32>
    %132 = vector.shape_cast %131 : vector<2x2x512xf32> to vector<4x512xf32>
    %133 = vector.extract_strided_slice %122 {offsets = [1, 2, 0], sizes = [2, 2, 512], strides = [1, 1, 1]} : vector<4x4x512xf32> to vector<2x2x512xf32>
    %134 = vector.shape_cast %133 : vector<2x2x512xf32> to vector<4x512xf32>
    %135 = vector.extract_strided_slice %122 {offsets = [2, 0, 0], sizes = [2, 2, 512], strides = [1, 1, 1]} : vector<4x4x512xf32> to vector<2x2x512xf32>
    %136 = vector.shape_cast %135 : vector<2x2x512xf32> to vector<4x512xf32>
    %137 = vector.extract_strided_slice %122 {offsets = [2, 1, 0], sizes = [2, 2, 512], strides = [1, 1, 1]} : vector<4x4x512xf32> to vector<2x2x512xf32>
    %138 = vector.shape_cast %137 : vector<2x2x512xf32> to vector<4x512xf32>
    %139 = vector.extract_strided_slice %122 {offsets = [2, 2, 0], sizes = [2, 2, 512], strides = [1, 1, 1]} : vector<4x4x512xf32> to vector<2x2x512xf32>
    %140 = vector.shape_cast %139 : vector<2x2x512xf32> to vector<4x512xf32>
    %141 = tpu.concatenate %124, %126, %128, %130, %132, %134, %136, %138, %140 in 1 : vector<4x512xf32>, vector<4x512xf32>, vector<4x512xf32>, vector<4x512xf32>, vector<4x512xf32>, vector<4x512xf32>, vector<4x512xf32>, vector<4x512xf32>, vector<4x512xf32> -> vector<4x4608xf32>
    %142 = arith.truncf %141 : vector<4x4608xf32> to vector<4x4608xbf16>
    %c0_81 = arith.constant 0 : index
    %c0_82 = arith.constant 0 : index
    %143 = vector.load %arg8[%c0_81, %c0_82] : memref<4608x128xbf16, #tpu.memory_space<vmem>>, vector<4608x128xbf16>
    %cst_83 = arith.constant dense<0.000000e+00> : vector<4x128xf32>
    %144 = tpu.matmul %142, %143, %cst_83 {dimension_numbers = #tpu.dot_dimension_numbers<[1], [0], [0], [1], [0, 0, 1, 1], [], []>} : vector<4x4608xbf16>, vector<4608x128xbf16>, vector<4x128xf32> -> vector<4x128xf32>
    %c0_84 = arith.constant 0 : index
    %c0_85 = arith.constant 0 : index
    %145 = vector.load %arg9[%c0_84, %c0_85] : memref<1x128xf32, #tpu.memory_space<vmem>>, vector<1x128xf32>
    %146 = vector.broadcast %145 : vector<1x128xf32> to vector<4x128xf32>
    %147 = arith.addf %144, %146 : vector<4x128xf32>
    %c0_86 = arith.constant 0 : index
    %c0_87 = arith.constant 0 : index
    %c0_88 = arith.constant 0 : index
    %148 = vector.load %arg12[%c0_86, %c0_87, %c0_88] : memref<1x4x128xf32, #tpu.memory_space<vmem>>, vector<1x4x128xf32>
    %149 = vector.shape_cast %148 : vector<1x4x128xf32> to vector<4x128xf32>
    %150 = vector.shape_cast %147 : vector<4x128xf32> to vector<1x4x128xf32>
    tpu.vector_store %arg12[%c0_86, %c0_87, %c0_88], %150 {strides = array<i32>} : memref<1x4x128xf32, #tpu.memory_space<vmem>>, vector<1x4x128xf32>,
    return
  }
  func.func @transform_0(%arg0: i32) -> (i32, i32, i32) {
    %c0_i32 = arith.constant 0 : i32
    %c0_i32_0 = arith.constant 0 : i32
    %c0_i32_1 = arith.constant 0 : i32
    return %arg0, %c0_i32, %c0_i32_0 : i32, i32, i32
  }
  func.func @transform_1(%arg0: i32) -> (i32, i32) {
    %c0_i32 = arith.constant 0 : i32
    %c0_i32_0 = arith.constant 0 : i32
    %c0_i32_1 = arith.constant 0 : i32
    return %c0_i32, %c0_i32_0 : i32, i32
  }
  func.func @transform_2(%arg0: i32) -> (i32, i32) {
    %c0_i32 = arith.constant 0 : i32
    %c0_i32_0 = arith.constant 0 : i32
    %c0_i32_1 = arith.constant 0 : i32
    return %c0_i32, %c0_i32_0 : i32, i32
  }
  func.func @transform_3(%arg0: i32) -> (i32, i32) {
    %c0_i32 = arith.constant 0 : i32
    %c0_i32_0 = arith.constant 0 : i32
    %c0_i32_1 = arith.constant 0 : i32
    return %c0_i32, %c0_i32_0 : i32, i32
  }
  func.func @transform_4(%arg0: i32) -> (i32, i32) {
    %c0_i32 = arith.constant 0 : i32
    %c0_i32_0 = arith.constant 0 : i32
    %c0_i32_1 = arith.constant 0 : i32
    return %c0_i32, %c0_i32_0 : i32, i32
  }
  func.func @transform_5(%arg0: i32) -> (i32, i32) {
    %c0_i32 = arith.constant 0 : i32
    %c0_i32_0 = arith.constant 0 : i32
    %c0_i32_1 = arith.constant 0 : i32
    return %c0_i32, %c0_i32_0 : i32, i32
  }
  func.func @transform_6(%arg0: i32) -> (i32, i32) {
    %c0_i32 = arith.constant 0 : i32
    %c0_i32_0 = arith.constant 0 : i32
    %c0_i32_1 = arith.constant 0 : i32
    return %c0_i32, %c0_i32_0 : i32, i32
  }
  func.func @transform_7(%arg0: i32) -> (i32, i32) {
    %c0_i32 = arith.constant 0 : i32
    %c0_i32_0 = arith.constant 0 : i32
    %c0_i32_1 = arith.constant 0 : i32
    return %c0_i32, %c0_i32_0 : i32, i32
  }
  func.func @transform_8(%arg0: i32) -> (i32, i32) {
    %c0_i32 = arith.constant 0 : i32
    %c0_i32_0 = arith.constant 0 : i32
    %c0_i32_1 = arith.constant 0 : i32
    return %c0_i32, %c0_i32_0 : i32, i32
  }
  func.func @transform_9(%arg0: i32) -> (i32, i32) {
    %c0_i32 = arith.constant 0 : i32
    %c0_i32_0 = arith.constant 0 : i32
    %c0_i32_1 = arith.constant 0 : i32
    return %c0_i32, %c0_i32_0 : i32, i32
  }
  func.func @transform_10(%arg0: i32) -> (i32, i32) {
    %c0_i32 = arith.constant 0 : i32
    %c0_i32_0 = arith.constant 0 : i32
    %c0_i32_1 = arith.constant 0 : i32
    return %c0_i32, %c0_i32_0 : i32, i32
  }
  func.func @transform_11(%arg0: i32) -> (i32, i32, i32) {
    %c0_i32 = arith.constant 0 : i32
    %c0_i32_0 = arith.constant 0 : i32
    %c0_i32_1 = arith.constant 0 : i32
    return %arg0, %c0_i32, %c0_i32_0 : i32, i32, i32
  }
}

</mosaic_0001>

<bundles_post_ra>
// kernel: img2embed_forward.1
= control target key start
LH: loop header
LB: loop body
LE: loop exit
PB: predicated region body
PF: predicated region fallthrough
CT: control target
= control target key end

     0   :  { %s21018_s0 = inlined_call_operand.vmem [shape: bf16[2,256,128], index: 0, kind: input, shape index: {}]   ;;  %s21019_s1 = inlined_call_operand.vmem [shape: bf16[128,128], index: 1, kind: input, shape index: {}]   ;;  %s21020_s2 = inlined_call_operand.vmem [shape: f32[1,128], index: 2, kind: input, shape index: {}]   ;;  %s21021_s3 = inlined_call_operand.vmem [shape: bf16[4608,128], index: 3, kind: input, shape index: {}]   ;;  %s21022_s4 = inlined_call_operand.vmem [shape: f32[1,128], index: 4, kind: input, shape index: {}]   ;;  %s21023_s5 = inlined_call_operand.vmem [shape: bf16[4608,128], index: 5, kind: input, shape index: {}]   ;;  %s21024_s6 = inlined_call_operand.vmem [shape: f32[1,128], index: 6, kind: input, shape index: {}]   ;;  %s21025_s7 = inlined_call_operand.vmem [shape: bf16[4608,128], index: 7, kind: input, shape index: {}]   ;;  %s21026_s8 = inlined_call_operand.vmem [shape: f32[1,128], index: 8, kind: input, shape index: {}]   ;;  %s21027_s9 = inlined_call_operand.vmem [shape: bf16[64,64], index: 9, kind: input, shape index: {}]   ;;  %s21028_s10 = inlined_call_operand.vmem [shape: bf16[16,16], index: 10, kind: input, shape index: {}]   ;;  %s21029_s11 = inlined_call_operand.hbm [shape: f32[2,4,128], index: 11, kind: output, shape index: {}]  }
   0x1   :  { %21115 = sst [smem:[#allocation69_spill]] %s21018_s0 }
   0x2   :  { %16 = vsyncpa [#allocation6], 0 }
   0x3   :  { %18 = vsyncpa [#allocation6 + $0x1], 0  ;;  %s16087_s17 = smov 0   ;;  %s16089_s18 = smov 0  }
   0x4   :  { %s16091_s19 = smov 0   ;;  %s16093_s20 = smov 0  }
   0x5 LB: > { %s16108_s21 = sadd.s32 4294967295, %s16021_s20   ;;  %s12382_s22 = sadd.s32 4294967294, %s16021_s20   ;;  %s16021_s20 = sphi %s16093_s20, %s21331_s20   ;;  %s16017_s19 = sphi %s16091_s19, %s21330_s19   ;;  %s16013_s18 = sphi %s16089_s18, %s21329_s18   ;;  %s16009_s17 = sphi %s16087_s17, %s21328_s17  }
   0x6   : > { %s16112_s23 = sadd.s32 1, %s16021_s20   ;;  %s267_s24 = sadd.s32 1, %s16017_s19 }
   0x7   : > { %s264_s25 = ssub.s32 %s16021_s20, %s16112_s23  ;;  %p277_p0 = scmp.ne.s32.totalorder %s16017_s19, %s16013_s18 }
   0x8   : > { %p265_p1 = scmp.eq.s32.totalorder %s264_s25, 0  ;;  %p278_p2 = scmp.eq.s32.totalorder %s16108_s21, 1 }
   0x9   : > { %p283_p3 = scmp.ne.s32.totalorder %s16013_s18, %s16009_s17  ;;  %p284_p4 = scmp.eq.s32.totalorder %s12382_s22, 1 }
   0xa   : > { %s16123_s26 = scalar_select %p265_p1, %s16017_s19, %s267_s24  }
   0xb   : > { %p16125_p5 = por %p278_p2, %p277_p0  ;;  %p16129_p6 = por %p284_p4, %p283_p3 }
   0xc   : > { %p12385_p7 = scmp.ge.s32.totalorder %s16021_s20, 1  ;;  %p340_p8 = scmp.lt.s32.totalorder %s16021_s20, 3 }
   0xe   : > { %p341_p9 = pnand %p12385_p7, %p340_p8 }
  0x10   : > { %344 = sbr.rel (%p341_p9) target bundleno = 2305 (0x901), region = 64 }
  0x17   : > { %v16138_v0 = vld [vmem:[%s21019_s1] sm:$0xff]   ;;  %p380_p10 = scmp.lt.s32.totalorder %s16108_s21, 1  ;;  %v16144_v1 = vld [vmem:[%s21019_s1 + $0x8] sm:$0xff]   ;;  %v16023_v2 = vmov 0.0   ;;  %v15024_v3 = vld [vmem:[%s21019_s1 + $0x10] sm:$0xff]   ;;  %s21118_s0 = sld [smem:[#allocation69_spill]] }
  0x18   : > { %14910 = vmatprep.subr.bf16.mxu0 %v16138_v0  ;;  %410 = vst [vmem:[#allocation2 + $0xc0] sm:$0xff] %v16023_v2  ;;  %414 = vst [vmem:[#allocation2 + $0xe0] sm:$0x3] %v16023_v2  ;;  %v15025_v4 = vld [vmem:[%s21019_s1 + $0x18] sm:$0xff]   ;;  %v15026_v6 = vld [vmem:[%s21019_s1 + $0x20] sm:$0xff]   ;;  %vm1259_vm4 = vcmask 1046528  }
  0x19   : > { %s16148_s14 = scalar_select %p380_p10, %s16108_s21, 1  ;;  %386 = vst [vmem:[#allocation2] sm:$0xff] %v16023_v2  ;;  %390 = vst [vmem:[#allocation2 + $0x20] sm:$0x3] %v16023_v2  ;;  %14911 = vmatpush3.bf16.msra.mxu0 %v16138_v0  ;;  %v15027_v7 = vld [vmem:[%s21019_s1 + $0x28] sm:$0xff]   ;;  %v15028_v8 = vld [vmem:[%s21019_s1 + $0x30] sm:$0xff]  }
  0x1a   : > { %391 = vst [vmem:[#allocation2 + $0x28] sm:$0x3] %v16023_v2  ;;  %392 = vst [vmem:[#allocation2 + $0x30] sm:$0x3] %v16023_v2  ;;  %14912 = vmatprep.subr.bf16.mxu0 %v16144_v1  ;;  %v15029_v9 = vld [vmem:[%s21019_s1 + $0x38] sm:$0xff]   ;;  %v15046_v25 = vld [vmem:[%s21021_s3 + $0x40] sm:$0xff]  }
  0x1b   : > { %393 = vst [vmem:[#allocation2 + $0x38] sm:$0x3] %v16023_v2  ;;  %394 = vst [vmem:[#allocation2 + $0x40] sm:$0xff] %v16023_v2  ;;  %s13363_s22 = sshll.u32 %s16148_s14, 7  ;;  %v15047_v26 = vld [vmem:[%s21021_s3] sm:$0xff]   ;;  %13388 = vmatprep.subr.bf16.mxu1 %v15046_v25  ;;  %v15049_v28 = vld [vmem:[%s21021_s3 + $0x48] sm:$0xff]  }
  0x1c   : > { %395 = vst [vmem:[#allocation2 + $0x48] sm:$0xff] %v16023_v2  ;;  %396 = vst [vmem:[#allocation2 + $0x50] sm:$0xff] %v16023_v2  ;;  %13389 = vmatpush3.bf16.msra.mxu1 %v15047_v26  ;;  %v15048_v27 = vld [vmem:[%s21021_s3 + $0x140] sm:$0xff]   ;;  %v15051_v30 = vld [vmem:[%s21021_s3 + $0x8] sm:$0xff]   ;;  %s377_s24 = sand.u32 1, %s16013_s18  }
  0x1d   : > { %397 = vst [vmem:[#allocation2 + $0x58] sm:$0xff] %v16023_v2  ;;  %398 = vst [vmem:[#allocation2 + $0x60] sm:$0x3] %v16023_v2  ;;  %s16264_s29 = scalar_lea.vmem %s21118_s0, %s13363_s22  ;;  %14913 = vmatpush3.bf16.msra.mxu0 %v16144_v1  ;;  %v15050_v29 = vld [vmem:[%s21021_s3 + $0x100] sm:$0xff]   ;;  %13390 = vmatprep.subr.bf16.mxu1 %v15049_v28  ;;  %v15052_v31 = vld [vmem:[%s21021_s3 + $0x148] sm:$0xff]   ;;  %s12386_s25 = sshll.u32 %s377_s24, 2 }
  0x1e   : > { %399 = vst [vmem:[#allocation2 + $0x68] sm:$0x3] %v16023_v2  ;;  %400 = vst [vmem:[#allocation2 + $0x70] sm:$0x3] %v16023_v2  ;;  %14914 = vmatprep.subr.bf16.mxu0 %v15024_v3  ;;  %v15030_v5 = vld [vmem:[%s16264_s29] sm:$0xff]   ;;  %v15031_v10 = vld [vmem:[%s16264_s29 + $0x8] sm:$0xff]  }
  0x1f   : > { %401 = vst [vmem:[#allocation2 + $0x78] sm:$0x3] %v16023_v2  ;;  %402 = vst [vmem:[#allocation2 + $0x80] sm:$0xff] %v16023_v2  ;;  %14926 = vmatprep.mubr.bf16.mxu0 %v15030_v5  ;;  %v15032_v11 = vld [vmem:[%s16264_s29 + $0x10] sm:$0xff]   ;;  %v15033_v12 = vld [vmem:[%s16264_s29 + $0x18] sm:$0xff]   ;;  %s379_s30 = scalar_lea.vmem [#allocation5], %s12386_s25 }
  0x20   : > { %403 = vst [vmem:[#allocation2 + $0x88] sm:$0xff] %v16023_v2  ;;  %404 = vst [vmem:[#allocation2 + $0x90] sm:$0xff] %v16023_v2  ;;  %v15034_v13 = vld [vmem:[%s16264_s29 + $0x20] sm:$0xff]   ;;  %v15035_v14 = vld [vmem:[%s16264_s29 + $0x28] sm:$0xff]   ;;  %13391 = vmatpush3.bf16.msra.mxu1 %v15051_v30  ;;  %s12323_s12 = sshll.u32 %s379_s30, 4  ;;  %s12310_s16 = scalar_lea.sflag [#allocation6], %s377_s24  ;;  %s20978_s12 = int_to_ptr.vmem [resolvable:$true] %s12323_s12 }
  0x21   : > { %405 = vst [vmem:[#allocation2 + $0x98] sm:$0xff] %v16023_v2  ;;  %406 = vst [vmem:[#allocation2 + $0xa0] sm:$0x3] %v16023_v2  ;;  %14915 = vmatpush3.bf16.msra.mxu0 %v15024_v3  ;;  %v15036_v15 = vld [vmem:[%s16264_s29 + $0x30] sm:$0xff]   ;;  %v15037_v16 = vld [vmem:[%s16264_s29 + $0x38] sm:$0xff]   ;;  %s15959_s22 = scalar_lea.vmem %s20978_s12, 64 }
  0x22   : > { %407 = vst [vmem:[#allocation2 + $0xa8] sm:$0x3] %v16023_v2  ;;  %408 = vst [vmem:[#allocation2 + $0xb0] sm:$0x3] %v16023_v2  ;;  %14916 = vmatprep.subr.bf16.mxu0 %v15025_v4  ;;  %v15038_v17 = vld [vmem:[%s16264_s29 + $0x40] sm:$0xff]   ;;  %v15039_v18 = vld [vmem:[%s16264_s29 + $0x48] sm:$0xff]   ;;  %p15960_p11 = scmp.ne.s32.totalorder %s20978_s12, %s15959_s22 }
  0x23   : > { %409 = vst [vmem:[#allocation2 + $0xb8] sm:$0x3] %v16023_v2  ;;  %411 = vst [vmem:[#allocation2 + $0xc8] sm:$0xff] %v16023_v2  ;;  %v15040_v19 = vld [vmem:[%s16264_s29 + $0x50] sm:$0xff]   ;;  %v15041_v20 = vld [vmem:[%s16264_s29 + $0x58] sm:$0xff]  }
  0x24   : > { %412 = vst [vmem:[#allocation2 + $0xd0] sm:$0xff] %v16023_v2  ;;  %413 = vst [vmem:[#allocation2 + $0xd8] sm:$0xff] %v16023_v2  ;;  %v15042_v21 = vld [vmem:[%s16264_s29 + $0x60] sm:$0xff]   ;;  %v15043_v22 = vld [vmem:[%s16264_s29 + $0x68] sm:$0xff]   ;;  %p15961_p12 = pnand %p15960_p11, %p16125_p5 }
  0x25   : > { %415 = vst [vmem:[#allocation2 + $0xe8] sm:$0x3] %v16023_v2  ;;  %416 = vst [vmem:[#allocation2 + $0xf0] sm:$0x3] %v16023_v2  ;;  %14917 = vmatpush3.bf16.msra.mxu0 %v15025_v4  ;;  %v15044_v23 = vld [vmem:[%s16264_s29 + $0x70] sm:$0xff]   ;;  %v15045_v24 = vld [vmem:[%s16264_s29 + $0x78] sm:$0xff]  }
  0x26   : > { %417 = vst [vmem:[#allocation2 + $0xf8] sm:$0x3] %v16023_v2  ;;  %418 = vst [vmem:[#allocation2 + $0x100] sm:$0xff] %v16023_v2  ;;  %14918 = vmatprep.subr.bf16.mxu0 %v15026_v6  ;;  %v15053_v32 = vld [vmem:[%s21021_s3 + $0x50] sm:$0xff]   ;;  %v15054_v33 = vld [vmem:[%s21021_s3 + $0x108] sm:$0xff]   ;;  %s13360_s29 = sshll.u32 %s16108_s21, 6  ;;  %p15962_p13 = pneg %p15961_p12 }
  0x27   : > { %419 = vst [vmem:[#allocation2 + $0x108] sm:$0xff] %v16023_v2  ;;  %420 = vst [vmem:[#allocation2 + $0x110] sm:$0xff] %v16023_v2  ;;  %v15055_v34 = vld [vmem:[%s21021_s3 + $0x10] sm:$0xff]   ;;  %13392 = vmatprep.subr.bf16.mxu1 %v15053_v32  ;;  %v15057_v36 = vld [vmem:[%s21021_s3 + $0x58] sm:$0xff]   ;;  %s20976_s15 = scalar_lea.hbm %s21029_s11, %s13360_s29  ;;  %s16026_s21 = smov [#allocation5]  }
  0x28   : > { %421 = vst [vmem:[#allocation2 + $0x118] sm:$0xff] %v16023_v2  ;;  %422 = vst [vmem:[#allocation2 + $0x120] sm:$0x3] %v16023_v2  ;;  %13393 = vmatpush3.bf16.msra.mxu1 %v15055_v34  ;;  %v15056_v35 = vld [vmem:[%s21021_s3 + $0x150] sm:$0xff]   ;;  %v15059_v38 = vld [vmem:[%s21021_s3 + $0x18] sm:$0xff]   ;;  %s15963_s25 = sshll.u32 %s16026_s21, 4  ;;  %s15964_s25 = int_to_ptr.vmem [resolvable:$false] %s15963_s25 }
  0x29   : > { %423 = vst [vmem:[#allocation2 + $0x128] sm:$0x3] %v16023_v2  ;;  %424 = vst [vmem:[#allocation2 + $0x130] sm:$0x3] %v16023_v2  ;;  %14919 = vmatpush3.bf16.msra.mxu0 %v15026_v6  ;;  %v15058_v37 = vld [vmem:[%s21021_s3 + $0x110] sm:$0xff]   ;;  %13394 = vmatprep.subr.bf16.mxu1 %v15057_v36  ;;  %v15060_v39 = vld [vmem:[%s21021_s3 + $0x158] sm:$0xff]   ;;  %p15966_p0 = scmp.lt.s32.totalorder %s20978_s12, %s15964_s25 }
  0x2a   : > { %425 = vst [vmem:[#allocation2 + $0x138] sm:$0x3] %v16023_v2  ;;  %426 = vst [vmem:[#allocation2 + $0x140] sm:$0xff] %v16023_v2  ;;  %14920 = vmatprep.subr.bf16.mxu0 %v15027_v7  ;;  %v15061_v40 = vld [vmem:[%s21021_s3 + $0x60] sm:$0xff]   ;;  %v15062_v41 = vld [vmem:[%s21021_s3 + $0x118] sm:$0xff]   ;;  %s15965_s0 = scalar_lea.vmem %s15964_s25, 128 }
  0x2b   : > { %427 = vst [vmem:[#allocation2 + $0x148] sm:$0xff] %v16023_v2  ;;  %428 = vst [vmem:[#allocation2 + $0x150] sm:$0xff] %v16023_v2  ;;  %v15063_v42 = vld [vmem:[%s21021_s3 + $0x20] sm:$0xff]   ;;  %v15065_v44 = vld [vmem:[%s21021_s3 + $0x68] sm:$0xff]   ;;  %p15967_p1 = scmp.lt.s32.totalorder %s15965_s0, %s15959_s22 }
  0x2c   : > { %429 = vst [vmem:[#allocation2 + $0x158] sm:$0xff] %v16023_v2  ;;  %430 = vst [vmem:[#allocation2 + $0x160] sm:$0x3] %v16023_v2  ;;  %13395 = vmatpush3.bf16.msra.mxu1 %v15059_v38  ;;  %v15064_v43 = vld [vmem:[%s21021_s3 + $0x160] sm:$0xff]   ;;  %v15067_v46 = vld [vmem:[%s21021_s3 + $0x28] sm:$0xff]  }
  0x2d   : > { %431 = vst [vmem:[#allocation2 + $0x168] sm:$0x3] %v16023_v2  ;;  %432 = vst [vmem:[#allocation2 + $0x170] sm:$0x3] %v16023_v2  ;;  %14921 = vmatpush3.bf16.msra.mxu0 %v15027_v7  ;;  %13396 = vmatprep.subr.bf16.mxu1 %v15061_v40  ;;  %v15066_v45 = vld [vmem:[%s21021_s3 + $0x120] sm:$0xff]   ;;  %v15068_v47 = vld [vmem:[%s21021_s3 + $0x168] sm:$0xff]   ;;  %p15968_p2 = por %p15967_p1, %p15966_p0 }
  0x2e   : > { %433 = vst [vmem:[#allocation2 + $0x178] sm:$0x3] %v16023_v2  ;;  %434 = vst [vmem:[#allocation2 + $0x180] sm:$0xff] %v16023_v2  ;;  %14922 = vmatprep.subr.bf16.mxu0 %v15028_v8  ;;  %v15069_v48 = vld [vmem:[%s21021_s3 + $0x70] sm:$0xff]   ;;  %v15070_v49 = vld [vmem:[%s21021_s3 + $0x128] sm:$0xff]  }
  0x2f   : > { %435 = vst [vmem:[#allocation2 + $0x188] sm:$0xff] %v16023_v2  ;;  %436 = vst [vmem:[#allocation2 + $0x190] sm:$0xff] %v16023_v2  ;;  %v15071_v50 = vld [vmem:[%s21021_s3 + $0x30] sm:$0xff]   ;;  %v15073_v52 = vld [vmem:[%s21021_s3 + $0x78] sm:$0xff]   ;;  %p15969_p3 = pnand %p15968_p2, %p15962_p13 }
  0x30   : > { %437 = vst [vmem:[#allocation2 + $0x198] sm:$0xff] %v16023_v2  ;;  %438 = vst [vmem:[#allocation2 + $0x1a0] sm:$0x3] %v16023_v2  ;;  %13397 = vmatpush3.bf16.msra.mxu1 %v15063_v42  ;;  %v15072_v51 = vld [vmem:[%s21021_s3 + $0x170] sm:$0xff]   ;;  %v15075_v54 = vld [vmem:[%s21021_s3 + $0x38] sm:$0xff]  }
  0x31   : > { %439 = vst [vmem:[#allocation2 + $0x1a8] sm:$0x3] %v16023_v2  ;;  %440 = vst [vmem:[#allocation2 + $0x1b0] sm:$0x3] %v16023_v2  ;;  %14923 = vmatpush3.bf16.msra.mxu0 %v15028_v8  ;;  %13398 = vmatprep.subr.bf16.mxu1 %v15065_v44  ;;  %v15074_v53 = vld [vmem:[%s21021_s3 + $0x130] sm:$0xff]   ;;  %v15076_v55 = vld [vmem:[%s21021_s3 + $0x178] sm:$0xff]  }
  0x32   : > { %441 = vst [vmem:[#allocation2 + $0x1b8] sm:$0x3] %v16023_v2  ;;  %442 = vst [vmem:[#allocation2 + $0x1c0] sm:$0xff] %v16023_v2  ;;  %14924 = vmatprep.subr.bf16.mxu0 %v15029_v9  ;;  %v15077_v56 = vld [vmem:[%s21021_s3 + $0xc0] sm:$0xff]   ;;  %v15078_v57 = vld [vmem:[%s21021_s3 + $0x138] sm:$0xff]  }
  0x33   : > { %443 = vst [vmem:[#allocation2 + $0x1c8] sm:$0xff] %v16023_v2  ;;  %444 = vst [vmem:[#allocation2 + $0x1d0] sm:$0xff] %v16023_v2  ;;  %v15080_v58 = vld [vmem:[%s21021_s3 + $0x240] sm:$0xff]  }
  0x34   : > { %445 = vst [vmem:[#allocation2 + $0x1d8] sm:$0xff] %v16023_v2  ;;  %446 = vst [vmem:[#allocation2 + $0x1e0] sm:$0x3] %v16023_v2  ;;  %13399 = vmatpush3.bf16.msra.mxu1 %v15067_v46  ;;  %v16403_v59 = vld [vmem:[%s21020_s2] ss:$0 sm:$0xff] }
  0x35   : > { %447 = vst [vmem:[#allocation2 + $0x1e8] sm:$0x3] %v16023_v2  ;;  %448 = vst [vmem:[#allocation2 + $0x1f0] sm:$0x3] %v16023_v2  ;;  %14925 = vmatpush3.bf16.msra.mxu0 %v15029_v9  ;;  %13400 = vmatprep.subr.bf16.mxu1 %v15069_v48 }
  0x36   : > { %449 = vst [vmem:[#allocation2 + $0x1f8] sm:$0x3] %v16023_v2  ;;  %450 = vst [vmem:[#allocation2 + $0x200] sm:$0xff] %v16023_v2  ;;  %13468 = vmatprep.subr.bf16.mxu0 %v15048_v27 }
  0x37   : > { %451 = vst [vmem:[#allocation2 + $0x208] sm:$0xff] %v16023_v2  ;;  %452 = vst [vmem:[#allocation2 + $0x210] sm:$0xff] %v16023_v2 }
  0x38   : > { %453 = vst [vmem:[#allocation2 + $0x218] sm:$0xff] %v16023_v2  ;;  %454 = vst [vmem:[#allocation2 + $0x220] sm:$0x3] %v16023_v2  ;;  %14927 = vmatmul.mubr.bf16.vlgmr.msra.gmra.mrb[0].mxu0 %v15031_v10  ;;  %13401 = vmatpush3.bf16.msra.mxu1 %v15071_v50 }
  0x39   : > { %455 = vst [vmem:[#allocation2 + $0x228] sm:$0x3] %v16023_v2  ;;  %456 = vst [vmem:[#allocation2 + $0x230] sm:$0x3] %v16023_v2  ;;  %14930 = vmatprep.mubr.bf16.mxu0 %v15032_v11  ;;  %13469 = vmatpush3.bf16.msra.mxu0 %v15050_v29 }
  0x3a   : > { %457 = vst [vmem:[#allocation2 + $0x238] sm:$0x3] %v16023_v2  ;;  %462 = vst [vmem:[#allocation2 + $0x260] sm:$0x3] %v16023_v2  ;;  %13470 = vmatprep.subr.bf16.mxu0 %v15052_v31  ;;  %13402 = vmatprep.subr.bf16.mxu1 %v15073_v52 }
  0x3b   : > { %463 = vst [vmem:[#allocation2 + $0x268] sm:$0x3] %v16023_v2  ;;  %464 = vst [vmem:[#allocation2 + $0x270] sm:$0x3] %v16023_v2 }
  0x3c   : > { %465 = vst [vmem:[#allocation2 + $0x278] sm:$0x3] %v16023_v2  ;;  %466 = vst [vmem:[#allocation3] sm:$0x3f] %v16023_v2  ;;  %13403 = vmatpush3.bf16.msra.mxu1 %v15075_v54 }
  0x3d   : > { %467 = vst [vmem:[#allocation3 + $0x8] sm:$0x3f] %v16023_v2  ;;  %468 = vst [vmem:[#allocation3 + $0x10] sm:$0x3f] %v16023_v2  ;;  %13471 = vmatpush3.bf16.msra.mxu0 %v15054_v33  ;;  %13428 = vmatprep.subr.bf16.mxu1 %v15077_v56 }
  0x3e   : > { %469 = vst [vmem:[#allocation3 + $0x18] sm:$0x3f] %v16023_v2  ;;  %470 = vst [vmem:[#allocation3 + $0x20] sm:$0x3f] %v16023_v2  ;;  %13472 = vmatprep.subr.bf16.mxu0 %v15056_v35 }
  0x3f   : > { %471 = vst [vmem:[#allocation3 + $0x28] sm:$0x3f] %v16023_v2  ;;  %472 = vst [vmem:[#allocation3 + $0x30] sm:$0x3f] %v16023_v2 }
  0x40   : > { %473 = vst [vmem:[#allocation3 + $0x38] sm:$0x3f] %v16023_v2  ;;  %474 = vst [vmem:[#allocation3 + $0x40] sm:$0x3f] %v16023_v2  ;;  %14931 = vmatmul.mubr.bf16.gmra.mrb[4].mxu0 %v15033_v12 }
  0x41   : > { %475 = vst [vmem:[#allocation3 + $0x48] sm:$0x3f] %v16023_v2  ;;  %476 = vst [vmem:[#allocation3 + $0x50] sm:$0x3f] %v16023_v2  ;;  %14934 = vmatprep.mubr.bf16.mxu0 %v15034_v13  ;;  %13473 = vmatpush3.bf16.msra.mxu0 %v15058_v37  ;;  %v16409_v13 = vld [vmem:[#allocation2 + $0xc0] sm:$0xff] }
  0x42   : > { %477 = vst [vmem:[#allocation3 + $0x58] sm:$0x3f] %v16023_v2  ;;  %478 = vst [vmem:[#allocation3 + $0x60] sm:$0x3f] %v16023_v2  ;;  %13474 = vmatprep.subr.bf16.mxu0 %v15060_v39  ;;  %v16425_v39 = vrot.slane %v16409_v13, 2 }
  0x43   : > { %479 = vst [vmem:[#allocation3 + $0x68] sm:$0x3f] %v16023_v2  ;;  %480 = vst [vmem:[#allocation3 + $0x70] sm:$0x3f] %v16023_v2 }
  0x44   : > { %481 = vst [vmem:[#allocation3 + $0x78] sm:$0x3f] %v16023_v2  ;;  %482 = vst [vmem:[#allocation3 + $0x80] sm:$0x3f] %v16023_v2 }
  0x45   : > { %483 = vst [vmem:[#allocation3 + $0x88] sm:$0x3f] %v16023_v2  ;;  %484 = vst [vmem:[#allocation3 + $0x90] sm:$0x3f] %v16023_v2  ;;  %13475 = vmatpush3.bf16.msra.mxu0 %v15062_v41 }
  0x46   : > { %485 = vst [vmem:[#allocation3 + $0x98] sm:$0x3f] %v16023_v2  ;;  %486 = vst [vmem:[#allocation3 + $0xa0] sm:$0x3f] %v16023_v2  ;;  %13476 = vmatprep.subr.bf16.mxu0 %v15064_v43 }
  0x47   : > { %487 = vst [vmem:[#allocation3 + $0xa8] sm:$0x3f] %v16023_v2  ;;  %488 = vst [vmem:[#allocation3 + $0xb0] sm:$0x3f] %v16023_v2 }
  0x48   : > { %489 = vst [vmem:[#allocation3 + $0xb8] sm:$0x3f] %v16023_v2  ;;  %490 = vst [vmem:[#allocation4] sm:$0xff] %v16023_v2  ;;  %14935 = vmatmul.mubr.bf16.gmra.mrb[8].mxu0 %v15035_v14  ;;  %v16412_v14 = vrot.slane %v16409_v13, 1 }
  0x49   : > { %491 = vst [vmem:[#allocation4 + $0x8] sm:$0xff] %v16023_v2  ;;  %492 = vst [vmem:[#allocation4 + $0x10] sm:$0xff] %v16023_v2  ;;  %14938 = vmatprep.mubr.bf16.mxu0 %v15036_v15  ;;  %13477 = vmatpush3.bf16.msra.mxu0 %v15066_v45 }
  0x4a   : > { %493 = vst [vmem:[#allocation4 + $0x18] sm:$0xff] %v16023_v2  ;;  %494 = vst [vmem:[#allocation4 + $0x20] sm:$0xff] %v16023_v2  ;;  %13478 = vmatprep.subr.bf16.mxu0 %v15068_v47 }
  0x4b   : > { %495 = vst [vmem:[#allocation4 + $0x28] sm:$0xff] %v16023_v2  ;;  %496 = vst [vmem:[#allocation4 + $0x30] sm:$0xff] %v16023_v2 }
  0x4c   : > { %497 = vst [vmem:[#allocation4 + $0x38] sm:$0xff] %v16023_v2  ;;  %21119 = vst [vmem:[#allocation8_spill] sm:$0xff] %v16425_v39 }
  0x4d   : > { %13479 = vmatpush3.bf16.msra.mxu0 %v15070_v49 }
  0x4e   : > { %13480 = vmatprep.subr.bf16.mxu0 %v15072_v51 }
  0x50   : > { %14939 = vmatmul.mubr.bf16.gmra.mrb[12].mxu0 %v15037_v16 }
  0x51   : > { %14942 = vmatprep.mubr.bf16.mxu0 %v15038_v17  ;;  %13481 = vmatpush3.bf16.msra.mxu0 %v15074_v53 }
  0x52   : > { %13482 = vmatprep.subr.bf16.mxu0 %v15076_v55 }
  0x55   : > { %13483 = vmatpush3.bf16.msra.mxu0 %v15078_v57 }
  0x56   : > { %13548 = vmatprep.subr.bf16.mxu0 %v15080_v58 }
  0x58   : > { %14943 = vmatmul.mubr.bf16.gmra.mrb[16].mxu0 %v15039_v18  ;;  %v16414_v18 = vld [vmem:[#allocation2 + $0x20] sm:$0x3] }
  0x59   : > { %14946 = vmatprep.mubr.bf16.mxu0 %v15040_v19  ;;  %v1261_v30 = vrot.slane %v16414_v18, 1 }
  0x5b   : > { %v16437_v50 = vsel %vm1259_vm4, %v16412_v14, %v1261_v30 }
  0x60   : > { %14947 = vmatmul.mubr.bf16.gmra.mrb[20].mxu0 %v15041_v20 }
  0x61   : > { %14950 = vmatprep.mubr.bf16.mxu0 %v15042_v21 }
  0x68   : > { %14951 = vmatmul.mubr.bf16.gmra.mrb[24].mxu0 %v15043_v22  ;;  %v16417_v22 = vld [vmem:[#allocation2 + $0x28] sm:$0x3] }
  0x69   : > { %14954 = vmatprep.mubr.bf16.mxu0 %v15044_v23  ;;  %v1264_v33 = vrot.slane %v16417_v22, 1 }
  0x6b   : > { %v16444_v54 = vsel %vm1259_vm4, %v16412_v14, %v1264_v33 }
  0x70   : > { %14955 = vmatmul.mubr.bf16.gmra.mrb[28].mxu0 %v15045_v24 }
 0x10b   : > { %v14928_v60 = vpop.f32.mrb[0].mxu0 }
 0x10c   : > { %v740_v61 = vadd.f32 %v14928_v60, %v16403_v59  ;;  %v731_v62 = vpop.f32.mrb[1].mxu0 }
 0x10d   : > { %v732_v63 = vadd.f32 %v16403_v59, %v731_v62  ;;  %v14929_v0 = vpop.f32.mrb[2].mxu0 }
 0x10e   : > { %vm860_vm0 = vcmp.ge.f32.partialorder %v740_v61, 0.0  ;;  %v892_v1 = vmul.f32 0.01, %v740_v61  ;;  %v743_v2 = vadd.f32 %v14929_v0, %v16403_v59  ;;  %v734_v3 = vpop.f32.mrb[3].mxu0 }
 0x10f   : > { %vm858_vm1 = vcmp.ge.f32.partialorder %v732_v63, 0.0  ;;  %v890_v4 = vmul.f32 0.01, %v732_v63  ;;  %v735_v5 = vadd.f32 %v16403_v59, %v734_v3 }
 0x110   : > { %v924_v6 = vsel %vm860_vm0, %v740_v61, %v892_v1  ;;  %vm861_vm2 = vcmp.ge.f32.partialorder %v743_v2, 0.0  ;;  %v893_v7 = vmul.f32 0.01, %v743_v2 }
 0x111   : > { %v964_v8 = vrot.slane %v924_v6, 7  ;;  %v922_v9 = vsel %vm858_vm1, %v732_v63, %v890_v4  ;;  %vm859_vm3 = vcmp.ge.f32.partialorder %v735_v5, 0.0  ;;  %v891_v10 = vmul.f32 0.01, %v735_v5 }
 0x112   : > { %v962_v11 = vrot.slane %v922_v9, 7  ;;  %v925_v12 = vsel %vm861_vm2, %v743_v2, %v893_v7 }
 0x113   : > { %983 = vst [vmem:[#allocation2 + $0xc0] sm:$0xfe] %v964_v8  ;;  %984 = vst [vmem:[#allocation2 + $0xe0] sm:$0x1] %v964_v8  ;;  %v965_v15 = vrot.slane %v925_v12, 7  ;;  %v923_v16 = vsel %vm859_vm3, %v735_v5, %v891_v10  ;;  %v14932_v17 = vpop.f32.mrb[4].mxu0 }
 0x114   : > { %979 = vst [vmem:[#allocation2 + $0x40] sm:$0xfe] %v962_v11  ;;  %980 = vst [vmem:[#allocation2 + $0x60] sm:$0x1] %v962_v11  ;;  %v963_v19 = vrot.slane %v923_v16, 7  ;;  %v756_v20 = vadd.f32 %v14932_v17, %v16403_v59  ;;  %v747_v21 = vpop.f32.mrb[5].mxu0 }
 0x115   : > { %985 = vst [vmem:[#allocation2 + $0x100] sm:$0xfe] %v965_v15  ;;  %986 = vst [vmem:[#allocation2 + $0x120] sm:$0x1] %v965_v15  ;;  %v748_v23 = vadd.f32 %v16403_v59, %v747_v21  ;;  %v14933_v24 = vpop.f32.mrb[6].mxu0 }
 0x116   : > { %981 = vst [vmem:[#allocation2 + $0x80] sm:$0xfe] %v963_v19  ;;  %982 = vst [vmem:[#allocation2 + $0xa0] sm:$0x1] %v963_v19  ;;  %vm864_vm5 = vcmp.ge.f32.partialorder %v756_v20, 0.0  ;;  %v759_v26 = vadd.f32 %v14933_v24, %v16403_v59  ;;  %v750_v27 = vpop.f32.mrb[7].mxu0 }
 0x117   : > { %v896_v25 = vmul.f32 0.01, %v756_v20  ;;  %vm862_vm6 = vcmp.ge.f32.partialorder %v748_v23, 0.0  ;;  %v894_v28 = vmul.f32 0.01, %v748_v23  ;;  %v751_v29 = vadd.f32 %v16403_v59, %v750_v27 }
 0x118   : > { %vm865_vm7 = vcmp.ge.f32.partialorder %v759_v26, 0.0  ;;  %v897_v32 = vmul.f32 0.01, %v759_v26 }
 0x119   : > { %v928_v31 = vsel %vm864_vm5, %v756_v20, %v896_v25  ;;  %v926_v35 = vsel %vm862_vm6, %v748_v23, %v894_v28  ;;  %vm863_vm8 = vcmp.ge.f32.partialorder %v751_v29, 0.0  ;;  %v895_v36 = vmul.f32 0.01, %v751_v29 }
 0x11a   : > { %v968_v34 = vrot.slane %v928_v31, 7  ;;  %v966_v37 = vrot.slane %v926_v35, 7  ;;  %v929_v38 = vsel %vm865_vm7, %v759_v26, %v897_v32  ;;  %v16431_v45 = vld [vmem:[#allocation2 + $0xc0] sm:$0xff] }
 0x11b   : > { %v969_v40 = vrot.slane %v929_v38, 7  ;;  %v927_v41 = vsel %vm863_vm8, %v751_v29, %v895_v36  ;;  %v14936_v42 = vpop.f32.mrb[8].mxu0  ;;  %v16427_v43 = vld [vmem:[#allocation2 + $0x40] sm:$0xff]  ;;  %v1296_v62 = vrot.slane %v16431_v45, 1 }
 0x11c   : > { %991 = vst [vmem:[#allocation2 + $0x1c0] sm:$0xfe] %v968_v34  ;;  %992 = vst [vmem:[#allocation2 + $0x1e0] sm:$0x1] %v968_v34  ;;  %v16429_v44 = vld [vmem:[#allocation2 + $0x60] sm:$0x3]  ;;  %v772_v47 = vadd.f32 %v14936_v42, %v16403_v59  ;;  %v1597_v20 = vpack.c.bf16 %v16427_v43, %v16409_v13 }
 0x11d   : > { %987 = vst [vmem:[#allocation2 + $0x140] sm:$0xfe] %v966_v37  ;;  %988 = vst [vmem:[#allocation2 + $0x160] sm:$0x1] %v966_v37  ;;  %v967_v46 = vrot.slane %v927_v41, 7  ;;  %v763_v48 = vpop.f32.mrb[9].mxu0 }
 0x11e   : > { %v1272_v49 = vrot.slane %v16427_v43, 1  ;;  %v16439_v51 = vld [vmem:[#allocation2 + $0xe0] sm:$0x3]  ;;  %993 = vst [vmem:[#allocation2 + $0x200] sm:$0xfe] %v969_v40  ;;  %v764_v52 = vadd.f32 %v16403_v59, %v763_v48  ;;  %v14937_v53 = vpop.f32.mrb[10].mxu0 }
 0x11f   : > { %994 = vst [vmem:[#allocation2 + $0x220] sm:$0x1] %v969_v40  ;;  %v1273_v55 = vrot.slane %v16429_v44, 1  ;;  %989 = vst [vmem:[#allocation2 + $0x180] sm:$0xfe] %v967_v46  ;;  %vm868_vm9 = vcmp.ge.f32.partialorder %v772_v47, 0.0  ;;  %v775_v58 = vadd.f32 %v14937_v53, %v16403_v59 }
 0x120   : > { %990 = vst [vmem:[#allocation2 + $0x1a0] sm:$0x1] %v967_v46  ;;  %v900_v57 = vmul.f32 0.01, %v772_v47  ;;  %v766_v60 = vpop.f32.mrb[11].mxu0  ;;  %v16449_v61 = vld [vmem:[#allocation2 + $0x80] sm:$0xff] }
 0x121   : > { %vm866_vm10 = vcmp.ge.f32.partialorder %v764_v52, 0.0  ;;  %v898_v63 = vmul.f32 0.01, %v764_v52  ;;  %v767_v0 = vadd.f32 %v16403_v59, %v766_v60  ;;  %v16453_v1 = vld [vmem:[#allocation2 + $0xa0] sm:$0x3]  ;;  %v1297_v2 = vrot.slane %v16439_v51, 1 }
 0x122   : > { %v932_v3 = vsel %vm868_vm9, %v772_v47, %v900_v57  ;;  %vm869_vm11 = vcmp.ge.f32.partialorder %v775_v58, 0.0  ;;  %v901_v4 = vmul.f32 0.01, %v775_v58  ;;  %v16457_v5 = vsel %vm1259_vm4, %v1272_v49, %v1273_v55  ;;  %v16461_v15 = vld [vmem:[#allocation2 + $0x100] sm:$0xff] }
 0x123   : > { %21120 = vst [vmem:[#allocation9_spill] sm:$0xff] %v16457_v5  ;;  %v1005_v6 = vrot.slane %v932_v3, 7  ;;  %v930_v7 = vsel %vm866_vm10, %v764_v52, %v898_v63  ;;  %vm867_vm12 = vcmp.ge.f32.partialorder %v767_v0, 0.0  ;;  %v899_v8 = vmul.f32 0.01, %v767_v0  ;;  %v14940_v19 = vpop.f32.mrb[12].mxu0 }
 0x124   : > { %v1003_v9 = vrot.slane %v930_v7, 7  ;;  %v933_v10 = vsel %vm869_vm11, %v775_v58, %v901_v4  ;;  %v1284_v11 = vrot.slane %v16449_v61, 1  ;;  %v1285_v12 = vrot.slane %v16453_v1, 1  ;;  %v16469_v23 = vld [vmem:[#allocation2 + $0x120] sm:$0x3]  ;;  %v779_v26 = vpop.f32.mrb[13].mxu0 }
 0x125   : > { %1023 = vst [vmem:[#allocation2 + $0xc8] sm:$0xfe] %v1005_v6  ;;  %1024 = vst [vmem:[#allocation2 + $0xe8] sm:$0x1] %v1005_v6  ;;  %v1006_v16 = vrot.slane %v933_v10, 7  ;;  %v931_v17 = vsel %vm867_vm12, %v767_v0, %v899_v8  ;;  %v16467_v21 = vpack.c.bf16 %v16431_v45, %v16449_v61  ;;  %v788_v25 = vadd.f32 %v14940_v19, %v16403_v59  ;;  %v16477_v29 = vld [vmem:[#allocation2 + $0x140] sm:$0xff] }
 0x126   : > { %1019 = vst [vmem:[#allocation2 + $0x48] sm:$0xfe] %v1003_v9  ;;  %1020 = vst [vmem:[#allocation2 + $0x68] sm:$0x1] %v1003_v9  ;;  %v1004_v24 = vrot.slane %v931_v17, 7  ;;  %v1601_v27 = vpack.c.bf16 %v16457_v5, %v16437_v50  ;;  %v16475_v28 = vsel %vm1259_vm4, %v1284_v11, %v1285_v12  ;;  %v780_v30 = vadd.f32 %v16403_v59, %v779_v26  ;;  %v14941_v31 = vpop.f32.mrb[14].mxu0 }
 0x127   : > { %21121 = vst [vmem:[#allocation10_spill] sm:$0xff] %v16467_v21  ;;  %21122 = vst [vmem:[#allocation11_spill] sm:$0xff] %v16475_v28  ;;  %v16481_v32 = vsel %vm1259_vm4, %v1296_v62, %v1297_v2  ;;  %v16485_v34 = vld [vmem:[#allocation2 + $0x160] sm:$0x3]  ;;  %v1308_v35 = vrot.slane %v16461_v15, 1  ;;  %vm872_vm13 = vcmp.ge.f32.partialorder %v788_v25, 0.0  ;;  %v791_v37 = vadd.f32 %v14941_v31, %v16403_v59 }
 0x128   : > { %1025 = vst [vmem:[#allocation2 + $0x108] sm:$0xfe] %v1006_v16  ;;  %1026 = vst [vmem:[#allocation2 + $0x128] sm:$0x1] %v1006_v16  ;;  %v904_v36 = vmul.f32 0.01, %v788_v25  ;;  %v16499_v63 = vpack.c.bf16 %v16481_v32, %v16475_v28  ;;  %v16503_v0 = vpack.c.bf16 %v16477_v29, %v16461_v15 }
 0x129   : > { %21123 = vst [vmem:[#allocation12_spill] sm:$0xff] %v16481_v32  ;;  %1021 = vst [vmem:[#allocation2 + $0x88] sm:$0xfe] %v1004_v24  ;;  %v782_v38 = vpop.f32.mrb[15].mxu0  ;;  %v1309_v40 = vrot.slane %v16469_v23, 1  ;;  %vm870_vm14 = vcmp.ge.f32.partialorder %v780_v30, 0.0 }
 0x12a   : > { %1022 = vst [vmem:[#allocation2 + $0xa8] sm:$0x1] %v1004_v24  ;;  %v902_v41 = vmul.f32 0.01, %v780_v30  ;;  %v783_v42 = vadd.f32 %v16403_v59, %v782_v38  ;;  %v1320_v46 = vrot.slane %v16477_v29, 1  ;;  %v936_v47 = vsel %vm872_vm13, %v788_v25, %v904_v36  ;;  %21124 = vst [vmem:[#allocation13_spill] sm:$0xff] %v16499_v63 }
 0x12b   : > { %vm873_vm15 = vcmp.ge.f32.partialorder %v791_v37, 0.0  ;;  %v905_v48 = vmul.f32 0.01, %v791_v37  ;;  %v1321_v49 = vrot.slane %v16485_v34, 1  ;;  %v1009_v52 = vrot.slane %v936_v47, 7  ;;  %21125 = vst [vmem:[#allocation14_spill] sm:$0xff] %v16503_v0 }
 0x12c   : > { %v934_v53 = vsel %vm870_vm14, %v780_v30, %v902_v41  ;;  %vm871_vm0 = vcmp.ge.f32.partialorder %v783_v42, 0.0  ;;  %v903_v55 = vmul.f32 0.01, %v783_v42  ;;  %v16493_v60 = vld [vmem:[#allocation2 + $0xc8] sm:$0xff]  ;;  %v14944_v4 = vpop.f32.mrb[16].mxu0  ;;  %v16510_v8 = vsel %vm1259_vm4, %v1308_v35, %v1309_v40  ;;  %v15079_v30 = vld [vmem:[%s21021_s3 + $0x80] sm:$0xff]  }
 0x12d   : > { %v1007_v57 = vrot.slane %v934_v53, 7  ;;  %v937_v58 = vsel %vm873_vm15, %v791_v37, %v905_v48  ;;  %v16495_v62 = vld [vmem:[#allocation2 + $0xe8] sm:$0x3]  ;;  %1031 = vst [vmem:[#allocation2 + $0x1c8] sm:$0xfe] %v1009_v52  ;;  %21126 = vst [vmem:[#allocation15_spill] sm:$0xff] %v16510_v8  ;;  %v16513_v9 = vsel %vm1259_vm4, %v1320_v46, %v1321_v49  ;;  %v804_v11 = vadd.f32 %v14944_v4, %v16403_v59 }
 0x12e   : > { %1032 = vst [vmem:[#allocation2 + $0x1e8] sm:$0x1] %v1009_v52  ;;  %v1010_v2 = vrot.slane %v937_v58, 7  ;;  %v935_v3 = vsel %vm871_vm0, %v783_v42, %v903_v55  ;;  %v16505_v6 = vld [vmem:[#allocation2 + $0x48] sm:$0xff]  ;;  %21127 = vst [vmem:[#allocation16_spill] sm:$0xff] %v16513_v9  ;;  %v795_v12 = vpop.f32.mrb[17].mxu0 }
 0x12f   : > { %v16507_v7 = vld [vmem:[#allocation2 + $0x68] sm:$0x3]  ;;  %1027 = vst [vmem:[#allocation2 + $0x148] sm:$0xfe] %v1007_v57  ;;  %1028 = vst [vmem:[#allocation2 + $0x168] sm:$0x1] %v1007_v57  ;;  %v796_v19 = vadd.f32 %v16403_v59, %v795_v12  ;;  %v1598_v25 = vpack.c.bf16 %v16505_v6, %v16409_v13 }
 0x130   : > { %v1008_v10 = vrot.slane %v935_v3, 7  ;;  %v1275_v16 = vrot.slane %v16505_v6, 1  ;;  %v1299_v17 = vrot.slane %v16493_v60, 1  ;;  %1033 = vst [vmem:[#allocation2 + $0x208] sm:$0xfe] %v1010_v2  ;;  %v14945_v24 = vpop.f32.mrb[18].mxu0 }
 0x131   : > { %1034 = vst [vmem:[#allocation2 + $0x228] sm:$0x1] %v1010_v2  ;;  %v16521_v26 = vld [vmem:[#allocation2 + $0x88] sm:$0xff]  ;;  %v1276_v31 = vrot.slane %v16507_v7, 1  ;;  %v1300_v35 = vrot.slane %v16495_v62, 1  ;;  %vm876_vm1 = vcmp.ge.f32.partialorder %v804_v11, 0.0  ;;  %v807_v37 = vadd.f32 %v14945_v24, %v16403_v59  ;;  %4048 = vmatprep.mubr.bf16.mxu1 %v1598_v25 }
 0x132   : > { %1029 = vst [vmem:[#allocation2 + $0x188] sm:$0xfe] %v1008_v10  ;;  %1030 = vst [vmem:[#allocation2 + $0x1a8] sm:$0x1] %v1008_v10  ;;  %v908_v36 = vmul.f32 0.01, %v804_v11  ;;  %v16531_v40 = vpack.c.bf16 %v16493_v60, %v16521_v26  ;;  %4049 = vmatmul.mubr.bf16.vlgmr.msra.gmra.mrb[0].mxu1 %v1597_v20 }
 0x133   : > { %v798_v38 = vpop.f32.mrb[19].mxu0  ;;  %v15081_v41 = vld [vmem:[%s21021_s3 + $0xc8] sm:$0xff]   ;;  %vm874_vm2 = vcmp.ge.f32.partialorder %v796_v19, 0.0  ;;  %v906_v42 = vmul.f32 0.01, %v796_v19  ;;  %v16538_v47 = vsel %vm1259_vm4, %v1275_v16, %v1276_v31  ;;  %vm877_vm3 = vcmp.ge.f32.partialorder %v807_v37, 0.0  ;;  %13429 = vmatpush3.bf16.msra.mxu1 %v15079_v30 }
 0x134   : > { %21128 = vst [vmem:[#allocation17_spill] sm:$0xff] %v16531_v40  ;;  %v799_v46 = vadd.f32 %v16403_v59, %v798_v38  ;;  %21129 = vst [vmem:[#allocation18_spill] sm:$0xff] %v16538_v47  ;;  %v16540_v48 = vld [vmem:[#allocation2 + $0xa8] sm:$0x3]  ;;  %v940_v49 = vsel %vm876_vm1, %v804_v11, %v908_v36  ;;  %v909_v52 = vmul.f32 0.01, %v807_v37  ;;  %v1602_v53 = vpack.c.bf16 %v16538_v47, %v16444_v54 }
 0x135   : > { %v15082_v55 = vld [vmem:[%s21021_s3 + $0x200] sm:$0xff]   ;;  %v16550_v57 = vld [vmem:[#allocation2 + $0x108] sm:$0xff]  ;;  %v1045_v58 = vrot.slane %v940_v49, 7  ;;  %v938_v2 = vsel %vm874_vm2, %v796_v19, %v906_v42  ;;  %4056 = vmatprep.mubr.bf16.mxu1 %v16531_v40  ;;  %13430 = vmatprep.subr.bf16.mxu1 %v15081_v41  ;;  %v1287_v11 = vrot.slane %v16521_v26, 1  ;;  %v1288_v12 = vrot.slane %v16540_v48, 1  ;;  %v15085_v16 = vld [vmem:[%s21021_s3 + $0xd0] sm:$0xff]  }
 0x136   : > { %vm875_vm5 = vcmp.ge.f32.partialorder %v799_v46, 0.0  ;;  %v907_v3 = vmul.f32 0.01, %v799_v46  ;;  %v15083_v20 = vld [vmem:[%s21021_s3 + $0x88] sm:$0xff]   ;;  %v1043_v4 = vrot.slane %v938_v2, 7  ;;  %v941_v10 = vsel %vm877_vm3, %v807_v37, %v909_v52  ;;  %4178 = vmatprep.mubr.bf16.mxu0 %v1602_v53  ;;  %v14948_v30 = vpop.f32.mrb[20].mxu0 }
 0x137   : > { %v15084_v54 = vld [vmem:[%s21021_s3 + $0x248] sm:$0xff]   ;;  %1063 = vst [vmem:[#allocation2 + $0xd0] sm:$0xfe] %v1045_v58  ;;  %1064 = vst [vmem:[#allocation2 + $0xf0] sm:$0x1] %v1045_v58  ;;  %v1046_v24 = vrot.slane %v941_v10, 7  ;;  %4179 = vmatmul.mubr.bf16.vlgmr.msra.gmra.mrb[32].mxu0 %v1601_v27  ;;  %v16571_v31 = vsel %vm1259_vm4, %v1299_v17, %v1300_v35  ;;  %v820_v42 = vadd.f32 %v14948_v30, %v16403_v59  ;;  %13431 = vmatpush3.bf16.msra.mxu1 %v15083_v20 }
 0x138   : > { %v16564_v19 = vld [vmem:[#allocation2 + $0x128] sm:$0x3]  ;;  %v939_v25 = vsel %vm875_vm5, %v799_v46, %v907_v3  ;;  %21130 = vst [vmem:[#allocation19_spill] sm:$0xff] %v16571_v31  ;;  %v1311_v38 = vrot.slane %v16550_v57, 1  ;;  %1059 = vst [vmem:[#allocation2 + $0x50] sm:$0xfe] %v1043_v4  ;;  %v16580_v46 = vsel %vm1259_vm4, %v1287_v11, %v1288_v12  ;;  %13549 = vmatpush3.bf16.msra.mxu0 %v15082_v55  ;;  %13432 = vmatprep.subr.bf16.mxu1 %v15085_v16 }
 0x139   : > { %v16573_v36 = vld [vmem:[#allocation2 + $0x148] sm:$0xff]  ;;  %1060 = vst [vmem:[#allocation2 + $0x70] sm:$0x1] %v1043_v4  ;;  %v1044_v41 = vrot.slane %v939_v25, 7  ;;  %21131 = vst [vmem:[#allocation20_spill] sm:$0xff] %v16580_v46  ;;  %v811_v50 = vpop.f32.mrb[21].mxu0  ;;  %v16591_v35 = vpack.c.bf16 %v16571_v31, %v16580_v46  ;;  %13550 = vmatprep.subr.bf16.mxu0 %v15084_v54 }
 0x13a   : > { %v16575_v37 = vld [vmem:[#allocation2 + $0x168] sm:$0x3]  ;;  %v16587_v17 = vpack.c.bf16 %v16573_v36, %v16550_v57  ;;  %1065 = vst [vmem:[#allocation2 + $0x110] sm:$0xfe] %v1046_v24  ;;  %1066 = vst [vmem:[#allocation2 + $0x130] sm:$0x1] %v1046_v24  ;;  %v812_v49 = vadd.f32 %v16403_v59, %v811_v50  ;;  %4057 = vmatmul.mubr.bf16.gmra.mrb[4].mxu1 %v16467_v21 }
 0x13b   : > { %v15086_v27 = vld [vmem:[%s21021_s3 + $0x208] sm:$0xff]   ;;  %21133 = vst [vmem:[#allocation22_spill] sm:$0xff] %v16591_v35  ;;  %v14949_v52 = vpop.f32.mrb[22].mxu0  ;;  %v15087_v53 = vld [vmem:[%s21021_s3 + $0x90] sm:$0xff]   ;;  %v15089_v58 = vld [vmem:[%s21021_s3 + $0xd8] sm:$0xff]   ;;  %v1312_v2 = vrot.slane %v16564_v19, 1  ;;  %4186 = vmatprep.mubr.bf16.mxu0 %v16591_v35 }
 0x13c   : > { %21132 = vst [vmem:[#allocation21_spill] sm:$0xff] %v16587_v17  ;;  %v15088_v55 = vld [vmem:[%s21021_s3 + $0x250] sm:$0xff]   ;;  %v1323_v3 = vrot.slane %v16573_v36, 1  ;;  %1061 = vst [vmem:[#allocation2 + $0x90] sm:$0xfe] %v1044_v41  ;;  %vm880_vm6 = vcmp.ge.f32.partialorder %v820_v42, 0.0  ;;  %v823_v54 = vadd.f32 %v14949_v52, %v16403_v59  ;;  %13551 = vmatpush3.bf16.msra.mxu0 %v15086_v27  ;;  %4064 = vmatprep.mubr.bf16.mxu1 %v16587_v17 }
 0x13d   : > { %1062 = vst [vmem:[#allocation2 + $0xb0] sm:$0x1] %v1044_v41  ;;  %v912_v20 = vmul.f32 0.01, %v820_v42  ;;  %v814_v4 = vpop.f32.mrb[23].mxu0  ;;  %v1324_v10 = vrot.slane %v16575_v37, 1  ;;  %v16613_v25 = vsel %vm1259_vm4, %v1311_v38, %v1312_v2  ;;  %13433 = vmatpush3.bf16.msra.mxu1 %v15087_v53  ;;  %13552 = vmatprep.subr.bf16.mxu0 %v15088_v55 }
 0x13e   : > { %v15090_v11 = vld [vmem:[%s21021_s3 + $0x210] sm:$0xff]   ;;  %vm878_vm7 = vcmp.ge.f32.partialorder %v812_v49, 0.0  ;;  %v910_v12 = vmul.f32 0.01, %v812_v49  ;;  %v815_v24 = vadd.f32 %v16403_v59, %v814_v4  ;;  %21134 = vst [vmem:[#allocation23_spill] sm:$0xff] %v16613_v25  ;;  %v15091_v30 = vld [vmem:[%s21021_s3 + $0x98] sm:$0xff]   ;;  %13434 = vmatprep.subr.bf16.mxu1 %v15089_v58 }
 0x13f   : > { %v15092_v16 = vld [vmem:[%s21021_s3 + $0x258] sm:$0xff]   ;;  %v16621_v41 = vld [vmem:[#allocation2 + $0x1c8] sm:$0xff]  ;;  %v944_v50 = vsel %vm880_vm6, %v820_v42, %v912_v20  ;;  %vm881_vm8 = vcmp.ge.f32.partialorder %v823_v54, 0.0  ;;  %v913_v52 = vmul.f32 0.01, %v823_v54  ;;  %v16625_v4 = vsel %vm1259_vm4, %v1323_v3, %v1324_v10  ;;  %v15093_v3 = vld [vmem:[%s21021_s3 + $0xe0] sm:$0xff]   ;;  %4187 = vmatmul.mubr.bf16.gmra.mrb[36].mxu0 %v16499_v63 }
 0x140   : > { %21135 = vst [vmem:[#allocation24_spill] sm:$0xff] %v16625_v4  ;;  %v16627_v38 = vld [vmem:[#allocation2 + $0x188] sm:$0xff]  ;;  %v1049_v33 = vrot.slane %v944_v50, 7  ;;  %v942_v56 = vsel %vm878_vm7, %v812_v49, %v910_v12  ;;  %vm879_vm9 = vcmp.ge.f32.partialorder %v815_v24, 0.0  ;;  %v911_v35 = vmul.f32 0.01, %v815_v24  ;;  %13553 = vmatpush3.bf16.msra.mxu0 %v15090_v11 }
 0x141   : > { %v16629_v2 = vld [vmem:[#allocation2 + $0x1a8] sm:$0x3]  ;;  %v1047_v20 = vrot.slane %v942_v56, 7  ;;  %v945_v21 = vsel %vm881_vm8, %v823_v54, %v913_v52  ;;  %v16637_v27 = vpack.c.bf16 %v16625_v4, %v16613_v25  ;;  %v16644_v49 = vpack.c.bf16 %v16513_v9, %v16510_v8  ;;  %v16646_v10 = vld [vmem:[#allocation2 + $0x180] sm:$0xff]  ;;  %v14952_v55 = vpop.f32.mrb[24].mxu0  ;;  %13435 = vmatpush3.bf16.msra.mxu1 %v15091_v30  ;;  %13554 = vmatprep.subr.bf16.mxu0 %v15092_v16 }
 0x142   : > { %v16633_v42 = vld [vmem:[#allocation2 + $0x1e8] sm:$0x3]  ;;  %1071 = vst [vmem:[#allocation2 + $0x1d0] sm:$0xfe] %v1049_v33  ;;  %1072 = vst [vmem:[#allocation2 + $0x1f0] sm:$0x1] %v1049_v33  ;;  %v943_v53 = vsel %vm879_vm9, %v815_v24, %v911_v35  ;;  %v836_v52 = vadd.f32 %v14952_v55, %v16403_v59  ;;  %13436 = vmatprep.subr.bf16.mxu1 %v15093_v3  ;;  %4065 = vmatmul.mubr.bf16.gmra.mrb[8].mxu1 %v16503_v0 }
 0x143   : > { %21136 = vst [vmem:[#allocation25_spill] sm:$0xff] %v16637_v27  ;;  %21137 = vst [vmem:[#allocation26_spill] sm:$0xff] %v16644_v49  ;;  %v1050_v56 = vrot.slane %v945_v21, 7  ;;  %v1335_v58 = vrot.slane %v16627_v38, 1  ;;  %v1336_v54 = vrot.slane %v16629_v2, 1  ;;  %vm1388_vm10 = vcmask 1045504   ;;  %4194 = vmatprep.mubr.bf16.mxu0 %v16637_v27 }
 0x144   : > { %v16652_v12 = vld [vmem:[#allocation2 + $0x1a0] sm:$0x3]  ;;  %1067 = vst [vmem:[#allocation2 + $0x150] sm:$0xfe] %v1047_v20  ;;  %1068 = vst [vmem:[#allocation2 + $0x170] sm:$0x1] %v1047_v20 }
 0x145   : > { %v1048_v50 = vrot.slane %v943_v53, 7  ;;  %v827_v21 = vpop.f32.mrb[25].mxu0  ;;  %v15094_v33 = vld [vmem:[%s21021_s3 + $0x218] sm:$0xff]   ;;  %v1347_v35 = vrot.slane %v16621_v41, 1  ;;  %v1348_v24 = vrot.slane %v16633_v42, 1  ;;  %v16664_v53 = vpack.c.bf16 %v16621_v41, %v16627_v38  ;;  %v15095_v11 = vld [vmem:[%s21021_s3 + $0xa0] sm:$0xff]  }
 0x146   : > { %1073 = vst [vmem:[#allocation2 + $0x210] sm:$0xfe] %v1050_v56  ;;  %1074 = vst [vmem:[#allocation2 + $0x230] sm:$0x1] %v1050_v56  ;;  %v828_v63 = vadd.f32 %v16403_v59, %v827_v21  ;;  %v14953_v20 = vpop.f32.mrb[26].mxu0  ;;  %v15096_v55 = vld [vmem:[%s21021_s3 + $0x260] sm:$0xff]   ;;  %v16673_v27 = vsel %vm1259_vm4, %v1335_v58, %v1336_v54  ;;  %13555 = vmatpush3.bf16.msra.mxu0 %v15094_v33  ;;  %13437 = vmatpush3.bf16.msra.mxu1 %v15095_v11 }
 0x147   : > { %21138 = vst [vmem:[#allocation27_spill] sm:$0xff] %v16664_v53  ;;  %21139 = vst [vmem:[#allocation28_spill] sm:$0xff] %v16673_v27  ;;  %vm884_vm11 = vcmp.ge.f32.partialorder %v836_v52, 0.0  ;;  %v916_v30 = vmul.f32 0.01, %v836_v52  ;;  %v839_v16 = vadd.f32 %v14953_v20, %v16403_v59  ;;  %v830_v21 = vpop.f32.mrb[27].mxu0  ;;  %v16683_v54 = vsel %vm1259_vm4, %v1347_v35, %v1348_v24  ;;  %4072 = vmatprep.mubr.bf16.mxu1 %v16664_v53 }
 0x148   : > { %1069 = vst [vmem:[#allocation2 + $0x190] sm:$0xfe] %v1048_v50  ;;  %1070 = vst [vmem:[#allocation2 + $0x1b0] sm:$0x1] %v1048_v50  ;;  %v15097_v17 = vld [vmem:[%s21021_s3 + $0xe8] sm:$0xff]   ;;  %v1333_v40 = vrot.slane %v16652_v12, 1  ;;  %v831_v58 = vadd.f32 %v16403_v59, %v830_v21  ;;  %v16692_v8 = vpack.c.bf16 %v16683_v54, %v16673_v27  ;;  %13556 = vmatprep.subr.bf16.mxu0 %v15096_v55  ;;  %4195 = vmatmul.mubr.bf16.gmra.mrb[40].mxu0 %v16644_v49 }
 0x149   : > { %vm882_vm12 = vcmp.ge.f32.partialorder %v828_v63, 0.0  ;;  %v914_v9 = vmul.f32 0.01, %v828_v63  ;;  %21140 = vst [vmem:[#allocation29_spill] sm:$0xff] %v16683_v54  ;;  %v16685_v50 = vld [vmem:[#allocation2 + $0x1c0] sm:$0xff]  ;;  %v948_v20 = vsel %vm884_vm11, %v836_v52, %v916_v30  ;;  %vm885_vm13 = vcmp.ge.f32.partialorder %v839_v16, 0.0  ;;  %13438 = vmatprep.subr.bf16.mxu1 %v15097_v17 }
 0x14a   : > { %v16687_v56 = vld [vmem:[#allocation2 + $0x1e0] sm:$0x3]  ;;  %v917_v3 = vmul.f32 0.01, %v839_v16  ;;  %21141 = vst [vmem:[#allocation30_spill] sm:$0xff] %v16692_v8  ;;  %v1085_v35 = vrot.slane %v948_v20, 7  ;;  %4202 = vmatprep.mubr.bf16.mxu0 %v16692_v8 }
 0x14b   : > { %v15098_v21 = vld [vmem:[%s21021_s3 + $0x220] sm:$0xff]   ;;  %v946_v24 = vsel %vm882_vm12, %v828_v63, %v914_v9  ;;  %vm883_vm14 = vcmp.ge.f32.partialorder %v831_v58, 0.0  ;;  %v915_v32 = vmul.f32 0.01, %v831_v58  ;;  %v15099_v52 = vld [vmem:[%s21021_s3 + $0xa8] sm:$0xff]   ;;  %v15101_v63 = vld [vmem:[%s21021_s3 + $0xf0] sm:$0xff]  }
 0x14c   : > { %v15100_v33 = vld [vmem:[%s21021_s3 + $0x268] sm:$0xff]   ;;  %v1083_v30 = vrot.slane %v946_v24, 7  ;;  %v949_v0 = vsel %vm885_vm13, %v839_v16, %v917_v3  ;;  %v1344_v9 = vrot.slane %v16685_v50, 1  ;;  %v1345_v11 = vrot.slane %v16687_v56, 1  ;;  %1103 = vst [vmem:[#allocation2 + $0xd8] sm:$0xfe] %v1085_v35  ;;  %13557 = vmatpush3.bf16.msra.mxu0 %v15098_v21  ;;  %13439 = vmatpush3.bf16.msra.mxu1 %v15099_v52 }
 0x14d   : > { %v1404_v20 = vrot.slane %v16505_v6, 2  ;;  %1104 = vst [vmem:[#allocation2 + $0xf8] sm:$0x1] %v1085_v35  ;;  %v1086_v53 = vrot.slane %v949_v0, 7  ;;  %v947_v54 = vsel %vm883_vm14, %v831_v58, %v915_v32  ;;  %v14956_v16 = vpop.f32.mrb[28].mxu0  ;;  %v1405_v17 = vrot.slane %v16507_v7, 2  ;;  %13558 = vmatprep.subr.bf16.mxu0 %v15100_v33  ;;  %13440 = vmatprep.subr.bf16.mxu1 %v15101_v63 }
 0x14e   : > { %1099 = vst [vmem:[#allocation2 + $0x58] sm:$0xfe] %v1083_v30  ;;  %1100 = vst [vmem:[#allocation2 + $0x78] sm:$0x1] %v1083_v30  ;;  %v1084_v55 = vrot.slane %v947_v54, 7  ;;  %v852_v3 = vadd.f32 %v14956_v16, %v16403_v59  ;;  %v843_v24 = vpop.f32.mrb[29].mxu0  ;;  %v16727_v21 = vpack.c.bf16 %v16685_v50, %v16646_v10  ;;  %v16742_v35 = vsel %vm1259_vm4, %v1344_v9, %v1345_v11 }
 0x14f   : > { %v15102_v0 = vld [vmem:[%s21021_s3 + $0x228] sm:$0xff]   ;;  %v21142_v32 = vrot.slane %v16417_v22, 2  ;;  %1105 = vst [vmem:[#allocation2 + $0x118] sm:$0xfe] %v1086_v53  ;;  %1106 = vst [vmem:[#allocation2 + $0x138] sm:$0x1] %v1086_v53  ;;  %v844_v54 = vadd.f32 %v16403_v59, %v843_v24  ;;  %v16749_v8 = vsel %vm1388_vm10, %v1404_v20, %v1405_v17 }
 0x150   : > { %21143 = vst [vmem:[#allocation31_spill] sm:$0xff] %v16727_v21  ;;  %v14957_v30 = vpop.f32.mrb[30].mxu0  ;;  %v15103_v22 = vld [vmem:[%s21021_s3 + $0xb0] sm:$0xff]   ;;  %v21144_v16 = vrot.slane %v16646_v10, 1  ;;  %1101 = vst [vmem:[#allocation2 + $0x98] sm:$0xfe] %v1084_v55  ;;  %4073 = vmatmul.mubr.bf16.gmra.mrb[12].mxu1 %v16727_v21  ;;  %13559 = vmatpush3.bf16.msra.mxu0 %v15102_v0 }
 0x151   : > { %v1394_v58 = vsel %vm1388_vm10, %v16425_v39, %v21142_v32  ;;  %v15104_v53 = vld [vmem:[%s21021_s3 + $0x270] sm:$0xff]   ;;  %1102 = vst [vmem:[#allocation2 + $0xb8] sm:$0x1] %v1084_v55  ;;  %vm888_vm15 = vcmp.ge.f32.partialorder %v852_v3, 0.0  ;;  %v920_v52 = vmul.f32 0.01, %v852_v3  ;;  %v855_v33 = vadd.f32 %v14957_v30, %v16403_v59  ;;  %13441 = vmatpush3.bf16.msra.mxu1 %v15103_v22 }
 0x152   : > { %v16735_v32 = vsel %vm1259_vm4, %v21144_v16, %v1333_v40  ;;  %v846_v24 = vpop.f32.mrb[31].mxu0  ;;  %21146 = vst [vmem:[#allocation33_spill] sm:$0xff] %v16742_v35  ;;  %v15105_v40 = vld [vmem:[%s21021_s3 + $0xf8] sm:$0xff]   ;;  %vm886_vm0 = vcmp.ge.f32.partialorder %v844_v54, 0.0  ;;  %v918_v16 = vmul.f32 0.01, %v844_v54  ;;  %13560 = vmatprep.subr.bf16.mxu0 %v15104_v53 }
 0x153   : > { %21145 = vst [vmem:[#allocation32_spill] sm:$0xff] %v16735_v32  ;;  %v847_v7 = vadd.f32 %v16403_v59, %v846_v24  ;;  %v952_v55 = vsel %vm888_vm15, %v852_v3, %v920_v52  ;;  %vm889_vm1 = vcmp.ge.f32.partialorder %v855_v33, 0.0  ;;  %v921_v63 = vmul.f32 0.01, %v855_v33  ;;  %v15106_v11 = vld [vmem:[%s21021_s3 + $0x230] sm:$0xff]   ;;  %v15107_v59 = vld [vmem:[%s21021_s3 + $0xb8] sm:$0xff]   ;;  %13442 = vmatprep.subr.bf16.mxu1 %v15105_v40 }
 0x154   : > { %v16754_v9 = vpack.c.bf16 %v16742_v35, %v16735_v32  ;;  %v15108_v20 = vld [vmem:[%s21021_s3 + $0x278] sm:$0xff]   ;;  %v1089_v17 = vrot.slane %v952_v55, 7  ;;  %v950_v3 = vsel %vm886_vm0, %v844_v54, %v918_v16  ;;  %v1606_v24 = vpack.c.bf16 %v16749_v8, %v1394_v58  ;;  %v15109_v49 = vld [vmem:[%s21021_s3 + $0x1c0] sm:$0xff]   ;;  %v16773_v22 = vld [vmem:[#allocation2 + $0x50] sm:$0xff]  ;;  %13561 = vmatpush3.bf16.msra.mxu0 %v15106_v11 }
 0x155   : > { %vm887_vm2 = vcmp.ge.f32.partialorder %v847_v7, 0.0  ;;  %v919_v0 = vmul.f32 0.01, %v847_v7  ;;  %v1087_v30 = vrot.slane %v950_v3, 7  ;;  %v953_v52 = vsel %vm889_vm1, %v855_v33, %v921_v63  ;;  %v16771_v54 = vld [vmem:[#allocation2 + $0x58] sm:$0xff]  ;;  %13443 = vmatpush3.bf16.msra.mxu1 %v15107_v59  ;;  %13562 = vmatprep.subr.bf16.mxu0 %v15108_v20  ;;  %v15111_v63 = vld [vmem:[%s21021_s3 + $0x180] sm:$0xff]  }
 0x156   : > { %21147 = vst [vmem:[#allocation34_spill] sm:$0xff] %v16754_v9  ;;  %v1402_v21 = vrot.slane %v16429_v44, 2  ;;  %1111 = vst [vmem:[#allocation2 + $0x1d8] sm:$0xfe] %v1089_v17  ;;  %v1090_v35 = vrot.slane %v953_v52, 7  ;;  %4203 = vmatmul.mubr.bf16.gmra.mrb[44].mxu0 %v16754_v9  ;;  %v1416_v53 = vrot.slane %v16521_v26, 2  ;;  %v1600_v44 = vpack.c.bf16 %v16771_v54, %v16409_v13  ;;  %13508 = vmatprep.subr.bf16.mxu1 %v15109_v49 }
 0x157   : > { %1112 = vst [vmem:[#allocation2 + $0x1f8] sm:$0x1] %v1089_v17  ;;  %v951_v55 = vsel %vm887_vm2, %v847_v7, %v919_v0  ;;  %v1417_v58 = vrot.slane %v16540_v48, 2  ;;  %1107 = vst [vmem:[#allocation2 + $0x158] sm:$0xfe] %v1087_v30  ;;  %4308 = vmatprep.mubr.bf16.mxu0 %v1606_v24  ;;  %v15110_v7 = vld [vmem:[%s21021_s3 + $0x238] sm:$0xff]   ;;  %v1599_v59 = vpack.c.bf16 %v16773_v22, %v16409_v13 }
 0x158   : > { %1108 = vst [vmem:[#allocation2 + $0x178] sm:$0x1] %v1087_v30  ;;  %v1088_v33 = vrot.slane %v951_v55, 7  ;;  %v1413_v40 = vrot.slane %v16449_v61, 2  ;;  %1113 = vst [vmem:[#allocation2 + $0x218] sm:$0xfe] %v1090_v35  ;;  %4113 = vmatprep.mubr.bf16.mxu1 %v1600_v44  ;;  %13563 = vmatpush3.bf16.msra.mxu0 %v15110_v7 }
 0x159   : > { %1114 = vst [vmem:[#allocation2 + $0x238] sm:$0x1] %v1090_v35  ;;  %v16783_v16 = vld [vmem:[#allocation2 + $0x98] sm:$0xff]  ;;  %v21148_v11 = vrot.slane %v16414_v18, 2  ;;  %v1428_v3 = vrot.slane %v16493_v60, 2  ;;  %v1429_v61 = vrot.slane %v16495_v62, 2  ;;  %v16815_v13 = vsel %vm1388_vm10, %v1416_v53, %v1417_v58  ;;  %4114 = vmatmul.mubr.bf16.vlgmr.msra.gmra.mrb[16].mxu1 %v1599_v59 }
 0x15a   : > { %v16785_v48 = vld [vmem:[#allocation2 + $0xd8] sm:$0xff]  ;;  %v1414_v35 = vrot.slane %v16453_v1, 2  ;;  %1109 = vst [vmem:[#allocation2 + $0x198] sm:$0xfe] %v1088_v33  ;;  %1110 = vst [vmem:[#allocation2 + $0x1b8] sm:$0x1] %v1088_v33  ;;  %13509 = vmatpush3.bf16.msra.mxu1 %v15111_v63 }
 0x15b   : > { %v1391_v17 = vsel %vm1388_vm10, %v16425_v39, %v21148_v11  ;;  %v16801_v20 = vpack.c.bf16 %v16785_v48, %v16783_v16  ;;  %v21150_v18 = vrot.slane %v16427_v43, 2  ;;  %v15112_v1 = vld [vmem:[%s21021_s3 + $0x340] sm:$0xff]   ;;  %v15113_v62 = vld [vmem:[%s21021_s3 + $0x1c8] sm:$0xff]   ;;  %v16828_v52 = vsel %vm1388_vm10, %v1428_v3, %v1429_v61  ;;  %v15117_v58 = vld [vmem:[%s21021_s3 + $0x1d0] sm:$0xff]  }
 0x15c   : > { %v16818_v49 = vsel %vm1388_vm10, %v1413_v40, %v1414_v35  ;;  %v15114_v43 = vld [vmem:[%s21021_s3 + $0x300] sm:$0xff]   ;;  %v15115_v24 = vld [vmem:[%s21021_s3 + $0x188] sm:$0xff]   ;;  %13628 = vmatprep.subr.bf16.mxu0 %v15112_v1  ;;  %13510 = vmatprep.subr.bf16.mxu1 %v15113_v62  ;;  %v16838_v53 = vpack.c.bf16 %v16828_v52, %v16815_v13  ;;  %v16843_v33 = vld [vmem:[#allocation2 + $0x90] sm:$0xff]  ;;  %v1425_v44 = vrot.slane %v16431_v45, 2  ;;  %v1426_v7 = vrot.slane %v16439_v51, 2 }
 0x15d   : > { %21149 = vst [vmem:[#allocation35_spill] sm:$0xff] %v16801_v20  ;;  %v16806_v0 = vsel %vm1388_vm10, %v21150_v18, %v1402_v21  ;;  %21152 = vst [vmem:[#allocation37_spill] sm:$0xff] %v16818_v49  ;;  %4121 = vmatprep.mubr.bf16.mxu1 %v16801_v20  ;;  %v15116_v55 = vld [vmem:[%s21021_s3 + $0x348] sm:$0xff]   ;;  %v1452_v40 = vrot.slane %v16573_v36, 2  ;;  %v1453_v63 = vrot.slane %v16575_v37, 2  ;;  %v16855_v3 = vld [vmem:[#allocation2 + $0xd0] sm:$0xff] }
 0x15e   : > { %21151 = vst [vmem:[#allocation36_spill] sm:$0xff] %v16806_v0  ;;  %v1605_v30 = vpack.c.bf16 %v16806_v0, %v1391_v17  ;;  %21153 = vst [vmem:[#allocation38_spill] sm:$0xff] %v16838_v53  ;;  %v15118_v11 = vld [vmem:[%s21021_s3 + $0x308] sm:$0xff]   ;;  %v16853_v17 = vld [vmem:[#allocation2 + $0x158] sm:$0xff]  ;;  %13511 = vmatpush3.bf16.msra.mxu1 %v15115_v24  ;;  %v1440_v37 = vrot.slane %v16550_v57, 2  ;;  %v1441_v61 = vrot.slane %v16564_v19, 2  ;;  %v16867_v35 = vpack.c.bf16 %v16855_v3, %v16843_v33 }
 0x15f   : > { %v15119_v45 = vld [vmem:[%s21021_s3 + $0x190] sm:$0xff]   ;;  %13512 = vmatprep.subr.bf16.mxu1 %v15117_v58  ;;  %v16869_v59 = vld [vmem:[#allocation2 + $0x118] sm:$0xff]  ;;  %v16882_v19 = vsel %vm1388_vm10, %v1425_v44, %v1426_v7  ;;  %v15125_v7 = vld [vmem:[%s21021_s3 + $0x1e0] sm:$0xff]   ;;  %v1278_v20 = vrot.slane %v16773_v22, 1  ;;  %v1329_v47 = vrot.slane %v16853_v17, 1  ;;  %v1422_v25 = vrot.slane %v16783_v16, 2 }
 0x160   : > { %4309 = vmatmul.mubr.bf16.vlgmr.msra.gmra.mrb[48].mxu0 %v1605_v30  ;;  %v15120_v51 = vld [vmem:[%s21021_s3 + $0x350] sm:$0xff]   ;;  %21154 = vst [vmem:[#allocation39_spill] sm:$0xff] %v16867_v35  ;;  %v15121_v18 = vld [vmem:[%s21021_s3 + $0x1d8] sm:$0xff]   ;;  %v16879_v62 = vpack.c.bf16 %v16853_v17, %v16869_v59  ;;  %21156 = vst [vmem:[#allocation41_spill] sm:$0xff] %v16882_v19  ;;  %v16900_v44 = vpack.c.bf16 %v16882_v19, %v16818_v49  ;;  %v16911_v21 = vsel %vm1388_vm10, %v1440_v37, %v1441_v61  ;;  %vm5441_vm12 = vcmask 1042432  }
 0x161   : > { %4316 = vmatprep.mubr.bf16.mxu0 %v16838_v53  ;;  %13629 = vmatpush3.bf16.msra.mxu0 %v15114_v43  ;;  %v15122_v1 = vld [vmem:[%s21021_s3 + $0x310] sm:$0xff]   ;;  %v16885_v43 = vsel %vm1388_vm10, %v1452_v40, %v1453_v63  ;;  %v15123_v30 = vld [vmem:[%s21021_s3 + $0x198] sm:$0xff]   ;;  %v1450_v53 = vrot.slane %v16485_v34, 2  ;;  %v1290_v61 = vrot.slane %v16843_v33, 1  ;;  %v1437_v34 = vrot.slane %v16461_v15, 2  ;;  %v15129_v15 = vld [vmem:[%s21021_s3 + $0x1e8] sm:$0xff]  }
 0x162   : > { %13630 = vmatprep.subr.bf16.mxu0 %v15116_v55  ;;  %21155 = vst [vmem:[#allocation40_spill] sm:$0xff] %v16879_v62  ;;  %21157 = vst [vmem:[#allocation42_spill] sm:$0xff] %v16885_v43  ;;  %v15124_v24 = vld [vmem:[%s21021_s3 + $0x358] sm:$0xff]   ;;  %v16895_v58 = vld [vmem:[#allocation2 + $0x70] sm:$0x3]  ;;  %4122 = vmatmul.mubr.bf16.gmra.mrb[20].mxu1 %v16867_v35  ;;  %v16920_v9 = vpack.c.bf16 %v16885_v43, %v16911_v21  ;;  %vm5442_vm13 = vcmask 1046532  }
 0x163   : > { %v16893_v55 = vld [vmem:[#allocation2 + $0x38] sm:$0x3]  ;;  %21159 = vst [vmem:[#allocation44_spill] sm:$0xff] %v16900_v44  ;;  %v16905_v40 = vld [vmem:[#allocation2 + $0x30] sm:$0x3]  ;;  %4129 = vmatprep.mubr.bf16.mxu1 %v16879_v62  ;;  %13513 = vmatpush3.bf16.msra.mxu1 %v15119_v45  ;;  %v1279_v37 = vrot.slane %v16895_v58, 1  ;;  %vm18639_vm0 = vmor %vm5441_vm12, %vm5442_vm13 }
 0x164   : > { %21158 = vst [vmem:[#allocation43_spill] sm:$0xff] %v16893_v55  ;;  %21160 = vst [vmem:[#allocation45_spill] sm:$0xff] %v16905_v40  ;;  %v16907_v63 = vld [vmem:[#allocation2 + $0xb0] sm:$0x3]  ;;  %13514 = vmatprep.subr.bf16.mxu1 %v15121_v18  ;;  %v15126_v45 = vld [vmem:[%s21021_s3 + $0x318] sm:$0xff]   ;;  %v1464_v18 = vrot.slane %v16627_v38, 2 }
 0x165   : > { %13631 = vmatpush3.bf16.msra.mxu0 %v15118_v11  ;;  %v16913_v35 = vld [vmem:[#allocation2 + $0x150] sm:$0xff]  ;;  %v1449_v11 = vrot.slane %v16477_v29, 2  ;;  %21161 = vst [vmem:[#allocation46_spill] sm:$0xff] %v16920_v9  ;;  %v15127_v29 = vld [vmem:[%s21021_s3 + $0x1a0] sm:$0xff]   ;;  %v1465_v62 = vrot.slane %v16629_v2, 2  ;;  %v16936_v0 = vld [vmem:[#allocation2 + $0x198] sm:$0xff] }
 0x166   : > { %13632 = vmatprep.subr.bf16.mxu0 %v15120_v51  ;;  %v1438_v51 = vrot.slane %v16469_v23, 2  ;;  %v16938_v49 = vld [vmem:[#allocation2 + $0x1d8] sm:$0xff]  ;;  %v1270_v23 = vrot.slane %v16893_v55, 1  ;;  %v1291_v32 = vrot.slane %v16907_v63, 1  ;;  %v16948_v2 = vld [vmem:[#allocation2 + $0x110] sm:$0xff]  ;;  %v1267_v28 = vrot.slane %v16905_v40, 1 }
 0x167   : > { %13515 = vmatpush3.bf16.msra.mxu1 %v15123_v30  ;;  %v16952_v5 = vld [vmem:[#allocation2 + $0x78] sm:$0x3]  ;;  %v16957_v39 = vpack.c.bf16 %v16913_v35, %v16948_v2  ;;  %v16960_v55 = vsel %vm1388_vm10, %v1449_v11, %v1450_v53  ;;  %v16963_v30 = vsel %vm1259_vm4, %v1278_v20, %v1279_v37  ;;  %v16976_v40 = vsel %vm1388_vm10, %v1464_v18, %v1465_v62  ;;  %v15130_v53 = vld [vmem:[%s21021_s3 + $0x320] sm:$0xff]   ;;  %v15133_v18 = vld [vmem:[%s21021_s3 + $0x1f0] sm:$0xff]  }
 0x168   : > { %4317 = vmatmul.mubr.bf16.gmra.mrb[52].mxu0 %v16900_v44  ;;  %v15128_v44 = vld [vmem:[%s21021_s3 + $0x360] sm:$0xff]   ;;  %13516 = vmatprep.subr.bf16.mxu1 %v15125_v7  ;;  %21163 = vst [vmem:[#allocation48_spill] sm:$0xff] %v16960_v55  ;;  %21164 = vst [vmem:[#allocation49_spill] sm:$0xff] %v16963_v30  ;;  %v15132_v7 = vld [vmem:[%s21021_s3 + $0x368] sm:$0xff]   ;;  %v1281_v62 = vrot.slane %v16771_v54, 1  ;;  %v1282_v11 = vrot.slane %v16952_v5, 1 }
 0x169   : > { %4324 = vmatprep.mubr.bf16.mxu0 %v16920_v9  ;;  %13633 = vmatpush3.bf16.msra.mxu0 %v15122_v1  ;;  %v1476_v1 = vrot.slane %v16621_v41, 2  ;;  %v1477_v9 = vrot.slane %v16633_v42, 2  ;;  %21162 = vst [vmem:[#allocation47_spill] sm:$0xff] %v16957_v39  ;;  %v16970_v41 = vpack.c.bf16 %v16938_v49, %v16936_v0  ;;  %v16973_v42 = vsel %vm1388_vm10, %v1437_v34, %v1438_v51  ;;  %v17002_v51 = vld [vmem:[#allocation2 + $0x190] sm:$0xff]  ;;  %v17007_v20 = vld [vmem:[#allocation2 + $0xb8] sm:$0x3] }
 0x16a   : > { %13634 = vmatprep.subr.bf16.mxu0 %v15124_v24  ;;  %v16966_v24 = vsel %vm1259_vm4, %v1290_v61, %v1291_v32  ;;  %21167 = vst [vmem:[#allocation52_spill] sm:$0xff] %v16973_v42  ;;  %21168 = vst [vmem:[#allocation53_spill] sm:$0xff] %v16976_v40  ;;  %4130 = vmatmul.mubr.bf16.gmra.mrb[24].mxu1 %v16957_v39  ;;  %v15131_v32 = vld [vmem:[%s21021_s3 + $0x1a8] sm:$0xff]   ;;  %v1461_v37 = vrot.slane %v16646_v10, 2  ;;  %v1462_v61 = vrot.slane %v16652_v12, 2  ;;  %v17101_v43 = vld [vmem:[#allocation2 + $0x40] sm:$0xff] }
 0x16b   : > { %21165 = vst [vmem:[#allocation50_spill] sm:$0xff] %v16966_v24  ;;  %21166 = vst [vmem:[#allocation51_spill] sm:$0xff] %v16970_v41  ;;  %4137 = vmatprep.mubr.bf16.mxu1 %v16970_v41  ;;  %13517 = vmatpush3.bf16.msra.mxu1 %v15127_v29  ;;  %v17000_v34 = vsel %vm1388_vm10, %v1476_v1, %v1477_v9  ;;  %v15134_v12 = vld [vmem:[%s21021_s3 + $0x328] sm:$0xff]   ;;  %v1473_v9 = vrot.slane %v16685_v50, 2  ;;  %v1474_v29 = vrot.slane %v16687_v56, 2  ;;  %v15135_v1 = vld [vmem:[%s21021_s3 + $0x1b0] sm:$0xff]  }
 0x16c   : > { %21170 = vst [vmem:[#allocation55_spill] sm:$0xff] %v17000_v34  ;;  %13518 = vmatprep.subr.bf16.mxu1 %v15129_v15  ;;  %v17011_v10 = vpack.c.bf16 %v17000_v34, %v16976_v40  ;;  %v17024_v15 = vld [vmem:[#allocation2 + $0xf8] sm:$0x3]  ;;  %v17027_v41 = vld [vmem:[#allocation2 + $0x1d0] sm:$0xff]  ;;  %v17030_v50 = vsel %vm1259_vm4, %v1281_v62, %v1282_v11  ;;  %v17033_v56 = vsel %vm1388_vm10, %v1461_v37, %v1462_v61  ;;  %v1293_v37 = vrot.slane %v16783_v16, 1  ;;  %v15150_v27 = vld [vmem:[%s21021_s3 + $0x408] sm:$0xff]  }
 0x16d   : > { %13635 = vmatpush3.bf16.msra.mxu0 %v15126_v45  ;;  %v16997_v45 = vpack.c.bf16 %v16960_v55, %v16973_v42  ;;  %21172 = vst [vmem:[#allocation57_spill] sm:$0xff] %v17027_v41  ;;  %21173 = vst [vmem:[#allocation58_spill] sm:$0xff] %v17030_v50  ;;  %v17049_v62 = vpack.c.bf16 %v17027_v41, %v17002_v51  ;;  %v1610_v11 = vpack.c.bf16 %v16521_v26, %v16505_v6  ;;  %v17055_v39 = vld [vmem:[#allocation2 + $0x178] sm:$0x3]  ;;  %v15941_v42 = vld [vmem:[#allocation2 + $0x80] sm:$0xff]  ;;  %vm5476_vm14 = vcmask 1041408  }
 0x16e   : > { %13636 = vmatprep.subr.bf16.mxu0 %v15128_v44  ;;  %21171 = vst [vmem:[#allocation56_spill] sm:$0xff] %v17011_v10  ;;  %v1271_v44 = vsel %vm1259_vm4, %v16412_v14, %v1270_v23  ;;  %21174 = vst [vmem:[#allocation59_spill] sm:$0xff] %v17033_v56  ;;  %v15137_v23 = vld [vmem:[%s21021_s3 + $0x1f8] sm:$0xff]   ;;  %v1294_v61 = vrot.slane %v17007_v20, 1  ;;  %v1407_v41 = vrot.slane %v16773_v22, 2  ;;  %v1408_v55 = vrot.slane %v16895_v58, 2 }
 0x16f   : > { %21169 = vst [vmem:[#allocation54_spill] sm:$0xff] %v16997_v45  ;;  %13519 = vmatpush3.bf16.msra.mxu1 %v15131_v32  ;;  %21175 = vst [vmem:[#allocation60_spill] sm:$0xff] %v17049_v62  ;;  %v1305_v32 = vrot.slane %v16785_v48, 1  ;;  %v17065_v34 = vld [vmem:[#allocation2 + $0x138] sm:$0x3]  ;;  %v1604_v26 = vpack.c.bf16 %v17030_v50, %v1271_v44  ;;  %v15141_v44 = vld [vmem:[%s21021_s3 + $0x2c0] sm:$0xff]  }
 0x170   : > { %4325 = vmatmul.mubr.bf16.gmra.mrb[56].mxu0 %v16997_v45  ;;  %v15136_v45 = vld [vmem:[%s21021_s3 + $0x370] sm:$0xff]   ;;  %13520 = vmatprep.subr.bf16.mxu1 %v15133_v18  ;;  %v1302_v6 = vrot.slane %v16855_v3, 1  ;;  %v1330_v46 = vrot.slane %v17055_v39, 1  ;;  %v17093_v58 = vsel %vm1259_vm4, %v1293_v37, %v1294_v61  ;;  %v1317_v37 = vrot.slane %v16869_v59, 1 }
 0x171   : > { %4332 = vmatprep.mubr.bf16.mxu0 %v17011_v10  ;;  %13637 = vmatpush3.bf16.msra.mxu0 %v15130_v53  ;;  %v17043_v10 = vsel %vm1259_vm4, %v16412_v14, %v1267_v28  ;;  %v17045_v53 = vld [vmem:[#allocation2 + $0xf0] sm:$0x3]  ;;  %v17058_v14 = vsel %vm1388_vm10, %v1473_v9, %v1474_v29  ;;  %v15139_v9 = vld [vmem:[%s21021_s3 + $0x1b8] sm:$0xff]   ;;  %v1318_v61 = vrot.slane %v17065_v34, 1  ;;  %v21197_v31 = vrot.slane %v17024_v15, 2 }
 0x172   : > { %13638 = vmatprep.subr.bf16.mxu0 %v15132_v7  ;;  %21176 = vst [vmem:[#allocation61_spill] sm:$0xff] %v17058_v14  ;;  %v15138_v28 = vld [vmem:[%s21021_s3 + $0x330] sm:$0xff]   ;;  %v1306_v7 = vrot.slane %v17024_v15, 1  ;;  %v17072_v18 = vpack.c.bf16 %v17058_v14, %v17033_v56  ;;  %v15140_v29 = vld [vmem:[%s21021_s3 + $0x378] sm:$0xff]   ;;  %4138 = vmatmul.mubr.bf16.gmra.mrb[28].mxu1 %v17049_v62  ;;  %v1303_v14 = vrot.slane %v17045_v53, 1  ;;  %v1419_v62 = vrot.slane %v16843_v33, 2 }
 0x173   : > { %v17090_v50 = vld [vmem:[#allocation2 + $0x130] sm:$0x3]  ;;  %13521 = vmatpush3.bf16.msra.mxu1 %v15135_v1  ;;  %4243 = vmatprep.mubr.bf16.mxu1 %v1604_v26  ;;  %v1420_v56 = vrot.slane %v16907_v63, 2  ;;  %v1603_v40 = vpack.c.bf16 %v16963_v30, %v17043_v10  ;;  %v1609_v1 = vpack.c.bf16 %v15941_v42, %v17101_v43  ;;  %v15142_v63 = vld [vmem:[%s21021_s3 + $0x338] sm:$0xff]   ;;  %v15143_v10 = vld [vmem:[%s21021_s3 + $0x280] sm:$0xff]   ;;  %v1634_v43 = vpack.c.bf16 %v16550_v57, %v16493_v60 }
 0x174   : > { %21177 = vst [vmem:[#allocation62_spill] sm:$0xff] %v17072_v18  ;;  %13522 = vmatprep.subr.bf16.mxu1 %v15137_v23  ;;  %v17118_v42 = vld [vmem:[#allocation2 + $0x170] sm:$0x3]  ;;  %v17121_v23 = vsel %vm1388_vm10, %v1407_v41, %v1408_v55  ;;  %v15145_v60 = vld [vmem:[%s21021_s3 + $0x2c8] sm:$0xff]   ;;  %v17137_v57 = vsel %vm1259_vm4, %v1329_v47, %v1330_v46  ;;  %v17139_v55 = vld [vmem:[#allocation2 + $0x1b8] sm:$0x3]  ;;  %v17155_v46 = vsel %vm1259_vm4, %v1317_v37, %v1318_v61 }
 0x175   : > { %13639 = vmatpush3.bf16.msra.mxu0 %v15134_v12  ;;  %21178 = vst [vmem:[#allocation63_spill] sm:$0xff] %v17121_v23  ;;  %v17124_v26 = vsel %vm1388_vm10, %v1419_v62, %v1420_v56  ;;  %v17141_v41 = vld [vmem:[#allocation2 + $0x1f8] sm:$0x3]  ;;  %v17143_v56 = vld [vmem:[#allocation2 + $0x1b0] sm:$0x3]  ;;  %v1315_v12 = vrot.slane %v17090_v50, 1  ;;  %v17177_v61 = vpack.c.bf16 %v17137_v57, %v17155_v46 }
 0x176   : > { %13640 = vmatprep.subr.bf16.mxu0 %v15136_v45  ;;  %v17111_v45 = vsel %vm1259_vm4, %v1305_v32, %v1306_v7  ;;  %21179 = vst [vmem:[#allocation64_spill] sm:$0xff] %v17124_v26  ;;  %v15144_v7 = vld [vmem:[%s21021_s3 + $0x440] sm:$0xff]   ;;  %v1341_v47 = vrot.slane %v16936_v0, 1  ;;  %v1342_v4 = vrot.slane %v17139_v55, 1  ;;  %v1338_v62 = vrot.slane %v17002_v51, 1 }
 0x177   : > { %v17128_v32 = vpack.c.bf16 %v17111_v45, %v17093_v58  ;;  %13523 = vmatpush3.bf16.msra.mxu1 %v15139_v9  ;;  %v17159_v30 = vld [vmem:[#allocation2 + $0x100] sm:$0xff]  ;;  %21182 = vst [vmem:[#allocation67_spill] sm:$0xff] %v17177_v61  ;;  %v15148_v9 = vld [vmem:[%s21021_s3 + $0x448] sm:$0xff]   ;;  %v21203_v15 = vrot.slane %v16853_v17, 2  ;;  %vm5477_vm15 = vcmask 1045508   ;;  %vm16024_vm2 = vmmov 0  }
 0x178   : > { %4333 = vmatmul.mubr.bf16.gmra.mrb[60].mxu0 %v17072_v18  ;;  %13588 = vmatprep.subr.bf16.mxu1 %v15141_v44  ;;  %v17157_v18 = vld [vmem:[#allocation2 + $0xc0] sm:$0xff]  ;;  %v15147_v44 = vld [vmem:[%s21021_s3 + $0x288] sm:$0xff]   ;;  %vm18649_vm1 = vmor %vm5476_vm14, %vm5477_vm15 }
 0x179   : > { %13641 = vmatpush3.bf16.msra.mxu0 %v15138_v28  ;;  %4438 = vmatprep.mubr.bf16.mxu0 %v1610_v11  ;;  %21180 = vst [vmem:[#allocation65_spill] sm:$0xff] %v17128_v32  ;;  %v17148_v11 = vsel %vm1259_vm4, %v1302_v6, %v1303_v14  ;;  %v1314_v28 = vrot.slane %v16948_v2, 1  ;;  %v1326_v14 = vrot.slane %v16913_v35, 1  ;;  %v1327_v6 = vrot.slane %v17118_v42, 1  ;;  %v21188_v19 = vld [vmem:[#allocation59_spill] sm:$0xff] }
 0x17a   : > { %13642 = vmatprep.subr.bf16.mxu0 %v15140_v29  ;;  %v15146_v29 = vld [vmem:[%s21021_s3 + $0x400] sm:$0xff]   ;;  %v17173_v37 = vpack.c.bf16 %v17148_v11, %v16966_v24  ;;  %4244 = vmatmul.mubr.bf16.vlgmr.msra.gmra.mrb[32].mxu1 %v1603_v40  ;;  %v15149_v24 = vld [vmem:[%s21021_s3 + $0x2d0] sm:$0xff]   ;;  %v1339_v40 = vrot.slane %v17143_v56, 1 }
 0x17b   : > { %4251 = vmatprep.mubr.bf16.mxu1 %v17128_v32  ;;  %13589 = vmatpush3.bf16.msra.mxu1 %v15143_v10  ;;  %v17201_v26 = vsel %vm1259_vm4, %v1314_v28, %v1315_v12  ;;  %v17204_v32 = vsel %vm1259_vm4, %v1326_v14, %v1327_v6  ;;  %v1423_v10 = vrot.slane %v17007_v20, 2  ;;  %v1446_v12 = vrot.slane %v16869_v59, 2  ;;  %v15152_v20 = vld [vmem:[%s21021_s3 + $0x450] sm:$0xff]  }
 0x17c   : > { %21181 = vst [vmem:[#allocation66_spill] sm:$0xff] %v17173_v37  ;;  %13590 = vmatprep.subr.bf16.mxu1 %v15145_v60  ;;  %v1447_v28 = vrot.slane %v17065_v34, 2  ;;  %v15154_v34 = vld [vmem:[%s21021_s3 + $0x410] sm:$0xff]   ;;  %v17236_v14 = vsel %vm1259_vm4, %v1341_v47, %v1342_v4  ;;  %v1467_v6 = vrot.slane %v17002_v51, 2  ;;  %v1468_v60 = vrot.slane %v17143_v56, 2 }
 0x17d   : > { %13643 = vmatpush3.bf16.msra.mxu0 %v15142_v63  ;;  %v17246_v63 = vpack.c.bf16 %v17204_v32, %v17201_v26  ;;  %v21186_v4 = vld [vmem:[#allocation53_spill] sm:$0xff]  ;;  %v21190_v47 = vpack.c.bf16 %v17159_v30, %v17157_v18  ;;  %v21191_v18 = vpack.c.bf16 %v16627_v38, %v16573_v36  ;;  %v15161_v30 = vld [vmem:[%s21021_s3 + $0x2e8] sm:$0xff]  }
 0x17e   : > { %13708 = vmatprep.subr.bf16.mxu0 %v15144_v7  ;;  %v15151_v7 = vld [vmem:[%s21021_s3 + $0x290] sm:$0xff]   ;;  %v17280_v23 = vsel %vm1388_vm10, %v1446_v12, %v1447_v28  ;;  %v15159_v12 = vld [vmem:[%s21021_s3 + $0x2a0] sm:$0xff]   ;;  %v17325_v38 = vld [vmem:[#allocation2 + $0x208] sm:$0xff] }
 0x17f   : > { %13591 = vmatpush3.bf16.msra.mxu1 %v15147_v44  ;;  %21183 = vst [vmem:[#allocation68_spill] sm:$0xff] %v17246_v63  ;;  %v15155_v44 = vld [vmem:[%s21021_s3 + $0x298] sm:$0xff]   ;;  %v15160_v28 = vld [vmem:[%s21021_s3 + $0x460] sm:$0xff]  }
 0x180   : > { %4439 = vmatmul.mubr.bf16.vlgmr.msra.gmra.mrb[64].mxu0 %v1609_v1  ;;  %v15153_v1 = vld [vmem:[%s21021_s3 + $0x2d8] sm:$0xff]   ;;  %13592 = vmatprep.subr.bf16.mxu1 %v15149_v24  ;;  %v17249_v24 = vsel %vm1259_vm4, %v1338_v62, %v1339_v40  ;;  %v1470_v62 = vrot.slane %v16936_v0, 2  ;;  %v1471_v40 = vrot.slane %v17139_v55, 2  ;;  %v15157_v55 = vld [vmem:[%s21021_s3 + $0x2e0] sm:$0xff]  }
 0x181   : > { %4446 = vmatprep.mubr.bf16.mxu0 %v1634_v43  ;;  %13709 = vmatpush3.bf16.msra.mxu0 %v15146_v29  ;;  %v1443_v43 = vrot.slane %v16948_v2, 2  ;;  %v1444_v29 = vrot.slane %v17090_v50, 2  ;;  %v15156_v50 = vld [vmem:[%s21021_s3 + $0x458] sm:$0xff]  }
 0x182   : > { %13710 = vmatprep.subr.bf16.mxu0 %v15148_v9  ;;  %4252 = vmatmul.mubr.bf16.gmra.mrb[36].mxu1 %v17173_v37  ;;  %v21185_v9 = vld [vmem:[#allocation42_spill] sm:$0xff]  ;;  %v21187_v37 = vld [vmem:[#allocation48_spill] sm:$0xff]  ;;  %v17323_v36 = vsel %vm1388_vm10, %v1470_v62, %v1471_v40  ;;  %v21202_v40 = vrot.slane %v17055_v39, 2 }
 0x183   : > { %4259 = vmatprep.mubr.bf16.mxu1 %v17177_v61  ;;  %13593 = vmatpush3.bf16.msra.mxu1 %v15151_v7  ;;  %v1455_v7 = vrot.slane %v16913_v35, 2  ;;  %v17320_v56 = vsel %vm1388_vm10, %v1443_v43, %v1444_v29  ;;  %21194 = vst [vmem:[#allocation42_spill] sm:$0xff] %v17323_v36  ;;  %v21198_v43 = vrot.slane %v16785_v48, 2 }
 0x184   : > { %13594 = vmatprep.subr.bf16.mxu1 %v15153_v1  ;;  %v1456_v1 = vrot.slane %v17118_v42, 2 }
 0x185   : > { %13711 = vmatpush3.bf16.msra.mxu0 %v15150_v27  ;;  %v17270_v27 = vsel %vm1388_vm10, %v1422_v25, %v1423_v10  ;;  %v21189_v25 = vld [vmem:[#allocation58_spill] sm:$0xff]  ;;  %v21193_v10 = vrot.slane %v16938_v49, 1  ;;  %v17341_v29 = vsel %vm1388_vm10, %v21198_v43, %v21197_v31  ;;  %v21207_v43 = vld [vmem:[#allocation43_spill] sm:$0xff] }
 0x186   : > { %13712 = vmatprep.subr.bf16.mxu0 %v15152_v20  ;;  %v15158_v20 = vld [vmem:[%s21021_s3 + $0x418] sm:$0xff]  }
 0x187   : > { %13595 = vmatpush3.bf16.msra.mxu1 %v15155_v44  ;;  %v21199_v44 = vrot.slane %v17045_v53, 2 }
 0x188   : > { %4447 = vmatmul.mubr.bf16.gmra.mrb[68].mxu0 %v21190_v47  ;;  %v21192_v47 = vrot.slane %v17141_v41, 1  ;;  %13596 = vmatprep.subr.bf16.mxu1 %v15157_v55  ;;  %v21208_v55 = vld [vmem:[#allocation57_spill] sm:$0xff] }
 0x189   : > { %4454 = vmatprep.mubr.bf16.mxu0 %v21191_v18  ;;  %13713 = vmatpush3.bf16.msra.mxu0 %v15154_v34  ;;  %v17327_v34 = vld [vmem:[#allocation2 + $0x1f0] sm:$0x3]  ;;  %v21196_v18 = vrot.slane %v16771_v54, 2  ;;  %v1350_v39 = vrot.slane %v21208_v55, 1 }
 0x18a   : > { %v17311_v42 = vsel %vm1259_vm4, %v21193_v10, %v21192_v47  ;;  %13714 = vmatprep.subr.bf16.mxu0 %v15156_v50  ;;  %v21195_v10 = vrot.slane %v16952_v5, 2  ;;  %v17344_v50 = vsel %vm1388_vm10, %v1467_v6, %v1468_v60  ;;  %v21200_v5 = vrot.slane %v16855_v3, 2  ;;  %4260 = vmatmul.mubr.bf16.gmra.mrb[40].mxu1 %v17246_v63  ;;  %v15167_v60 = vld [vmem:[%s21021_s3 + $0x2b0] sm:$0xff]  }
 0x18b   : > { %v17366_v53 = vpack.c.bf16 %v17311_v42, %v17236_v14  ;;  %v17369_v6 = vsel %vm1388_vm10, %v1455_v7, %v1456_v1  ;;  %13597 = vmatpush3.bf16.msra.mxu1 %v15159_v12  ;;  %v15944_v7 = vld [vmem:[#allocation2 + $0x140] sm:$0xff]  ;;  %v21211_v63 = vld [vmem:[#allocation45_spill] sm:$0xff] }
 0x18c   : > { %v17334_v47 = vsel %vm1388_vm10, %v21196_v18, %v21195_v10  ;;  %v17351_v62 = vsel %vm1388_vm10, %v21200_v5, %v21199_v44  ;;  %v17358_v10 = vsel %vm1388_vm10, %v21203_v15, %v21202_v40  ;;  %21206 = vst [vmem:[#allocation58_spill] sm:$0xff] %v17369_v6  ;;  %v15162_v18 = vld [vmem:[%s21021_s3 + $0x420] sm:$0xff]   ;;  %v1399_v44 = vrot.slane %v21207_v43, 2  ;;  %v15163_v15 = vld [vmem:[%s21021_s3 + $0x2a8] sm:$0xff]   ;;  %13598 = vmatprep.subr.bf16.mxu1 %v15161_v30 }
 0x18d   : > { %21201 = vst [vmem:[#allocation53_spill] sm:$0xff] %v17351_v62  ;;  %21204 = vst [vmem:[#allocation48_spill] sm:$0xff] %v17358_v10  ;;  %13715 = vmatpush3.bf16.msra.mxu0 %v15158_v20  ;;  %4267 = vmatprep.mubr.bf16.mxu1 %v17366_v53  ;;  %v15945_v1 = vld [vmem:[#allocation2 + $0x180] sm:$0xff]  ;;  %v15164_v20 = vld [vmem:[%s21021_s3 + $0x468] sm:$0xff]   ;;  %v1351_v43 = vrot.slane %v17327_v34, 1  ;;  %v1396_v61 = vrot.slane %v21211_v63, 2 }
 0x18e   : > { %21205 = vst [vmem:[#allocation59_spill] sm:$0xff] %v17366_v53  ;;  %v1657_v40 = vpack.c.bf16 %v15945_v1, %v15944_v7  ;;  %13716 = vmatprep.subr.bf16.mxu0 %v15160_v28  ;;  %v15946_v5 = vld [vmem:[#allocation2 + $0x1c8] sm:$0xff]  ;;  %v15165_v7 = vld [vmem:[%s21021_s3 + $0x2f0] sm:$0xff]   ;;  %v17412_v53 = vld [vmem:[#allocation2 + $0x200] sm:$0xff] }
 0x18f   : > { %v1682_v12 = vpack.c.bf16 %v17325_v38, %v15946_v5  ;;  %v15166_v1 = vld [vmem:[%s21021_s3 + $0x428] sm:$0xff]   ;;  %v15168_v5 = vld [vmem:[%s21021_s3 + $0x470] sm:$0xff]   ;;  %13599 = vmatpush3.bf16.msra.mxu1 %v15163_v15  ;;  %v17410_v31 = vsel %vm1259_vm4, %v1350_v39, %v1351_v43  ;;  %v15947_v39 = vld [vmem:[#allocation2 + $0x1c0] sm:$0xff] }
 0x190   : > { %4455 = vmatmul.mubr.bf16.gmra.mrb[72].mxu0 %v1657_v40  ;;  %v21209_v28 = vld [vmem:[#allocation8_spill] sm:$0xff]  ;;  %v15169_v40 = vld [vmem:[%s21021_s3 + $0x2f8] sm:$0xff]   ;;  %13600 = vmatprep.subr.bf16.mxu1 %v15165_v7  ;;  %v1681_v15 = vpack.c.bf16 %v17412_v53, %v15947_v39  ;;  %v15173_v63 = vld [vmem:[%s21021_s3 + $0x3c0] sm:$0xff]  }
 0x191   : > { %4462 = vmatprep.mubr.bf16.mxu0 %v1682_v12  ;;  %13717 = vmatpush3.bf16.msra.mxu0 %v15162_v18  ;;  %v1400_v30 = vsel %vm1388_vm10, %v21209_v28, %v1399_v44  ;;  %v17416_v18 = vpack.c.bf16 %v17410_v31, %v17249_v24  ;;  %v15170_v12 = vld [vmem:[%s21021_s3 + $0x430] sm:$0xff]   ;;  %v15172_v43 = vld [vmem:[%s21021_s3 + $0x478] sm:$0xff]   ;;  %v1397_v7 = vsel %vm1388_vm10, %v21209_v28, %v1396_v61  ;;  %v21215_v61 = vld [vmem:[#allocation63_spill] sm:$0xff] }
 0x192   : > { %13718 = vmatprep.subr.bf16.mxu0 %v15164_v20  ;;  %v1608_v44 = vpack.c.bf16 %v17334_v47, %v1400_v30  ;;  %v15171_v20 = vld [vmem:[%s21021_s3 + $0x2b8] sm:$0xff]   ;;  %v21212_v30 = vld [vmem:[#allocation20_spill] sm:$0xff]  ;;  %v1607_v28 = vpack.c.bf16 %v21215_v61, %v1397_v7  ;;  %v21217_v7 = vld [vmem:[#allocation11_spill] sm:$0xff] }
 0x193   : > { %21210 = vst [vmem:[#allocation43_spill] sm:$0xff] %v17416_v18  ;;  %4268 = vmatmul.mubr.bf16.gmra.mrb[44].mxu1 %v17416_v18  ;;  %v21227_v18 = vld [vmem:[#allocation15_spill] sm:$0xff] }
 0x194   : > { %13601 = vmatpush3.bf16.msra.mxu1 %v15167_v60  ;;  %4373 = vmatprep.mubr.bf16.mxu1 %v1608_v44  ;;  %v15174_v60 = vld [vmem:[%s21021_s3 + $0x438] sm:$0xff]  }
 0x195   : > { %13719 = vmatpush3.bf16.msra.mxu0 %v15166_v1  ;;  %13602 = vmatprep.subr.bf16.mxu1 %v15169_v40  ;;  %v15175_v1 = vld [vmem:[%s21021_s3 + $0x380] sm:$0xff]   ;;  %v21213_v44 = vld [vmem:[#allocation18_spill] sm:$0xff]  ;;  %v15177_v40 = vld [vmem:[%s21021_s3 + $0x3c8] sm:$0xff]  }
 0x196   : > { %13720 = vmatprep.subr.bf16.mxu0 %v15168_v5  ;;  %v21214_v39 = vpack.c.bf16 %v21212_v30, %v21213_v44  ;;  %v15176_v5 = vld [vmem:[%s21021_s3 + $0x540] sm:$0xff]   ;;  %v15183_v44 = vld [vmem:[%s21021_s3 + $0x390] sm:$0xff]  }
 0x198   : > { %4463 = vmatmul.mubr.bf16.gmra.mrb[76].mxu0 %v1681_v15  ;;  %13603 = vmatpush3.bf16.msra.mxu1 %v15171_v20  ;;  %v15178_v15 = vld [vmem:[%s21021_s3 + $0x500] sm:$0xff]   ;;  %v15179_v20 = vld [vmem:[%s21021_s3 + $0x388] sm:$0xff]  }
 0x199   : > { %13721 = vmatpush3.bf16.msra.mxu0 %v15170_v12  ;;  %4568 = vmatprep.mubr.bf16.mxu0 %v21214_v39  ;;  %v17454_v12 = vpack.c.bf16 %v17341_v29, %v17270_v27  ;;  %v21220_v39 = vld [vmem:[#allocation23_spill] sm:$0xff] }
 0x19a   : > { %13722 = vmatprep.subr.bf16.mxu0 %v15172_v43  ;;  %13668 = vmatprep.subr.bf16.mxu1 %v15173_v63  ;;  %v15180_v43 = vld [vmem:[%s21021_s3 + $0x548] sm:$0xff]   ;;  %v15181_v63 = vld [vmem:[%s21021_s3 + $0x3d0] sm:$0xff]  }
 0x19b   : > { %21216 = vst [vmem:[#allocation57_spill] sm:$0xff] %v17454_v12  ;;  %4374 = vmatmul.mubr.bf16.vlgmr.msra.gmra.mrb[48].mxu1 %v1607_v28  ;;  %v21221_v28 = vld [vmem:[#allocation19_spill] sm:$0xff] }
 0x19c   : > { %4381 = vmatprep.mubr.bf16.mxu1 %v17454_v12  ;;  %13669 = vmatpush3.bf16.msra.mxu1 %v15175_v1  ;;  %v21218_v1 = vld [vmem:[#allocation9_spill] sm:$0xff]  ;;  %v21222_v12 = vpack.c.bf16 %v21220_v39, %v21221_v28  ;;  %v17506_v39 = vld [vmem:[#allocation2 + $0x228] sm:$0x3] }
 0x19d   : > { %13723 = vmatpush3.bf16.msra.mxu0 %v15174_v60  ;;  %13670 = vmatprep.subr.bf16.mxu1 %v15177_v40  ;;  %v15182_v60 = vld [vmem:[%s21021_s3 + $0x508] sm:$0xff]   ;;  %v21219_v30 = vpack.c.bf16 %v21217_v7, %v21218_v1  ;;  %v15185_v40 = vld [vmem:[%s21021_s3 + $0x3d8] sm:$0xff]  }
 0x19e   : > { %13788 = vmatprep.subr.bf16.mxu0 %v15176_v5  ;;  %v15184_v5 = vld [vmem:[%s21021_s3 + $0x550] sm:$0xff]   ;;  %v21223_v7 = vld [vmem:[#allocation64_spill] sm:$0xff] }
 0x19f   : > { %v17489_v1 = vpack.c.bf16 %v17351_v62, %v21223_v7  ;;  %v21226_v28 = vld [vmem:[#allocation12_spill] sm:$0xff]  ;;  %v15189_v62 = vld [vmem:[%s21021_s3 + $0x3e0] sm:$0xff]  }
 0x1a0   : > { %4569 = vmatmul.mubr.bf16.vlgmr.msra.gmra.mrb[80].mxu0 %v21219_v30  ;;  %13671 = vmatpush3.bf16.msra.mxu1 %v15179_v20  ;;  %v15187_v30 = vld [vmem:[%s21021_s3 + $0x398] sm:$0xff]  }
 0x1a1   : > { %4576 = vmatprep.mubr.bf16.mxu0 %v21222_v12  ;;  %13789 = vmatpush3.bf16.msra.mxu0 %v15178_v15  ;;  %21224 = vst [vmem:[#allocation8_spill] sm:$0xff] %v17489_v1  ;;  %v15186_v12 = vld [vmem:[%s21021_s3 + $0x510] sm:$0xff]   ;;  %v17496_v15 = vpack.c.bf16 %v17358_v10, %v17280_v23  ;;  %v15188_v20 = vld [vmem:[%s21021_s3 + $0x558] sm:$0xff]   ;;  %v1637_v10 = vpack.c.bf16 %v21227_v18, %v21226_v28  ;;  %v21228_v18 = vld [vmem:[#allocation28_spill] sm:$0xff] }
 0x1a2   : > { %13790 = vmatprep.subr.bf16.mxu0 %v15180_v43  ;;  %13672 = vmatprep.subr.bf16.mxu1 %v15181_v63  ;;  %v1482_v43 = vrot.slane %v16938_v49, 2  ;;  %v1483_v63 = vrot.slane %v17141_v41, 2  ;;  %v15190_v49 = vld [vmem:[%s21021_s3 + $0x518] sm:$0xff]   ;;  %v1528_v41 = vrot.slane %v17325_v38, 1  ;;  %v21229_v28 = vld [vmem:[#allocation24_spill] sm:$0xff] }
 0x1a3   : > { %21225 = vst [vmem:[#allocation45_spill] sm:$0xff] %v17496_v15  ;;  %4382 = vmatmul.mubr.bf16.gmra.mrb[52].mxu1 %v17489_v1  ;;  %v17537_v1 = vpack.c.bf16 %v17369_v6, %v17320_v56  ;;  %v1480_v6 = vrot.slane %v17327_v34, 2  ;;  %v15200_v34 = vld [vmem:[%s21021_s3 + $0x570] sm:$0xff]  }
 0x1a4   : > { %4389 = vmatprep.mubr.bf16.mxu1 %v17496_v15  ;;  %13673 = vmatpush3.bf16.msra.mxu1 %v15183_v44  ;;  %v15191_v44 = vld [vmem:[%s21021_s3 + $0x3a0] sm:$0xff]   ;;  %v21230_v15 = vpack.c.bf16 %v21228_v18, %v21229_v28  ;;  %v1479_v28 = vrot.slane %v21208_v55, 2  ;;  %v15199_v55 = vld [vmem:[%s21021_s3 + $0x3b0] sm:$0xff]  }
 0x1a5   : > { %13791 = vmatpush3.bf16.msra.mxu0 %v15182_v60  ;;  %13674 = vmatprep.subr.bf16.mxu1 %v15185_v40  ;;  %v1529_v60 = vrot.slane %v17506_v39, 1  ;;  %v15192_v40 = vld [vmem:[%s21021_s3 + $0x560] sm:$0xff]   ;;  %21232 = vst [vmem:[#allocation18_spill] sm:$0xff] %v17537_v1 }
 0x1a6   : > { %13792 = vmatprep.subr.bf16.mxu0 %v15184_v5  ;;  %v17527_v5 = vsel %vm1388_vm10, %v1482_v43, %v1483_v63  ;;  %v15197_v63 = vld [vmem:[%s21021_s3 + $0x3f0] sm:$0xff]  }
 0x1a7   : > { %21231 = vst [vmem:[#allocation20_spill] sm:$0xff] %v17527_v5  ;;  %v17547_v43 = vsel %vm1259_vm4, %v1528_v41, %v1529_v60  ;;  %v21233_v41 = vld [vmem:[#allocation16_spill] sm:$0xff] }
 0x1a8   : > { %4577 = vmatmul.mubr.bf16.gmra.mrb[84].mxu0 %v1637_v10  ;;  %v15193_v10 = vld [vmem:[%s21021_s3 + $0x3e8] sm:$0xff]   ;;  %13675 = vmatpush3.bf16.msra.mxu1 %v15187_v30 }
 0x1a9   : > { %4584 = vmatprep.mubr.bf16.mxu0 %v21230_v15  ;;  %13793 = vmatpush3.bf16.msra.mxu0 %v15186_v12  ;;  %v15194_v12 = vld [vmem:[%s21021_s3 + $0x520] sm:$0xff]   ;;  %v17544_v15 = vpack.c.bf16 %v17527_v5, %v17323_v36  ;;  %v15195_v30 = vld [vmem:[%s21021_s3 + $0x3a8] sm:$0xff]   ;;  %v21235_v5 = vld [vmem:[#allocation29_spill] sm:$0xff]  ;;  %v1525_v36 = vrot.slane %v17412_v53, 1 }
 0x1aa   : > { %13794 = vmatprep.subr.bf16.mxu0 %v15188_v20  ;;  %13676 = vmatprep.subr.bf16.mxu1 %v15189_v62  ;;  %v15196_v20 = vld [vmem:[%s21021_s3 + $0x568] sm:$0xff]   ;;  %v17555_v62 = vld [vmem:[#allocation2 + $0x220] sm:$0x3] }
 0x1ab   : > { %4390 = vmatmul.mubr.bf16.gmra.mrb[56].mxu1 %v17537_v1  ;;  %v21234_v60 = vld [vmem:[#allocation32_spill] sm:$0xff]  ;;  %v1686_v1 = vpack.c.bf16 %v17547_v43, %v21235_v5  ;;  %v15201_v5 = vld [vmem:[%s21021_s3 + $0x3f8] sm:$0xff]  }
 0x1ac   : > { %4397 = vmatprep.mubr.bf16.mxu1 %v17544_v15  ;;  %13677 = vmatpush3.bf16.msra.mxu1 %v15191_v44  ;;  %v1661_v18 = vpack.c.bf16 %v21234_v60, %v21233_v41  ;;  %v1526_v44 = vrot.slane %v17555_v62, 1  ;;  %v15205_v41 = vld [vmem:[%s21021_s3 + $0x4c0] sm:$0xff]   ;;  %v15206_v60 = vld [vmem:[%s21021_s3 + $0x538] sm:$0xff]  }
 0x1ad   : > { %13795 = vmatpush3.bf16.msra.mxu0 %v15190_v49  ;;  %13678 = vmatprep.subr.bf16.mxu1 %v15193_v10  ;;  %v15198_v49 = vld [vmem:[%s21021_s3 + $0x528] sm:$0xff]  }
 0x1ae   : > { %13796 = vmatprep.subr.bf16.mxu0 %v15192_v40  ;;  %v17583_v40 = vsel %vm1388_vm10, %v1479_v28, %v1480_v6  ;;  %v15204_v6 = vld [vmem:[%s21021_s3 + $0x578] sm:$0xff]   ;;  %v15209_v28 = vld [vmem:[%s21021_s3 + $0x4c8] sm:$0xff]  }
 0x1af   : > { %v17587_v10 = vpack.c.bf16 %v17583_v40, %v17344_v50 }
 0x1b0   : > { %4585 = vmatmul.mubr.bf16.gmra.mrb[88].mxu0 %v1661_v18  ;;  %13679 = vmatpush3.bf16.msra.mxu1 %v15195_v30  ;;  %v15203_v30 = vld [vmem:[%s21021_s3 + $0x3b8] sm:$0xff]   ;;  %v15207_v18 = vld [vmem:[%s21021_s3 + $0x480] sm:$0xff]  }
 0x1b1   : > { %4592 = vmatprep.mubr.bf16.mxu0 %v1686_v1  ;;  %13797 = vmatpush3.bf16.msra.mxu0 %v15194_v12  ;;  %v17590_v1 = vsel %vm1259_vm4, %v1525_v36, %v1526_v44  ;;  %v15202_v12 = vld [vmem:[%s21021_s3 + $0x530] sm:$0xff]   ;;  %v21236_v36 = vpack.c.bf16 %v16783_v16, %v16771_v54  ;;  %v21238_v54 = vpack.c.bf16 %v16815_v13, %v16749_v8  ;;  %v15208_v16 = vld [vmem:[%s21021_s3 + $0x640] sm:$0xff]   ;;  %v15211_v8 = vld [vmem:[%s21021_s3 + $0x488] sm:$0xff]  }
 0x1b2   : > { %13798 = vmatprep.subr.bf16.mxu0 %v15196_v20  ;;  %13680 = vmatprep.subr.bf16.mxu1 %v15197_v63  ;;  %v21237_v20 = vld [vmem:[#allocation33_spill] sm:$0xff]  ;;  %v15212_v13 = vld [vmem:[%s21021_s3 + $0x648] sm:$0xff]   ;;  %v21239_v44 = vpack.c.bf16 %v16843_v33, %v16773_v22  ;;  %v21244_v33 = vpack.c.bf16 %v16911_v21, %v16828_v52  ;;  %v15219_v21 = vld [vmem:[%s21021_s3 + $0x498] sm:$0xff]  }
 0x1b3   : > { %4398 = vmatmul.mubr.bf16.gmra.mrb[60].mxu1 %v17587_v10  ;;  %v1685_v63 = vpack.c.bf16 %v17590_v1, %v21237_v20  ;;  %v15220_v52 = vld [vmem:[%s21021_s3 + $0x658] sm:$0xff]   ;;  %v21245_v20 = vpack.c.bf16 %v16948_v2, %v16855_v3  ;;  %v1544_v3 = vrot.slane %v17325_v38, 2  ;;  %v1545_v2 = vrot.slane %v17506_v39, 2  ;;  %v15225_v38 = vld [vmem:[%s21021_s3 + $0x4e8] sm:$0xff]   ;;  %v15226_v39 = vld [vmem:[%s21021_s3 + $0x620] sm:$0xff]  }
 0x1b4   : > { %13681 = vmatpush3.bf16.msra.mxu1 %v15199_v55  ;;  %4503 = vmatprep.mubr.bf16.mxu1 %v21236_v36  ;;  %v21240_v55 = vpack.c.bf16 %v16869_v59, %v16785_v48  ;;  %v15215_v48 = vld [vmem:[%s21021_s3 + $0x490] sm:$0xff]  }
 0x1b5   : > { %13799 = vmatpush3.bf16.msra.mxu0 %v15198_v49  ;;  %13682 = vmatprep.subr.bf16.mxu1 %v15201_v5  ;;  %v15210_v49 = vld [vmem:[%s21021_s3 + $0x600] sm:$0xff]   ;;  %v15214_v5 = vld [vmem:[%s21021_s3 + $0x608] sm:$0xff]   ;;  %v15216_v59 = vld [vmem:[%s21021_s3 + $0x650] sm:$0xff]  }
 0x1b6   : > { %13800 = vmatprep.subr.bf16.mxu0 %v15200_v34  ;;  %v15213_v34 = vld [vmem:[%s21021_s3 + $0x4d0] sm:$0xff]  }
 0x1b7   : > { %v15218_v36 = vld [vmem:[%s21021_s3 + $0x610] sm:$0xff]  }
 0x1b8   : > { %4593 = vmatmul.mubr.bf16.gmra.mrb[92].mxu0 %v1685_v63  ;;  %13683 = vmatpush3.bf16.msra.mxu1 %v15203_v30  ;;  %v21242_v30 = vld [vmem:[#allocation36_spill] sm:$0xff]  ;;  %v21246_v63 = vpack.c.bf16 %v16936_v0, %v16853_v17  ;;  %v21248_v0 = vld [vmem:[#allocation41_spill] sm:$0xff] }
 0x1b9   : > { %13801 = vmatpush3.bf16.msra.mxu0 %v15202_v12  ;;  %4698 = vmatprep.mubr.bf16.mxu0 %v21238_v54  ;;  %v21241_v12 = vld [vmem:[#allocation37_spill] sm:$0xff]  ;;  %v21247_v54 = vld [vmem:[#allocation52_spill] sm:$0xff] }
 0x1ba   : > { %13802 = vmatprep.subr.bf16.mxu0 %v15204_v6  ;;  %13748 = vmatprep.subr.bf16.mxu1 %v15205_v41  ;;  %v21243_v22 = vpack.c.bf16 %v21241_v12, %v21242_v30  ;;  %v15217_v6 = vld [vmem:[%s21021_s3 + $0x4d8] sm:$0xff]   ;;  %v15221_v41 = vld [vmem:[%s21021_s3 + $0x4e0] sm:$0xff]   ;;  %v21249_v17 = vpack.c.bf16 %v21247_v54, %v21248_v0 }
 0x1bb   : > { %4504 = vmatmul.mubr.bf16.vlgmr.msra.gmra.mrb[64].mxu1 %v21239_v44  ;;  %v15228_v44 = vld [vmem:[%s21021_s3 + $0x668] sm:$0xff]   ;;  %v17722_v12 = vld [vmem:[#allocation2] sm:$0xff] }
 0x1bc   : > { %4511 = vmatprep.mubr.bf16.mxu1 %v21240_v55  ;;  %13749 = vmatpush3.bf16.msra.mxu1 %v15207_v18  ;;  %v17682_v18 = vld [vmem:[#allocation2 + $0x218] sm:$0xff]  ;;  %v21251_v55 = vpack.c.bf16 %v17002_v51, %v16913_v35  ;;  %v17725_v30 = vrot.slane %v17722_v12, 1  ;;  %v15230_v51 = vld [vmem:[%s21021_s3 + $0x628] sm:$0xff]   ;;  %v15237_v0 = vld [vmem:[%s21021_s3 + $0x5c0] sm:$0xff]  }
 0x1bd   : > { %13803 = vmatpush3.bf16.msra.mxu0 %v15206_v60  ;;  %13750 = vmatprep.subr.bf16.mxu1 %v15209_v28  ;;  %v15222_v60 = vld [vmem:[%s21021_s3 + $0x618] sm:$0xff]   ;;  %v21250_v28 = vpack.c.bf16 %v21186_v4, %v21185_v9  ;;  %v17706_v4 = vsel %vm1388_vm10, %v1544_v3, %v1545_v2 }
 0x1be   : > { %13868 = vmatprep.subr.bf16.mxu0 %v15208_v16  ;;  %v15223_v16 = vld [vmem:[%s21021_s3 + $0x4a0] sm:$0xff]   ;;  %v15236_v3 = vld [vmem:[%s21021_s3 + $0x678] sm:$0xff]  }
 0x1c0   : > { %4699 = vmatmul.mubr.bf16.vlgmr.msra.gmra.mrb[96].mxu0 %v21243_v22  ;;  %13751 = vmatpush3.bf16.msra.mxu1 %v15211_v8  ;;  %v15948_v8 = vld [vmem:[#allocation2 + $0x1d8] sm:$0xff]  ;;  %v21252_v22 = vld [vmem:[#allocation55_spill] sm:$0xff] }
 0x1c1   : > { %4706 = vmatprep.mubr.bf16.mxu0 %v21244_v33  ;;  %13869 = vmatpush3.bf16.msra.mxu0 %v15210_v49  ;;  %v15224_v49 = vld [vmem:[%s21021_s3 + $0x660] sm:$0xff]   ;;  %v1684_v9 = vpack.c.bf16 %v17682_v18, %v15948_v8  ;;  %v1690_v35 = vpack.c.bf16 %v17706_v4, %v21252_v22  ;;  %v1542_v33 = vrot.slane %v17555_v62, 2  ;;  %v15233_v62 = vld [vmem:[%s21021_s3 + $0x4f8] sm:$0xff]   ;;  %v15244_v22 = vld [vmem:[%s21021_s3 + $0x748] sm:$0xff]  }
 0x1c2   : > { %13870 = vmatprep.subr.bf16.mxu0 %v15212_v13  ;;  %13752 = vmatprep.subr.bf16.mxu1 %v15213_v34  ;;  %v15227_v13 = vld [vmem:[%s21021_s3 + $0x4a8] sm:$0xff]   ;;  %v17717_v34 = vld [vmem:[#allocation2 + $0x210] sm:$0xff] }
 0x1c3   : > { %4512 = vmatmul.mubr.bf16.gmra.mrb[68].mxu1 %v21245_v20  ;;  %v1531_v8 = vrot.slane %v17717_v34, 1 }
 0x1c4   : > { %4519 = vmatprep.mubr.bf16.mxu1 %v21246_v63  ;;  %13753 = vmatpush3.bf16.msra.mxu1 %v15215_v48  ;;  %v1541_v48 = vrot.slane %v17412_v53, 2  ;;  %v15232_v53 = vld [vmem:[%s21021_s3 + $0x670] sm:$0xff]  }
 0x1c5   : > { %13871 = vmatpush3.bf16.msra.mxu0 %v15214_v5  ;;  %13754 = vmatprep.subr.bf16.mxu1 %v15217_v6  ;;  %v15229_v5 = vld [vmem:[%s21021_s3 + $0x4f0] sm:$0xff]   ;;  %v17736_v6 = vld [vmem:[#allocation2 + $0x260] sm:$0x3] }
 0x1c6   : > { %13872 = vmatprep.subr.bf16.mxu0 %v15216_v59  ;;  %v17734_v59 = vld [vmem:[#allocation2 + $0x268] sm:$0x3]  ;;  %v17756_v63 = vsel %vm1388_vm10, %v1541_v48, %v1542_v33  ;;  %v1566_v54 = vrot.slane %v17736_v6, 1  ;;  %v1547_v48 = vrot.slane %v17717_v34, 2  ;;  %v15300_v6 = vld [vmem:[%s21021_s3 + $0x878] sm:$0xff]  }
 0x1c7   : > { %v1569_v2 = vrot.slane %v17734_v59, 1  ;;  %v15293_v59 = vld [vmem:[%s21021_s3 + $0x6f0] sm:$0xff]  }
 0x1c8   : > { %4707 = vmatmul.mubr.bf16.gmra.mrb[100].mxu0 %v21249_v17  ;;  %13755 = vmatpush3.bf16.msra.mxu1 %v15219_v21  ;;  %v15231_v21 = vld [vmem:[%s21021_s3 + $0x4b0] sm:$0xff]   ;;  %v21254_v17 = vpack.c.bf16 %v17093_v58, %v21189_v25  ;;  %v15239_v58 = vld [vmem:[%s21021_s3 + $0x580] sm:$0xff]  }
 0x1c9   : > { %4714 = vmatprep.mubr.bf16.mxu0 %v21250_v28  ;;  %13873 = vmatpush3.bf16.msra.mxu0 %v15218_v36  ;;  %v21253_v36 = vpack.c.bf16 %v21188_v19, %v21187_v37  ;;  %v17752_v19 = vld [vmem:[#allocation2 + $0x230] sm:$0x3] }
 0x1ca   : > { %13874 = vmatprep.subr.bf16.mxu0 %v15220_v52  ;;  %13756 = vmatprep.subr.bf16.mxu1 %v15221_v41  ;;  %v17750_v52 = vld [vmem:[#allocation2 + $0x238] sm:$0x3]  ;;  %v15950_v37 = vld [vmem:[#allocation2 + $0x1d0] sm:$0xff]  ;;  %v1548_v33 = vrot.slane %v17752_v19, 2 }
 0x1cb   : > { %4520 = vmatmul.mubr.bf16.gmra.mrb[72].mxu1 %v21251_v55  ;;  %v1683_v20 = vpack.c.bf16 %v17717_v34, %v15950_v37  ;;  %v15234_v41 = vld [vmem:[%s21021_s3 + $0x630] sm:$0xff]   ;;  %v15242_v55 = vld [vmem:[%s21021_s3 + $0x700] sm:$0xff]   ;;  %v21260_v37 = vpack.c.bf16 %v17155_v46, %v17111_v45  ;;  %v15249_v46 = vld [vmem:[%s21021_s3 + $0x5d8] sm:$0xff]  }
 0x1cc   : > { %4527 = vmatprep.mubr.bf16.mxu1 %v1684_v9  ;;  %13757 = vmatpush3.bf16.msra.mxu1 %v15223_v16  ;;  %v21255_v16 = vld [vmem:[#allocation61_spill] sm:$0xff]  ;;  %v1532_v9 = vrot.slane %v17752_v19, 1  ;;  %v15297_v34 = vld [vmem:[%s21021_s3 + $0x6f8] sm:$0xff]  }
 0x1cd   : > { %13875 = vmatpush3.bf16.msra.mxu0 %v15222_v60  ;;  %13758 = vmatprep.subr.bf16.mxu1 %v15225_v38  ;;  %v15235_v60 = vld [vmem:[%s21021_s3 + $0x4b8] sm:$0xff]   ;;  %v1689_v28 = vpack.c.bf16 %v17756_v63, %v21255_v16  ;;  %v1535_v38 = vrot.slane %v17750_v52, 1  ;;  %v21256_v25 = vld [vmem:[#allocation17_spill] sm:$0xff] }
 0x1ce   : > { %13876 = vmatprep.subr.bf16.mxu0 %v15224_v49  ;;  %v1534_v49 = vrot.slane %v17682_v18, 1  ;;  %v15248_v45 = vld [vmem:[%s21021_s3 + $0x750] sm:$0xff]   ;;  %v15252_v16 = vld [vmem:[%s21021_s3 + $0x758] sm:$0xff]  }
 0x1d0   : > { %4715 = vmatmul.mubr.bf16.gmra.mrb[104].mxu0 %v21253_v36  ;;  %13759 = vmatpush3.bf16.msra.mxu1 %v15227_v13  ;;  %v15240_v13 = vld [vmem:[%s21021_s3 + $0x740] sm:$0xff]   ;;  %v21257_v36 = vld [vmem:[#allocation50_spill] sm:$0xff] }
 0x1d1   : > { %4722 = vmatprep.mubr.bf16.mxu0 %v1690_v35  ;;  %13877 = vmatpush3.bf16.msra.mxu0 %v15226_v39  ;;  %v15238_v39 = vld [vmem:[%s21021_s3 + $0x638] sm:$0xff]   ;;  %v1550_v35 = vrot.slane %v17682_v18, 2 }
 0x1d2   : > { %13878 = vmatprep.subr.bf16.mxu0 %v15228_v44  ;;  %13760 = vmatprep.subr.bf16.mxu1 %v15229_v5  ;;  %v15241_v44 = vld [vmem:[%s21021_s3 + $0x5c8] sm:$0xff]  }
 0x1d3   : > { %4528 = vmatmul.mubr.bf16.gmra.mrb[76].mxu1 %v1683_v20  ;;  %v15243_v5 = vld [vmem:[%s21021_s3 + $0x588] sm:$0xff]  }
 0x1d4   : > { %13761 = vmatpush3.bf16.msra.mxu1 %v15231_v21  ;;  %4633 = vmatprep.mubr.bf16.mxu1 %v21254_v17  ;;  %v21258_v21 = vld [vmem:[#allocation49_spill] sm:$0xff]  ;;  %v15246_v20 = vld [vmem:[%s21021_s3 + $0x708] sm:$0xff]   ;;  %v15251_v17 = vld [vmem:[%s21021_s3 + $0x598] sm:$0xff]  }
 0x1d5   : > { %13879 = vmatpush3.bf16.msra.mxu0 %v15230_v51  ;;  %13762 = vmatprep.subr.bf16.mxu1 %v15233_v62  ;;  %v1551_v51 = vrot.slane %v17750_v52, 2  ;;  %v15245_v62 = vld [vmem:[%s21021_s3 + $0x5d0] sm:$0xff]   ;;  %v15290_v52 = vld [vmem:[%s21021_s3 + $0x820] sm:$0xff]  }
 0x1d6   : > { %13880 = vmatprep.subr.bf16.mxu0 %v15232_v53  ;;  %v21259_v53 = vpack.c.bf16 %v21257_v36, %v21258_v21  ;;  %v15261_v36 = vld [vmem:[%s21021_s3 + $0x5f0] sm:$0xff]  }
 0x1d8   : > { %4723 = vmatmul.mubr.bf16.gmra.mrb[108].mxu0 %v1689_v28  ;;  %13763 = vmatpush3.bf16.msra.mxu1 %v15235_v60  ;;  %v15247_v60 = vld [vmem:[%s21021_s3 + $0x590] sm:$0xff]   ;;  %v21263_v28 = vpack.c.bf16 %v17201_v26, %v17148_v11  ;;  %v15255_v26 = vld [vmem:[%s21021_s3 + $0x5a0] sm:$0xff]  }
 0x1d9   : > { %13881 = vmatpush3.bf16.msra.mxu0 %v15234_v41  ;;  %4828 = vmatprep.mubr.bf16.mxu0 %v21256_v25  ;;  %v21261_v41 = vld [vmem:[#allocation10_spill] sm:$0xff]  ;;  %v21266_v11 = vld [vmem:[#allocation27_spill] sm:$0xff] }
 0x1da   : > { %13882 = vmatprep.subr.bf16.mxu0 %v15236_v3  ;;  %13828 = vmatprep.subr.bf16.mxu1 %v15237_v0  ;;  %v21262_v3 = vld [vmem:[#allocation21_spill] sm:$0xff]  ;;  %v15254_v25 = vld [vmem:[%s21021_s3 + $0x718] sm:$0xff]  }
 0x1db   : > { %4634 = vmatmul.mubr.bf16.vlgmr.msra.gmra.mrb[80].mxu1 %v21259_v53  ;;  %v15250_v0 = vld [vmem:[%s21021_s3 + $0x710] sm:$0xff]   ;;  %v15262_v53 = vld [vmem:[%s21021_s3 + $0x728] sm:$0xff]  }
 0x1dc   : > { %4641 = vmatprep.mubr.bf16.mxu1 %v21260_v37  ;;  %13829 = vmatpush3.bf16.msra.mxu1 %v15239_v58  ;;  %v21264_v58 = vpack.c.bf16 %v17236_v14, %v17137_v57  ;;  %v15256_v57 = vld [vmem:[%s21021_s3 + $0x760] sm:$0xff]   ;;  %v15257_v14 = vld [vmem:[%s21021_s3 + $0x5e8] sm:$0xff]   ;;  %v15264_v37 = vld [vmem:[%s21021_s3 + $0x770] sm:$0xff]  }
 0x1dd   : > { %13883 = vmatpush3.bf16.msra.mxu0 %v15238_v39  ;;  %13830 = vmatprep.subr.bf16.mxu1 %v15241_v44  ;;  %v15253_v39 = vld [vmem:[%s21021_s3 + $0x5e0] sm:$0xff]   ;;  %v17857_v44 = vsel %vm1259_vm4, %v1534_v49, %v1535_v38  ;;  %v15259_v49 = vld [vmem:[%s21021_s3 + $0x5a8] sm:$0xff]  }
 0x1de   : > { %13948 = vmatprep.subr.bf16.mxu0 %v15240_v13  ;;  %v21265_v13 = vld [vmem:[#allocation14_spill] sm:$0xff]  ;;  %v15260_v38 = vld [vmem:[%s21021_s3 + $0x768] sm:$0xff]  }
 0x1e0   : > { %4829 = vmatmul.mubr.bf16.vlgmr.msra.gmra.mrb[112].mxu0 %v21261_v41  ;;  %13831 = vmatpush3.bf16.msra.mxu1 %v15243_v5  ;;  %v1688_v5 = vpack.c.bf16 %v17857_v44, %v17311_v42  ;;  %v15951_v42 = vld [vmem:[#allocation2 + $0x208] sm:$0xff]  ;;  %v15267_v41 = vld [vmem:[%s21021_s3 + $0x5b8] sm:$0xff]  }
 0x1e1   : > { %4836 = vmatprep.mubr.bf16.mxu0 %v21262_v3  ;;  %13949 = vmatpush3.bf16.msra.mxu0 %v15242_v55  ;;  %v15258_v55 = vld [vmem:[%s21021_s3 + $0x720] sm:$0xff]   ;;  %v1694_v21 = vpack.c.bf16 %v17722_v12, %v15951_v42  ;;  %v21278_v42 = vld [vmem:[#allocation48_spill] sm:$0xff] }
 0x1e2   : > { %13950 = vmatprep.subr.bf16.mxu0 %v15244_v22  ;;  %13832 = vmatprep.subr.bf16.mxu1 %v15245_v62  ;;  %v21267_v22 = vpack.c.bf16 %v17249_v24, %v17204_v32  ;;  %v21268_v62 = vld [vmem:[#allocation31_spill] sm:$0xff]  ;;  %v17892_v32 = vsel %vm1259_vm4, %v1531_v8, %v1532_v9  ;;  %v15263_v24 = vld [vmem:[%s21021_s3 + $0x5b0] sm:$0xff]  }
 0x1e3   : > { %4642 = vmatmul.mubr.bf16.gmra.mrb[84].mxu1 %v21263_v28  ;;  %v1687_v8 = vpack.c.bf16 %v17892_v32, %v17410_v31  ;;  %v15266_v9 = vld [vmem:[%s21021_s3 + $0x730] sm:$0xff]   ;;  %v15269_v3 = vld [vmem:[%s21021_s3 + $0x6c0] sm:$0xff]   ;;  %v21269_v31 = vpack.c.bf16 %v17270_v27, %v17334_v47  ;;  %v15273_v47 = vld [vmem:[%s21021_s3 + $0x6c8] sm:$0xff]  }
 0x1e4   : > { %4649 = vmatprep.mubr.bf16.mxu1 %v21264_v58  ;;  %13833 = vmatpush3.bf16.msra.mxu1 %v15247_v60  ;;  %v15268_v60 = vld [vmem:[%s21021_s3 + $0x778] sm:$0xff]   ;;  %v15272_v27 = vld [vmem:[%s21021_s3 + $0x840] sm:$0xff]   ;;  %v15276_v58 = vld [vmem:[%s21021_s3 + $0x848] sm:$0xff]  }
 0x1e5   : > { %13951 = vmatpush3.bf16.msra.mxu0 %v15246_v20  ;;  %13834 = vmatprep.subr.bf16.mxu1 %v15249_v46  ;;  %v15265_v20 = vld [vmem:[%s21021_s3 + $0x5f8] sm:$0xff]   ;;  %v15274_v28 = vld [vmem:[%s21021_s3 + $0x800] sm:$0xff]  }
 0x1e6   : > { %13952 = vmatprep.subr.bf16.mxu0 %v15248_v45  ;;  %v15952_v45 = vld [vmem:[#allocation2 + $0x200] sm:$0xff] }
 0x1e7   : > { %v1693_v46 = vpack.c.bf16 %v17722_v12, %v15952_v45 }
 0x1e8   : > { %4837 = vmatmul.mubr.bf16.gmra.mrb[116].mxu0 %v21265_v13  ;;  %13835 = vmatpush3.bf16.msra.mxu1 %v15251_v17  ;;  %v15271_v17 = vld [vmem:[%s21021_s3 + $0x680] sm:$0xff]   ;;  %v15277_v13 = vld [vmem:[%s21021_s3 + $0x6d0] sm:$0xff]  }
 0x1e9   : > { %4844 = vmatprep.mubr.bf16.mxu0 %v21266_v11  ;;  %13953 = vmatpush3.bf16.msra.mxu0 %v15250_v0  ;;  %v15270_v0 = vld [vmem:[%s21021_s3 + $0x738] sm:$0xff]   ;;  %v15278_v11 = vld [vmem:[%s21021_s3 + $0x808] sm:$0xff]  }
 0x1ea   : > { %13954 = vmatprep.subr.bf16.mxu0 %v15252_v16  ;;  %13836 = vmatprep.subr.bf16.mxu1 %v15253_v39  ;;  %v21270_v16 = vld [vmem:[#allocation22_spill] sm:$0xff]  ;;  %v15275_v39 = vld [vmem:[%s21021_s3 + $0x688] sm:$0xff]  }
 0x1eb   : > { %4650 = vmatmul.mubr.bf16.gmra.mrb[88].mxu1 %v21267_v22  ;;  %v15285_v22 = vld [vmem:[%s21021_s3 + $0x6e0] sm:$0xff]  }
 0x1ec   : > { %4657 = vmatprep.mubr.bf16.mxu1 %v1688_v5  ;;  %13837 = vmatpush3.bf16.msra.mxu1 %v15255_v26  ;;  %v21272_v26 = vpack.c.bf16 %v17280_v23, %v17341_v29  ;;  %v15280_v23 = vld [vmem:[%s21021_s3 + $0x850] sm:$0xff]   ;;  %v15281_v29 = vld [vmem:[%s21021_s3 + $0x6d8] sm:$0xff]  }
 0x1ed   : > { %13955 = vmatpush3.bf16.msra.mxu0 %v15254_v25  ;;  %13838 = vmatprep.subr.bf16.mxu1 %v15257_v14  ;;  %v21271_v25 = vpack.c.bf16 %v21223_v7, %v21215_v61  ;;  %v15279_v61 = vld [vmem:[%s21021_s3 + $0x690] sm:$0xff]   ;;  %v15284_v5 = vld [vmem:[%s21021_s3 + $0x858] sm:$0xff]  }
 0x1ee   : > { %13956 = vmatprep.subr.bf16.mxu0 %v15256_v57  ;;  %v21273_v57 = vld [vmem:[#allocation13_spill] sm:$0xff] }
 0x1ef   : > { %v21274_v7 = vld [vmem:[#allocation25_spill] sm:$0xff] }
 0x1f0   : > { %4845 = vmatmul.mubr.bf16.gmra.mrb[120].mxu0 %v21268_v62  ;;  %13839 = vmatpush3.bf16.msra.mxu1 %v15259_v49  ;;  %v15282_v14 = vld [vmem:[%s21021_s3 + $0x810] sm:$0xff]   ;;  %v21280_v62 = vld [vmem:[#allocation26_spill] sm:$0xff] }
 0x1f1   : > { %4852 = vmatprep.mubr.bf16.mxu0 %v1694_v21  ;;  %13957 = vmatpush3.bf16.msra.mxu0 %v15258_v55  ;;  %v15283_v55 = vld [vmem:[%s21021_s3 + $0x698] sm:$0xff]   ;;  %v21275_v49 = vld [vmem:[#allocation53_spill] sm:$0xff] }
 0x1f2   : > { %13958 = vmatprep.subr.bf16.mxu0 %v15260_v38  ;;  %13840 = vmatprep.subr.bf16.mxu1 %v15261_v36  ;;  %v21276_v38 = vpack.c.bf16 %v17320_v56, %v21275_v49  ;;  %v21277_v36 = vld [vmem:[#allocation42_spill] sm:$0xff]  ;;  %v15287_v56 = vld [vmem:[%s21021_s3 + $0x6a0] sm:$0xff]   ;;  %v15304_v49 = vld [vmem:[%s21021_s3 + $0x7c8] sm:$0xff]  }
 0x1f3   : > { %4658 = vmatmul.mubr.bf16.gmra.mrb[92].mxu1 %v1687_v8  ;;  %v21279_v21 = vpack.c.bf16 %v21277_v36, %v21278_v42  ;;  %v15289_v8 = vld [vmem:[%s21021_s3 + $0x6e8] sm:$0xff]  }
 0x1f4   : > { %13841 = vmatpush3.bf16.msra.mxu1 %v15263_v24  ;;  %4763 = vmatprep.mubr.bf16.mxu1 %v21269_v31  ;;  %v21281_v24 = vld [vmem:[#allocation30_spill] sm:$0xff]  ;;  %v15294_v31 = vld [vmem:[%s21021_s3 + $0x828] sm:$0xff]  }
 0x1f5   : > { %13959 = vmatpush3.bf16.msra.mxu0 %v15262_v53  ;;  %13842 = vmatprep.subr.bf16.mxu1 %v15265_v20  ;;  %v15286_v53 = vld [vmem:[%s21021_s3 + $0x818] sm:$0xff]   ;;  %v15288_v20 = vld [vmem:[%s21021_s3 + $0x860] sm:$0xff]  }
 0x1f6   : > { %13960 = vmatprep.subr.bf16.mxu0 %v15264_v37  ;;  %v17997_v37 = vsel %vm1388_vm10, %v1550_v35, %v1551_v51  ;;  %v1570_v35 = vsel %vm1259_vm4, %v17725_v30, %v1569_v2  ;;  %v15291_v51 = vld [vmem:[%s21021_s3 + $0x6a8] sm:$0xff]  }
 0x1f7   : > { %v1698_v2 = vpack.c.bf16 %v1570_v35, %v17547_v43  ;;  %v15296_v43 = vld [vmem:[%s21021_s3 + $0x870] sm:$0xff]  }
 0x1f8   : > { %4853 = vmatmul.mubr.bf16.gmra.mrb[124].mxu0 %v1693_v46  ;;  %13843 = vmatpush3.bf16.msra.mxu1 %v15267_v41  ;;  %v15292_v41 = vld [vmem:[%s21021_s3 + $0x868] sm:$0xff]   ;;  %v21285_v46 = vld [vmem:[#allocation34_spill] sm:$0xff] }
 0x1f9   : > { %13961 = vmatpush3.bf16.msra.mxu0 %v15266_v9  ;;  %4958 = vmatprep.mubr.bf16.mxu0 %v21270_v16  ;;  %v21282_v9 = vld [vmem:[#allocation20_spill] sm:$0xff] }
 0x1fa   : > { %13962 = vmatprep.subr.bf16.mxu0 %v15268_v60  ;;  %13908 = vmatprep.subr.bf16.mxu1 %v15269_v3  ;;  %v1692_v18 = vpack.c.bf16 %v17997_v37, %v21282_v9  ;;  %v21283_v60 = vld [vmem:[#allocation58_spill] sm:$0xff] }
 0x1fb   : > { %4764 = vmatmul.mubr.bf16.vlgmr.msra.gmra.mrb[96].mxu1 %v21271_v25  ;;  %v21284_v3 = vpack.c.bf16 %v17344_v50, %v21283_v60  ;;  %v18036_v50 = vsel %vm1388_vm10, %v1547_v48, %v1548_v33  ;;  %v15299_v25 = vld [vmem:[%s21021_s3 + $0x6b8] sm:$0xff]  }
 0x1fc   : > { %4771 = vmatprep.mubr.bf16.mxu1 %v21272_v26  ;;  %13909 = vmatpush3.bf16.msra.mxu1 %v15271_v17  ;;  %v1691_v33 = vpack.c.bf16 %v18036_v50, %v17583_v40  ;;  %v21286_v26 = vld [vmem:[#allocation35_spill] sm:$0xff] }
 0x1fd   : > { %13963 = vmatpush3.bf16.msra.mxu0 %v15270_v0  ;;  %13910 = vmatprep.subr.bf16.mxu1 %v15273_v47  ;;  %v15295_v0 = vld [vmem:[%s21021_s3 + $0x6b0] sm:$0xff]   ;;  %v1567_v47 = vsel %vm1259_vm4, %v17725_v30, %v1566_v54 }
 0x1fe   : > { %14028 = vmatprep.subr.bf16.mxu0 %v15272_v27 }
 0x200   : > { %4959 = vmatmul.mubr.bf16.vlgmr.msra.gmra.mrb[128].mxu0 %v21273_v57  ;;  %13911 = vmatpush3.bf16.msra.mxu1 %v15275_v39  ;;  %v15301_v57 = vld [vmem:[%s21021_s3 + $0x7c0] sm:$0xff]  }
 0x201   : > { %4966 = vmatprep.mubr.bf16.mxu0 %v21274_v7  ;;  %14029 = vmatpush3.bf16.msra.mxu0 %v15274_v28  ;;  %v15298_v28 = vld [vmem:[%s21021_s3 + $0x830] sm:$0xff]  }
 0x202   : > { %14030 = vmatprep.subr.bf16.mxu0 %v15276_v58  ;;  %13912 = vmatprep.subr.bf16.mxu1 %v15277_v13 }
 0x203   : > { %4772 = vmatmul.mubr.bf16.gmra.mrb[100].mxu1 %v21276_v38 }
 0x204   : > { %4779 = vmatprep.mubr.bf16.mxu1 %v21279_v21  ;;  %13913 = vmatpush3.bf16.msra.mxu1 %v15279_v61 }
 0x205   : > { %14031 = vmatpush3.bf16.msra.mxu0 %v15278_v11  ;;  %13914 = vmatprep.subr.bf16.mxu1 %v15281_v29  ;;  %v13404_v45 = vpop.f32.mrb[0].mxu1  ;;  %v1697_v11 = vpack.c.bf16 %v1567_v47, %v17590_v1  ;;  %v15303_v1 = vld [vmem:[%s21021_s3 + $0x780] sm:$0xff]  }
 0x206   : > { %14032 = vmatprep.subr.bf16.mxu0 %v15280_v23  ;;  %v13405_v17 = vpop.f32.mrb[1].mxu1  ;;  %v15302_v23 = vld [vmem:[%s21021_s3 + $0x838] sm:$0xff]  }
 0x207   : > { %v18044_v16 = vadd.f32 %v13405_v17, %v13404_v45  ;;  %v13407_v27 = vpop.f32.mrb[2].mxu1  ;;  %v18112_v45 = vrot.slane %v17722_v12, 2  ;;  %v15310_v12 = vld [vmem:[%s21021_s3 + $0x7e0] sm:$0xff]  }
 0x208   : > { %4967 = vmatmul.mubr.bf16.gmra.mrb[132].mxu0 %v21280_v62  ;;  %13915 = vmatpush3.bf16.msra.mxu1 %v15283_v55  ;;  %v13408_v19 = vpop.f32.mrb[3].mxu1  ;;  %v21288_v62 = vld [vmem:[#allocation39_spill] sm:$0xff] }
 0x209   : > { %4974 = vmatprep.mubr.bf16.mxu0 %v21281_v24  ;;  %14033 = vmatpush3.bf16.msra.mxu0 %v15282_v14  ;;  %v18058_v39 = vadd.f32 %v13408_v19, %v13407_v27  ;;  %v21287_v14 = vld [vmem:[#allocation38_spill] sm:$0xff]  ;;  %v21292_v27 = vld [vmem:[#allocation47_spill] sm:$0xff] }
 0x20a   : > { %14034 = vmatprep.subr.bf16.mxu0 %v15284_v5  ;;  %13916 = vmatprep.subr.bf16.mxu1 %v15285_v22  ;;  %v13484_v48 = vpop.f32.mrb[32].mxu0 }
 0x20b   : > { %4780 = vmatmul.mubr.bf16.gmra.mrb[104].mxu1 %v21284_v3  ;;  %v13485_v58 = vpop.f32.mrb[33].mxu0 }
 0x20c   : > { %4787 = vmatprep.mubr.bf16.mxu1 %v1692_v18  ;;  %13917 = vmatpush3.bf16.msra.mxu1 %v15287_v56  ;;  %v18063_v13 = vadd.f32 %v13485_v58, %v13484_v48  ;;  %v13487_v40 = vpop.f32.mrb[34].mxu0  ;;  %v15305_v56 = vld [vmem:[%s21021_s3 + $0x788] sm:$0xff]   ;;  %v21293_v48 = vld [vmem:[#allocation51_spill] sm:$0xff] }
 0x20d   : > { %14035 = vmatpush3.bf16.msra.mxu0 %v15286_v53  ;;  %13918 = vmatprep.subr.bf16.mxu1 %v15289_v8  ;;  %v13488_v54 = vpop.f32.mrb[35].mxu0  ;;  %v13410_v7 = vpop.f32.mrb[4].mxu1  ;;  %v15306_v8 = vld [vmem:[%s21021_s3 + $0x7d0] sm:$0xff]   ;;  %v21290_v18 = vld [vmem:[#allocation44_spill] sm:$0xff] }
 0x20e   : > { %14036 = vmatprep.subr.bf16.mxu0 %v15288_v20  ;;  %v18073_v61 = vadd.f32 %v13488_v54, %v13487_v40  ;;  %v13411_v29 = vpop.f32.mrb[5].mxu1  ;;  %v21289_v20 = vld [vmem:[#allocation40_spill] sm:$0xff]  ;;  %v15311_v54 = vld [vmem:[%s21021_s3 + $0x7a0] sm:$0xff]  }
 0x20f   : > { %v18082_v55 = vadd.f32 %v13411_v29, %v13410_v7  ;;  %v13413_v5 = vpop.f32.mrb[6].mxu1  ;;  %v15953_v58 = vld [vmem:[#allocation2 + $0x268] sm:$0x3] }
 0x210   : > { %4975 = vmatmul.mubr.bf16.gmra.mrb[136].mxu0 %v21285_v46  ;;  %13919 = vmatpush3.bf16.msra.mxu1 %v15291_v51  ;;  %v13414_v38 = vpop.f32.mrb[7].mxu1  ;;  %v21291_v51 = vld [vmem:[#allocation46_spill] sm:$0xff] }
 0x211   : > { %4982 = vmatprep.mubr.bf16.mxu0 %v1698_v2  ;;  %14037 = vmatpush3.bf16.msra.mxu0 %v15290_v52  ;;  %v18087_v36 = vadd.f32 %v13414_v38, %v13413_v5  ;;  %v15955_v5 = vld [vmem:[#allocation2 + $0x218] sm:$0xff] }
 0x212   : > { %14038 = vmatprep.subr.bf16.mxu0 %v15292_v41  ;;  %13920 = vmatprep.subr.bf16.mxu1 %v15293_v59  ;;  %v13490_v22 = vpop.f32.mrb[36].mxu0  ;;  %v15307_v41 = vld [vmem:[%s21021_s3 + $0x790] sm:$0xff]   ;;  %v15308_v59 = vld [vmem:[%s21021_s3 + $0x7d8] sm:$0xff]  }
 0x213   : > { %4788 = vmatmul.mubr.bf16.gmra.mrb[108].mxu1 %v1691_v33  ;;  %v13491_v42 = vpop.f32.mrb[37].mxu0 }
 0x214   : > { %13921 = vmatpush3.bf16.msra.mxu1 %v15295_v0  ;;  %4893 = vmatprep.mubr.bf16.mxu1 %v21286_v26  ;;  %v18089_v21 = vadd.f32 %v13491_v42, %v13490_v22  ;;  %v13493_v53 = vpop.f32.mrb[38].mxu0  ;;  %v15956_v22 = vld [vmem:[#allocation2 + $0x260] sm:$0x3] }
 0x215   : > { %14039 = vmatpush3.bf16.msra.mxu0 %v15294_v31  ;;  %13922 = vmatprep.subr.bf16.mxu1 %v15297_v34  ;;  %v13494_v24 = vpop.f32.mrb[39].mxu0  ;;  %v13416_v9 = vpop.f32.mrb[8].mxu1  ;;  %v15309_v34 = vld [vmem:[%s21021_s3 + $0x798] sm:$0xff]   ;;  %v1582_v42 = vrot.slane %v15956_v22, 2 }
 0x216   : > { %14040 = vmatprep.subr.bf16.mxu0 %v15296_v43  ;;  %v18099_v52 = vadd.f32 %v13494_v24, %v13493_v53  ;;  %v13417_v35 = vpop.f32.mrb[9].mxu1  ;;  %v18145_v53 = vld [vmem:[%s21022_s4] ss:$0 sm:$0xff]  ;;  %v21296_v24 = vld [vmem:[#allocation60_spill] sm:$0xff] }
 0x217   : > { %v18106_v60 = vadd.f32 %v13417_v35, %v13416_v9  ;;  %v13419_v3 = vpop.f32.mrb[10].mxu1  ;;  %v15314_v9 = vld [vmem:[%s21021_s3 + $0x7f0] sm:$0xff]  }
 0x218   : > { %4983 = vmatmul.mubr.bf16.gmra.mrb[140].mxu0 %v1697_v11  ;;  %13923 = vmatpush3.bf16.msra.mxu1 %v15299_v25  ;;  %v13420_v2 = vpop.f32.mrb[11].mxu1  ;;  %v1585_v25 = vrot.slane %v15953_v58, 2 }
 0x219   : > { %14041 = vmatpush3.bf16.msra.mxu0 %v15298_v28  ;;  %5088 = vmatprep.mubr.bf16.mxu0 %v21287_v14  ;;  %v18114_v46 = vadd.f32 %v13420_v2, %v13419_v3  ;;  %v21294_v28 = vld [vmem:[#allocation54_spill] sm:$0xff]  ;;  %v4051_v2 = vadd.f32 %v18044_v16, %v18145_v53 }
 0x21a   : > { %14042 = vmatprep.subr.bf16.mxu0 %v15300_v6  ;;  %13988 = vmatprep.subr.bf16.mxu1 %v15301_v57  ;;  %v21295_v6 = vld [vmem:[#allocation56_spill] sm:$0xff]  ;;  %v1586_v38 = vsel %vm1388_vm10, %v18112_v45, %v1585_v25 }
 0x21b   : > { %4894 = vmatmul.mubr.bf16.vlgmr.msra.gmra.mrb[112].mxu1 %v21288_v62  ;;  %v13496_v31 = vpop.f32.mrb[40].mxu0  ;;  %v15312_v57 = vld [vmem:[%s21021_s3 + $0x7e8] sm:$0xff]   ;;  %v1702_v35 = vpack.c.bf16 %v1586_v38, %v17706_v4 }
 0x21c   : > { %4901 = vmatprep.mubr.bf16.mxu1 %v21289_v20  ;;  %13989 = vmatpush3.bf16.msra.mxu1 %v15303_v1  ;;  %v13497_v0 = vpop.f32.mrb[41].mxu0  ;;  %v15954_v1 = vld [vmem:[#allocation2] sm:$0xff]  ;;  %v15313_v20 = vld [vmem:[%s21021_s3 + $0x7a8] sm:$0xff]  }
 0x21d   : > { %14043 = vmatpush3.bf16.msra.mxu0 %v15302_v23  ;;  %13990 = vmatprep.subr.bf16.mxu1 %v15304_v49  ;;  %v18116_v17 = vadd.f32 %v13497_v0, %v13496_v31  ;;  %v13499_v43 = vpop.f32.mrb[42].mxu0  ;;  %v1696_v49 = vpack.c.bf16 %v15954_v1, %v15955_v5 }
 0x21e   : > { %v13500_v19 = vpop.f32.mrb[43].mxu0 }
 0x21f   : > { %v18126_v33 = vadd.f32 %v13500_v19, %v13499_v43  ;;  %v15316_v43 = vld [vmem:[%s21021_s3 + $0x7f8] sm:$0xff]  }
 0x220   : > { %5089 = vmatmul.mubr.bf16.vlgmr.msra.gmra.mrb[144].mxu0 %v21290_v18  ;;  %13991 = vmatpush3.bf16.msra.mxu1 %v15305_v56 }
 0x221   : > { %5096 = vmatprep.mubr.bf16.mxu0 %v21291_v51  ;;  %13992 = vmatprep.subr.bf16.mxu1 %v15306_v8 }
 0x223   : > { %4902 = vmatmul.mubr.bf16.gmra.mrb[116].mxu1 %v21292_v27  ;;  %v13422_v47 = vpop.f32.mrb[12].mxu1 }
 0x224   : > { %4909 = vmatprep.mubr.bf16.mxu1 %v21293_v48  ;;  %13993 = vmatpush3.bf16.msra.mxu1 %v15307_v41  ;;  %v13423_v40 = vpop.f32.mrb[13].mxu1  ;;  %v21297_v41 = vld [vmem:[#allocation62_spill] sm:$0xff]  ;;  %v1583_v48 = vsel %vm1388_vm10, %v18112_v45, %v1582_v42 }
 0x225   : > { %13994 = vmatprep.subr.bf16.mxu1 %v15308_v59  ;;  %v18133_v26 = vadd.f32 %v13423_v40, %v13422_v47  ;;  %v13425_v11 = vpop.f32.mrb[14].mxu1  ;;  %v15315_v59 = vld [vmem:[%s21021_s3 + $0x7b0] sm:$0xff]   ;;  %v15317_v40 = vld [vmem:[%s21021_s3 + $0x7b8] sm:$0xff]  }
 0x226   : > { %v13426_v7 = vpop.f32.mrb[15].mxu1 }
 0x227   : > { %v18138_v29 = vadd.f32 %v13426_v7, %v13425_v11  ;;  %v21298_v11 = vld [vmem:[#allocation65_spill] sm:$0xff] }
 0x228   : > { %5097 = vmatmul.mubr.bf16.gmra.mrb[148].mxu0 %v21294_v28  ;;  %13995 = vmatpush3.bf16.msra.mxu1 %v15309_v34  ;;  %v15957_v34 = vld [vmem:[#allocation2 + $0x210] sm:$0xff] }
 0x229   : > { %5104 = vmatprep.mubr.bf16.mxu0 %v21295_v6  ;;  %v13502_v23 = vpop.f32.mrb[44].mxu0  ;;  %13996 = vmatprep.subr.bf16.mxu1 %v15310_v12  ;;  %v1695_v19 = vpack.c.bf16 %v15954_v1, %v15957_v34  ;;  %v4054_v12 = vadd.f32 %v18058_v39, %v18145_v53  ;;  %v15318_v39 = vld [vmem:[%s21021_s3 + $0x8c0] sm:$0xff]   ;;  %v15323_v34 = vld [vmem:[%s21021_s3 + $0x890] sm:$0xff]  }
 0x22a   : > { %v13503_v14 = vpop.f32.mrb[45].mxu0 }
 0x22b   : > { %v18147_v62 = vadd.f32 %v13503_v14, %v13502_v23  ;;  %v13505_v56 = vpop.f32.mrb[46].mxu0  ;;  %4910 = vmatmul.mubr.bf16.gmra.mrb[120].mxu1 %v21296_v24 }
 0x22c   : > { %v13506_v8 = vpop.f32.mrb[47].mxu0  ;;  %4917 = vmatprep.mubr.bf16.mxu1 %v1696_v49  ;;  %13997 = vmatpush3.bf16.msra.mxu1 %v15311_v54  ;;  %v13444_v51 = vpop.f32.mrb[16].mxu1  ;;  %v4059_v49 = vadd.f32 %v18082_v55, %v18145_v53  ;;  %v21299_v55 = vld [vmem:[#allocation66_spill] sm:$0xff] }
 0x22d   : > { %v18156_v18 = vadd.f32 %v13506_v8, %v13505_v56  ;;  %13998 = vmatprep.subr.bf16.mxu1 %v15312_v57  ;;  %v13445_v3 = vpop.f32.mrb[17].mxu1  ;;  %v1701_v57 = vpack.c.bf16 %v1583_v48, %v17756_v63  ;;  %v15319_v63 = vld [vmem:[%s21021_s3 + $0x880] sm:$0xff]  }
 0x22e   : > { %v13446_v31 = vadd.f32 %v13445_v3, %v13444_v51  ;;  %v13447_v0 = vpop.f32.mrb[18].mxu1  ;;  %v15321_v51 = vld [vmem:[%s21021_s3 + $0x888] sm:$0xff]  }
 0x22f   : > { %v13448_v4 = vpop.f32.mrb[19].mxu1 }
 0x230   : > { %5105 = vmatmul.mubr.bf16.gmra.mrb[152].mxu0 %v21297_v41  ;;  %13999 = vmatpush3.bf16.msra.mxu1 %v15313_v20  ;;  %v4116_v47 = vadd.f32 %v13446_v31, %v4051_v2  ;;  %v13449_v16 = vadd.f32 %v13448_v4, %v13447_v0  ;;  %v18215_v0 = vld [vmem:[#allocation2 + $0x278] sm:$0x3] }
 0x231   : > { %5112 = vmatprep.mubr.bf16.mxu0 %v1702_v35  ;;  %14000 = vmatprep.subr.bf16.mxu1 %v15314_v9 }
 0x232   : > { %v4119_v6 = vadd.f32 %v13449_v16, %v4054_v12  ;;  %v18183_v7 = vadd.f32 %v18063_v13, %v4116_v47  ;;  %v15320_v13 = vld [vmem:[%s21021_s3 + $0x8c8] sm:$0xff]   ;;  %v15324_v12 = vld [vmem:[%s21021_s3 + $0x8d8] sm:$0xff]  }
 0x233   : > { %v13564_v27 = vpop.f32.mrb[48].mxu0  ;;  %4918 = vmatmul.mubr.bf16.gmra.mrb[124].mxu1 %v1695_v19  ;;  %v4067_v19 = vadd.f32 %v18106_v60, %v18145_v53  ;;  %v1575_v60 = vrot.slane %v18215_v0, 1 }
 0x234   : > { %v13565_v28 = vpop.f32.mrb[49].mxu0  ;;  %14001 = vmatpush3.bf16.msra.mxu1 %v15315_v59  ;;  %5023 = vmatprep.mubr.bf16.mxu1 %v21298_v11  ;;  %v18188_v1 = vadd.f32 %v18073_v61, %v4119_v6  ;;  %v4062_v61 = vadd.f32 %v18087_v36, %v18145_v53  ;;  %v21300_v59 = vld [vmem:[#allocation67_spill] sm:$0xff]  ;;  %v15322_v36 = vld [vmem:[%s21021_s3 + $0x8d0] sm:$0xff]  }
 0x235   : > { %v18172_v58 = vadd.f32 %v13565_v28, %v13564_v27  ;;  %v13567_v25 = vpop.f32.mrb[50].mxu0  ;;  %14002 = vmatprep.subr.bf16.mxu1 %v15316_v43  ;;  %v13450_v14 = vpop.f32.mrb[20].mxu1  ;;  %v4070_v28 = vadd.f32 %v18114_v46, %v18145_v53  ;;  %v15326_v46 = vld [vmem:[%s21021_s3 + $0x8e0] sm:$0xff]  }
 0x236   : > { %v13568_v54 = vpop.f32.mrb[51].mxu0  ;;  %v13451_v5 = vpop.f32.mrb[21].mxu1 }
 0x237   : > { %v18185_v23 = vadd.f32 %v13568_v54, %v13567_v25  ;;  %v13452_v38 = vadd.f32 %v13451_v5, %v13450_v14  ;;  %v13453_v22 = vpop.f32.mrb[22].mxu1 }
 0x238   : > { %5113 = vmatmul.mubr.bf16.gmra.mrb[156].mxu0 %v1701_v57  ;;  %14003 = vmatpush3.bf16.msra.mxu1 %v15317_v40  ;;  %v13454_v42 = vpop.f32.mrb[23].mxu1  ;;  %v21301_v57 = vld [vmem:[#allocation68_spill] sm:$0xff] }
 0x239   : > { %14068 = vmatprep.subr.bf16.mxu1 %v15318_v39  ;;  %v4124_v24 = vadd.f32 %v13452_v38, %v4059_v49  ;;  %v13455_v20 = vadd.f32 %v13454_v42, %v13453_v22  ;;  %v15325_v39 = vld [vmem:[%s21021_s3 + $0x898] sm:$0xff]  }
 0x23b   : > { %v13570_v56 = vpop.f32.mrb[52].mxu0  ;;  %5024 = vmatmul.mubr.bf16.vlgmr.msra.gmra.mrb[128].mxu1 %v21299_v55  ;;  %v4127_v41 = vadd.f32 %v13455_v20, %v4062_v61  ;;  %v18211_v2 = vadd.f32 %v18089_v21, %v4124_v24  ;;  %v1576_v61 = vsel %vm1259_vm4, %v17725_v30, %v1575_v60  ;;  %v15327_v24 = vld [vmem:[%s21021_s3 + $0x8a0] sm:$0xff]  }
 0x23c   : > { %v13571_v8 = vpop.f32.mrb[53].mxu0  ;;  %5031 = vmatprep.mubr.bf16.mxu1 %v21300_v59  ;;  %14069 = vmatpush3.bf16.msra.mxu1 %v15319_v63  ;;  %v21302_v63 = vld [vmem:[#allocation59_spill] sm:$0xff] }
 0x23d   : > { %v18200_v9 = vadd.f32 %v13571_v8, %v13570_v56  ;;  %v13573_v35 = vpop.f32.mrb[54].mxu0  ;;  %14070 = vmatprep.subr.bf16.mxu1 %v15320_v13  ;;  %v13456_v43 = vpop.f32.mrb[24].mxu1  ;;  %v18218_v4 = vadd.f32 %v18099_v52, %v4127_v41  ;;  %v18228_v52 = vld [vmem:[#allocation2 + $0x270] sm:$0x3] }
 0x23e   : > { %v13574_v3 = vpop.f32.mrb[55].mxu0  ;;  %v13457_v27 = vpop.f32.mrb[25].mxu1  ;;  %v1572_v13 = vrot.slane %v18228_v52, 1 }
 0x23f   : > { %v18213_v31 = vadd.f32 %v13574_v3, %v13573_v35  ;;  %v13458_v48 = vadd.f32 %v13457_v27, %v13456_v43  ;;  %v13459_v21 = vpop.f32.mrb[26].mxu1  ;;  %v15328_v35 = vld [vmem:[%s21021_s3 + $0x8e8] sm:$0xff]   ;;  %v21303_v27 = vld [vmem:[#allocation43_spill] sm:$0xff] }
 0x240   : > { %14071 = vmatpush3.bf16.msra.mxu1 %v15321_v51  ;;  %v13460_v47 = vpop.f32.mrb[27].mxu1  ;;  %v4078_v51 = vadd.f32 %v18138_v29, %v18145_v53  ;;  %v15330_v29 = vld [vmem:[%s21021_s3 + $0x8f0] sm:$0xff]  }
 0x241   : > { %14072 = vmatprep.subr.bf16.mxu1 %v15322_v36  ;;  %v4132_v25 = vadd.f32 %v13458_v48, %v4067_v19  ;;  %v13461_v40 = vadd.f32 %v13460_v47, %v13459_v21  ;;  %v1700_v36 = vpack.c.bf16 %v1576_v61, %v17857_v44 }
 0x243   : > { %v13576_v16 = vpop.f32.mrb[56].mxu0  ;;  %5032 = vmatmul.mubr.bf16.gmra.mrb[132].mxu1 %v21301_v57  ;;  %v4135_v14 = vadd.f32 %v13461_v40, %v4070_v28  ;;  %v18244_v49 = vadd.f32 %v18116_v17, %v4132_v25  ;;  %v4075_v17 = vadd.f32 %v18133_v26, %v18145_v53  ;;  %v15331_v28 = vld [vmem:[%s21021_s3 + $0x8b0] sm:$0xff]  }
 0x244   : > { %v13577_v6 = vpop.f32.mrb[57].mxu0  ;;  %5039 = vmatprep.mubr.bf16.mxu1 %v21302_v63  ;;  %14073 = vmatpush3.bf16.msra.mxu1 %v15323_v34  ;;  %v15329_v34 = vld [vmem:[%s21021_s3 + $0x8a8] sm:$0xff]  }
 0x245   : > { %v18233_v54 = vadd.f32 %v13577_v6, %v13576_v16  ;;  %v13579_v11 = vpop.f32.mrb[58].mxu0  ;;  %14074 = vmatprep.subr.bf16.mxu1 %v15324_v12  ;;  %v13462_v22 = vpop.f32.mrb[28].mxu1  ;;  %v18250_v42 = vadd.f32 %v18126_v33, %v4135_v14  ;;  %v1573_v12 = vsel %vm1259_vm4, %v17725_v30, %v1572_v13  ;;  %vm5242_vm4 = vcmask 523264  }
 0x246   : > { %v13580_v5 = vpop.f32.mrb[59].mxu0  ;;  %v13463_v56 = vpop.f32.mrb[29].mxu1 }
 0x247   : > { %v18246_v38 = vadd.f32 %v13580_v5, %v13579_v11  ;;  %v13464_v20 = vadd.f32 %v13463_v56, %v13462_v22  ;;  %v13465_v8 = vpop.f32.mrb[30].mxu1  ;;  %v1699_v11 = vpack.c.bf16 %v1573_v12, %v17892_v32  ;;  %v15333_v22 = vld [vmem:[%s21021_s3 + $0x8b8] sm:$0xff]  }
 0x248   : > { %14075 = vmatpush3.bf16.msra.mxu1 %v15325_v39  ;;  %v13466_v33 = vpop.f32.mrb[31].mxu1 }
 0x249   : > { %14076 = vmatprep.subr.bf16.mxu1 %v15326_v46  ;;  %v4140_v41 = vadd.f32 %v13464_v20, %v4075_v17  ;;  %v13467_v3 = vadd.f32 %v13466_v33, %v13465_v8  ;;  %v21304_v46 = vld [vmem:[#allocation57_spill] sm:$0xff] }
 0x24b   : > { %v13582_v55 = vpop.f32.mrb[60].mxu0  ;;  %5040 = vmatmul.mubr.bf16.gmra.mrb[136].mxu1 %v21303_v27  ;;  %v4143_v19 = vadd.f32 %v13467_v3, %v4078_v51  ;;  %v18275_v53 = vadd.f32 %v18147_v62, %v4140_v41  ;;  %v15332_v62 = vld [vmem:[%s21021_s3 + $0x8f8] sm:$0xff]   ;;  %v21305_v51 = vld [vmem:[#allocation8_spill] sm:$0xff] }
 0x24c   : > { %v13583_v59 = vpop.f32.mrb[61].mxu0  ;;  %5047 = vmatprep.mubr.bf16.mxu1 %v1700_v36  ;;  %14077 = vmatpush3.bf16.msra.mxu1 %v15327_v24 }
 0x24d   : > { %v18265_v43 = vadd.f32 %v13583_v59, %v13582_v55  ;;  %v13585_v26 = vpop.f32.mrb[62].mxu0  ;;  %14078 = vmatprep.subr.bf16.mxu1 %v15328_v35  ;;  %v13524_v21 = vpop.f32.mrb[32].mxu1  ;;  %v18282_v47 = vadd.f32 %v18156_v18, %v4143_v19 }
 0x24e   : > { %v13586_v48 = vpop.f32.mrb[63].mxu0  ;;  %v13525_v16 = vpop.f32.mrb[33].mxu1 }
 0x24f   : > { %v18277_v44 = vadd.f32 %v13586_v48, %v13585_v26  ;;  %v13526_v25 = vadd.f32 %v13525_v16, %v13524_v21  ;;  %v13527_v40 = vpop.f32.mrb[34].mxu1 }
 0x250   : > { %14079 = vmatpush3.bf16.msra.mxu1 %v15329_v34  ;;  %v13528_v6 = vpop.f32.mrb[35].mxu1 }
 0x251   : > { %14080 = vmatprep.subr.bf16.mxu1 %v15330_v29  ;;  %v4246_v30 = vadd.f32 %v13526_v25, %v18183_v7  ;;  %v13529_v18 = vadd.f32 %v13528_v6, %v13527_v40  ;;  %v1591_v25 = vrot.slane %v18215_v0, 2 }
 0x253   : > { %v13644_v60 = vpop.f32.mrb[64].mxu0  ;;  %5048 = vmatmul.mubr.bf16.gmra.mrb[140].mxu1 %v1699_v11  ;;  %v4249_v5 = vadd.f32 %v13529_v18, %v18188_v1  ;;  %v18300_v32 = vadd.f32 %v18172_v58, %v4246_v30  ;;  %v1592_v30 = vsel %vm1388_vm10, %v18112_v45, %v1591_v25 }
 0x254   : > { %v13645_v57 = vpop.f32.mrb[65].mxu0  ;;  %14081 = vmatpush3.bf16.msra.mxu1 %v15331_v28  ;;  %5153 = vmatprep.mubr.bf16.mxu1 %v21304_v46 }
 0x255   : > { %v18292_v39 = vadd.f32 %v13645_v57, %v13644_v60  ;;  %v13647_v14 = vpop.f32.mrb[66].mxu0  ;;  %14082 = vmatprep.subr.bf16.mxu1 %v15332_v62  ;;  %v13530_v13 = vpop.f32.mrb[36].mxu1  ;;  %v18305_v56 = vadd.f32 %v18185_v23, %v4249_v5  ;;  %v21306_v23 = vld [vmem:[#allocation45_spill] sm:$0xff] }
 0x256   : > { %v13648_v63 = vpop.f32.mrb[67].mxu0  ;;  %v13531_v61 = vpop.f32.mrb[37].mxu1 }
 0x257   : > { %v18302_v7 = vadd.f32 %v13648_v63, %v13647_v14  ;;  %v13532_v1 = vadd.f32 %v13531_v61, %v13530_v13  ;;  %v13533_v24 = vpop.f32.mrb[38].mxu1  ;;  %v1588_v63 = vrot.slane %v18228_v52, 2 }
 0x258   : > { %14083 = vmatpush3.bf16.msra.mxu1 %v15333_v22  ;;  %v13534_v17 = vpop.f32.mrb[39].mxu1 }
 0x259   : > { %v4254_v8 = vadd.f32 %v13532_v1, %v18211_v2  ;;  %v13535_v35 = vadd.f32 %v13534_v17, %v13533_v24  ;;  %v1589_v24 = vsel %vm1388_vm10, %v18112_v45, %v1588_v63 }
 0x25b   : > { %v13650_v20 = vpop.f32.mrb[68].mxu0  ;;  %5154 = vmatmul.mubr.bf16.vlgmr.msra.gmra.mrb[144].mxu1 %v21305_v51  ;;  %v4257_v41 = vadd.f32 %v13535_v35, %v18218_v4  ;;  %v18314_v59 = vadd.f32 %v18200_v9, %v4254_v8  ;;  %v21307_v9 = vld [vmem:[#allocation18_spill] sm:$0xff] }
 0x25c   : > { %v13651_v33 = vpop.f32.mrb[69].mxu0  ;;  %5161 = vmatprep.mubr.bf16.mxu1 %v21306_v23 }
 0x25d   : > { %v18308_v55 = vadd.f32 %v13651_v33, %v13650_v20  ;;  %v13653_v58 = vpop.f32.mrb[70].mxu0  ;;  %v13536_v26 = vpop.f32.mrb[40].mxu1  ;;  %v18319_v2 = vadd.f32 %v18213_v31, %v4257_v41 }
 0x25e   : > { %v13654_v3 = vpop.f32.mrb[71].mxu0  ;;  %v13537_v27 = vpop.f32.mrb[41].mxu1 }
 0x25f   : > { %v18316_v36 = vadd.f32 %v13654_v3, %v13653_v58  ;;  %v13538_v34 = vadd.f32 %v13537_v27, %v13536_v26  ;;  %v13539_v19 = vpop.f32.mrb[42].mxu1 }
 0x260   : > { %v13540_v48 = vpop.f32.mrb[43].mxu1 }
 0x261   : > { %v4262_v21 = vadd.f32 %v13538_v34, %v18244_v49  ;;  %v13541_v4 = vadd.f32 %v13540_v48, %v13539_v19 }
 0x263   : > { %v13656_v29 = vpop.f32.mrb[72].mxu0  ;;  %5162 = vmatmul.mubr.bf16.gmra.mrb[148].mxu1 %v21307_v9  ;;  %v4265_v40 = vadd.f32 %v13541_v4, %v18250_v42  ;;  %v18329_v62 = vadd.f32 %v18233_v54, %v4262_v21  ;;  %v1704_v54 = vpack.c.bf16 %v1592_v30, %v17997_v37 }
 0x264   : > { %v13657_v12 = vpop.f32.mrb[73].mxu0  ;;  %5169 = vmatprep.mubr.bf16.mxu1 %v17544_v15 }
 0x265   : > { %v18322_v16 = vadd.f32 %v13657_v12, %v13656_v29  ;;  %v13659_v28 = vpop.f32.mrb[74].mxu0  ;;  %v18334_v60 = vadd.f32 %v18246_v38, %v4265_v40 }
 0x266   : > { %v13660_v31 = vpop.f32.mrb[75].mxu0  ;;  %v13542_v49 = vpop.f32.mrb[44].mxu1 }
 0x267   : > { %v18331_v6 = vadd.f32 %v13660_v31, %v13659_v28  ;;  %v13543_v11 = vpop.f32.mrb[45].mxu1 }
 0x268   : > { %v13544_v18 = vadd.f32 %v13543_v11, %v13542_v49  ;;  %v13545_v0 = vpop.f32.mrb[46].mxu1 }
 0x269   : > { %v13546_v57 = vpop.f32.mrb[47].mxu1 }
 0x26a   : > { %v4270_v14 = vadd.f32 %v13544_v18, %v18275_v53  ;;  %v13547_v15 = vadd.f32 %v13546_v57, %v13545_v0 }
 0x26b   : > { %v13662_v42 = vpop.f32.mrb[76].mxu0  ;;  %5170 = vmatmul.mubr.bf16.gmra.mrb[152].mxu1 %v17587_v10  ;;  %v1703_v10 = vpack.c.bf16 %v1589_v24, %v18036_v50 }
 0x26c   : > { %v13663_v5 = vpop.f32.mrb[77].mxu0  ;;  %v4273_v22 = vadd.f32 %v13547_v15, %v18282_v47  ;;  %5177 = vmatprep.mubr.bf16.mxu1 %v1704_v54  ;;  %v4335_v61 = vadd.f32 %v18265_v43, %v4270_v14 }
 0x26d   : > { %v18341_v46 = vadd.f32 %v13663_v5, %v13662_v42  ;;  %v13665_v38 = vpop.f32.mrb[78].mxu0 }
 0x26e   : > { %v13666_v13 = vpop.f32.mrb[79].mxu0  ;;  %v13604_v53 = vpop.f32.mrb[48].mxu1  ;;  %v4338_v37 = vadd.f32 %v18277_v44, %v4273_v22 }
 0x26f   : > { %v18346_v1 = vadd.f32 %v13666_v13, %v13665_v38  ;;  %v13605_v52 = vpop.f32.mrb[49].mxu1 }
 0x270   : > { %v13606_v17 = vadd.f32 %v13605_v52, %v13604_v53  ;;  %v13607_v20 = vpop.f32.mrb[50].mxu1 }
 0x271   : > { %v13608_v8 = vpop.f32.mrb[51].mxu1 }
 0x272   : > { %v4376_v47 = vadd.f32 %v13606_v17, %v18300_v32  ;;  %v13609_v33 = vadd.f32 %v13608_v8, %v13607_v20 }
 0x273   : > { %v13724_v35 = vpop.f32.mrb[80].mxu0  ;;  %5178 = vmatmul.mubr.bf16.gmra.mrb[156].mxu1 %v1703_v10 }
 0x274   : > { %v13725_v58 = vpop.f32.mrb[81].mxu0  ;;  %v4379_v41 = vadd.f32 %v13609_v33, %v18305_v56  ;;  %v4441_v44 = vadd.f32 %v18292_v39, %v4376_v47 }
 0x275   : > { %v18353_v43 = vadd.f32 %v13725_v58, %v13724_v35  ;;  %v13727_v51 = vpop.f32.mrb[82].mxu0 }
 0x276   : > { %v13728_v45 = vpop.f32.mrb[83].mxu0  ;;  %v13610_v23 = vpop.f32.mrb[52].mxu1  ;;  %v4444_v26 = vadd.f32 %v18302_v7, %v4379_v41 }
 0x277   : > { %v18357_v3 = vadd.f32 %v13728_v45, %v13727_v51  ;;  %v13611_v27 = vpop.f32.mrb[53].mxu1 }
 0x278   : > { %v13612_v50 = vadd.f32 %v13611_v27, %v13610_v23  ;;  %v13613_v34 = vpop.f32.mrb[54].mxu1 }
 0x279   : > { %v13614_v32 = vpop.f32.mrb[55].mxu1 }
 0x27a   : > { %v4384_v48 = vadd.f32 %v13612_v50, %v18314_v59  ;;  %v13615_v29 = vadd.f32 %v13614_v32, %v13613_v34 }
 0x27b   : > { %v13730_v19 = vpop.f32.mrb[84].mxu0 }
 0x27c   : > { %v13731_v21 = vpop.f32.mrb[85].mxu0  ;;  %v4387_v12 = vadd.f32 %v13615_v29, %v18319_v2  ;;  %v4449_v28 = vadd.f32 %v18308_v55, %v4384_v48 }
 0x27d   : > { %v18361_v4 = vadd.f32 %v13731_v21, %v13730_v19  ;;  %v13733_v56 = vpop.f32.mrb[86].mxu0 }
 0x27e   : > { %v13734_v39 = vpop.f32.mrb[87].mxu0  ;;  %v13616_v7 = vpop.f32.mrb[56].mxu1  ;;  %v4452_v25 = vadd.f32 %v18316_v36, %v4387_v12 }
 0x27f   : > { %v18365_v9 = vadd.f32 %v13734_v39, %v13733_v56  ;;  %v13617_v40 = vpop.f32.mrb[57].mxu1 }
 0x280   : > { %v13618_v31 = vadd.f32 %v13617_v40, %v13616_v7  ;;  %v13619_v49 = vpop.f32.mrb[58].mxu1 }
 0x281   : > { %v13620_v11 = vpop.f32.mrb[59].mxu1 }
 0x282   : > { %v4392_v30 = vadd.f32 %v13618_v31, %v18329_v62  ;;  %v13621_v18 = vadd.f32 %v13620_v11, %v13619_v49 }
 0x283   : > { %v13736_v59 = vpop.f32.mrb[88].mxu0 }
 0x284   : > { %v13737_v0 = vpop.f32.mrb[89].mxu0  ;;  %v4395_v42 = vadd.f32 %v13621_v18, %v18334_v60  ;;  %v4457_v14 = vadd.f32 %v18322_v16, %v4392_v30 }
 0x285   : > { %v18369_v57 = vadd.f32 %v13737_v0, %v13736_v59  ;;  %v13739_v2 = vpop.f32.mrb[90].mxu0 }
 0x286   : > { %v13740_v55 = vpop.f32.mrb[91].mxu0  ;;  %v13622_v36 = vpop.f32.mrb[60].mxu1  ;;  %v4460_v5 = vadd.f32 %v18331_v6, %v4395_v42 }
 0x287   : > { %v18373_v15 = vadd.f32 %v13740_v55, %v13739_v2  ;;  %v13623_v54 = vpop.f32.mrb[61].mxu1 }
 0x288   : > { %v13624_v63 = vadd.f32 %v13623_v54, %v13622_v36  ;;  %v13625_v38 = vpop.f32.mrb[62].mxu1 }
 0x289   : > { %v13626_v22 = vpop.f32.mrb[63].mxu1 }
 0x28a   : > { %v4400_v13 = vadd.f32 %v13624_v63, %v4335_v61  ;;  %v13627_v53 = vadd.f32 %v13626_v22, %v13625_v38 }
 0x28b   : > { %v13742_v62 = vpop.f32.mrb[92].mxu0 }
 0x28c   : > { %v13743_v24 = vpop.f32.mrb[93].mxu0  ;;  %v4403_v60 = vadd.f32 %v13627_v53, %v4338_v37  ;;  %v4465_v16 = vadd.f32 %v18341_v46, %v4400_v13 }
 0x28d   : > { %v18376_v52 = vadd.f32 %v13743_v24, %v13742_v62  ;;  %v13745_v17 = vpop.f32.mrb[94].mxu0 }
 0x28e   : > { %v13746_v20 = vpop.f32.mrb[95].mxu0  ;;  %v13684_v35 = vpop.f32.mrb[64].mxu1  ;;  %v4468_v6 = vadd.f32 %v18346_v1, %v4403_v60 }
 0x28f   : > { %v18379_v8 = vadd.f32 %v13746_v20, %v13745_v17  ;;  %v13685_v10 = vpop.f32.mrb[65].mxu1 }
 0x290   : > { %v13686_v47 = vadd.f32 %v13685_v10, %v13684_v35  ;;  %v13687_v33 = vpop.f32.mrb[66].mxu1 }
 0x291   : > { %v13688_v58 = vpop.f32.mrb[67].mxu1 }
 0x292   : > { %v4506_v61 = vadd.f32 %v13686_v47, %v4441_v44  ;;  %v13689_v41 = vadd.f32 %v13688_v58, %v13687_v33 }
 0x293   : > { %v13804_v51 = vpop.f32.mrb[96].mxu0 }
 0x294   : > { %v13805_v45 = vpop.f32.mrb[97].mxu0  ;;  %v4509_v37 = vadd.f32 %v13689_v41, %v4444_v26  ;;  %v4571_v46 = vadd.f32 %v18353_v43, %v4506_v61 }
 0x295   : > { %v18382_v23 = vadd.f32 %v13805_v45, %v13804_v51  ;;  %v13807_v27 = vpop.f32.mrb[98].mxu0 }
 0x296   : > { %v13808_v50 = vpop.f32.mrb[99].mxu0  ;;  %v13690_v32 = vpop.f32.mrb[68].mxu1  ;;  %v4574_v1 = vadd.f32 %v18357_v3, %v4509_v37 }
 0x297   : > { %v18385_v34 = vadd.f32 %v13808_v50, %v13807_v27  ;;  %v13691_v19 = vpop.f32.mrb[69].mxu1 }
 0x298   : > { %v13692_v48 = vadd.f32 %v13691_v19, %v13690_v32  ;;  %v13693_v29 = vpop.f32.mrb[70].mxu1 }
 0x299   : > { %v13694_v21 = vpop.f32.mrb[71].mxu1 }
 0x29a   : > { %v4514_v44 = vadd.f32 %v13692_v48, %v4449_v28  ;;  %v13695_v12 = vadd.f32 %v13694_v21, %v13693_v29 }
 0x29b   : > { %v13810_v56 = vpop.f32.mrb[100].mxu0 }
 0x29c   : > { %v13811_v39 = vpop.f32.mrb[101].mxu0  ;;  %v4517_v26 = vadd.f32 %v13695_v12, %v4452_v25  ;;  %v4579_v43 = vadd.f32 %v18361_v4, %v4514_v44 }
 0x29d   : > { %v18388_v7 = vadd.f32 %v13811_v39, %v13810_v56  ;;  %v13813_v40 = vpop.f32.mrb[102].mxu0 }
 0x29e   : > { %v13814_v31 = vpop.f32.mrb[103].mxu0  ;;  %v13696_v11 = vpop.f32.mrb[72].mxu1  ;;  %v4582_v3 = vadd.f32 %v18365_v9, %v4517_v26 }
 0x29f   : > { %v18391_v49 = vadd.f32 %v13814_v31, %v13813_v40  ;;  %v13697_v59 = vpop.f32.mrb[73].mxu1 }
 0x2a0   : > { %v13698_v30 = vadd.f32 %v13697_v59, %v13696_v11  ;;  %v13699_v18 = vpop.f32.mrb[74].mxu1 }
 0x2a1   : > { %v13700_v0 = vpop.f32.mrb[75].mxu1 }
 0x2a2   : > { %v4522_v28 = vadd.f32 %v13698_v30, %v4457_v14  ;;  %v13701_v42 = vadd.f32 %v13700_v0, %v13699_v18 }
 0x2a3   : > { %v13816_v2 = vpop.f32.mrb[104].mxu0 }
 0x2a4   : > { %v13817_v55 = vpop.f32.mrb[105].mxu0  ;;  %v4525_v25 = vadd.f32 %v13701_v42, %v4460_v5  ;;  %v4587_v4 = vadd.f32 %v18369_v57, %v4522_v28 }
 0x2a5   : > { %v18394_v36 = vadd.f32 %v13817_v55, %v13816_v2  ;;  %v13819_v54 = vpop.f32.mrb[106].mxu0 }
 0x2a6   : > { %v13820_v63 = vpop.f32.mrb[107].mxu0  ;;  %v13702_v22 = vpop.f32.mrb[76].mxu1  ;;  %v4590_v9 = vadd.f32 %v18373_v15, %v4525_v25 }
 0x2a7   : > { %v18397_v38 = vadd.f32 %v13820_v63, %v13819_v54  ;;  %v13703_v62 = vpop.f32.mrb[77].mxu1 }
 0x2a8   : > { %v13704_v13 = vadd.f32 %v13703_v62, %v13702_v22  ;;  %v13705_v53 = vpop.f32.mrb[78].mxu1 }
 0x2a9   : > { %v13706_v24 = vpop.f32.mrb[79].mxu1 }
 0x2aa   : > { %v4530_v14 = vadd.f32 %v13704_v13, %v4465_v16  ;;  %v13707_v60 = vadd.f32 %v13706_v24, %v13705_v53 }
 0x2ab   : > { %v13822_v17 = vpop.f32.mrb[108].mxu0 }
 0x2ac   : > { %v13823_v20 = vpop.f32.mrb[109].mxu0  ;;  %v4533_v5 = vadd.f32 %v13707_v60, %v4468_v6  ;;  %v4595_v57 = vadd.f32 %v18376_v52, %v4530_v14 }
 0x2ad   : > { %v18400_v35 = vadd.f32 %v13823_v20, %v13822_v17  ;;  %v13825_v10 = vpop.f32.mrb[110].mxu0 }
 0x2ae   : > { %v13826_v47 = vpop.f32.mrb[111].mxu0  ;;  %v13764_v58 = vpop.f32.mrb[80].mxu1  ;;  %v4598_v15 = vadd.f32 %v18379_v8, %v4533_v5 }
 0x2af   : > { %v18403_v33 = vadd.f32 %v13826_v47, %v13825_v10  ;;  %v13765_v51 = vpop.f32.mrb[81].mxu1 }
 0x2b0   : > { %v13766_v61 = vadd.f32 %v13765_v51, %v13764_v58  ;;  %v13767_v41 = vpop.f32.mrb[82].mxu1 }
 0x2b1   : > { %v13768_v45 = vpop.f32.mrb[83].mxu1 }
 0x2b2   : > { %v4636_v16 = vadd.f32 %v13766_v61, %v4571_v46  ;;  %v13769_v37 = vadd.f32 %v13768_v45, %v13767_v41 }
 0x2b3   : > { %v13884_v27 = vpop.f32.mrb[112].mxu0 }
 0x2b4   : > { %v13885_v50 = vpop.f32.mrb[113].mxu0  ;;  %v4639_v6 = vadd.f32 %v13769_v37, %v4574_v1  ;;  %v4701_v52 = vadd.f32 %v18382_v23, %v4636_v16 }
 0x2b5   : > { %v18406_v32 = vadd.f32 %v13885_v50, %v13884_v27  ;;  %v13887_v19 = vpop.f32.mrb[114].mxu0 }
 0x2b6   : > { %v13888_v48 = vpop.f32.mrb[115].mxu0  ;;  %v13770_v21 = vpop.f32.mrb[84].mxu1  ;;  %v4704_v8 = vadd.f32 %v18385_v34, %v4639_v6 }
 0x2b7   : > { %v18409_v29 = vadd.f32 %v13888_v48, %v13887_v19  ;;  %v13771_v56 = vpop.f32.mrb[85].mxu1 }
 0x2b8   : > { %v13772_v44 = vadd.f32 %v13771_v56, %v13770_v21  ;;  %v13773_v12 = vpop.f32.mrb[86].mxu1 }
 0x2b9   : > { %v13774_v39 = vpop.f32.mrb[87].mxu1 }
 0x2ba   : > { %v4644_v46 = vadd.f32 %v13772_v44, %v4579_v43  ;;  %v13775_v26 = vadd.f32 %v13774_v39, %v13773_v12 }
 0x2bb   : > { %v13890_v40 = vpop.f32.mrb[116].mxu0 }
 0x2bc   : > { %v13891_v31 = vpop.f32.mrb[117].mxu0  ;;  %v4647_v1 = vadd.f32 %v13775_v26, %v4582_v3  ;;  %v4709_v23 = vadd.f32 %v18388_v7, %v4644_v46 }
 0x2bd   : > { %v18412_v11 = vadd.f32 %v13891_v31, %v13890_v40  ;;  %v13893_v59 = vpop.f32.mrb[118].mxu0 }
 0x2be   : > { %v13894_v30 = vpop.f32.mrb[119].mxu0  ;;  %v13776_v0 = vpop.f32.mrb[88].mxu1  ;;  %v4712_v34 = vadd.f32 %v18391_v49, %v4647_v1 }
 0x2bf   : > { %v18415_v18 = vadd.f32 %v13894_v30, %v13893_v59  ;;  %v13777_v2 = vpop.f32.mrb[89].mxu1 }
 0x2c0   : > { %v13778_v28 = vadd.f32 %v13777_v2, %v13776_v0  ;;  %v13779_v42 = vpop.f32.mrb[90].mxu1 }
 0x2c1   : > { %v13780_v55 = vpop.f32.mrb[91].mxu1 }
 0x2c2   : > { %v4652_v43 = vadd.f32 %v13778_v28, %v4587_v4  ;;  %v13781_v25 = vadd.f32 %v13780_v55, %v13779_v42 }
 0x2c3   : > { %v13896_v54 = vpop.f32.mrb[120].mxu0 }
 0x2c4   : > { %v13897_v63 = vpop.f32.mrb[121].mxu0  ;;  %v4655_v3 = vadd.f32 %v13781_v25, %v4590_v9  ;;  %v18421_v7 = vadd.f32 %v18394_v36, %v4652_v43  ;;  %v15339_v25 = vld [vmem:[%s21023_s5] sm:$0xff]  }
 0x2c5   : > { %v18418_v22 = vadd.f32 %v13897_v63, %v13896_v54  ;;  %v13899_v62 = vpop.f32.mrb[122].mxu0 }
 0x2c6   : > { %v13900_v13 = vpop.f32.mrb[123].mxu0  ;;  %v13782_v24 = vpop.f32.mrb[92].mxu1  ;;  %v18426_v49 = vadd.f32 %v18397_v38, %v4655_v3 }
 0x2c7   : > { %v18423_v53 = vadd.f32 %v13900_v13, %v13899_v62  ;;  %v13783_v17 = vpop.f32.mrb[93].mxu1 }
 0x2c8   : > { %v13784_v14 = vadd.f32 %v13783_v17, %v13782_v24  ;;  %v13785_v60 = vpop.f32.mrb[94].mxu1  ;;  %v15341_v17 = vld [vmem:[%s21023_s5 + $0x8] sm:$0xff]  }
 0x2c9   : > { %v13786_v4 = vpop.f32.mrb[95].mxu1 }
 0x2ca   : > { %v4660_v10 = vadd.f32 %v13784_v14, %v4595_v57  ;;  %v13787_v5 = vadd.f32 %v13786_v4, %v13785_v60  ;;  %v15342_v4 = vld [vmem:[%s21023_s5 + $0x50] sm:$0xff]  }
 0x2cb   : > { %v13902_v20 = vpop.f32.mrb[124].mxu0 }
 0x2cc   : > { %v13903_v47 = vpop.f32.mrb[125].mxu0  ;;  %v4663_v51 = vadd.f32 %v13787_v5, %v4598_v15  ;;  %v18431_v61 = vadd.f32 %v18400_v35, %v4660_v10 }
 0x2cd   : > { %v18428_v58 = vadd.f32 %v13903_v47, %v13902_v20  ;;  %v13905_v9 = vpop.f32.mrb[126].mxu0 }
 0x2ce   : > { %v13906_v36 = vpop.f32.mrb[127].mxu0  ;;  %v13844_v38 = vpop.f32.mrb[96].mxu1  ;;  %v18436_v45 = vadd.f32 %v18403_v33, %v4663_v51  ;;  %v15334_v33 = vld [vmem:[%s21027_s9] sm:$0xff]   ;;  %v15344_v51 = vld [vmem:[%s21023_s5 + $0x10] sm:$0xff]  }
 0x2cf   : > { %v18433_v41 = vadd.f32 %v13906_v36, %v13905_v9  ;;  %v13845_v27 = vpop.f32.mrb[97].mxu1  ;;  %14966 = vmatprep.mubr.msk.bf16.mxu0 %vm5242_vm4, %v15334_v33 }
 0x2d0   : > { %v13846_v16 = vadd.f32 %v13845_v27, %v13844_v38  ;;  %v13847_v37 = vpop.f32.mrb[98].mxu1 }
 0x2d1   : > { %v13848_v57 = vpop.f32.mrb[99].mxu1 }
 0x2d2   : > { %v4766_v19 = vadd.f32 %v13846_v16, %v4701_v52  ;;  %v13849_v6 = vadd.f32 %v13848_v57, %v13847_v37 }
 0x2d3   : > { %v13964_v50 = vpop.f32.mrb[128].mxu0 }
 0x2d4   : > { %v13965_v48 = vpop.f32.mrb[129].mxu0  ;;  %v4769_v56 = vadd.f32 %v13849_v6, %v4704_v8  ;;  %v18441_v44 = vadd.f32 %v18406_v32, %v4766_v19 }
 0x2d5   : > { %v18438_v21 = vadd.f32 %v13965_v48, %v13964_v50  ;;  %v13967_v15 = vpop.f32.mrb[130].mxu0  ;;  %v15348_v50 = vld [vmem:[%s21023_s5 + $0x18] sm:$0xff]  }
 0x2d6   : > { %v13968_v35 = vpop.f32.mrb[131].mxu0  ;;  %v13850_v39 = vpop.f32.mrb[100].mxu1  ;;  %v18449_v52 = vadd.f32 %v18409_v29, %v4769_v56 }
 0x2d7   : > { %v18446_v12 = vadd.f32 %v13968_v35, %v13967_v15  ;;  %v13851_v40 = vpop.f32.mrb[101].mxu1 }
 0x2d8   : > { %v13852_v46 = vadd.f32 %v13851_v40, %v13850_v39  ;;  %v13853_v8 = vpop.f32.mrb[102].mxu1 }
 0x2d9   : > { %v13854_v26 = vpop.f32.mrb[103].mxu1 }
 0x2da   : > { %v4774_v32 = vadd.f32 %v13852_v46, %v4709_v23  ;;  %v13855_v59 = vadd.f32 %v13854_v26, %v13853_v8  ;;  %v15338_v23 = vld [vmem:[%s21023_s5 + $0x40] sm:$0xff]  }
 0x2db   : > { %v13970_v31 = vpop.f32.mrb[132].mxu0  ;;  %14116 = vmatprep.subr.bf16.mxu1 %v15338_v23 }
 0x2dc   : > { %v13971_v1 = vpop.f32.mrb[133].mxu0  ;;  %v4777_v2 = vadd.f32 %v13855_v59, %v4712_v34  ;;  %v18455_v42 = vadd.f32 %v18412_v11, %v4774_v32  ;;  %v15340_v11 = vld [vmem:[%s21023_s5 + $0x48] sm:$0xff]   ;;  %14117 = vmatpush3.bf16.msra.mxu1 %v15339_v25 }
 0x2dd   : > { %v18452_v30 = vadd.f32 %v13971_v1, %v13970_v31  ;;  %v13973_v0 = vpop.f32.mrb[134].mxu0  ;;  %14118 = vmatprep.subr.bf16.mxu1 %v15340_v11 }
 0x2de   : > { %v13974_v28 = vpop.f32.mrb[135].mxu0  ;;  %v13856_v55 = vpop.f32.mrb[104].mxu1  ;;  %v18460_v54 = vadd.f32 %v18415_v18, %v4777_v2 }
 0x2df   : > { %v18457_v29 = vadd.f32 %v13974_v28, %v13973_v0  ;;  %v13857_v43 = vpop.f32.mrb[105].mxu1 }
 0x2e0   : > { %v13858_v34 = vadd.f32 %v13857_v43, %v13856_v55  ;;  %v13859_v63 = vpop.f32.mrb[106].mxu1  ;;  %14119 = vmatpush3.bf16.msra.mxu1 %v15341_v17 }
 0x2e1   : > { %v13860_v62 = vpop.f32.mrb[107].mxu1  ;;  %14120 = vmatprep.subr.bf16.mxu1 %v15342_v4 }
 0x2e2   : > { %v4782_v18 = vadd.f32 %v13858_v34, %v18421_v7  ;;  %v13861_v13 = vadd.f32 %v13860_v62, %v13859_v63 }
 0x2e3   : > { %v13976_v3 = vpop.f32.mrb[136].mxu0 }
 0x2e4   : > { %v13977_v24 = vpop.f32.mrb[137].mxu0  ;;  %v4785_v20 = vadd.f32 %v13861_v13, %v18426_v49  ;;  %v18482_v7 = vadd.f32 %v18418_v22, %v4782_v18  ;;  %v15346_v49 = vld [vmem:[%s21023_s5 + $0x58] sm:$0xff]   ;;  %14121 = vmatpush3.bf16.msra.mxu1 %v15344_v51 }
 0x2e5   : > { %v18475_v14 = vadd.f32 %v13977_v24, %v13976_v3  ;;  %v13979_v60 = vpop.f32.mrb[138].mxu0  ;;  %14122 = vmatprep.subr.bf16.mxu1 %v15346_v49 }
 0x2e6   : > { %v13980_v10 = vpop.f32.mrb[139].mxu0  ;;  %v13862_v47 = vpop.f32.mrb[108].mxu1  ;;  %v18487_v9 = vadd.f32 %v18423_v53, %v4785_v20 }
 0x2e7   : > { %v18484_v5 = vadd.f32 %v13980_v10, %v13979_v60  ;;  %v13863_v36 = vpop.f32.mrb[109].mxu1 }
 0x2e8   : > { %v13864_v38 = vadd.f32 %v13863_v36, %v13862_v47  ;;  %v13865_v22 = vpop.f32.mrb[110].mxu1  ;;  %14123 = vmatpush3.bf16.msra.mxu1 %v15348_v50 }
 0x2e9   : > { %v13866_v27 = vpop.f32.mrb[111].mxu1 }
 0x2ea   : > { %v4790_v37 = vadd.f32 %v13864_v38, %v18431_v61  ;;  %v13867_v57 = vadd.f32 %v13866_v27, %v13865_v22 }
 0x2eb   : > { %v13982_v16 = vpop.f32.mrb[140].mxu0 }
 0x2ec   : > { %v13983_v53 = vpop.f32.mrb[141].mxu0  ;;  %v4793_v48 = vadd.f32 %v13867_v57, %v18436_v45  ;;  %v4855_v56 = vadd.f32 %v18428_v58, %v4790_v37 }
 0x2ed   : > { %v18499_v19 = vadd.f32 %v13983_v53, %v13982_v16  ;;  %v13985_v6 = vpop.f32.mrb[142].mxu0 }
 0x2ee   : > { %v13986_v15 = vpop.f32.mrb[143].mxu0  ;;  %v13924_v33 = vpop.f32.mrb[112].mxu1  ;;  %v4858_v61 = vadd.f32 %v18433_v41, %v4793_v48 }
 0x2ef   : > { %v18503_v35 = vadd.f32 %v13986_v15, %v13985_v6  ;;  %v13925_v39 = vpop.f32.mrb[113].mxu1 }
 0x2f0   : > { %v13926_v40 = vadd.f32 %v13925_v39, %v13924_v33  ;;  %v13927_v46 = vpop.f32.mrb[114].mxu1 }
 0x2f1   : > { %v13928_v8 = vpop.f32.mrb[115].mxu1 }
 0x2f2   : > { %v4896_v31 = vadd.f32 %v13926_v40, %v18441_v44  ;;  %v13929_v32 = vadd.f32 %v13928_v8, %v13927_v46 }
 0x2f3   : > { %v14044_v26 = vpop.f32.mrb[144].mxu0 }
 0x2f4   : > { %v14045_v59 = vpop.f32.mrb[145].mxu0  ;;  %v4899_v58 = vadd.f32 %v13929_v32, %v18449_v52  ;;  %v4961_v2 = vadd.f32 %v18438_v21, %v4896_v31 }
 0x2f5   : > { %v18507_v1 = vadd.f32 %v14045_v59, %v14044_v26  ;;  %v14047_v45 = vpop.f32.mrb[146].mxu0 }
 0x2f6   : > { %v14048_v0 = vpop.f32.mrb[147].mxu0  ;;  %v13930_v41 = vpop.f32.mrb[116].mxu1  ;;  %v4964_v55 = vadd.f32 %v18446_v12, %v4899_v58 }
 0x2f7   : > { %v14049_v28 = vadd.f32 %v14048_v0, %v14047_v45  ;;  %v13931_v43 = vpop.f32.mrb[117].mxu1 }
 0x2f8   : > { %v13932_v23 = vadd.f32 %v13931_v43, %v13930_v41  ;;  %v13933_v25 = vpop.f32.mrb[118].mxu1 }
 0x2f9   : > { %v13934_v11 = vpop.f32.mrb[119].mxu1 }
 0x2fa   : > { %v4904_v44 = vadd.f32 %v13932_v23, %v18455_v42  ;;  %v13935_v63 = vadd.f32 %v13934_v11, %v13933_v25 }
 0x2fb   : > { %v14050_v34 = vpop.f32.mrb[148].mxu0 }
 0x2fc   : > { %v14051_v62 = vpop.f32.mrb[149].mxu0  ;;  %v4907_v52 = vadd.f32 %v13935_v63, %v18460_v54  ;;  %v4969_v21 = vadd.f32 %v18452_v30, %v4904_v44 }
 0x2fd   : > { %v14052_v3 = vadd.f32 %v14051_v62, %v14050_v34  ;;  %v14053_v18 = vpop.f32.mrb[150].mxu0 }
 0x2fe   : > { %v14054_v13 = vpop.f32.mrb[151].mxu0  ;;  %v13936_v17 = vpop.f32.mrb[120].mxu1  ;;  %v4972_v12 = vadd.f32 %v18457_v29, %v4907_v52 }
 0x2ff   : > { %v14055_v24 = vadd.f32 %v14054_v13, %v14053_v18  ;;  %v13937_v60 = vpop.f32.mrb[121].mxu1 }
 0x300   : > { %v13938_v4 = vadd.f32 %v13937_v60, %v13936_v17  ;;  %v13939_v20 = vpop.f32.mrb[122].mxu1 }
 0x301   : > { %v13940_v10 = vpop.f32.mrb[123].mxu1 }
 0x302   : > { %v4912_v42 = vadd.f32 %v13938_v4, %v18482_v7  ;;  %v13941_v51 = vadd.f32 %v13940_v10, %v13939_v20 }
 0x303   : > { %v14056_v47 = vpop.f32.mrb[152].mxu0 }
 0x304   : > { %v14057_v36 = vpop.f32.mrb[153].mxu0  ;;  %v4915_v54 = vadd.f32 %v13941_v51, %v18487_v9  ;;  %v4977_v30 = vadd.f32 %v18475_v14, %v4912_v42 }
 0x305   : > { %v14058_v49 = vadd.f32 %v14057_v36, %v14056_v47  ;;  %v14059_v38 = vpop.f32.mrb[154].mxu0 }
 0x306   : > { %v14060_v22 = vpop.f32.mrb[155].mxu0  ;;  %v13942_v16 = vpop.f32.mrb[124].mxu1  ;;  %v4980_v29 = vadd.f32 %v18484_v5, %v4915_v54 }
 0x307   : > { %v14061_v27 = vadd.f32 %v14060_v22, %v14059_v38  ;;  %v13943_v37 = vpop.f32.mrb[125].mxu1 }
 0x308   : > { %v13944_v57 = vadd.f32 %v13943_v37, %v13942_v16  ;;  %v13945_v53 = vpop.f32.mrb[126].mxu1 }
 0x309   : > { %v13946_v50 = vpop.f32.mrb[127].mxu1 }
 0x30a   : > { %v4920_v48 = vadd.f32 %v13944_v57, %v4855_v56  ;;  %v13947_v7 = vadd.f32 %v13946_v50, %v13945_v53 }
 0x30b   : > { %v14062_v6 = vpop.f32.mrb[156].mxu0 }
 0x30c   : > { %v14063_v15 = vpop.f32.mrb[157].mxu0  ;;  %v4923_v40 = vadd.f32 %v13947_v7, %v4858_v61  ;;  %v4985_v9 = vadd.f32 %v18499_v19, %v4920_v48 }
 0x30d   : > { %v14064_v33 = vadd.f32 %v14063_v15, %v14062_v6  ;;  %v14065_v39 = vpop.f32.mrb[158].mxu0 }
 0x30e   : > { %v14066_v46 = vpop.f32.mrb[159].mxu0  ;;  %v14004_v14 = vpop.f32.mrb[128].mxu1  ;;  %v4988_v26 = vadd.f32 %v18503_v35, %v4923_v40 }
 0x30f   : > { %v14067_v8 = vadd.f32 %v14066_v46, %v14065_v39  ;;  %v14005_v31 = vpop.f32.mrb[129].mxu1 }
 0x310   : > { %v14006_v5 = vadd.f32 %v14005_v31, %v14004_v14  ;;  %v14007_v32 = vpop.f32.mrb[130].mxu1 }
 0x311   : > { %v14008_v59 = vpop.f32.mrb[131].mxu1 }
 0x312   : > { %v5026_v45 = vadd.f32 %v14006_v5, %v4961_v2  ;;  %v14009_v58 = vadd.f32 %v14008_v59, %v14007_v32 }
 0x314   : > { %v5029_v0 = vadd.f32 %v14009_v58, %v4964_v55  ;;  %v5091_v56 = vadd.f32 %v18507_v1, %v5026_v45 }
 0x316   : > { %v14010_v41 = vpop.f32.mrb[132].mxu1  ;;  %v5094_v43 = vadd.f32 %v14049_v28, %v5029_v0 }
 0x317   : > { %v14011_v23 = vpop.f32.mrb[133].mxu1 }
 0x318   : > { %v14012_v61 = vadd.f32 %v14011_v23, %v14010_v41  ;;  %v14013_v25 = vpop.f32.mrb[134].mxu1 }
 0x319   : > { %v14014_v11 = vpop.f32.mrb[135].mxu1 }
 0x31a   : > { %v5034_v19 = vadd.f32 %v14012_v61, %v4969_v21  ;;  %v14015_v34 = vadd.f32 %v14014_v11, %v14013_v25 }
 0x31c   : > { %v5037_v44 = vadd.f32 %v14015_v34, %v4972_v12  ;;  %v5099_v63 = vadd.f32 %v14052_v3, %v5034_v19 }
 0x31e   : > { %v14016_v35 = vpop.f32.mrb[136].mxu1  ;;  %v5102_v62 = vadd.f32 %v14055_v24, %v5037_v44 }
 0x31f   : > { %v14017_v18 = vpop.f32.mrb[137].mxu1 }
 0x320   : > { %v14018_v52 = vadd.f32 %v14017_v18, %v14016_v35  ;;  %v14019_v13 = vpop.f32.mrb[138].mxu1 }
 0x321   : > { %v14020_v2 = vpop.f32.mrb[139].mxu1 }
 0x322   : > { %v5042_v17 = vadd.f32 %v14018_v52, %v4977_v30  ;;  %v14021_v55 = vadd.f32 %v14020_v2, %v14019_v13 }
 0x324   : > { %v5045_v60 = vadd.f32 %v14021_v55, %v4980_v29  ;;  %v5107_v1 = vadd.f32 %v14058_v49, %v5042_v17  ;;  %v15343_v17 = vld [vmem:[%s21023_s5 + $0xc0] sm:$0xff]  }
 0x326   : > { %v14022_v4 = vpop.f32.mrb[140].mxu1  ;;  %v5110_v28 = vadd.f32 %v14061_v27, %v5045_v60 }
 0x327   : > { %v14023_v20 = vpop.f32.mrb[141].mxu1 }
 0x328   : > { %v14024_v10 = vadd.f32 %v14023_v20, %v14022_v4  ;;  %v14025_v47 = vpop.f32.mrb[142].mxu1  ;;  %v15335_v4 = vld [vmem:[%s21027_s9 + $0x8] sm:$0xff]   ;;  %v15345_v20 = vld [vmem:[%s21023_s5 + $0x80] sm:$0xff]  }
 0x329   : > { %v14026_v42 = vpop.f32.mrb[143].mxu1 }
 0x32a   : > { %v5050_v21 = vadd.f32 %v14024_v10, %v4985_v9  ;;  %v14027_v51 = vadd.f32 %v14026_v42, %v14025_v47  ;;  %v15347_v10 = vld [vmem:[%s21023_s5 + $0xc8] sm:$0xff]   ;;  %v15337_v42 = vld [vmem:[%s21027_s9 + $0x18] sm:$0xff]  }
 0x32b   : > { %v15349_v47 = vld [vmem:[%s21023_s5 + $0x88] sm:$0xff]  }
 0x32c   : > { %v5053_v12 = vadd.f32 %v14027_v51, %v4988_v26  ;;  %v5115_v3 = vadd.f32 %v14064_v33, %v5050_v21  ;;  %v15350_v21 = vld [vmem:[%s21023_s5 + $0x60] sm:$0xff]   ;;  %v15351_v51 = vld [vmem:[%s21023_s5 + $0xd0] sm:$0xff]  }
 0x32d   : > { %14124 = vmatprep.subr.bf16.mxu1 %v15350_v21 }
 0x32e   : > { %v14084_v36 = vpop.f32.mrb[144].mxu1  ;;  %v5118_v24 = vadd.f32 %v14067_v8, %v5053_v12  ;;  %v15352_v12 = vld [vmem:[%s21023_s5 + $0x20] sm:$0xff]  }
 0x32f   : > { %v14085_v38 = vpop.f32.mrb[145].mxu1  ;;  %14125 = vmatpush3.bf16.msra.mxu1 %v15352_v12 }
 0x330   : > { %v14086_v54 = vadd.f32 %v14085_v38, %v14084_v36  ;;  %v14087_v22 = vpop.f32.mrb[146].mxu1  ;;  %v15354_v36 = vld [vmem:[%s21023_s5 + $0x68] sm:$0xff]  }
 0x331   : > { %v14088_v16 = vpop.f32.mrb[147].mxu1  ;;  %v15356_v38 = vld [vmem:[%s21023_s5 + $0x28] sm:$0xff]   ;;  %14126 = vmatprep.subr.bf16.mxu1 %v15354_v36 }
 0x332   : > { %v5156_v30 = vadd.f32 %v14086_v54, %v5091_v56  ;;  %v14089_v37 = vadd.f32 %v14088_v16, %v14087_v22  ;;  %v15357_v54 = vld [vmem:[%s21023_s5 + $0x98] sm:$0xff]   ;;  %v15358_v22 = vld [vmem:[%s21023_s5 + $0x70] sm:$0xff]   ;;  %v15359_v16 = vld [vmem:[%s21023_s5 + $0xe0] sm:$0xff]  }
 0x333   : > { %14127 = vmatpush3.bf16.msra.mxu1 %v15356_v38 }
 0x334   : > { %vm5186_vm3 = vcmp.ge.f32.partialorder %v5156_v30, 0.0  ;;  %v5194_v49 = vmul.f32 0.01, %v5156_v30  ;;  %v5159_v29 = vadd.f32 %v14089_v37, %v5094_v43  ;;  %v15361_v37 = vld [vmem:[%s21023_s5 + $0xa0] sm:$0xff]   ;;  %14128 = vmatprep.subr.bf16.mxu1 %v15358_v22  ;;  %v15395_v22 = vld [vmem:[%s21023_s5 + $0x1c8] sm:$0xff]  }
 0x336   : > { %vm5187_vm5 = vcmp.ge.f32.partialorder %v5159_v29, 0.0  ;;  %v5195_v27 = vmul.f32 0.01, %v5159_v29  ;;  %v14090_v57 = vpop.f32.mrb[148].mxu1  ;;  %v5202_v48 = vsel %vm5186_vm3, %v5156_v30, %v5194_v49  ;;  %v15360_v30 = vld [vmem:[%s21023_s5 + $0x30] sm:$0xff]   ;;  %v15362_v49 = vld [vmem:[%s21023_s5 + $0x78] sm:$0xff]  }
 0x337   : > { %v14091_v53 = vpop.f32.mrb[149].mxu1  ;;  %14129 = vmatpush3.bf16.msra.mxu1 %v15360_v30 }
 0x338   : > { %v14092_v50 = vadd.f32 %v14091_v53, %v14090_v57  ;;  %v14093_v6 = vpop.f32.mrb[150].mxu1  ;;  %v5203_v7 = vsel %vm5187_vm5, %v5159_v29, %v5195_v27  ;;  %v15363_v29 = vld [vmem:[%s21023_s5 + $0xe8] sm:$0xff]   ;;  %v15364_v27 = vld [vmem:[%s21023_s5 + $0x38] sm:$0xff]   ;;  %14130 = vmatprep.subr.bf16.mxu1 %v15362_v49  ;;  %v15374_v53 = vld [vmem:[%s21023_s5 + $0xf0] sm:$0xff]   ;;  %vm8778_vm5 = vcmask 130048  }
 0x339   : > { %v14094_v15 = vpop.f32.mrb[151].mxu1  ;;  %v5218_v33 = vpack.c.bf16 %v5203_v7, %v5202_v48  ;;  %v15365_v57 = vld [vmem:[%s21023_s5 + $0xa8] sm:$0xff]   ;;  %v15378_v48 = vld [vmem:[%s21023_s5 + $0xf8] sm:$0xff]  }
 0x33a   : > { %v5164_v39 = vadd.f32 %v14092_v50, %v5099_v63  ;;  %v14095_v40 = vadd.f32 %v14094_v15, %v14093_v6  ;;  %v15375_v50 = vld [vmem:[%s21023_s5 + $0x140] sm:$0xff]   ;;  %v15376_v6 = vld [vmem:[%s21023_s5 + $0xb0] sm:$0xff]   ;;  %v15380_v7 = vld [vmem:[%s21023_s5 + $0xb8] sm:$0xff]  }
 0x33b   : > { %14958 = vmatprep.subr.bf16.mxu0 %v5218_v33  ;;  %14131 = vmatpush3.bf16.msra.mxu1 %v15364_v27  ;;  %v15391_v15 = vld [vmem:[%s21023_s5 + $0x1c0] sm:$0xff]  }
 0x33c   : > { %vm5188_vm6 = vcmp.ge.f32.partialorder %v5164_v39, 0.0  ;;  %v5196_v46 = vmul.f32 0.01, %v5164_v39  ;;  %v5167_v9 = vadd.f32 %v14095_v40, %v5102_v62  ;;  %14959 = vmatpush3.bf16.msra.mxu0 %v5218_v33  ;;  %14160 = vmatprep.subr.bf16.mxu1 %v15375_v50  ;;  %v18613_v33 = vld [vmem:[#allocation3] sm:$0x3f] }
 0x33d   : > { %v18617_v40 = vld [vmem:[#allocation3 + $0x10] sm:$0x3f] }
 0x33e   : > { %vm5189_vm7 = vcmp.ge.f32.partialorder %v5167_v9, 0.0  ;;  %v5197_v8 = vmul.f32 0.01, %v5167_v9  ;;  %v14096_v14 = vpop.f32.mrb[152].mxu1  ;;  %v5204_v32 = vsel %vm5188_vm6, %v5164_v39, %v5196_v46  ;;  %v18615_v39 = vld [vmem:[#allocation3 + $0x8] sm:$0x3f] }
 0x33f   : > { %v14097_v26 = vpop.f32.mrb[153].mxu1  ;;  %v18619_v46 = vld [vmem:[#allocation3 + $0x18] sm:$0x3f]  ;;  %vm8984_vm6 = vcmask 1040384  }
 0x340   : > { %v14098_v31 = vadd.f32 %v14097_v26, %v14096_v14  ;;  %v14099_v5 = vpop.f32.mrb[154].mxu1  ;;  %v5205_v59 = vsel %vm5189_vm7, %v5167_v9, %v5197_v8  ;;  %v5425_v9 = vcombine.low %v18613_v33, %v18615_v39  ;;  %v5433_v8 = vcombine.high %v18613_v33, %v18615_v39 }
 0x341   : > { %v14100_v45 = vpop.f32.mrb[155].mxu1  ;;  %v5219_v58 = vpack.c.bf16 %v5205_v59, %v5204_v32  ;;  %v5426_v14 = vcombine.low %v18617_v40, %v18619_v46  ;;  %v5434_v26 = vcombine.high %v18617_v40, %v18619_v46  ;;  %vm8985_vm7 = vcmask 1042434  }
 0x342   : > { %v5172_v0 = vadd.f32 %v14098_v31, %v5107_v1  ;;  %v14101_v56 = vadd.f32 %v14100_v45, %v14099_v5  ;;  %v12711_v31 = vrot.slane %v5425_v9, 9  ;;  %v5446_v5 = vrot.slane %v5433_v8, 5 }
 0x343   : > { %14960 = vmatprep.subr.bf16.mxu0 %v5219_v58  ;;  %v12712_v32 = vrot.slane %v5426_v14, 9  ;;  %v5450_v59 = vrot.slane %v5434_v26, 5 }
 0x344   : > { %vm5190_vm8 = vcmp.ge.f32.partialorder %v5172_v0, 0.0  ;;  %v5198_v41 = vmul.f32 0.01, %v5172_v0  ;;  %v5175_v43 = vadd.f32 %v14101_v56, %v5110_v28  ;;  %14961 = vmatpush3.bf16.msra.mxu0 %v5219_v58  ;;  %v15336_v28 = vld [vmem:[%s21027_s9 + $0x10] sm:$0xff]   ;;  %v18629_v58 = vld [vmem:[#allocation3 + $0xa0] sm:$0x3f] }
 0x346   : > { %vm5191_vm9 = vcmp.ge.f32.partialorder %v5175_v43, 0.0  ;;  %v5199_v23 = vmul.f32 0.01, %v5175_v43  ;;  %v14102_v61 = vpop.f32.mrb[156].mxu1  ;;  %v5206_v34 = vsel %vm5190_vm8, %v5172_v0, %v5198_v41  ;;  %v18631_v0 = vld [vmem:[#allocation3 + $0xa8] sm:$0x3f]  ;;  %vm8986_vm8 = vmor %vm8984_vm6, %vm8985_vm7 }
 0x347   : > { %v14103_v25 = vpop.f32.mrb[157].mxu1 }
 0x348   : > { %v14104_v11 = vadd.f32 %v14103_v25, %v14102_v61  ;;  %v14105_v19 = vpop.f32.mrb[158].mxu1  ;;  %v5207_v44 = vsel %vm5191_vm9, %v5175_v43, %v5199_v23  ;;  %v12719_v23 = vrot.slane %v5425_v9, 10  ;;  %v5481_v61 = vrot.slane %v5433_v8, 6 }
 0x349   : > { %v14106_v63 = vpop.f32.mrb[159].mxu1  ;;  %v5220_v35 = vpack.c.bf16 %v5207_v44, %v5206_v34  ;;  %v12720_v34 = vrot.slane %v5426_v14, 10  ;;  %v5485_v44 = vrot.slane %v5434_v26, 6  ;;  %vm8987_vm9 = vcmask 1044484  }
 0x34a   : > { %v5180_v62 = vadd.f32 %v14104_v11, %v5115_v3  ;;  %v14107_v18 = vadd.f32 %v14106_v63, %v14105_v19  ;;  %v15353_v3 = vld [vmem:[%s21023_s5 + $0x90] sm:$0xff]  }
 0x34b   : > { %14962 = vmatprep.subr.bf16.mxu0 %v5220_v35  ;;  %v18671_v12 = vsel %vm18649_vm1, %v12720_v34, %v5485_v44  ;;  %v15377_v44 = vld [vmem:[%s21023_s5 + $0x100] sm:$0xff]  }
 0x34c   : > { %vm5192_vm10 = vcmp.ge.f32.partialorder %v5180_v62, 0.0  ;;  %v5200_v52 = vmul.f32 0.01, %v5180_v62  ;;  %v5183_v13 = vadd.f32 %v14107_v18, %v5118_v24  ;;  %14963 = vmatpush3.bf16.msra.mxu0 %v5220_v35  ;;  %v15355_v24 = vld [vmem:[%s21023_s5 + $0xd8] sm:$0xff]   ;;  %21314 = vst [vmem:[#allocation9_spill] sm:$0xff] %v18671_v12 }
 0x34e   : > { %vm5193_vm11 = vcmp.ge.f32.partialorder %v5183_v13, 0.0  ;;  %v5201_v2 = vmul.f32 0.01, %v5183_v13  ;;  %v5208_v55 = vsel %vm5192_vm10, %v5180_v62, %v5200_v52  ;;  %v18635_v52 = vcombine.low %v18629_v58, %v18631_v0  ;;  %vm8988_vm10 = vmor %vm8986_vm8, %vm8987_vm9 }
 0x350   : > { %v5209_v60 = vsel %vm5193_vm11, %v5183_v13, %v5201_v2  ;;  %vm8989_vm11 = vcmask 1046534  }
 0x351   : > { %v5221_v1 = vpack.c.bf16 %v5209_v60, %v5208_v55  ;;  %v18645_v60 = vcombine.high %v18629_v58, %v18631_v0  ;;  %v15412_v55 = vld [vmem:[%s21023_s5 + $0x138] sm:$0xff]   ;;  %vm20033_vm12 = vmor %vm8988_vm10, %vm8989_vm11 }
 0x353   : > { %14964 = vmatprep.subr.bf16.mxu0 %v5221_v1 }
 0x354   : > { %14965 = vmatpush3.bf16.msra.mxu0 %v5221_v1 }
 0x355   : > { %14138 = vmatprep.subr.bf16.mxu0 %v15343_v17 }
 0x357   : > { %14967 = vmatmul.mubr.msk.bf16.vlgmr.msra.gmra.mrb[160].mxu0 %vm5242_vm4, %v15335_v4 }
 0x358   : > { %14970 = vmatprep.mubr.msk.bf16.mxu0 %vm5242_vm4, %v15336_v28  ;;  %14139 = vmatpush3.bf16.msra.mxu0 %v15345_v20  ;;  %v18655_v20 = vsel %vm18639_vm0, %v12711_v31, %v5446_v5 }
 0x359   : > { %14140 = vmatprep.subr.bf16.mxu0 %v15347_v10  ;;  %v18659_v10 = vsel %vm18639_vm0, %v12712_v32, %v5450_v59 }
 0x35a   : > { %21312 = vst [vmem:[#allocation63_spill] sm:$0xff] %v18659_v10 }
 0x35c   : > { %14141 = vmatpush3.bf16.msra.mxu0 %v15349_v47  ;;  %v18661_v47 = vld [vmem:[#allocation3 + $0xb0] sm:$0x3f] }
 0x35d   : > { %14142 = vmatprep.subr.bf16.mxu0 %v15351_v51  ;;  %v18667_v51 = vsel %vm18649_vm1, %v12719_v23, %v5481_v61 }
 0x35e   : > { %21313 = vst [vmem:[#allocation11_spill] sm:$0xff] %v18667_v51 }
 0x35f   : > { %14971 = vmatmul.mubr.msk.bf16.gmra.mrb[164].mxu0 %vm5242_vm4, %v15337_v42  ;;  %v18663_v42 = vld [vmem:[#allocation3 + $0xb8] sm:$0x3f] }
 0x360   : > { %14143 = vmatpush3.bf16.msra.mxu0 %v15353_v3  ;;  %v18681_v27 = vcombine.low %v18661_v47, %v18663_v42 }
 0x361   : > { %14144 = vmatprep.subr.bf16.mxu0 %v15355_v24 }
 0x364   : > { %14145 = vmatpush3.bf16.msra.mxu0 %v15357_v54 }
 0x365   : > { %14146 = vmatprep.subr.bf16.mxu0 %v15359_v16 }
 0x368   : > { %14147 = vmatpush3.bf16.msra.mxu0 %v15361_v37 }
 0x369   : > { %14148 = vmatprep.subr.bf16.mxu0 %v15363_v29 }
 0x36c   : > { %14149 = vmatpush3.bf16.msra.mxu0 %v15365_v57  ;;  %v18685_v57 = vcombine.high %v18661_v47, %v18663_v42 }
 0x36d   : > { %14150 = vmatprep.subr.bf16.mxu0 %v15374_v53 }
 0x370   : > { %14151 = vmatpush3.bf16.msra.mxu0 %v15376_v6 }
 0x371   : > { %14152 = vmatprep.subr.bf16.mxu0 %v15378_v48 }
 0x374   : > { %14153 = vmatpush3.bf16.msra.mxu0 %v15380_v7 }
 0x375   : > { %14182 = vmatprep.subr.bf16.mxu0 %v15391_v15 }
 0x42a   : > { %v14968_v45 = vpop.f32.mrb[160].mxu0 }
 0x42b   : > { %v5339_v56 = vcombine.high %v14968_v45, %v14968_v45  ;;  %v5341_v41 = vrot.slane %v14968_v45, 7  ;;  %v5289_v43 = vpop.f32.mrb[161].mxu0 }
 0x42c   : > { %v5322_v25 = vcombine.high %v5289_v43, %v5289_v43  ;;  %v5324_v11 = vrot.slane %v5289_v43, 7  ;;  %v14969_v19 = vpop.f32.mrb[162].mxu0 }
 0x42d   : > { %v5342_v63 = vrot.slane %v5339_v56, 7  ;;  %5349 = vst [vmem:[#allocation3 + $0x28] sm:$0x1e] %v5341_v41  ;;  %v5340_v35 = vcombine.high %v14969_v19, %v14969_v19  ;;  %v5343_v62 = vrot.slane %v14969_v19, 7  ;;  %v5292_v18 = vpop.f32.mrb[163].mxu0 }
 0x42e   : > { %v5325_v13 = vrot.slane %v5322_v25, 7  ;;  %5333 = vst [vmem:[#allocation3 + $0x20] sm:$0x1e] %v5324_v11  ;;  %v5323_v2 = vcombine.high %v5292_v18, %v5292_v18  ;;  %v5326_v17 = vrot.slane %v5292_v18, 7 }
 0x42f   : > { %5350 = vst [vmem:[#allocation3 + $0x48] sm:$0x1e] %v5342_v63  ;;  %v5344_v1 = vrot.slane %v5340_v35, 7  ;;  %5351 = vst [vmem:[#allocation3 + $0x68] sm:$0x1e] %v5343_v62 }
 0x430   : > { %5334 = vst [vmem:[#allocation3 + $0x40] sm:$0x1e] %v5325_v13  ;;  %v5327_v28 = vrot.slane %v5323_v2, 7  ;;  %5335 = vst [vmem:[#allocation3 + $0x60] sm:$0x1e] %v5326_v17  ;;  %v15379_v2 = vld [vmem:[%s21023_s5 + $0x148] sm:$0xff]  }
 0x431   : > { %5352 = vst [vmem:[#allocation3 + $0x88] sm:$0x1e] %v5344_v1 }
 0x432   : > { %5336 = vst [vmem:[#allocation3 + $0x80] sm:$0x1e] %v5327_v28  ;;  %v14972_v21 = vpop.f32.mrb[164].mxu0 }
 0x433   : > { %v5371_v24 = vcombine.high %v14972_v21, %v14972_v21  ;;  %v5373_v38 = vrot.slane %v14972_v21, 7  ;;  %v5305_v54 = vpop.f32.mrb[165].mxu0 }
 0x434   : > { %v5355_v30 = vcombine.high %v5305_v54, %v5305_v54  ;;  %v5357_v37 = vrot.slane %v5305_v54, 7  ;;  %v14973_v49 = vpop.f32.mrb[166].mxu0  ;;  %v18677_v29 = vld [vmem:[#allocation3 + $0x28] sm:$0x3f] }
 0x435   : > { %v5374_v53 = vrot.slane %v5371_v24, 7  ;;  %5381 = vst [vmem:[#allocation3 + $0x38] sm:$0x1e] %v5373_v38  ;;  %v5372_v50 = vcombine.high %v14973_v49, %v14973_v49  ;;  %v5375_v6 = vrot.slane %v14973_v49, 7  ;;  %v5308_v48 = vpop.f32.mrb[167].mxu0  ;;  %v12736_v15 = vcombine.low %v18615_v39, %v18677_v29 }
 0x436   : > { %v18687_v7 = vld [vmem:[#allocation3 + $0x20] sm:$0x3f]  ;;  %v5358_v9 = vrot.slane %v5355_v30, 7  ;;  %5365 = vst [vmem:[#allocation3 + $0x30] sm:$0x1e] %v5357_v37  ;;  %v5356_v8 = vcombine.high %v5308_v48, %v5308_v48  ;;  %v5359_v14 = vrot.slane %v5308_v48, 7 }
 0x437   : > { %v18691_v26 = vld [vmem:[#allocation3 + $0x48] sm:$0x3f]  ;;  %v18697_v5 = vcombine.low %v18687_v7, %v18677_v29  ;;  %5382 = vst [vmem:[#allocation3 + $0x58] sm:$0x1e] %v5374_v53  ;;  %v5376_v32 = vrot.slane %v5372_v50, 7  ;;  %v18705_v39 = vcombine.high %v18687_v7, %v18677_v29  ;;  %v12735_v41 = vcombine.low %v18613_v33, %v18687_v7 }
 0x438   : > { %v18693_v31 = vld [vmem:[#allocation3 + $0x68] sm:$0x3f]  ;;  %5383 = vst [vmem:[#allocation3 + $0x78] sm:$0x1e] %v5375_v6  ;;  %v18699_v59 = vld [vmem:[#allocation3 + $0x40] sm:$0x3f] }
 0x439   : > { %v18701_v45 = vld [vmem:[#allocation3 + $0x60] sm:$0x3f]  ;;  %v18709_v56 = vcombine.low %v18691_v26, %v18693_v31  ;;  %5366 = vst [vmem:[#allocation3 + $0x50] sm:$0x1e] %v5358_v9  ;;  %v5360_v43 = vrot.slane %v5356_v8, 7  ;;  %v18715_v23 = vcombine.low %v18699_v59, %v18691_v26  ;;  %v18723_v25 = vcombine.high %v18699_v59, %v18691_v26  ;;  %v15381_v48 = vld [vmem:[%s21023_s5 + $0x108] sm:$0xff]  }
 0x43a   : > { %5367 = vst [vmem:[#allocation3 + $0x70] sm:$0x1e] %v5359_v14  ;;  %v18719_v61 = vcombine.low %v18701_v45, %v18693_v31  ;;  %5384 = vst [vmem:[#allocation3 + $0x98] sm:$0x1e] %v5376_v32  ;;  %v18727_v11 = vcombine.high %v18701_v45, %v18693_v31  ;;  %v18732_v19 = vcombine.low %v18699_v59, %v18701_v45  ;;  %v12713_v34 = vrot.slane %v18697_v5, 9 }
 0x43b   : > { %v5680_v33 = vpack.c.bf16 %v18709_v56, %v12736_v15  ;;  %5368 = vst [vmem:[#allocation3 + $0x90] sm:$0x1e] %v5360_v43  ;;  %v5454_v63 = vrot.slane %v18705_v39, 5  ;;  %v12715_v35 = vrot.slane %v18715_v23, 9  ;;  %v5462_v62 = vrot.slane %v18723_v25, 5 }
 0x43c   : > { %v12717_v18 = vrot.slane %v18719_v61, 9  ;;  %v5679_v13 = vpack.c.bf16 %v18732_v19, %v12735_v41  ;;  %v5470_v17 = vrot.slane %v18727_v11, 5  ;;  %v18757_v38 = vld [vmem:[#allocation3 + $0x38] sm:$0x3f]  ;;  %v12721_v53 = vrot.slane %v18697_v5, 10 }
 0x43d   : > { %8058 = vmatprep.mubr.bf16.mxu1 %v5680_v33  ;;  %v18751_v21 = vsel %vm18639_vm0, %v12713_v34, %v5454_v63  ;;  %v18755_v24 = vsel %vm18639_vm0, %v12715_v35, %v5462_v62  ;;  %v18765_v49 = vld [vmem:[#allocation3 + $0x30] sm:$0x3f]  ;;  %v5489_v50 = vrot.slane %v18705_v39, 6  ;;  %v12723_v6 = vrot.slane %v18715_v23, 10 }
 0x43e   : > { %8059 = vmatmul.mubr.bf16.vlgmr.msra.gmra.mrb[160].mxu1 %v5679_v13  ;;  %v18763_v37 = vsel %vm18639_vm0, %v12717_v18, %v5470_v17  ;;  %v5576_v15 = vcombine.high %v18655_v20, %v18751_v21  ;;  %v18779_v8 = vld [vmem:[#allocation3 + $0x58] sm:$0x3f]  ;;  %v18785_v5 = vcombine.low %v18765_v49, %v18757_v38  ;;  %v18789_v32 = vcombine.high %v18765_v49, %v18757_v38  ;;  %v15390_v33 = vld [vmem:[%s21023_s5 + $0x150] sm:$0xff]   ;;  %v15393_v17 = vld [vmem:[%s21023_s5 + $0x180] sm:$0xff]  }
 0x43f   : > { %14161 = vmatpush3.bf16.msra.mxu1 %v15377_v44  ;;  %v18777_v9 = vcombine.high %v18755_v24, %v18763_v37  ;;  %v18781_v14 = vld [vmem:[#allocation3 + $0x78] sm:$0x3f]  ;;  %v12738_v43 = vcombine.low %v18619_v46, %v18757_v38  ;;  %v12737_v34 = vcombine.low %v18617_v40, %v18765_v49  ;;  %v5497_v44 = vrot.slane %v18723_v25, 6 }
 0x440   : > { %14162 = vmatprep.subr.bf16.mxu1 %v15379_v2  ;;  %v18791_v39 = vld [vmem:[#allocation3 + $0x50] sm:$0x3f]  ;;  %v18799_v23 = vcombine.low %v18779_v8, %v18781_v14  ;;  %v12714_v13 = vrot.slane %v18785_v5, 9  ;;  %v18850_v1 = vsel %vm18649_vm1, %v12721_v53, %v5489_v50  ;;  %v12725_v28 = vrot.slane %v18719_v61, 10 }
 0x441   : > { %v18793_v41 = vld [vmem:[#allocation3 + $0x70] sm:$0x3f]  ;;  %v5684_v63 = vpack.c.bf16 %v18777_v9, %v5576_v15  ;;  %v18810_v35 = vcombine.low %v18791_v39, %v18779_v8  ;;  %v18818_v62 = vcombine.high %v18791_v39, %v18779_v8  ;;  %v5458_v15 = vrot.slane %v18789_v32, 5  ;;  %v18913_v36 = vld [vmem:[#allocation3 + $0x98] sm:$0x3f] }
 0x442   : > { %v18814_v46 = vcombine.low %v18793_v41, %v18781_v14  ;;  %v18822_v18 = vcombine.high %v18793_v41, %v18781_v14  ;;  %v5682_v40 = vpack.c.bf16 %v18799_v23, %v12738_v43  ;;  %v18827_v25 = vcombine.low %v18791_v39, %v18793_v41  ;;  %v15392_v2 = vld [vmem:[%s21023_s5 + $0x110] sm:$0xff]  }
 0x443   : > { %14163 = vmatpush3.bf16.msra.mxu1 %v15381_v48  ;;  %8140 = vmatprep.mubr.bf16.mxu1 %v5684_v63  ;;  %v12716_v43 = vrot.slane %v18810_v35, 9  ;;  %v5466_v54 = vrot.slane %v18818_v62, 5  ;;  %v15394_v63 = vld [vmem:[%s21023_s5 + $0x158] sm:$0xff]   ;;  %v5505_v3 = vrot.slane %v18727_v11, 6  ;;  %v5575_v53 = vcombine.low %v18655_v20, %v18751_v21  ;;  %v15397_v20 = vld [vmem:[%s21023_s5 + $0x188] sm:$0xff]  }
 0x444   : > { %v12718_v30 = vrot.slane %v18814_v46, 9  ;;  %8099 = vmatprep.mubr.bf16.mxu0 %v5682_v40  ;;  %14164 = vmatprep.subr.bf16.mxu1 %v15390_v33  ;;  %v5681_v48 = vpack.c.bf16 %v18827_v25, %v12737_v34  ;;  %v5474_v16 = vrot.slane %v18822_v18, 5  ;;  %v18855_v33 = vsel %vm18639_vm0, %v12714_v13, %v5458_v15  ;;  %v15396_v11 = vld [vmem:[%s21023_s5 + $0x118] sm:$0xff]  }
 0x445   : > { %v18859_v34 = vsel %vm18639_vm0, %v12716_v43, %v5466_v54  ;;  %v18863_v40 = vsel %vm18649_vm1, %v12723_v6, %v5497_v44  ;;  %v5578_v50 = vcombine.high %v18659_v10, %v18855_v33  ;;  %v18876_v54 = vcombine.low %v18755_v24, %v18763_v37  ;;  %v15398_v44 = vld [vmem:[%s21023_s5 + $0x160] sm:$0xff]  }
 0x446   : > { %8100 = vmatmul.mubr.bf16.vlgmr.msra.gmra.mrb[168].mxu0 %v5681_v48  ;;  %v18870_v61 = vsel %vm18639_vm0, %v12718_v30, %v5474_v16  ;;  %v18890_v30 = vsel %vm18649_vm1, %v12725_v28, %v5505_v3  ;;  %v5592_v6 = vcombine.high %v18667_v51, %v18850_v1  ;;  %v5501_v3 = vrot.slane %v18818_v62, 6 }
 0x447   : > { %14165 = vmatpush3.bf16.msra.mxu1 %v15392_v2  ;;  %14183 = vmatpush3.bf16.msra.mxu0 %v15393_v17  ;;  %v18886_v16 = vcombine.high %v18859_v34, %v18870_v61  ;;  %v18899_v13 = vcombine.high %v18863_v40, %v18890_v30  ;;  %v12722_v2 = vrot.slane %v18785_v5, 10  ;;  %v12724_v17 = vrot.slane %v18810_v35, 10 }
 0x448   : > { %14166 = vmatprep.subr.bf16.mxu1 %v15394_v63  ;;  %14184 = vmatprep.subr.bf16.mxu0 %v15395_v22  ;;  %v15399_v22 = vld [vmem:[%s21023_s5 + $0x1d0] sm:$0xff]   ;;  %v5493_v15 = vrot.slane %v18789_v32, 6  ;;  %v12726_v43 = vrot.slane %v18814_v46, 10  ;;  %v5509_v48 = vrot.slane %v18822_v18, 6  ;;  %v18911_v63 = vld [vmem:[#allocation3 + $0x88] sm:$0x3f]  ;;  %v12754_v4 = vcombine.low %v18913_v36, %v18663_v42 }
 0x449   : > { %v5686_v28 = vpack.c.bf16 %v18886_v16, %v5578_v50  ;;  %v21315_v5 = vrot.slane %v18645_v60, 5  ;;  %v21316_v35 = vrot.slane %v18635_v52, 9  ;;  %v21317_v50 = vrot.slane %v18685_v57, 5  ;;  %v15418_v42 = vld [vmem:[%s21023_s5 + $0x1f8] sm:$0xff]  }
 0x44a   : > { %v21318_v32 = vrot.slane %v18681_v27, 9  ;;  %v21319_v18 = vrot.slane %v18645_v60, 6  ;;  %v21320_v51 = vrot.slane %v18635_v52, 10  ;;  %v21321_v10 = vrot.slane %v18685_v57, 6  ;;  %v15400_v60 = vld [vmem:[%s21023_s5 + $0x120] sm:$0xff]   ;;  %v15401_v52 = vld [vmem:[%s21023_s5 + $0x190] sm:$0xff]  }
 0x44b   : > { %v18921_v62 = vsel %vm18639_vm0, %v21316_v35, %v21315_v5  ;;  %v21322_v5 = vrot.slane %v18681_v27, 10  ;;  %14167 = vmatpush3.bf16.msra.mxu1 %v15396_v11  ;;  %14185 = vmatpush3.bf16.msra.mxu0 %v15397_v20  ;;  %v18957_v57 = vpack.c.bf16 %v18899_v13, %v5592_v6  ;;  %v18963_v27 = vld [vmem:[#allocation3 + $0x80] sm:$0x3f]  ;;  %v15402_v11 = vld [vmem:[%s21023_s5 + $0x168] sm:$0xff]   ;;  %v18973_v20 = vsel %vm18649_vm1, %v12724_v17, %v5501_v3 }
 0x44c   : > { %v18929_v46 = vsel %vm18639_vm0, %v21318_v32, %v21317_v50  ;;  %v18937_v12 = vsel %vm18649_vm1, %v21320_v51, %v21319_v18  ;;  %v18954_v51 = vpack.c.bf16 %v18876_v54, %v5575_v53  ;;  %8181 = vmatprep.mubr.bf16.mxu0 %v5686_v28  ;;  %14168 = vmatprep.subr.bf16.mxu1 %v15398_v44  ;;  %v15403_v53 = vld [vmem:[%s21023_s5 + $0x1d8] sm:$0xff]  }
 0x44d   : > { %v18945_v35 = vsel %vm18649_vm1, %v21322_v5, %v21321_v10  ;;  %v18961_v10 = vcombine.low %v18859_v34, %v18870_v61  ;;  %v18977_v6 = vsel %vm18649_vm1, %v12726_v43, %v5509_v48  ;;  %v12744_v28 = vcombine.low %v18677_v29, %v18691_v26  ;;  %14186 = vmatprep.subr.bf16.mxu0 %v15399_v22  ;;  %v15407_v22 = vld [vmem:[%s21023_s5 + $0x1e0] sm:$0xff]  }
 0x44e   : > { %v18983_v44 = vsel %vm18649_vm1, %v12722_v2, %v5493_v15  ;;  %v12748_v50 = vcombine.low %v18693_v31, %v18911_v63  ;;  %v12746_v32 = vcombine.low %v18757_v38, %v18779_v8  ;;  %v12750_v17 = vcombine.low %v18781_v14, %v18913_v36  ;;  %v19001_v31 = vld [vmem:[#allocation3 + $0x90] sm:$0x3f]  ;;  %v15404_v38 = vld [vmem:[%s21023_s5 + $0x128] sm:$0xff]   ;;  %v15405_v8 = vld [vmem:[%s21023_s5 + $0x198] sm:$0xff]  }
 0x44f   : > { %v18993_v3 = vcombine.low %v18863_v40, %v18890_v30  ;;  %v12743_v29 = vcombine.low %v18687_v7, %v18699_v59  ;;  %v12747_v26 = vcombine.low %v18701_v45, %v18963_v27  ;;  %v5515_v2 = vcombine.low %v18963_v27, %v18911_v63  ;;  %14169 = vmatpush3.bf16.msra.mxu1 %v15400_v60  ;;  %v15406_v14 = vld [vmem:[%s21023_s5 + $0x170] sm:$0xff]  }
 0x450   : > { %14187 = vmatpush3.bf16.msra.mxu0 %v15401_v52  ;;  %v19011_v7 = vcombine.high %v18973_v20, %v18977_v6  ;;  %v19013_v59 = vpack.c.bf16 %v12748_v50, %v12744_v28  ;;  %v19015_v45 = vpack.c.bf16 %v12750_v17, %v12746_v32  ;;  %14170 = vmatprep.subr.bf16.mxu1 %v15402_v11 }
 0x451   : > { %14188 = vmatprep.subr.bf16.mxu0 %v15403_v53  ;;  %v19023_v15 = vpack.c.bf16 %v12747_v26, %v12743_v29  ;;  %v5517_v43 = vcombine.high %v18963_v27, %v18911_v63  ;;  %v12727_v48 = vrot.slane %v5515_v2, 9  ;;  %v5624_v18 = vcombine.high %v18751_v21, %v18755_v24 }
 0x452   : > { %v12745_v5 = vcombine.low %v18765_v49, %v18791_v39  ;;  %v12749_v60 = vcombine.low %v18793_v41, %v19001_v31  ;;  %v5516_v52 = vcombine.low %v19001_v31, %v18913_v36  ;;  %v5518_v11 = vcombine.high %v19001_v31, %v18913_v36  ;;  %v15408_v49 = vld [vmem:[%s21023_s5 + $0x130] sm:$0xff]   ;;  %v15409_v39 = vld [vmem:[%s21023_s5 + $0x1a0] sm:$0xff]  }
 0x453   : > { %v5521_v53 = vrot.slane %v5517_v43, 5  ;;  %v5626_v28 = vcombine.high %v18855_v33, %v18859_v34  ;;  %v5623_v50 = vcombine.low %v18751_v21, %v18755_v24  ;;  %v12729_v32 = vrot.slane %v5515_v2, 10  ;;  %14171 = vmatpush3.bf16.msra.mxu1 %v15404_v38  ;;  %v15410_v21 = vld [vmem:[%s21023_s5 + $0x178] sm:$0xff]   ;;  %v15411_v24 = vld [vmem:[%s21023_s5 + $0x1e8] sm:$0xff]  }
 0x454   : > { %14189 = vmatpush3.bf16.msra.mxu0 %v15405_v8  ;;  %v19047_v41 = vpack.c.bf16 %v12749_v60, %v12745_v5  ;;  %v12728_v17 = vrot.slane %v5516_v52, 9  ;;  %v5525_v29 = vrot.slane %v5518_v11, 5  ;;  %v5529_v26 = vrot.slane %v5517_v43, 6  ;;  %14172 = vmatprep.subr.bf16.mxu1 %v15406_v14 }
 0x455   : > { %14190 = vmatprep.subr.bf16.mxu0 %v15407_v22  ;;  %v19057_v2 = vsel %vm18639_vm0, %v12727_v48, %v5521_v53  ;;  %v5640_v38 = vcombine.high %v18850_v1, %v18863_v40  ;;  %v5625_v8 = vcombine.low %v18855_v33, %v18859_v34  ;;  %v12730_v14 = vrot.slane %v5516_v52, 10 }
 0x456   : > { %v5628_v22 = vcombine.high %v18763_v37, %v19057_v2  ;;  %v19067_v43 = vsel %vm18639_vm0, %v12728_v17, %v5525_v29  ;;  %v5627_v5 = vcombine.low %v18763_v37, %v19057_v2  ;;  %v19073_v48 = vsel %vm18649_vm1, %v12729_v32, %v5529_v26  ;;  %v15413_v37 = vld [vmem:[%s21023_s5 + $0x1a8] sm:$0xff]  }
 0x457   : > { %v5630_v60 = vcombine.high %v18870_v61, %v19067_v43  ;;  %v5644_v34 = vcombine.high %v18890_v30, %v19073_v48  ;;  %v5629_v52 = vcombine.low %v18870_v61, %v19067_v43  ;;  %v5533_v53 = vrot.slane %v5518_v11, 6  ;;  %14173 = vmatpush3.bf16.msra.mxu1 %v15408_v49  ;;  %v15414_v61 = vld [vmem:[%s21023_s5 + $0x1f0] sm:$0xff]   ;;  %v15415_v11 = vld [vmem:[%s21023_s5 + $0x240] sm:$0xff]  }
 0x458   : > { %14191 = vmatpush3.bf16.msra.mxu0 %v15409_v39  ;;  %v19087_v32 = vpack.c.bf16 %v5628_v22, %v5624_v18  ;;  %v19089_v17 = vpack.c.bf16 %v5627_v5, %v5623_v50  ;;  %v5642_v29 = vcombine.high %v18983_v44, %v18973_v20  ;;  %14174 = vmatprep.subr.bf16.mxu1 %v15410_v21 }
 0x459   : > { %14192 = vmatprep.subr.bf16.mxu0 %v15411_v24  ;;  %v19099_v49 = vpack.c.bf16 %v5630_v60, %v5626_v28  ;;  %v19101_v39 = vpack.c.bf16 %v5644_v34, %v5640_v38  ;;  %v19103_v18 = vpack.c.bf16 %v5629_v52, %v5625_v8  ;;  %v5534_v50 = vsel %vm18649_vm1, %v12730_v14, %v5533_v53 }
 0x45a   : > { %v5639_v26 = vcombine.low %v18850_v1, %v18863_v40  ;;  %v5643_v21 = vcombine.low %v18890_v30, %v19073_v48  ;;  %v12752_v24 = vcombine.low %v18911_v63, %v18631_v0  ;;  %v5646_v22 = vcombine.high %v18977_v6, %v5534_v50  ;;  %v15416_v40 = vld [vmem:[%s21023_s5 + $0x1b0] sm:$0xff]   ;;  %v15417_v0 = vld [vmem:[%s21023_s5 + $0x200] sm:$0xff]  }
 0x45b   : > { %v5641_v28 = vcombine.low %v18983_v44, %v18973_v20  ;;  %v5645_v38 = vcombine.low %v18977_v6, %v5534_v50  ;;  %14175 = vmatpush3.bf16.msra.mxu1 %v15412_v55  ;;  %v12751_v8 = vcombine.low %v18963_v27, %v18629_v58  ;;  %v19140_v5 = vpack.c.bf16 %v12754_v4, %v18799_v23  ;;  %v15435_v4 = vld [vmem:[%s21023_s5 + $0x2d8] sm:$0xff]  }
 0x45c   : > { %14193 = vmatpush3.bf16.msra.mxu0 %v15413_v37  ;;  %v19125_v30 = vpack.c.bf16 %v5643_v21, %v5639_v26  ;;  %v19128_v63 = vpack.c.bf16 %v12752_v24, %v18709_v56  ;;  %14204 = vmatprep.subr.bf16.mxu1 %v15415_v11  ;;  %v19135_v36 = vpack.c.bf16 %v5646_v22, %v5642_v29  ;;  %v15419_v56 = vld [vmem:[%s21023_s5 + $0x248] sm:$0xff]   ;;  %v15426_v11 = vld [vmem:[%s21023_s5 + $0x258] sm:$0xff]   ;;  %v15430_v24 = vld [vmem:[%s21023_s5 + $0x260] sm:$0xff]  }
 0x45d   : > { %14194 = vmatprep.subr.bf16.mxu0 %v15414_v61  ;;  %v19137_v14 = vpack.c.bf16 %v5645_v38, %v5641_v28  ;;  %v19146_v60 = vpack.c.bf16 %v12751_v8, %v18732_v19  ;;  %v5663_v58 = vcombine.low %v19057_v2, %v18921_v62  ;;  %v5664_v27 = vcombine.high %v19057_v2, %v18921_v62  ;;  %v15421_v62 = vld [vmem:[%s21023_s5 + $0x208] sm:$0xff]   ;;  %v15423_v2 = vld [vmem:[%s21023_s5 + $0x2c0] sm:$0xff]   ;;  %v15433_v28 = vld [vmem:[%s21023_s5 + $0x290] sm:$0xff]  }
 0x45e   : > { %v12753_v34 = vcombine.low %v19001_v31, %v18661_v47  ;;  %8141 = vmatmul.mubr.bf16.vlgmr.msra.gmra.mrb[164].mxu1 %v18954_v51  ;;  %v5665_v23 = vcombine.low %v19067_v43, %v18929_v46  ;;  %v5666_v52 = vcombine.high %v19067_v43, %v18929_v46  ;;  %v5671_v19 = vcombine.low %v19073_v48, %v18937_v12  ;;  %v15420_v47 = vld [vmem:[%s21023_s5 + $0x1b8] sm:$0xff]   ;;  %v15429_v21 = vld [vmem:[%s21023_s5 + $0x288] sm:$0xff]   ;;  %v15432_v22 = vld [vmem:[%s21023_s5 + $0x220] sm:$0xff]  }
 0x45f   : > { %v5672_v53 = vcombine.high %v19073_v48, %v18937_v12  ;;  %14205 = vmatpush3.bf16.msra.mxu1 %v15417_v0  ;;  %v19170_v51 = vpack.c.bf16 %v5664_v27, %v18777_v9  ;;  %v19176_v31 = vpack.c.bf16 %v5663_v58, %v18876_v54  ;;  %8222 = vmatprep.mubr.bf16.mxu1 %v18957_v57  ;;  %v15422_v12 = vld [vmem:[%s21023_s5 + $0x250] sm:$0xff]   ;;  %v15434_v38 = vld [vmem:[%s21023_s5 + $0x268] sm:$0xff]   ;;  %v15437_v0 = vld [vmem:[%s21023_s5 + $0x298] sm:$0xff]  }
 0x460   : > { %14195 = vmatpush3.bf16.msra.mxu0 %v15416_v40  ;;  %v19173_v46 = vpack.c.bf16 %v12753_v34, %v18827_v25  ;;  %v19186_v9 = vpack.c.bf16 %v5666_v52, %v18886_v16  ;;  %v19192_v54 = vpack.c.bf16 %v5665_v23, %v18961_v10  ;;  %14206 = vmatprep.subr.bf16.mxu1 %v15419_v56  ;;  %v21323_v16 = vld [vmem:[#allocation63_spill] sm:$0xff]  ;;  %v15436_v40 = vld [vmem:[%s21023_s5 + $0x228] sm:$0xff]   ;;  %v15438_v8 = vld [vmem:[%s21023_s5 + $0x270] sm:$0xff]  }
 0x461   : > { %14196 = vmatprep.subr.bf16.mxu0 %v15418_v42  ;;  %v19189_v25 = vpack.c.bf16 %v5672_v53, %v18899_v13  ;;  %v19196_v57 = vcombine.low %v18973_v20, %v18977_v6  ;;  %v5673_v43 = vcombine.low %v5534_v50, %v18945_v35  ;;  %v5674_v48 = vcombine.high %v5534_v50, %v18945_v35  ;;  %v15424_v13 = vld [vmem:[%s21023_s5 + $0x210] sm:$0xff]   ;;  %v15425_v20 = vld [vmem:[%s21023_s5 + $0x280] sm:$0xff]   ;;  %v15427_v50 = vld [vmem:[%s21023_s5 + $0x2c8] sm:$0xff]  }
 0x462   : > { %v19201_v55 = vpack.c.bf16 %v5671_v19, %v18993_v3  ;;  %v5577_v37 = vcombine.low %v21323_v16, %v18855_v33  ;;  %v21324_v33 = vld [vmem:[#allocation9_spill] sm:$0xff]  ;;  %v15439_v42 = vld [vmem:[%s21023_s5 + $0x2e0] sm:$0xff]   ;;  %v15442_v27 = vld [vmem:[%s21023_s5 + $0x278] sm:$0xff]  }
 0x463   : > { %14207 = vmatpush3.bf16.msra.mxu1 %v15421_v62  ;;  %v19212_v6 = vpack.c.bf16 %v5674_v48, %v19011_v7  ;;  %v19215_v35 = vpack.c.bf16 %v5673_v43, %v19196_v57  ;;  %v5594_v61 = vcombine.high %v21324_v33, %v18983_v44  ;;  %v15440_v56 = vld [vmem:[%s21023_s5 + $0x230] sm:$0xff]   ;;  %v15441_v58 = vld [vmem:[%s21023_s5 + $0x2a0] sm:$0xff]   ;;  %v15443_v34 = vld [vmem:[%s21023_s5 + $0x2e8] sm:$0xff]  }
 0x464   : > { %14197 = vmatpush3.bf16.msra.mxu0 %v15420_v47  ;;  %v5685_v29 = vpack.c.bf16 %v18961_v10, %v5577_v37  ;;  %14208 = vmatprep.subr.bf16.mxu1 %v15422_v12  ;;  %v15428_v10 = vld [vmem:[%s21023_s5 + $0x218] sm:$0xff]   ;;  %v15445_v52 = vld [vmem:[%s21023_s5 + $0x2a8] sm:$0xff]   ;;  %v15446_v19 = vld [vmem:[%s21023_s5 + $0x2f0] sm:$0xff]  }
 0x465   : > { %14226 = vmatprep.subr.bf16.mxu0 %v15423_v2  ;;  %v5690_v26 = vpack.c.bf16 %v19011_v7, %v5594_v61  ;;  %v15431_v7 = vld [vmem:[%s21023_s5 + $0x2d0] sm:$0xff]   ;;  %v15444_v23 = vld [vmem:[%s21023_s5 + $0x238] sm:$0xff]   ;;  %v15447_v53 = vld [vmem:[%s21023_s5 + $0x340] sm:$0xff]  }
 0x466   : > { %v21325_v47 = vld [vmem:[#allocation11_spill] sm:$0xff]  ;;  %v15448_v12 = vld [vmem:[%s21023_s5 + $0x2b0] sm:$0xff]   ;;  %v15450_v48 = vld [vmem:[%s21023_s5 + $0x2f8] sm:$0xff]  }
 0x467   : > { %8182 = vmatmul.mubr.bf16.vlgmr.msra.gmra.mrb[172].mxu0 %v5685_v29  ;;  %14209 = vmatpush3.bf16.msra.mxu1 %v15424_v13  ;;  %v5591_v62 = vcombine.low %v21325_v47, %v18850_v1  ;;  %v15449_v2 = vld [vmem:[%s21023_s5 + $0x300] sm:$0xff]   ;;  %v15451_v1 = vld [vmem:[%s21023_s5 + $0x348] sm:$0xff]   ;;  %v15452_v16 = vld [vmem:[%s21023_s5 + $0x2b8] sm:$0xff]  }
 0x468   : > { %14227 = vmatpush3.bf16.msra.mxu0 %v15425_v20  ;;  %8263 = vmatprep.mubr.bf16.mxu0 %v5690_v26  ;;  %v15454_v37 = vld [vmem:[%s21023_s5 + $0x350] sm:$0xff]   ;;  %v15455_v13 = vld [vmem:[%s21023_s5 + $0x3c0] sm:$0xff]   ;;  %v5593_v20 = vcombine.low %v21324_v33, %v18983_v44  ;;  %v15459_v44 = vld [vmem:[%s21023_s5 + $0x3c8] sm:$0xff]  }
 0x469   : > { %14210 = vmatprep.subr.bf16.mxu1 %v15426_v11  ;;  %14228 = vmatprep.subr.bf16.mxu0 %v15427_v50  ;;  %v5687_v43 = vpack.c.bf16 %v18993_v3, %v5591_v62  ;;  %v15453_v3 = vld [vmem:[%s21023_s5 + $0x308] sm:$0xff]   ;;  %v15456_v29 = vld [vmem:[%s21023_s5 + $0x310] sm:$0xff]   ;;  %v15458_v11 = vld [vmem:[%s21023_s5 + $0x358] sm:$0xff]  }
 0x46a   : > { %v5689_v61 = vpack.c.bf16 %v19196_v57, %v5593_v20  ;;  %v15460_v33 = vld [vmem:[%s21023_s5 + $0x318] sm:$0xff]   ;;  %v15461_v57 = vld [vmem:[%s21023_s5 + $0x388] sm:$0xff]   ;;  %v15462_v50 = vld [vmem:[%s21023_s5 + $0x360] sm:$0xff]  }
 0x46b   : > { %14211 = vmatpush3.bf16.msra.mxu1 %v15428_v10  ;;  %v15463_v26 = vld [vmem:[%s21023_s5 + $0x3d0] sm:$0xff]   ;;  %v15464_v10 = vld [vmem:[%s21023_s5 + $0x320] sm:$0xff]   ;;  %v15487_v47 = vld [vmem:[%s21023_s5 + $0x408] sm:$0xff]  }
 0x46c   : > { %14229 = vmatpush3.bf16.msra.mxu0 %v15429_v21  ;;  %14212 = vmatprep.subr.bf16.mxu1 %v15430_v24  ;;  %v15466_v21 = vld [vmem:[%s21023_s5 + $0x368] sm:$0xff]   ;;  %v15467_v24 = vld [vmem:[%s21023_s5 + $0x3d8] sm:$0xff]   ;;  %v15488_v62 = vld [vmem:[%s21023_s5 + $0x450] sm:$0xff]  }
 0x46d   : > { %14230 = vmatprep.subr.bf16.mxu0 %v15431_v7  ;;  %v15468_v7 = vld [vmem:[%s21023_s5 + $0x328] sm:$0xff]  }
 0x46e   : > { %v15504_v20 = vld [vmem:[%s21023_s5 + $0x428] sm:$0xff]  }
 0x46f   : > { %14213 = vmatpush3.bf16.msra.mxu1 %v15432_v22  ;;  %v15469_v22 = vld [vmem:[%s21023_s5 + $0x398] sm:$0xff]  }
 0x470   : > { %14231 = vmatpush3.bf16.msra.mxu0 %v15433_v28  ;;  %14214 = vmatprep.subr.bf16.mxu1 %v15434_v38  ;;  %v15470_v28 = vld [vmem:[%s21023_s5 + $0x370] sm:$0xff]   ;;  %v15471_v38 = vld [vmem:[%s21023_s5 + $0x3e0] sm:$0xff]  }
 0x471   : > { %14232 = vmatprep.subr.bf16.mxu0 %v15435_v4  ;;  %v15472_v4 = vld [vmem:[%s21023_s5 + $0x330] sm:$0xff]  }
 0x473   : > { %14215 = vmatpush3.bf16.msra.mxu1 %v15436_v40  ;;  %v15473_v40 = vld [vmem:[%s21023_s5 + $0x3a0] sm:$0xff]  }
 0x474   : > { %14233 = vmatpush3.bf16.msra.mxu0 %v15437_v0  ;;  %14216 = vmatprep.subr.bf16.mxu1 %v15438_v8  ;;  %v15474_v0 = vld [vmem:[%s21023_s5 + $0x378] sm:$0xff]   ;;  %v15475_v8 = vld [vmem:[%s21023_s5 + $0x3e8] sm:$0xff]  }
 0x475   : > { %14234 = vmatprep.subr.bf16.mxu0 %v15439_v42  ;;  %v15476_v42 = vld [vmem:[%s21023_s5 + $0x338] sm:$0xff]  }
 0x477   : > { %14217 = vmatpush3.bf16.msra.mxu1 %v15440_v56  ;;  %v15477_v56 = vld [vmem:[%s21023_s5 + $0x3a8] sm:$0xff]  }
 0x478   : > { %14235 = vmatpush3.bf16.msra.mxu0 %v15441_v58  ;;  %14218 = vmatprep.subr.bf16.mxu1 %v15442_v27  ;;  %v15478_v58 = vld [vmem:[%s21023_s5 + $0x3f0] sm:$0xff]   ;;  %v15479_v27 = vld [vmem:[%s21023_s5 + $0x440] sm:$0xff]  }
 0x479   : > { %14236 = vmatprep.subr.bf16.mxu0 %v15443_v34  ;;  %v15480_v34 = vld [vmem:[%s21023_s5 + $0x3b0] sm:$0xff]  }
 0x47b   : > { %14219 = vmatpush3.bf16.msra.mxu1 %v15444_v23  ;;  %v15481_v23 = vld [vmem:[%s21023_s5 + $0x400] sm:$0xff]  }
 0x47c   : > { %14237 = vmatpush3.bf16.msra.mxu0 %v15445_v52  ;;  %14248 = vmatprep.subr.bf16.mxu1 %v15447_v53  ;;  %v15484_v52 = vld [vmem:[%s21023_s5 + $0x3f8] sm:$0xff]  }
 0x47d   : > { %14238 = vmatprep.subr.bf16.mxu0 %v15446_v19  ;;  %v15485_v19 = vld [vmem:[%s21023_s5 + $0x448] sm:$0xff]   ;;  %v15486_v53 = vld [vmem:[%s21023_s5 + $0x3b8] sm:$0xff]  }
 0x47e   : > { %8223 = vmatmul.mubr.bf16.vlgmr.msra.gmra.mrb[168].mxu1 %v5687_v43  ;;  %v15495_v43 = vld [vmem:[%s21023_s5 + $0x4c8] sm:$0xff]  }
 0x47f   : > { %14249 = vmatpush3.bf16.msra.mxu1 %v15449_v2  ;;  %8304 = vmatprep.mubr.bf16.mxu1 %v19013_v59  ;;  %v15457_v59 = vld [vmem:[%s21023_s5 + $0x380] sm:$0xff]   ;;  %v15494_v2 = vld [vmem:[%s21023_s5 + $0x458] sm:$0xff]  }
 0x480   : > { %14239 = vmatpush3.bf16.msra.mxu0 %v15448_v12  ;;  %14250 = vmatprep.subr.bf16.mxu1 %v15451_v1  ;;  %v15490_v12 = vld [vmem:[%s21023_s5 + $0x410] sm:$0xff]   ;;  %v15497_v1 = vld [vmem:[%s21023_s5 + $0x488] sm:$0xff]  }
 0x481   : > { %14240 = vmatprep.subr.bf16.mxu0 %v15450_v48  ;;  %v15496_v48 = vld [vmem:[%s21023_s5 + $0x418] sm:$0xff]  }
 0x483   : > { %14251 = vmatpush3.bf16.msra.mxu1 %v15453_v3  ;;  %v15500_v3 = vld [vmem:[%s21023_s5 + $0x420] sm:$0xff]  }
 0x484   : > { %14241 = vmatpush3.bf16.msra.mxu0 %v15452_v16  ;;  %14252 = vmatprep.subr.bf16.mxu1 %v15454_v37  ;;  %v15498_v16 = vld [vmem:[%s21023_s5 + $0x460] sm:$0xff]   ;;  %v15502_v37 = vld [vmem:[%s21023_s5 + $0x468] sm:$0xff]  }
 0x485   : > { %14270 = vmatprep.subr.bf16.mxu0 %v15455_v13  ;;  %v15503_v13 = vld [vmem:[%s21023_s5 + $0x4d8] sm:$0xff]  }
 0x487   : > { %8264 = vmatmul.mubr.bf16.vlgmr.msra.gmra.mrb[176].mxu0 %v5689_v61  ;;  %14253 = vmatpush3.bf16.msra.mxu1 %v15456_v29  ;;  %v15505_v29 = vld [vmem:[%s21023_s5 + $0x498] sm:$0xff]   ;;  %v15507_v61 = vld [vmem:[%s21023_s5 + $0x4e0] sm:$0xff]  }
 0x488   : > { %14271 = vmatpush3.bf16.msra.mxu0 %v15457_v59  ;;  %8345 = vmatprep.mubr.bf16.mxu0 %v19015_v45  ;;  %v15465_v45 = vld [vmem:[%s21023_s5 + $0x390] sm:$0xff]  }
 0x489   : > { %14254 = vmatprep.subr.bf16.mxu1 %v15458_v11  ;;  %14272 = vmatprep.subr.bf16.mxu0 %v15459_v44  ;;  %v15506_v59 = vld [vmem:[%s21023_s5 + $0x470] sm:$0xff]   ;;  %v15509_v44 = vld [vmem:[%s21023_s5 + $0x4a0] sm:$0xff]  }
 0x48a   : > { %v15508_v11 = vld [vmem:[%s21023_s5 + $0x430] sm:$0xff]  }
 0x48b   : > { %14255 = vmatpush3.bf16.msra.mxu1 %v15460_v33  ;;  %v15510_v33 = vld [vmem:[%s21023_s5 + $0x478] sm:$0xff]  }
 0x48c   : > { %14273 = vmatpush3.bf16.msra.mxu0 %v15461_v57  ;;  %14256 = vmatprep.subr.bf16.mxu1 %v15462_v50  ;;  %v15511_v57 = vld [vmem:[%s21023_s5 + $0x4e8] sm:$0xff]   ;;  %v15512_v50 = vld [vmem:[%s21023_s5 + $0x438] sm:$0xff]  }
 0x48d   : > { %14274 = vmatprep.subr.bf16.mxu0 %v15463_v26  ;;  %v15513_v26 = vld [vmem:[%s21023_s5 + $0x4a8] sm:$0xff]  }
 0x48f   : > { %14257 = vmatpush3.bf16.msra.mxu1 %v15464_v10  ;;  %v15514_v10 = vld [vmem:[%s21023_s5 + $0x4f0] sm:$0xff]  }
 0x490   : > { %14275 = vmatpush3.bf16.msra.mxu0 %v15465_v45  ;;  %14258 = vmatprep.subr.bf16.mxu1 %v15466_v21  ;;  %v15515_v45 = vld [vmem:[%s21023_s5 + $0x540] sm:$0xff]   ;;  %v15516_v21 = vld [vmem:[%s21023_s5 + $0x4b0] sm:$0xff]  }
 0x491   : > { %14276 = vmatprep.subr.bf16.mxu0 %v15467_v24  ;;  %v15517_v24 = vld [vmem:[%s21023_s5 + $0x500] sm:$0xff]  }
 0x493   : > { %14259 = vmatpush3.bf16.msra.mxu1 %v15468_v7  ;;  %v15518_v7 = vld [vmem:[%s21023_s5 + $0x4f8] sm:$0xff]  }
 0x494   : > { %14277 = vmatpush3.bf16.msra.mxu0 %v15469_v22  ;;  %14260 = vmatprep.subr.bf16.mxu1 %v15470_v28  ;;  %v15519_v22 = vld [vmem:[%s21023_s5 + $0x548] sm:$0xff]   ;;  %v15520_v28 = vld [vmem:[%s21023_s5 + $0x4b8] sm:$0xff]  }
 0x495   : > { %14278 = vmatprep.subr.bf16.mxu0 %v15471_v38  ;;  %v15521_v38 = vld [vmem:[%s21023_s5 + $0x508] sm:$0xff]  }
 0x497   : > { %14261 = vmatpush3.bf16.msra.mxu1 %v15472_v4  ;;  %v15522_v4 = vld [vmem:[%s21023_s5 + $0x550] sm:$0xff]  }
 0x498   : > { %14279 = vmatpush3.bf16.msra.mxu0 %v15473_v40  ;;  %14262 = vmatprep.subr.bf16.mxu1 %v15474_v0  ;;  %v15524_v40 = vld [vmem:[%s21023_s5 + $0x510] sm:$0xff]   ;;  %v15526_v0 = vld [vmem:[%s21023_s5 + $0x558] sm:$0xff]  }
 0x499   : > { %14280 = vmatprep.subr.bf16.mxu0 %v15475_v8  ;;  %v15527_v8 = vld [vmem:[%s21023_s5 + $0x5c8] sm:$0xff]  }
 0x49b   : > { %14263 = vmatpush3.bf16.msra.mxu1 %v15476_v42  ;;  %v15528_v42 = vld [vmem:[%s21023_s5 + $0x518] sm:$0xff]  }
 0x49c   : > { %14281 = vmatpush3.bf16.msra.mxu0 %v15477_v56  ;;  %14292 = vmatprep.subr.bf16.mxu1 %v15479_v27  ;;  %v15529_v56 = vld [vmem:[%s21023_s5 + $0x588] sm:$0xff]   ;;  %v15532_v27 = vld [vmem:[%s21023_s5 + $0x520] sm:$0xff]  }
 0x49d   : > { %14282 = vmatprep.subr.bf16.mxu0 %v15478_v58  ;;  %v15530_v58 = vld [vmem:[%s21023_s5 + $0x560] sm:$0xff]  }
 0x49e   : > { %8305 = vmatmul.mubr.bf16.vlgmr.msra.gmra.mrb[172].mxu1 %v19023_v15  ;;  %v15489_v15 = vld [vmem:[%s21023_s5 + $0x4c0] sm:$0xff]  }
 0x49f   : > { %14293 = vmatpush3.bf16.msra.mxu1 %v15481_v23  ;;  %8386 = vmatprep.mubr.bf16.mxu1 %v19087_v32  ;;  %v15491_v32 = vld [vmem:[%s21023_s5 + $0x480] sm:$0xff]   ;;  %v15535_v23 = vld [vmem:[%s21023_s5 + $0x5d8] sm:$0xff]  }
 0x4a0   : > { %14283 = vmatpush3.bf16.msra.mxu0 %v15480_v34  ;;  %14294 = vmatprep.subr.bf16.mxu1 %v15485_v19  ;;  %v15534_v34 = vld [vmem:[%s21023_s5 + $0x568] sm:$0xff]   ;;  %v15537_v19 = vld [vmem:[%s21023_s5 + $0x598] sm:$0xff]  }
 0x4a1   : > { %14284 = vmatprep.subr.bf16.mxu0 %v15484_v52  ;;  %v15536_v52 = vld [vmem:[%s21023_s5 + $0x528] sm:$0xff]  }
 0x4a3   : > { %14295 = vmatpush3.bf16.msra.mxu1 %v15487_v47  ;;  %v15539_v47 = vld [vmem:[%s21023_s5 + $0x5e0] sm:$0xff]  }
 0x4a4   : > { %14285 = vmatpush3.bf16.msra.mxu0 %v15486_v53  ;;  %14296 = vmatprep.subr.bf16.mxu1 %v15488_v62  ;;  %v15538_v53 = vld [vmem:[%s21023_s5 + $0x570] sm:$0xff]  }
 0x4a5   : > { %14314 = vmatprep.subr.bf16.mxu0 %v15489_v15  ;;  %v15540_v62 = vld [vmem:[%s21023_s5 + $0x530] sm:$0xff]   ;;  %v15541_v15 = vld [vmem:[%s21023_s5 + $0x5a0] sm:$0xff]  }
 0x4a7   : > { %8346 = vmatmul.mubr.bf16.vlgmr.msra.gmra.mrb[180].mxu0 %v19047_v41  ;;  %14297 = vmatpush3.bf16.msra.mxu1 %v15490_v12  ;;  %v15499_v41 = vld [vmem:[%s21023_s5 + $0x4d0] sm:$0xff]   ;;  %v15542_v12 = vld [vmem:[%s21023_s5 + $0x578] sm:$0xff]  }
 0x4a8   : > { %14315 = vmatpush3.bf16.msra.mxu0 %v15491_v32  ;;  %8427 = vmatprep.mubr.bf16.mxu0 %v19099_v49  ;;  %v15501_v49 = vld [vmem:[%s21023_s5 + $0x490] sm:$0xff]   ;;  %v15543_v32 = vld [vmem:[%s21023_s5 + $0x5e8] sm:$0xff]  }
 0x4a9   : > { %14298 = vmatprep.subr.bf16.mxu1 %v15494_v2  ;;  %14316 = vmatprep.subr.bf16.mxu0 %v15495_v43  ;;  %v15544_v2 = vld [vmem:[%s21023_s5 + $0x538] sm:$0xff]   ;;  %v15545_v43 = vld [vmem:[%s21023_s5 + $0x5a8] sm:$0xff]  }
 0x4ab   : > { %14299 = vmatpush3.bf16.msra.mxu1 %v15496_v48  ;;  %v15546_v48 = vld [vmem:[%s21023_s5 + $0x5f0] sm:$0xff]  }
 0x4ac   : > { %14317 = vmatpush3.bf16.msra.mxu0 %v15497_v1  ;;  %14300 = vmatprep.subr.bf16.mxu1 %v15498_v16  ;;  %v15547_v1 = vld [vmem:[%s21023_s5 + $0x640] sm:$0xff]   ;;  %v15548_v16 = vld [vmem:[%s21023_s5 + $0x5b0] sm:$0xff]  }
 0x4ad   : > { %14318 = vmatprep.subr.bf16.mxu0 %v15499_v41  ;;  %v15549_v41 = vld [vmem:[%s21023_s5 + $0x600] sm:$0xff]  }
 0x4af   : > { %14301 = vmatpush3.bf16.msra.mxu1 %v15500_v3  ;;  %v15552_v3 = vld [vmem:[%s21023_s5 + $0x5f8] sm:$0xff]  }
 0x4b0   : > { %14319 = vmatpush3.bf16.msra.mxu0 %v15501_v49  ;;  %14302 = vmatprep.subr.bf16.mxu1 %v15502_v37  ;;  %v15553_v49 = vld [vmem:[%s21023_s5 + $0x648] sm:$0xff]   ;;  %v15554_v37 = vld [vmem:[%s21023_s5 + $0x5b8] sm:$0xff]  }
 0x4b1   : > { %14320 = vmatprep.subr.bf16.mxu0 %v15503_v13  ;;  %v15555_v13 = vld [vmem:[%s21023_s5 + $0x608] sm:$0xff]  }
 0x4b3   : > { %14303 = vmatpush3.bf16.msra.mxu1 %v15504_v20  ;;  %v15556_v20 = vld [vmem:[%s21023_s5 + $0x650] sm:$0xff]  }
 0x4b4   : > { %14321 = vmatpush3.bf16.msra.mxu0 %v15505_v29  ;;  %14304 = vmatprep.subr.bf16.mxu1 %v15506_v59  ;;  %v15558_v29 = vld [vmem:[%s21023_s5 + $0x610] sm:$0xff]   ;;  %v15562_v59 = vld [vmem:[%s21023_s5 + $0x658] sm:$0xff]  }
 0x4b5   : > { %14322 = vmatprep.subr.bf16.mxu0 %v15507_v61  ;;  %v15563_v61 = vld [vmem:[%s21023_s5 + $0x6c8] sm:$0xff]  }
 0x4b7   : > { %14305 = vmatpush3.bf16.msra.mxu1 %v15508_v11  ;;  %v15564_v11 = vld [vmem:[%s21023_s5 + $0x618] sm:$0xff]  }
 0x4b8   : > { %14323 = vmatpush3.bf16.msra.mxu0 %v15509_v44  ;;  %14306 = vmatprep.subr.bf16.mxu1 %v15510_v33  ;;  %v15565_v44 = vld [vmem:[%s21023_s5 + $0x688] sm:$0xff]   ;;  %v15566_v33 = vld [vmem:[%s21023_s5 + $0x660] sm:$0xff]  }
 0x4b9   : > { %14324 = vmatprep.subr.bf16.mxu0 %v15511_v57  ;;  %v15568_v57 = vld [vmem:[%s21023_s5 + $0x620] sm:$0xff]  }
 0x4bb   : > { %14307 = vmatpush3.bf16.msra.mxu1 %v15512_v50  ;;  %v15570_v50 = vld [vmem:[%s21023_s5 + $0x668] sm:$0xff]  }
 0x4bc   : > { %14325 = vmatpush3.bf16.msra.mxu0 %v15513_v26  ;;  %14336 = vmatprep.subr.bf16.mxu1 %v15515_v45  ;;  %v15571_v26 = vld [vmem:[%s21023_s5 + $0x6d8] sm:$0xff]  }
 0x4bd   : > { %14326 = vmatprep.subr.bf16.mxu0 %v15514_v10  ;;  %v15572_v10 = vld [vmem:[%s21023_s5 + $0x628] sm:$0xff]   ;;  %v15573_v45 = vld [vmem:[%s21023_s5 + $0x698] sm:$0xff]  }
 0x4be   : > { %8387 = vmatmul.mubr.bf16.vlgmr.msra.gmra.mrb[176].mxu1 %v19089_v17  ;;  %v15523_v17 = vld [vmem:[%s21023_s5 + $0x5c0] sm:$0xff]  }
 0x4bf   : > { %14337 = vmatpush3.bf16.msra.mxu1 %v15517_v24  ;;  %8468 = vmatprep.mubr.bf16.mxu1 %v19101_v39  ;;  %v15525_v39 = vld [vmem:[%s21023_s5 + $0x580] sm:$0xff]  }
 0x4c0   : > { %14327 = vmatpush3.bf16.msra.mxu0 %v15516_v21  ;;  %14338 = vmatprep.subr.bf16.mxu1 %v15519_v22  ;;  %v15574_v21 = vld [vmem:[%s21023_s5 + $0x670] sm:$0xff]   ;;  %v15575_v24 = vld [vmem:[%s21023_s5 + $0x6e0] sm:$0xff]  }
 0x4c1   : > { %14328 = vmatprep.subr.bf16.mxu0 %v15518_v7  ;;  %v15576_v7 = vld [vmem:[%s21023_s5 + $0x630] sm:$0xff]   ;;  %v15577_v22 = vld [vmem:[%s21023_s5 + $0x6a0] sm:$0xff]  }
 0x4c3   : > { %14339 = vmatpush3.bf16.msra.mxu1 %v15521_v38  ;;  %v15579_v38 = vld [vmem:[%s21023_s5 + $0x6e8] sm:$0xff]  }
 0x4c4   : > { %14329 = vmatpush3.bf16.msra.mxu0 %v15520_v28  ;;  %14340 = vmatprep.subr.bf16.mxu1 %v15522_v4  ;;  %v15578_v28 = vld [vmem:[%s21023_s5 + $0x678] sm:$0xff]  }
 0x4c5   : > { %14358 = vmatprep.subr.bf16.mxu0 %v15523_v17  ;;  %v15580_v4 = vld [vmem:[%s21023_s5 + $0x638] sm:$0xff]   ;;  %v15581_v17 = vld [vmem:[%s21023_s5 + $0x6a8] sm:$0xff]  }
 0x4c7   : > { %8428 = vmatmul.mubr.bf16.vlgmr.msra.gmra.mrb[184].mxu0 %v19103_v18  ;;  %14341 = vmatpush3.bf16.msra.mxu1 %v15524_v40  ;;  %v15531_v18 = vld [vmem:[%s21023_s5 + $0x5d0] sm:$0xff]  }
 0x4c8   : > { %14359 = vmatpush3.bf16.msra.mxu0 %v15525_v39  ;;  %8509 = vmatprep.mubr.bf16.mxu0 %v19135_v36  ;;  %v15533_v36 = vld [vmem:[%s21023_s5 + $0x590] sm:$0xff]   ;;  %v15583_v39 = vld [vmem:[%s21023_s5 + $0x740] sm:$0xff]  }
 0x4c9   : > { %14342 = vmatprep.subr.bf16.mxu1 %v15526_v0  ;;  %14360 = vmatprep.subr.bf16.mxu0 %v15527_v8  ;;  %v15582_v40 = vld [vmem:[%s21023_s5 + $0x6f0] sm:$0xff]   ;;  %v15585_v8 = vld [vmem:[%s21023_s5 + $0x700] sm:$0xff]  }
 0x4ca   : > { %v15584_v0 = vld [vmem:[%s21023_s5 + $0x6b0] sm:$0xff]  }
 0x4cb   : > { %14343 = vmatpush3.bf16.msra.mxu1 %v15528_v42  ;;  %v15586_v42 = vld [vmem:[%s21023_s5 + $0x6f8] sm:$0xff]  }
 0x4cc   : > { %14361 = vmatpush3.bf16.msra.mxu0 %v15529_v56  ;;  %14344 = vmatprep.subr.bf16.mxu1 %v15530_v58  ;;  %v15587_v56 = vld [vmem:[%s21023_s5 + $0x748] sm:$0xff]   ;;  %v15588_v58 = vld [vmem:[%s21023_s5 + $0x6b8] sm:$0xff]  }
 0x4cd   : > { %14362 = vmatprep.subr.bf16.mxu0 %v15531_v18  ;;  %v15589_v18 = vld [vmem:[%s21023_s5 + $0x708] sm:$0xff]  }
 0x4cf   : > { %14345 = vmatpush3.bf16.msra.mxu1 %v15532_v27  ;;  %v15590_v27 = vld [vmem:[%s21023_s5 + $0x750] sm:$0xff]  }
 0x4d0   : > { %14363 = vmatpush3.bf16.msra.mxu0 %v15533_v36  ;;  %14346 = vmatprep.subr.bf16.mxu1 %v15534_v34  ;;  %v15592_v36 = vld [vmem:[%s21023_s5 + $0x710] sm:$0xff]   ;;  %v15594_v34 = vld [vmem:[%s21023_s5 + $0x758] sm:$0xff]  }
 0x4d1   : > { %14364 = vmatprep.subr.bf16.mxu0 %v15535_v23  ;;  %v15595_v23 = vld [vmem:[%s21023_s5 + $0x7c8] sm:$0xff]  }
 0x4d3   : > { %14347 = vmatpush3.bf16.msra.mxu1 %v15536_v52  ;;  %v15596_v52 = vld [vmem:[%s21023_s5 + $0x718] sm:$0xff]  }
 0x4d4   : > { %14365 = vmatpush3.bf16.msra.mxu0 %v15537_v19  ;;  %14348 = vmatprep.subr.bf16.mxu1 %v15538_v53  ;;  %v15597_v19 = vld [vmem:[%s21023_s5 + $0x788] sm:$0xff]   ;;  %v15598_v53 = vld [vmem:[%s21023_s5 + $0x760] sm:$0xff]  }
 0x4d5   : > { %14366 = vmatprep.subr.bf16.mxu0 %v15539_v47  ;;  %v15600_v47 = vld [vmem:[%s21023_s5 + $0x720] sm:$0xff]  }
 0x4d7   : > { %14349 = vmatpush3.bf16.msra.mxu1 %v15540_v62  ;;  %v15602_v62 = vld [vmem:[%s21023_s5 + $0x768] sm:$0xff]  }
 0x4d8   : > { %14367 = vmatpush3.bf16.msra.mxu0 %v15541_v15  ;;  %14350 = vmatprep.subr.bf16.mxu1 %v15542_v12  ;;  %v15603_v15 = vld [vmem:[%s21023_s5 + $0x7d8] sm:$0xff]   ;;  %v15604_v12 = vld [vmem:[%s21023_s5 + $0x728] sm:$0xff]  }
 0x4d9   : > { %14368 = vmatprep.subr.bf16.mxu0 %v15543_v32  ;;  %v15605_v32 = vld [vmem:[%s21023_s5 + $0x798] sm:$0xff]  }
 0x4db   : > { %14351 = vmatpush3.bf16.msra.mxu1 %v15544_v2  ;;  %v15606_v2 = vld [vmem:[%s21023_s5 + $0x770] sm:$0xff]  }
 0x4dc   : > { %14369 = vmatpush3.bf16.msra.mxu0 %v15545_v43  ;;  %14380 = vmatprep.subr.bf16.mxu1 %v15547_v1  ;;  %v15607_v43 = vld [vmem:[%s21023_s5 + $0x7e0] sm:$0xff]  }
 0x4dd   : > { %14370 = vmatprep.subr.bf16.mxu0 %v15546_v48 }
 0x4de   : > { %8469 = vmatmul.mubr.bf16.vlgmr.msra.gmra.mrb[180].mxu1 %v19125_v30  ;;  %v15557_v30 = vld [vmem:[%s21023_s5 + $0x6c0] sm:$0xff]  }
 0x4df   : > { %14381 = vmatpush3.bf16.msra.mxu1 %v15549_v41  ;;  %8550 = vmatprep.mubr.bf16.mxu1 %v19128_v63  ;;  %v15559_v63 = vld [vmem:[%s21023_s5 + $0x680] sm:$0xff]  }
 0x4e0   : > { %14371 = vmatpush3.bf16.msra.mxu0 %v15548_v16  ;;  %14382 = vmatprep.subr.bf16.mxu1 %v15553_v49  ;;  %v15609_v49 = vld [vmem:[%s21023_s5 + $0x7a0] sm:$0xff]  }
 0x4e1   : > { %14372 = vmatprep.subr.bf16.mxu0 %v15552_v3  ;;  %v15608_v3 = vld [vmem:[%s21023_s5 + $0x730] sm:$0xff]  }
 0x4e3   : > { %14383 = vmatpush3.bf16.msra.mxu1 %v15555_v13  ;;  %v15610_v13 = vld [vmem:[%s21023_s5 + $0x778] sm:$0xff]  }
 0x4e4   : > { %14373 = vmatpush3.bf16.msra.mxu0 %v15554_v37  ;;  %14384 = vmatprep.subr.bf16.mxu1 %v15556_v20  ;;  %v15611_v20 = vld [vmem:[%s21023_s5 + $0x7e8] sm:$0xff]  }
 0x4e5   : > { %14402 = vmatprep.subr.bf16.mxu0 %v15557_v30 }
 0x4e7   : > { %8510 = vmatmul.mubr.bf16.vlgmr.msra.gmra.mrb[188].mxu0 %v19137_v14  ;;  %14385 = vmatpush3.bf16.msra.mxu1 %v15558_v29  ;;  %v15567_v14 = vld [vmem:[%s21023_s5 + $0x6d0] sm:$0xff]   ;;  %v15612_v29 = vld [vmem:[%s21023_s5 + $0x738] sm:$0xff]  }
 0x4e8   : > { %14403 = vmatpush3.bf16.msra.mxu0 %v15559_v63  ;;  %8591 = vmatprep.mubr.bf16.mxu0 %v19140_v5  ;;  %v15569_v5 = vld [vmem:[%s21023_s5 + $0x690] sm:$0xff]   ;;  %v15613_v63 = vld [vmem:[%s21023_s5 + $0x7a8] sm:$0xff]  }
 0x4e9   : > { %14386 = vmatprep.subr.bf16.mxu1 %v15562_v59  ;;  %14404 = vmatprep.subr.bf16.mxu0 %v15563_v61  ;;  %v12755_v59 = vld [vmem:[%s21024_s6] ss:$0 sm:$0xff]  ;;  %v15614_v61 = vld [vmem:[%s21023_s5 + $0x7f0] sm:$0xff]  }
 0x4eb   : > { %14387 = vmatpush3.bf16.msra.mxu1 %v15564_v11  ;;  %v15615_v11 = vld [vmem:[%s21023_s5 + $0x840] sm:$0xff]  }
 0x4ec   : > { %14405 = vmatpush3.bf16.msra.mxu0 %v15565_v44  ;;  %14388 = vmatprep.subr.bf16.mxu1 %v15566_v33 }
 0x4ed   : > { %14406 = vmatprep.subr.bf16.mxu0 %v15567_v14 }
 0x4ef   : > { %14389 = vmatpush3.bf16.msra.mxu1 %v15568_v57 }
 0x4f0   : > { %14407 = vmatpush3.bf16.msra.mxu0 %v15569_v5  ;;  %14390 = vmatprep.subr.bf16.mxu1 %v15570_v50  ;;  %v15616_v50 = vld [vmem:[%s21023_s5 + $0x7b0] sm:$0xff]  }
 0x4f1   : > { %14408 = vmatprep.subr.bf16.mxu0 %v15571_v26  ;;  %v15617_v26 = vld [vmem:[%s21023_s5 + $0x800] sm:$0xff]  }
 0x4f3   : > { %14391 = vmatpush3.bf16.msra.mxu1 %v15572_v10 }
 0x4f4   : > { %14409 = vmatpush3.bf16.msra.mxu0 %v15573_v45  ;;  %14392 = vmatprep.subr.bf16.mxu1 %v15574_v21  ;;  %v15618_v45 = vld [vmem:[%s21023_s5 + $0x7f8] sm:$0xff]  }
 0x4f5   : > { %14410 = vmatprep.subr.bf16.mxu0 %v15575_v24 }
 0x4f7   : > { %14393 = vmatpush3.bf16.msra.mxu1 %v15576_v7 }
 0x4f8   : > { %14411 = vmatpush3.bf16.msra.mxu0 %v15577_v22  ;;  %14394 = vmatprep.subr.bf16.mxu1 %v15578_v28  ;;  %v15619_v22 = vld [vmem:[%s21023_s5 + $0x848] sm:$0xff]  }
 0x4f9   : > { %14412 = vmatprep.subr.bf16.mxu0 %v15579_v38  ;;  %v15620_v38 = vld [vmem:[%s21023_s5 + $0x7b8] sm:$0xff]  }
 0x4fb   : > { %14395 = vmatpush3.bf16.msra.mxu1 %v15580_v4  ;;  %v15621_v4 = vld [vmem:[%s21023_s5 + $0x808] sm:$0xff]  }
 0x4fc   : > { %14413 = vmatpush3.bf16.msra.mxu0 %v15581_v17  ;;  %14424 = vmatprep.subr.bf16.mxu1 %v15583_v39  ;;  %v15622_v17 = vld [vmem:[%s21023_s5 + $0x850] sm:$0xff]   ;;  %v15626_v39 = vld [vmem:[%s21023_s5 + $0x858] sm:$0xff]  }
 0x4fd   : > { %14414 = vmatprep.subr.bf16.mxu0 %v15582_v40  ;;  %v15624_v40 = vld [vmem:[%s21023_s5 + $0x810] sm:$0xff]  }
 0x4fe   : > { %8551 = vmatmul.mubr.bf16.vlgmr.msra.gmra.mrb[184].mxu1 %v19146_v60  ;;  %v15591_v60 = vld [vmem:[%s21023_s5 + $0x7c0] sm:$0xff]  }
 0x4ff   : > { %14425 = vmatpush3.bf16.msra.mxu1 %v15585_v8  ;;  %8632 = vmatprep.mubr.bf16.mxu1 %v19170_v51  ;;  %v15593_v51 = vld [vmem:[%s21023_s5 + $0x780] sm:$0xff]   ;;  %v15628_v8 = vld [vmem:[%s21023_s5 + $0x818] sm:$0xff]  }
 0x500   : > { %14415 = vmatpush3.bf16.msra.mxu0 %v15584_v0  ;;  %14426 = vmatprep.subr.bf16.mxu1 %v15587_v56  ;;  %v15627_v0 = vld [vmem:[%s21023_s5 + $0x8c8] sm:$0xff]   ;;  %v15630_v56 = vld [vmem:[%s21023_s5 + $0x860] sm:$0xff]  }
 0x501   : > { %14416 = vmatprep.subr.bf16.mxu0 %v15586_v42  ;;  %v15629_v42 = vld [vmem:[%s21023_s5 + $0x888] sm:$0xff]  }
 0x503   : > { %14427 = vmatpush3.bf16.msra.mxu1 %v15589_v18  ;;  %v15634_v18 = vld [vmem:[%s21023_s5 + $0x868] sm:$0xff]  }
 0x504   : > { %14417 = vmatpush3.bf16.msra.mxu0 %v15588_v58  ;;  %14428 = vmatprep.subr.bf16.mxu1 %v15590_v27  ;;  %v15632_v58 = vld [vmem:[%s21023_s5 + $0x820] sm:$0xff]   ;;  %v15635_v27 = vld [vmem:[%s21023_s5 + $0x8d8] sm:$0xff]  }
 0x505   : > { %14446 = vmatprep.subr.bf16.mxu0 %v15591_v60  ;;  %v15636_v60 = vld [vmem:[%s21023_s5 + $0x828] sm:$0xff]  }
 0x507   : > { %8592 = vmatmul.mubr.bf16.vlgmr.msra.gmra.mrb[192].mxu0 %v19173_v46  ;;  %14429 = vmatpush3.bf16.msra.mxu1 %v15592_v36  ;;  %v15599_v46 = vld [vmem:[%s21023_s5 + $0x7d0] sm:$0xff]   ;;  %v15637_v36 = vld [vmem:[%s21023_s5 + $0x898] sm:$0xff]  }
 0x508   : > { %14447 = vmatpush3.bf16.msra.mxu0 %v15593_v51  ;;  %8673 = vmatprep.mubr.bf16.mxu0 %v19186_v9  ;;  %v15601_v9 = vld [vmem:[%s21023_s5 + $0x790] sm:$0xff]  }
 0x509   : > { %14430 = vmatprep.subr.bf16.mxu1 %v15594_v34  ;;  %14448 = vmatprep.subr.bf16.mxu0 %v15595_v23  ;;  %v15638_v51 = vld [vmem:[%s21023_s5 + $0x870] sm:$0xff]   ;;  %v15639_v34 = vld [vmem:[%s21023_s5 + $0x8e0] sm:$0xff]  }
 0x50b   : > { %14431 = vmatpush3.bf16.msra.mxu1 %v15596_v52 }
 0x50c   : > { %14449 = vmatpush3.bf16.msra.mxu0 %v15597_v19  ;;  %14432 = vmatprep.subr.bf16.mxu1 %v15598_v53 }
 0x50d   : > { %14450 = vmatprep.subr.bf16.mxu0 %v15599_v46  ;;  %v15640_v46 = vld [vmem:[%s21023_s5 + $0x830] sm:$0xff]  }
 0x50f   : > { %14433 = vmatpush3.bf16.msra.mxu1 %v15600_v47  ;;  %v15641_v47 = vld [vmem:[%s21023_s5 + $0x8a0] sm:$0xff]  }
 0x510   : > { %14451 = vmatpush3.bf16.msra.mxu0 %v15601_v9  ;;  %14434 = vmatprep.subr.bf16.mxu1 %v15602_v62  ;;  %v15642_v62 = vld [vmem:[%s21023_s5 + $0x878] sm:$0xff]  }
 0x511   : > { %14452 = vmatprep.subr.bf16.mxu0 %v15603_v15  ;;  %v14132_v48 = vpop.f32.mrb[160].mxu1  ;;  %v15643_v15 = vld [vmem:[%s21023_s5 + $0x8e8] sm:$0xff]  }
 0x512   : > { %v14133_v1 = vpop.f32.mrb[161].mxu1 }
 0x513   : > { %v14134_v16 = vadd.f32 %v14133_v1, %v14132_v48  ;;  %14435 = vmatpush3.bf16.msra.mxu1 %v15604_v12  ;;  %v14135_v41 = vpop.f32.mrb[162].mxu1  ;;  %v15645_v48 = vld [vmem:[%s21023_s5 + $0x8a8] sm:$0xff]   ;;  %v15646_v1 = vld [vmem:[%s21023_s5 + $0x8f0] sm:$0xff]  }
 0x514   : > { %14453 = vmatpush3.bf16.msra.mxu0 %v15605_v32  ;;  %v14136_v37 = vpop.f32.mrb[163].mxu1  ;;  %14436 = vmatprep.subr.bf16.mxu1 %v15606_v2 }
 0x515   : > { %14454 = vmatprep.subr.bf16.mxu0 %v15607_v43  ;;  %v14137_v30 = vadd.f32 %v14136_v37, %v14135_v41  ;;  %v8061_v14 = vadd.f32 %v14134_v16, %v12755_v59  ;;  %v15644_v43 = vld [vmem:[%s21023_s5 + $0x838] sm:$0xff]   ;;  %v15647_v37 = vld [vmem:[%s21023_s5 + $0x8b0] sm:$0xff]  }
 0x517   : > { %14437 = vmatpush3.bf16.msra.mxu1 %v15608_v3  ;;  %v8064_v21 = vadd.f32 %v14137_v30, %v12755_v59  ;;  %v15958_v30 = vld [vmem:[#allocation2] sm:$0xff] }
 0x518   : > { %14455 = vmatpush3.bf16.msra.mxu0 %v15609_v49  ;;  %14438 = vmatprep.subr.bf16.mxu1 %v15610_v13 }
 0x519   : > { %14456 = vmatprep.subr.bf16.mxu0 %v15611_v20  ;;  %v14154_v44 = vpop.f32.mrb[168].mxu0  ;;  %v15648_v20 = vld [vmem:[%s21023_s5 + $0x8f8] sm:$0xff]  }
 0x51a   : > { %v14155_v33 = vpop.f32.mrb[169].mxu0 }
 0x51b   : > { %v14156_v57 = vadd.f32 %v14155_v33, %v14154_v44  ;;  %14439 = vmatpush3.bf16.msra.mxu1 %v15612_v29  ;;  %v14157_v5 = vpop.f32.mrb[170].mxu0 }
 0x51c   : > { %14457 = vmatpush3.bf16.msra.mxu0 %v15613_v63  ;;  %v14158_v10 = vpop.f32.mrb[171].mxu0  ;;  %14468 = vmatprep.subr.bf16.mxu1 %v15615_v11 }
 0x51d   : > { %14458 = vmatprep.subr.bf16.mxu0 %v15614_v61  ;;  %v8102_v24 = vadd.f32 %v14156_v57, %v8061_v14  ;;  %v14159_v7 = vadd.f32 %v14158_v10, %v14157_v5  ;;  %v15649_v61 = vld [vmem:[%s21023_s5 + $0x8b8] sm:$0xff]  }
 0x51e   : > { %8633 = vmatmul.mubr.bf16.vlgmr.msra.gmra.mrb[188].mxu1 %v19176_v31  ;;  %v15623_v31 = vld [vmem:[%s21023_s5 + $0x8c0] sm:$0xff]  }
 0x51f   : > { %v8105_v28 = vadd.f32 %v14159_v7, %v8064_v21  ;;  %14469 = vmatpush3.bf16.msra.mxu1 %v15617_v26  ;;  %8714 = vmatprep.mubr.bf16.mxu1 %v19189_v25  ;;  %v15625_v25 = vld [vmem:[%s21023_s5 + $0x880] sm:$0xff]  }
 0x520   : > { %14459 = vmatpush3.bf16.msra.mxu0 %v15616_v50  ;;  %14470 = vmatprep.subr.bf16.mxu1 %v15619_v22 }
 0x521   : > { %14460 = vmatprep.subr.bf16.mxu0 %v15618_v45 }
 0x523   : > { %14471 = vmatpush3.bf16.msra.mxu1 %v15621_v4 }
 0x524   : > { %14461 = vmatpush3.bf16.msra.mxu0 %v15620_v38  ;;  %14472 = vmatprep.subr.bf16.mxu1 %v15622_v17 }
 0x525   : > { %14490 = vmatprep.subr.bf16.mxu0 %v15623_v31 }
 0x527   : > { %8674 = vmatmul.mubr.bf16.vlgmr.msra.gmra.mrb[196].mxu0 %v19192_v54  ;;  %14473 = vmatpush3.bf16.msra.mxu1 %v15624_v40  ;;  %v15631_v54 = vld [vmem:[%s21023_s5 + $0x8d0] sm:$0xff]  }
 0x528   : > { %14491 = vmatpush3.bf16.msra.mxu0 %v15625_v25  ;;  %8755 = vmatprep.mubr.bf16.mxu0 %v19212_v6  ;;  %v15633_v6 = vld [vmem:[%s21023_s5 + $0x890] sm:$0xff]  }
 0x529   : > { %14474 = vmatprep.subr.bf16.mxu1 %v15626_v39  ;;  %14492 = vmatprep.subr.bf16.mxu0 %v15627_v0 }
 0x52b   : > { %14475 = vmatpush3.bf16.msra.mxu1 %v15628_v8 }
 0x52c   : > { %14493 = vmatpush3.bf16.msra.mxu0 %v15629_v42  ;;  %14476 = vmatprep.subr.bf16.mxu1 %v15630_v56 }
 0x52d   : > { %14494 = vmatprep.subr.bf16.mxu0 %v15631_v54 }
 0x52f   : > { %14477 = vmatpush3.bf16.msra.mxu1 %v15632_v58 }
 0x530   : > { %14495 = vmatpush3.bf16.msra.mxu0 %v15633_v6  ;;  %14478 = vmatprep.subr.bf16.mxu1 %v15634_v18 }
 0x531   : > { %14496 = vmatprep.subr.bf16.mxu0 %v15635_v27  ;;  %v14176_v23 = vpop.f32.mrb[164].mxu1 }
 0x532   : > { %v14177_v52 = vpop.f32.mrb[165].mxu1 }
 0x533   : > { %v14178_v19 = vadd.f32 %v14177_v52, %v14176_v23  ;;  %v14179_v53 = vpop.f32.mrb[166].mxu1  ;;  %14479 = vmatpush3.bf16.msra.mxu1 %v15636_v60 }
 0x534   : > { %14497 = vmatpush3.bf16.msra.mxu0 %v15637_v36  ;;  %v14180_v9 = vpop.f32.mrb[167].mxu1  ;;  %14480 = vmatprep.subr.bf16.mxu1 %v15638_v51 }
 0x535   : > { %14498 = vmatprep.subr.bf16.mxu0 %v15639_v34  ;;  %v8143_v12 = vadd.f32 %v14178_v19, %v8102_v24  ;;  %v14181_v32 = vadd.f32 %v14180_v9, %v14179_v53 }
 0x537   : > { %v8146_v2 = vadd.f32 %v14181_v32, %v8105_v28  ;;  %14481 = vmatpush3.bf16.msra.mxu1 %v15640_v46 }
 0x538   : > { %14499 = vmatpush3.bf16.msra.mxu0 %v15641_v47  ;;  %14482 = vmatprep.subr.bf16.mxu1 %v15642_v62 }
 0x539   : > { %14500 = vmatprep.subr.bf16.mxu0 %v15643_v15 }
 0x53a   : > { %v14198_v16 = vpop.f32.mrb[172].mxu0 }
 0x53b   : > { %v14199_v41 = vpop.f32.mrb[173].mxu0  ;;  %14483 = vmatpush3.bf16.msra.mxu1 %v15644_v43  ;;  %v15654_v43 = vld [vmem:[%s21025_s7 + $0x80] sm:$0xff]  }
 0x53c   : > { %v14200_v3 = vadd.f32 %v14199_v41, %v14198_v16  ;;  %v14201_v49 = vpop.f32.mrb[174].mxu0  ;;  %14501 = vmatpush3.bf16.msra.mxu0 %v15645_v48  ;;  %14974 = vmatprep.subr.bf16.mxu1 %v15958_v30  ;;  %v15657_v48 = vld [vmem:[%s21025_s7 + $0xc8] sm:$0xff]  }
 0x53d   : > { %v14202_v13 = vpop.f32.mrb[175].mxu0  ;;  %14502 = vmatprep.subr.bf16.mxu0 %v15646_v1 }
 0x53e   : > { %v8184_v29 = vadd.f32 %v14200_v3, %v8143_v12  ;;  %v14203_v63 = vadd.f32 %v14202_v13, %v14201_v49  ;;  %8715 = vmatmul.mubr.bf16.vlgmr.msra.gmra.mrb[192].mxu1 %v19201_v55 }
 0x53f   : > { %14976 = vmatprep.mubr.msk.bf16.mxu1 %vm16024_vm2, %v15958_v30 }
 0x540   : > { %v8187_v59 = vadd.f32 %v14203_v63, %v8146_v2  ;;  %14503 = vmatpush3.bf16.msra.mxu0 %v15647_v37  ;;  %v15653_v2 = vld [vmem:[%s21025_s7 + $0xc0] sm:$0xff]  }
 0x541   : > { %14504 = vmatprep.subr.bf16.mxu0 %v15648_v20 }
 0x544   : > { %14505 = vmatpush3.bf16.msra.mxu0 %v15649_v61 }
 0x545   : > { %14536 = vmatprep.subr.bf16.mxu0 %v15653_v2 }
 0x547   : > { %8756 = vmatmul.mubr.bf16.vlgmr.msra.gmra.mrb[200].mxu0 %v19215_v35 }
 0x548   : > { %14537 = vmatpush3.bf16.msra.mxu0 %v15654_v43 }
 0x549   : > { %14538 = vmatprep.subr.bf16.mxu0 %v15657_v48 }
 0x551   : > { %v14220_v11 = vpop.f32.mrb[168].mxu1 }
 0x552   : > { %v14221_v44 = vpop.f32.mrb[169].mxu1 }
 0x553   : > { %v14222_v33 = vadd.f32 %v14221_v44, %v14220_v11  ;;  %v14223_v14 = vpop.f32.mrb[170].mxu1 }
 0x554   : > { %v14224_v57 = vpop.f32.mrb[171].mxu1 }
 0x555   : > { %v8225_v5 = vadd.f32 %v14222_v33, %v8184_v29  ;;  %v14225_v50 = vadd.f32 %v14224_v57, %v14223_v14 }
 0x557   : > { %v8228_v26 = vadd.f32 %v14225_v50, %v8187_v59 }
 0x55a   : > { %v14242_v10 = vpop.f32.mrb[176].mxu0 }
 0x55b   : > { %v14243_v55 = vpop.f32.mrb[177].mxu0 }
 0x55c   : > { %v14244_v45 = vadd.f32 %v14243_v55, %v14242_v10  ;;  %v14245_v21 = vpop.f32.mrb[178].mxu0 }
 0x55d   : > { %v14246_v24 = vpop.f32.mrb[179].mxu0 }
 0x55e   : > { %v8266_v7 = vadd.f32 %v14244_v45, %v8225_v5  ;;  %v14247_v22 = vadd.f32 %v14246_v24, %v14245_v21 }
 0x560   : > { %v8269_v28 = vadd.f32 %v14247_v22, %v8228_v26 }
 0x571   : > { %v14264_v38 = vpop.f32.mrb[172].mxu1 }
 0x572   : > { %v14265_v4 = vpop.f32.mrb[173].mxu1 }
 0x573   : > { %v14266_v17 = vadd.f32 %v14265_v4, %v14264_v38  ;;  %v14267_v35 = vpop.f32.mrb[174].mxu1 }
 0x574   : > { %v14268_v31 = vpop.f32.mrb[175].mxu1 }
 0x575   : > { %v8307_v40 = vadd.f32 %v14266_v17, %v8266_v7  ;;  %v14269_v25 = vadd.f32 %v14268_v31, %v14267_v35 }
 0x577   : > { %v8310_v39 = vadd.f32 %v14269_v25, %v8269_v28 }
 0x57a   : > { %v14286_v0 = vpop.f32.mrb[180].mxu0 }
 0x57b   : > { %v14287_v8 = vpop.f32.mrb[181].mxu0 }
 0x57c   : > { %v14288_v42 = vadd.f32 %v14287_v8, %v14286_v0  ;;  %v14289_v56 = vpop.f32.mrb[182].mxu0 }
 0x57d   : > { %v14290_v54 = vpop.f32.mrb[183].mxu0 }
 0x57e   : > { %v8348_v58 = vadd.f32 %v14288_v42, %v8307_v40  ;;  %v14291_v6 = vadd.f32 %v14290_v54, %v14289_v56 }
 0x580   : > { %v8351_v18 = vadd.f32 %v14291_v6, %v8310_v39 }
 0x591   : > { %v14308_v27 = vpop.f32.mrb[176].mxu1 }
 0x592   : > { %v14309_v60 = vpop.f32.mrb[177].mxu1 }
 0x593   : > { %v14310_v36 = vadd.f32 %v14309_v60, %v14308_v27  ;;  %v14311_v51 = vpop.f32.mrb[178].mxu1 }
 0x594   : > { %v14312_v34 = vpop.f32.mrb[179].mxu1 }
 0x595   : > { %v8389_v23 = vadd.f32 %v14310_v36, %v8348_v58  ;;  %v14313_v52 = vadd.f32 %v14312_v34, %v14311_v51 }
 0x597   : > { %v8392_v19 = vadd.f32 %v14313_v52, %v8351_v18 }
 0x59a   : > { %v14330_v53 = vpop.f32.mrb[184].mxu0 }
 0x59b   : > { %v14331_v46 = vpop.f32.mrb[185].mxu0 }
 0x59c   : > { %v14332_v47 = vadd.f32 %v14331_v46, %v14330_v53  ;;  %v14333_v9 = vpop.f32.mrb[186].mxu0 }
 0x59d   : > { %v14334_v62 = vpop.f32.mrb[187].mxu0 }
 0x59e   : > { %v8430_v15 = vadd.f32 %v14332_v47, %v8389_v23  ;;  %v14335_v12 = vadd.f32 %v14334_v62, %v14333_v9 }
 0x5a0   : > { %v8433_v32 = vadd.f32 %v14335_v12, %v8392_v19 }
 0x5b1   : > { %v14352_v1 = vpop.f32.mrb[180].mxu1 }
 0x5b2   : > { %v14353_v16 = vpop.f32.mrb[181].mxu1 }
 0x5b3   : > { %v14354_v41 = vadd.f32 %v14353_v16, %v14352_v1  ;;  %v14355_v3 = vpop.f32.mrb[182].mxu1 }
 0x5b4   : > { %v14356_v49 = vpop.f32.mrb[183].mxu1 }
 0x5b5   : > { %v8471_v37 = vadd.f32 %v14354_v41, %v8430_v15  ;;  %v14357_v13 = vadd.f32 %v14356_v49, %v14355_v3  ;;  %v15651_v49 = vld [vmem:[%s21025_s7 + $0x40] sm:$0xff]  }
 0x5b7   : > { %v8474_v20 = vadd.f32 %v14357_v13, %v8433_v32  ;;  %v15650_v13 = vld [vmem:[%s21028_s10] sm:$0xff]  }
 0x5ba   : > { %v14374_v30 = vpop.f32.mrb[188].mxu0 }
 0x5bb   : > { %v14375_v29 = vpop.f32.mrb[189].mxu0 }
 0x5bc   : > { %v14376_v63 = vadd.f32 %v14375_v29, %v14374_v30  ;;  %v14377_v59 = vpop.f32.mrb[190].mxu0  ;;  %v15655_v30 = vld [vmem:[%s21025_s7 + $0x48] sm:$0xff]  }
 0x5bd   : > { %v14378_v61 = vpop.f32.mrb[191].mxu0  ;;  %v15656_v29 = vld [vmem:[%s21025_s7 + $0x8] sm:$0xff]  }
 0x5be   : > { %v8512_v11 = vadd.f32 %v14376_v63, %v8471_v37  ;;  %v14379_v44 = vadd.f32 %v14378_v61, %v14377_v59  ;;  %v15658_v63 = vld [vmem:[%s21025_s7 + $0x88] sm:$0xff]   ;;  %v15659_v59 = vld [vmem:[%s21025_s7 + $0x50] sm:$0xff]  }
 0x5bf   : > { %14539 = vmatpush3.bf16.msra.mxu0 %v15658_v63  ;;  %v15660_v61 = vld [vmem:[%s21025_s7 + $0x10] sm:$0xff]   ;;  %v20023_v63 = vld.sshfl [vmem:[#allocation4] sm:$0xff pattern:$0x76325410] }
 0x5c0   : > { %v8515_v33 = vadd.f32 %v14379_v44, %v8474_v20  ;;  %v15652_v20 = vld [vmem:[%s21025_s7] sm:$0xff]   ;;  %v15662_v44 = vld [vmem:[%s21025_s7 + $0x90] sm:$0xff]  }
 0x5d1   : > { %v14396_v14 = vpop.f32.mrb[184].mxu1 }
 0x5d2   : > { %v14397_v57 = vpop.f32.mrb[185].mxu1 }
 0x5d3   : > { %v14398_v5 = vadd.f32 %v14397_v57, %v14396_v14  ;;  %v14399_v50 = vpop.f32.mrb[186].mxu1  ;;  %v15665_v14 = vld [vmem:[%s21025_s7 + $0xd8] sm:$0xff]  }
 0x5d4   : > { %v14400_v26 = vpop.f32.mrb[187].mxu1  ;;  %v15664_v57 = vld [vmem:[%s21025_s7 + $0x18] sm:$0xff]  }
 0x5d5   : > { %v8553_v10 = vadd.f32 %v14398_v5, %v8512_v11  ;;  %v14401_v55 = vadd.f32 %v14400_v26, %v14399_v50  ;;  %v15661_v11 = vld [vmem:[%s21025_s7 + $0xd0] sm:$0xff]   ;;  %v15666_v5 = vld [vmem:[%s21025_s7 + $0x98] sm:$0xff]   ;;  %v15667_v50 = vld [vmem:[%s21025_s7 + $0x60] sm:$0xff]  }
 0x5d6   : > { %14540 = vmatprep.subr.bf16.mxu0 %v15661_v11  ;;  %v15669_v26 = vld [vmem:[%s21025_s7 + $0xe0] sm:$0xff]  }
 0x5d7   : > { %v8556_v45 = vadd.f32 %v14401_v55, %v8515_v33  ;;  %v15663_v33 = vld [vmem:[%s21025_s7 + $0x58] sm:$0xff]   ;;  %14541 = vmatpush3.bf16.msra.mxu0 %v15662_v44  ;;  %v15670_v55 = vld [vmem:[%s21025_s7 + $0xa0] sm:$0xff]  }
 0x5d8   : > { %14542 = vmatprep.subr.bf16.mxu0 %v15665_v14 }
 0x5da   : > { %v14418_v21 = vpop.f32.mrb[192].mxu0 }
 0x5db   : > { %v14419_v24 = vpop.f32.mrb[193].mxu0  ;;  %14543 = vmatpush3.bf16.msra.mxu0 %v15666_v5 }
 0x5dc   : > { %v14420_v7 = vadd.f32 %v14419_v24, %v14418_v21  ;;  %v14421_v22 = vpop.f32.mrb[194].mxu0  ;;  %14544 = vmatprep.subr.bf16.mxu0 %v15669_v26  ;;  %v15673_v21 = vld [vmem:[%s21025_s7 + $0xe8] sm:$0xff]  }
 0x5dd   : > { %v14422_v28 = vpop.f32.mrb[195].mxu0  ;;  %v15672_v24 = vld [vmem:[%s21025_s7 + $0x28] sm:$0xff]  }
 0x5de   : > { %v8594_v38 = vadd.f32 %v14420_v7, %v8553_v10  ;;  %v14423_v4 = vadd.f32 %v14422_v28, %v14421_v22  ;;  %v15668_v10 = vld [vmem:[%s21025_s7 + $0x20] sm:$0xff]   ;;  %v15674_v7 = vld [vmem:[%s21025_s7 + $0xa8] sm:$0xff]   ;;  %v15675_v22 = vld [vmem:[%s21025_s7 + $0x70] sm:$0xff]  }
 0x5df   : > { %14545 = vmatpush3.bf16.msra.mxu0 %v15670_v55  ;;  %v15677_v28 = vld [vmem:[%s21025_s7 + $0xf0] sm:$0xff]  }
 0x5e0   : > { %v8597_v17 = vadd.f32 %v14423_v4, %v8556_v45  ;;  %v15671_v45 = vld [vmem:[%s21025_s7 + $0x68] sm:$0xff]   ;;  %14546 = vmatprep.subr.bf16.mxu0 %v15673_v21  ;;  %v15678_v4 = vld [vmem:[%s21025_s7 + $0xb0] sm:$0xff]  }
 0x5e3   : > { %14547 = vmatpush3.bf16.msra.mxu0 %v15674_v7 }
 0x5e4   : > { %14548 = vmatprep.subr.bf16.mxu0 %v15677_v28 }
 0x5e7   : > { %14549 = vmatpush3.bf16.msra.mxu0 %v15678_v4 }
 0x5f1   : > { %v14440_v35 = vpop.f32.mrb[188].mxu1 }
 0x5f2   : > { %v14441_v31 = vpop.f32.mrb[189].mxu1 }
 0x5f3   : > { %v14442_v40 = vadd.f32 %v14441_v31, %v14440_v35  ;;  %v14443_v25 = vpop.f32.mrb[190].mxu1  ;;  %v15681_v35 = vld [vmem:[%s21025_s7 + $0xf8] sm:$0xff]  }
 0x5f4   : > { %v14444_v39 = vpop.f32.mrb[191].mxu1  ;;  %v15680_v31 = vld [vmem:[%s21025_s7 + $0x38] sm:$0xff]   ;;  %14550 = vmatprep.subr.bf16.mxu0 %v15681_v35 }
 0x5f5   : > { %v8635_v0 = vadd.f32 %v14442_v40, %v8594_v38  ;;  %v14445_v8 = vadd.f32 %v14444_v39, %v14443_v25  ;;  %v15676_v38 = vld [vmem:[%s21025_s7 + $0x30] sm:$0xff]   ;;  %v15682_v40 = vld [vmem:[%s21025_s7 + $0xb8] sm:$0xff]   ;;  %v15683_v25 = vld [vmem:[%s21025_s7 + $0x140] sm:$0xff]  }
 0x5f6   : > { %v15685_v39 = vld [vmem:[%s21025_s7 + $0x1c0] sm:$0xff]   ;;  %14551 = vmatpush3.bf16.msra.mxu0 %v15682_v40 }
 0x5f7   : > { %v8638_v42 = vadd.f32 %v14445_v8, %v8597_v17  ;;  %v15679_v17 = vld [vmem:[%s21025_s7 + $0x78] sm:$0xff]   ;;  %14580 = vmatprep.subr.bf16.mxu0 %v15685_v39 }
 0x5fa   : > { %v14462_v56 = vpop.f32.mrb[196].mxu0 }
 0x5fb   : > { %v14463_v54 = vpop.f32.mrb[197].mxu0 }
 0x5fc   : > { %v14464_v58 = vadd.f32 %v14463_v54, %v14462_v56  ;;  %v14465_v6 = vpop.f32.mrb[198].mxu0 }
 0x5fd   : > { %v14466_v18 = vpop.f32.mrb[199].mxu0 }
 0x5fe   : > { %v8676_v27 = vadd.f32 %v14464_v58, %v8635_v0  ;;  %v14467_v60 = vadd.f32 %v14466_v18, %v14465_v6  ;;  %v16025_v0 = vmov 1983009808  }
 0x5ff   : > { %v8825_v8 = vunpack.c.l.s4 %v16025_v0  ;;  %v15684_v0 = vld [vmem:[%s21025_s7 + $0x100] sm:$0xff]  }
 0x600   : > { %v8679_v36 = vadd.f32 %v14467_v60, %v8638_v42  ;;  %v8827_v42 = vlaneseq }
 0x601   : > { %v8826_v56 = vunpack.c.0.s8 %v8825_v8 }
 0x602   : > { %v8828_v54 = vshrl.u32 %v8827_v42, 7 }
 0x604   : > { %v20007_v58 = vsub.s32 %v8826_v56, %v8828_v54 }
 0x611   : > { %v14484_v51 = vpop.f32.mrb[192].mxu1 }
 0x612   : > { %v14485_v34 = vpop.f32.mrb[193].mxu1 }
 0x613   : > { %v14486_v23 = vadd.f32 %v14485_v34, %v14484_v51  ;;  %v14487_v52 = vpop.f32.mrb[194].mxu1 }
 0x614   : > { %v14488_v19 = vpop.f32.mrb[195].mxu1 }
 0x615   : > { %v8717_v53 = vadd.f32 %v14486_v23, %v8676_v27  ;;  %v14489_v46 = vadd.f32 %v14488_v19, %v14487_v52 }
 0x617   : > { %v8720_v47 = vadd.f32 %v14489_v46, %v8679_v36 }
 0x61a   : > { %v14506_v9 = vpop.f32.mrb[200].mxu0 }
 0x61b   : > { %v14507_v62 = vpop.f32.mrb[201].mxu0 }
 0x61c   : > { %v14508_v15 = vadd.f32 %v14507_v62, %v14506_v9  ;;  %v14509_v12 = vpop.f32.mrb[202].mxu0 }
 0x61d   : > { %v14510_v32 = vpop.f32.mrb[203].mxu0 }
 0x61e   : > { %v8758_v2 = vadd.f32 %v14508_v15, %v8717_v53  ;;  %v14511_v43 = vadd.f32 %v14510_v32, %v14509_v12 }
 0x620   : > { %v8766_v48 = vmul.f32 0.01, %v8758_v2  ;;  %v8761_v1 = vadd.f32 %v14511_v43, %v8720_v47  ;;  %vm8764_vm4 = vcmp.ge.f32.partialorder %v8758_v2, 0.0 }
 0x622   : > { %vm8765_vm3 = vcmp.ge.f32.partialorder %v8761_v1, 0.0  ;;  %v8767_v16 = vmul.f32 0.01, %v8761_v1  ;;  %v8768_v41 = vsel %vm8764_vm4, %v8758_v2, %v8766_v48 }
 0x624   : > { %v8769_v3 = vsel %vm8765_vm3, %v8761_v1, %v8767_v16 }
 0x625   : > { %v8772_v37 = vpack.c.bf16 %v8769_v3, %v8768_v41 }
 0x627   : > { %14975 = vmatpush3.bf16.msra.mxu1 %v8772_v37 }
 0x628   : > { %14514 = vmatprep.subr.bf16.mxu1 %v15651_v49 }
 0x62a   : > { %14977 = vmatmul.mubr.msk.bf16.vlgmr.msra.gmra.mrb[196].mxu1 %vm8778_vm5, %v15650_v13 }
 0x62b   : > { %14515 = vmatpush3.bf16.msra.mxu1 %v15652_v20 }
 0x62c   : > { %14516 = vmatprep.subr.bf16.mxu1 %v15655_v30  ;;  %v20021_v30 = vld.sshfl [vmem:[#allocation4 + $0x8] sm:$0xff pattern:$0x76325410] }
 0x62f   : > { %14517 = vmatpush3.bf16.msra.mxu1 %v15656_v29 }
 0x630   : > { %14518 = vmatprep.subr.bf16.mxu1 %v15659_v59  ;;  %v8966_v59 = vcombine.low %v20023_v63, %v20021_v30 }
 0x633   : > { %14519 = vmatpush3.bf16.msra.mxu1 %v15660_v61  ;;  %v8982_v61 = vcombine.high %v20023_v63, %v20021_v30 }
 0x634   : > { %14520 = vmatprep.subr.bf16.mxu1 %v15663_v33  ;;  %v13050_v33 = vrot.slane %v8966_v59, 9 }
 0x635   : > { %v8993_v14 = vrot.slane %v8982_v61, 7 }
 0x637   : > { %14521 = vmatpush3.bf16.msra.mxu1 %v15664_v57 }
 0x638   : > { %14522 = vmatprep.subr.bf16.mxu1 %v15667_v50  ;;  %v20039_v50 = vld.sshfl [vmem:[#allocation4 + $0x38] sm:$0xff pattern:$0x76325410] }
 0x63b   : > { %14523 = vmatpush3.bf16.msra.mxu1 %v15668_v10 }
 0x63c   : > { %14524 = vmatprep.subr.bf16.mxu1 %v15671_v45 }
 0x63f   : > { %14525 = vmatpush3.bf16.msra.mxu1 %v15672_v24 }
 0x640   : > { %14526 = vmatprep.subr.bf16.mxu1 %v15675_v22  ;;  %v20054_v22 = vld.sshfl [vmem:[#allocation4 + $0x30] sm:$0xff pattern:$0x76325410] }
 0x643   : > { %14527 = vmatpush3.bf16.msra.mxu1 %v15676_v38  ;;  %v8994_v38 = vsel %vm20033_vm12, %v13050_v33, %v8993_v14 }
 0x644   : > { %14528 = vmatprep.subr.bf16.mxu1 %v15679_v17  ;;  %v9037_v17 = vcombine.low %v20054_v22, %v20039_v50 }
 0x647   : > { %14529 = vmatpush3.bf16.msra.mxu1 %v15680_v31 }
 0x648   : > { %14558 = vmatprep.subr.bf16.mxu1 %v15683_v25  ;;  %v9038_v25 = vcombine.high %v20054_v22, %v20039_v50 }
 0x6fd   : > { %v8816_v6 = vpop.f32.mrb[196].mxu1 }
 0x6fe   : > { %v8830_v18 = vrot.slane %v8816_v6, %v20007_v58  ;;  %v8853_v27 = vcombine.high %v8816_v6, %v8816_v6  ;;  %v14978_v60 = vpop.f32.mrb[197].mxu1  ;;  %v15687_v6 = vld [vmem:[%s21025_s7 + $0x148] sm:$0xff]  }
 0x6ff   : > { %v8819_v36 = vpop.f32.mrb[198].mxu1 }
 0x700   : > { %v8831_v51 = vcombine.high %v8830_v18, %v8830_v18  ;;  %v8838_v34 = vrot.slane %v8830_v18, %v20007_v58  ;;  %v8860_v23 = vrot.slane %v8853_v27, %v20007_v58  ;;  %v8889_v52 = vrot.slane %v8819_v36, %v20007_v58  ;;  %v14979_v19 = vpop.f32.mrb[199].mxu1 }
 0x701   : > { %v8911_v53 = vcombine.high %v8819_v36, %v8819_v36 }
 0x702   : > { %v8845_v46 = vrot.slane %v8831_v51, %v20007_v58  ;;  %v8846_v47 = vrot.slane %v8838_v34, 7  ;;  %v8861_v9 = vcombine.high %v8860_v23, %v8860_v23  ;;  %v8868_v62 = vrot.slane %v8860_v23, %v20007_v58  ;;  %v15686_v51 = vld [vmem:[%s21025_s7 + $0x180] sm:$0xff]  }
 0x703   : > { %v8890_v15 = vcombine.high %v8889_v52, %v8889_v52  ;;  %v8897_v12 = vrot.slane %v8889_v52, %v20007_v58  ;;  %v8918_v32 = vrot.slane %v8911_v53, %v20007_v58  ;;  %v13057_v23 = vrot.slane %v9037_v17, 9  ;;  %v15688_v53 = vld [vmem:[%s21025_s7 + $0x108] sm:$0xff]  }
 0x704   : > { %v8847_v2 = vrot.slane %v8845_v46, 7  ;;  %8851 = vst [vmem:[#allocation4 + $0x10] sm:$0x6] %v8846_v47  ;;  %v8875_v43 = vrot.slane %v8861_v9, %v20007_v58  ;;  %v8876_v48 = vrot.slane %v8868_v62, 7  ;;  %v9041_v52 = vrot.slane %v9038_v25, 7  ;;  %v15689_v46 = vld [vmem:[%s21025_s7 + $0x1c8] sm:$0xff]  }
 0x705   : > { %v8904_v1 = vrot.slane %v8890_v15, %v20007_v58  ;;  %v8905_v16 = vrot.slane %v8897_v12, 7  ;;  %v8919_v41 = vcombine.high %v8918_v32, %v8918_v32  ;;  %v8926_v3 = vrot.slane %v8918_v32, %v20007_v58  ;;  %v15691_v15 = vld [vmem:[%s21025_s7 + $0x150] sm:$0xff]   ;;  %v15701_v25 = vld [vmem:[%s21025_s7 + $0x1e0] sm:$0xff]  }
 0x706   : > { %8852 = vst [vmem:[#allocation4 + $0x20] sm:$0x6] %v8847_v2  ;;  %v8877_v49 = vrot.slane %v8875_v43, 7  ;;  %8880 = vst [vmem:[#allocation4 + $0x14] sm:$0x6] %v8876_v48  ;;  %v15690_v43 = vld [vmem:[%s21025_s7 + $0x188] sm:$0xff]  }
 0x707   : > { %v8906_v37 = vrot.slane %v8904_v1, 7  ;;  %8909 = vst [vmem:[#allocation4 + $0x18] sm:$0x6] %v8905_v16  ;;  %v8933_v13 = vrot.slane %v8919_v41, %v20007_v58  ;;  %v8934_v20 = vrot.slane %v8926_v3, 7  ;;  %v9042_v41 = vsel %vm20033_vm12, %v13057_v23, %v9041_v52  ;;  %v15710_v52 = vld [vmem:[%s21025_s7 + $0x1b0] sm:$0xff]  }
 0x708   : > { %8881 = vst [vmem:[#allocation4 + $0x24] sm:$0x6] %v8877_v49 }
 0x709   : > { %8910 = vst [vmem:[#allocation4 + $0x28] sm:$0x6] %v8906_v37  ;;  %v8935_v29 = vrot.slane %v8933_v13, 7  ;;  %8938 = vst [vmem:[#allocation4 + $0x1c] sm:$0x6] %v8934_v20  ;;  %v15692_v37 = vld [vmem:[%s21025_s7 + $0x110] sm:$0xff]  }
 0x70a   : > { %v15693_v13 = vld [vmem:[%s21025_s7 + $0x1d0] sm:$0xff]  }
 0x70b   : > { %8939 = vst [vmem:[#allocation4 + $0x2c] sm:$0x6] %v8935_v29  ;;  %v15695_v29 = vld [vmem:[%s21025_s7 + $0x158] sm:$0xff]  }
 0x70d   : > { %v20029_v11 = vld.sshfl [vmem:[#allocation4 + $0x10] sm:$0xff pattern:$0x76325410] }
 0x70e   : > { %v13058_v44 = vcombine.low %v20023_v63, %v20029_v11 }
 0x70f   : > { %v20037_v5 = vld.sshfl [vmem:[#allocation4 + $0x20] sm:$0xff pattern:$0x76325410] }
 0x710   : > { %v9051_v26 = vrot.slane %v13058_v44, %v20007_v58  ;;  %v20042_v10 = vld.sshfl [vmem:[#allocation4 + $0x18] sm:$0xff pattern:$0x76325410]  ;;  %v13062_v55 = vcombine.low %v20029_v11, %v20037_v5  ;;  %v13064_v45 = vcombine.high %v20029_v11, %v20037_v5  ;;  %v13066_v61 = vcombine.low %v20037_v5, %v20054_v22 }
 0x711   : > { %v13059_v21 = vcombine.low %v20021_v30, %v20042_v10  ;;  %v8981_v24 = vcombine.low %v20029_v11, %v20042_v10  ;;  %v8983_v7 = vcombine.high %v20029_v11, %v20042_v10 }
 0x712   : > { %v9059_v28 = vcombine.high %v9051_v26, %v9051_v26  ;;  %v20058_v4 = vld.sshfl [vmem:[#allocation4 + $0x28] sm:$0xff pattern:$0x76325410]  ;;  %v20069_v8 = vrot.slane %v13062_v55, %v20007_v58  ;;  %v9241_v56 = vpack.c.bf16 %v9051_v26, %v9051_v26  ;;  %v20111_v16 = vrot.slane %v13064_v45, %v20007_v58  ;;  %v15694_v26 = vld [vmem:[%s21025_s7 + $0x190] sm:$0xff]  }
 0x713   : > { %v9058_v35 = vrot.slane %v13059_v21, %v20007_v58  ;;  %v13051_v31 = vrot.slane %v8981_v24, 9  ;;  %v8997_v40 = vrot.slane %v8983_v7, 7  ;;  %v13063_v42 = vcombine.low %v20042_v10, %v20058_v4  ;;  %v15696_v21 = vld [vmem:[%s21025_s7 + $0x118] sm:$0xff]  }
 0x714   : > { %v9242_v39 = vpack.c.bf16 %v9059_v28, %v9059_v28  ;;  %v9015_v62 = vcombine.low %v20037_v5, %v20058_v4  ;;  %v9016_v12 = vcombine.high %v20037_v5, %v20058_v4  ;;  %v13065_v20 = vcombine.high %v20042_v10, %v20058_v4  ;;  %v15697_v24 = vld [vmem:[%s21025_s7 + $0x1d8] sm:$0xff]  }
 0x715   : > { %v9060_v54 = vcombine.high %v9058_v35, %v9058_v35  ;;  %v8998_v18 = vsel %vm20033_vm12, %v13051_v31, %v8997_v40  ;;  %v20082_v34 = vrot.slane %v13063_v42, %v20007_v58  ;;  %v9243_v19 = vpack.c.bf16 %v9058_v35, %v9058_v35  ;;  %v15698_v35 = vld [vmem:[%s21025_s7 + $0x198] sm:$0xff]   ;;  %v15700_v40 = vld [vmem:[%s21025_s7 + $0x120] sm:$0xff]  }
 0x716   : > { %11620 = vmatprep.mubr.bf16.mxu1 %v9242_v39  ;;  %v9065_v27 = vcombine.low %v8994_v38, %v8998_v18  ;;  %v9066_v60 = vcombine.high %v8994_v38, %v8998_v18  ;;  %v13054_v48 = vrot.slane %v9015_v62, 9  ;;  %v9019_v1 = vrot.slane %v9016_v12, 7  ;;  %v15699_v38 = vld [vmem:[%s21025_s7 + $0x160] sm:$0xff]   ;;  %v15703_v39 = vld [vmem:[%s21025_s7 + $0x168] sm:$0xff]   ;;  %v15714_v62 = vld [vmem:[%s21025_s7 + $0x1b8] sm:$0xff]  }
 0x717   : > { %11621 = vmatmul.mubr.bf16.vlgmr.msra.gmra.mrb[200].mxu1 %v9241_v56  ;;  %v9244_v36 = vpack.c.bf16 %v9060_v54, %v9060_v54  ;;  %v20131_v14 = vrot.slane %v13065_v20, %v20007_v58  ;;  %v20137_v55 = vrot.slane %v13066_v61, %v20007_v58  ;;  %v13067_v57 = vcombine.low %v20058_v4, %v20039_v50  ;;  %v15702_v54 = vld [vmem:[%s21025_s7 + $0x1a0] sm:$0xff]   ;;  %v15727_v20 = vld [vmem:[%s21025_s7 + $0x258] sm:$0xff]  }
 0x718   : > { %14559 = vmatpush3.bf16.msra.mxu1 %v15684_v0  ;;  %v20091_v47 = vrot.slane %v9065_v27, %v20007_v58  ;;  %v20094_v9 = vrot.slane %v9066_v60, %v20007_v58  ;;  %v9020_v59 = vsel %vm20033_vm12, %v13054_v48, %v9019_v1  ;;  %v13068_v42 = vcombine.high %v20037_v5, %v20054_v22  ;;  %v15705_v5 = vld [vmem:[%s21025_s7 + $0x1e8] sm:$0xff]   ;;  %v15718_v48 = vld [vmem:[%s21025_s7 + $0x280] sm:$0xff]   ;;  %v15729_v61 = vld [vmem:[%s21025_s7 + $0x2d8] sm:$0xff]  }
 0x719   : > { %11660 = vmatprep.mubr.bf16.mxu0 %v9244_v36  ;;  %14560 = vmatprep.subr.bf16.mxu1 %v15687_v6  ;;  %v9131_v44 = vcombine.low %v8998_v18, %v9020_v59  ;;  %v9132_v33 = vcombine.high %v8998_v18, %v9020_v59  ;;  %v9197_v45 = vcombine.low %v9020_v59, %v9042_v41  ;;  %v15704_v18 = vld [vmem:[%s21025_s7 + $0x128] sm:$0xff]   ;;  %v15708_v36 = vld [vmem:[%s21025_s7 + $0x130] sm:$0xff]  }
 0x71a   : > { %11661 = vmatmul.mubr.bf16.vlgmr.msra.gmra.mrb[204].mxu0 %v9243_v19  ;;  %v9081_v32 = vcombine.high %v20091_v47, %v20091_v47  ;;  %v9082_v2 = vcombine.high %v20094_v9, %v20094_v9  ;;  %v20157_v17 = vrot.slane %v13067_v57, %v20007_v58  ;;  %v9198_v0 = vcombine.high %v9020_v59, %v9042_v41  ;;  %v15706_v60 = vld [vmem:[%s21025_s7 + $0x1a8] sm:$0xff]   ;;  %v15712_v19 = vld [vmem:[%s21025_s7 + $0x138] sm:$0xff]   ;;  %v15733_v57 = vld [vmem:[%s21025_s7 + $0x2e0] sm:$0xff]  }
 0x71b   : > { %14581 = vmatpush3.bf16.msra.mxu0 %v15686_v51  ;;  %v20148_v7 = vrot.slane %v9131_v44, %v20007_v58  ;;  %v20151_v28 = vrot.slane %v9132_v33, %v20007_v58  ;;  %v20163_v31 = vrot.slane %v9197_v45, %v20007_v58  ;;  %v13069_v56 = vcombine.high %v20058_v4, %v20039_v50  ;;  %v15707_v4 = vld [vmem:[%s21025_s7 + $0x170] sm:$0xff]   ;;  %v15720_v1 = vld [vmem:[%s21025_s7 + $0x208] sm:$0xff]   ;;  %v15728_v59 = vld [vmem:[%s21025_s7 + $0x218] sm:$0xff]  }
 0x71c   : > { %14561 = vmatpush3.bf16.msra.mxu1 %v15688_v53  ;;  %14582 = vmatprep.subr.bf16.mxu0 %v15689_v46  ;;  %v9246_v3 = vpack.c.bf16 %v9081_v32, %v9081_v32  ;;  %v9248_v49 = vpack.c.bf16 %v9082_v2, %v9082_v2  ;;  %v20182_v6 = vrot.slane %v9198_v0, %v20007_v58  ;;  %v15709_v51 = vld [vmem:[%s21025_s7 + $0x1f0] sm:$0xff]   ;;  %v15713_v53 = vld [vmem:[%s21025_s7 + $0x1f8] sm:$0xff]   ;;  %v15719_v2 = vld [vmem:[%s21025_s7 + $0x248] sm:$0xff]  }
 0x71d   : > { %14562 = vmatprep.subr.bf16.mxu1 %v15691_v15  ;;  %v20191_v50 = vrot.slane %v13068_v42, %v20007_v58  ;;  %v20194_v22 = vrot.slane %v13069_v56, %v20007_v58  ;;  %v13060_v27 = vcombine.high %v20023_v63, %v20029_v11  ;;  %v15711_v63 = vld [vmem:[%s21025_s7 + $0x178] sm:$0xff]   ;;  %v13061_v11 = vcombine.high %v20021_v30, %v20042_v10  ;;  %v15715_v30 = vld [vmem:[%s21025_s7 + $0x240] sm:$0xff]   ;;  %v15721_v41 = vld [vmem:[%s21025_s7 + $0x2c8] sm:$0xff]  }
 0x71e   : > { %11700 = vmatprep.mubr.bf16.mxu1 %v9246_v3  ;;  %11740 = vmatprep.mubr.bf16.mxu0 %v9248_v49  ;;  %v15716_v15 = vld [vmem:[%s21025_s7 + $0x200] sm:$0xff]   ;;  %v9245_v12 = vpack.c.bf16 %v20091_v47, %v20091_v47  ;;  %v9247_v47 = vpack.c.bf16 %v20094_v9, %v20094_v9  ;;  %v15723_v49 = vld [vmem:[%s21025_s7 + $0x250] sm:$0xff]   ;;  %v15722_v9 = vld [vmem:[%s21025_s7 + $0x288] sm:$0xff]  }
 0x71f   : > { %14583 = vmatpush3.bf16.msra.mxu0 %v15690_v43  ;;  %v20216_v23 = vrot.slane %v13060_v27, %v20007_v58  ;;  %v20231_v10 = vrot.slane %v13061_v11, %v20007_v58  ;;  %v15717_v58 = vld [vmem:[%s21025_s7 + $0x2c0] sm:$0xff]   ;;  %v15730_v33 = vld [vmem:[%s21025_s7 + $0x298] sm:$0xff]   ;;  %v15735_v45 = vld [vmem:[%s21025_s7 + $0x268] sm:$0xff]  }
 0x720   : > { %14563 = vmatpush3.bf16.msra.mxu1 %v15692_v37  ;;  %14584 = vmatprep.subr.bf16.mxu0 %v15693_v13  ;;  %v15724_v37 = vld [vmem:[%s21025_s7 + $0x210] sm:$0xff]   ;;  %v15731_v44 = vld [vmem:[%s21025_s7 + $0x260] sm:$0xff]   ;;  %v15743_v0 = vld [vmem:[%s21025_s7 + $0x278] sm:$0xff]  }
 0x721   : > { %14564 = vmatprep.subr.bf16.mxu1 %v15695_v29  ;;  %v9103_v46 = vcombine.high %v20216_v23, %v20216_v23  ;;  %v9104_v32 = vcombine.high %v20231_v10, %v20231_v10  ;;  %v15725_v13 = vld [vmem:[%s21025_s7 + $0x2d0] sm:$0xff]   ;;  %v15744_v56 = vld [vmem:[%s21025_s7 + $0x238] sm:$0xff]   ;;  %v15748_v27 = vld [vmem:[%s21025_s7 + $0x300] sm:$0xff]  }
 0x722   : > { %v15726_v29 = vld [vmem:[%s21025_s7 + $0x290] sm:$0xff]  }
 0x723   : > { %14585 = vmatpush3.bf16.msra.mxu0 %v15694_v26  ;;  %v9250_v43 = vpack.c.bf16 %v9103_v46, %v9103_v46  ;;  %v9252_v3 = vpack.c.bf16 %v9104_v32, %v9104_v32  ;;  %v15732_v26 = vld [vmem:[%s21025_s7 + $0x220] sm:$0xff]   ;;  %v15742_v42 = vld [vmem:[%s21025_s7 + $0x2b0] sm:$0xff]   ;;  %v15760_v32 = vld [vmem:[%s21025_s7 + $0x318] sm:$0xff]  }
 0x724   : > { %14565 = vmatpush3.bf16.msra.mxu1 %v15696_v21  ;;  %14586 = vmatprep.subr.bf16.mxu0 %v15697_v24  ;;  %v15734_v21 = vld [vmem:[%s21025_s7 + $0x2a0] sm:$0xff]   ;;  %v15736_v24 = vld [vmem:[%s21025_s7 + $0x228] sm:$0xff]   ;;  %v15755_v46 = vld [vmem:[%s21025_s7 + $0x350] sm:$0xff]  }
 0x725   : > { %14566 = vmatprep.subr.bf16.mxu1 %v15699_v38  ;;  %v15737_v38 = vld [vmem:[%s21025_s7 + $0x2e8] sm:$0xff]  }
 0x727   : > { %14587 = vmatpush3.bf16.msra.mxu0 %v15698_v35  ;;  %v15739_v35 = vld [vmem:[%s21025_s7 + $0x270] sm:$0xff]  }
 0x728   : > { %14567 = vmatpush3.bf16.msra.mxu1 %v15700_v40  ;;  %14588 = vmatprep.subr.bf16.mxu0 %v15701_v25  ;;  %v15738_v40 = vld [vmem:[%s21025_s7 + $0x2a8] sm:$0xff]   ;;  %v15740_v25 = vld [vmem:[%s21025_s7 + $0x230] sm:$0xff]  }
 0x729   : > { %14568 = vmatprep.subr.bf16.mxu1 %v15703_v39  ;;  %v15741_v39 = vld [vmem:[%s21025_s7 + $0x2f0] sm:$0xff]  }
 0x72b   : > { %14589 = vmatpush3.bf16.msra.mxu0 %v15702_v54  ;;  %v15745_v54 = vld [vmem:[%s21025_s7 + $0x2f8] sm:$0xff]  }
 0x72c   : > { %14569 = vmatpush3.bf16.msra.mxu1 %v15704_v18  ;;  %14590 = vmatprep.subr.bf16.mxu0 %v15705_v5  ;;  %v15747_v18 = vld [vmem:[%s21025_s7 + $0x340] sm:$0xff]   ;;  %v9125_v5 = vcombine.high %v20069_v8, %v20069_v8 }
 0x72d   : > { %14570 = vmatprep.subr.bf16.mxu1 %v15707_v4  ;;  %v15746_v4 = vld [vmem:[%s21025_s7 + $0x2b8] sm:$0xff]  }
 0x72e   : > { %v9254_v11 = vpack.c.bf16 %v9125_v5, %v9125_v5  ;;  %v15789_v5 = vld [vmem:[%s21025_s7 + $0x4d0] sm:$0xff]  }
 0x72f   : > { %14591 = vmatpush3.bf16.msra.mxu0 %v15706_v60  ;;  %v9249_v60 = vpack.c.bf16 %v20216_v23, %v20216_v23  ;;  %v9251_v23 = vpack.c.bf16 %v20231_v10, %v20231_v10  ;;  %v15754_v10 = vld [vmem:[%s21025_s7 + $0x388] sm:$0xff]  }
 0x730   : > { %14571 = vmatpush3.bf16.msra.mxu1 %v15708_v36  ;;  %14592 = vmatprep.subr.bf16.mxu0 %v15709_v51  ;;  %v15749_v36 = vld [vmem:[%s21025_s7 + $0x3c0] sm:$0xff]   ;;  %v9126_v51 = vcombine.high %v20082_v34, %v20082_v34 }
 0x731   : > { %14572 = vmatprep.subr.bf16.mxu1 %v15711_v63  ;;  %v15751_v63 = vld [vmem:[%s21025_s7 + $0x348] sm:$0xff]  }
 0x733   : > { %14593 = vmatpush3.bf16.msra.mxu0 %v15710_v52  ;;  %v15750_v52 = vld [vmem:[%s21025_s7 + $0x380] sm:$0xff]  }
 0x734   : > { %14573 = vmatpush3.bf16.msra.mxu1 %v15712_v19  ;;  %14594 = vmatprep.subr.bf16.mxu0 %v15713_v53  ;;  %v15752_v19 = vld [vmem:[%s21025_s7 + $0x308] sm:$0xff]  }
 0x735   : > { %14602 = vmatprep.subr.bf16.mxu1 %v15715_v30  ;;  %v15753_v53 = vld [vmem:[%s21025_s7 + $0x3c8] sm:$0xff]   ;;  %v9256_v30 = vpack.c.bf16 %v9126_v51, %v9126_v51  ;;  %v15795_v51 = vld [vmem:[%s21025_s7 + $0x460] sm:$0xff]  }
 0x737   : > { %14595 = vmatpush3.bf16.msra.mxu0 %v15714_v62  ;;  %11701 = vmatmul.mubr.bf16.vlgmr.msra.gmra.mrb[204].mxu1 %v9245_v12  ;;  %v15756_v62 = vld [vmem:[%s21025_s7 + $0x310] sm:$0xff]   ;;  %v15759_v12 = vld [vmem:[%s21025_s7 + $0x358] sm:$0xff]  }
 0x738   : > { %14603 = vmatpush3.bf16.msra.mxu1 %v15716_v15  ;;  %11780 = vmatprep.mubr.bf16.mxu1 %v9250_v43  ;;  %v15757_v15 = vld [vmem:[%s21025_s7 + $0x3d0] sm:$0xff]   ;;  %v15763_v43 = vld [vmem:[%s21025_s7 + $0x360] sm:$0xff]  }
 0x739   : > { %14624 = vmatprep.subr.bf16.mxu0 %v15717_v58  ;;  %14604 = vmatprep.subr.bf16.mxu1 %v15719_v2  ;;  %v15758_v58 = vld [vmem:[%s21025_s7 + $0x390] sm:$0xff]   ;;  %v15761_v2 = vld [vmem:[%s21025_s7 + $0x3d8] sm:$0xff]  }
 0x73a   : > { %11741 = vmatmul.mubr.bf16.vlgmr.msra.gmra.mrb[208].mxu0 %v9247_v47  ;;  %v15764_v47 = vld [vmem:[%s21025_s7 + $0x320] sm:$0xff]  }
 0x73b   : > { %14625 = vmatpush3.bf16.msra.mxu0 %v15718_v48  ;;  %11820 = vmatprep.mubr.bf16.mxu0 %v9252_v3  ;;  %v15762_v48 = vld [vmem:[%s21025_s7 + $0x398] sm:$0xff]   ;;  %v15766_v3 = vld [vmem:[%s21025_s7 + $0x3a0] sm:$0xff]  }
 0x73c   : > { %14605 = vmatpush3.bf16.msra.mxu1 %v15720_v1  ;;  %14626 = vmatprep.subr.bf16.mxu0 %v15721_v41  ;;  %v15765_v1 = vld [vmem:[%s21025_s7 + $0x3e0] sm:$0xff]   ;;  %v15767_v41 = vld [vmem:[%s21025_s7 + $0x368] sm:$0xff]  }
 0x73d   : > { %14606 = vmatprep.subr.bf16.mxu1 %v15723_v49  ;;  %v15768_v49 = vld [vmem:[%s21025_s7 + $0x328] sm:$0xff]  }
 0x73f   : > { %14627 = vmatpush3.bf16.msra.mxu0 %v15722_v9  ;;  %v15769_v9 = vld [vmem:[%s21025_s7 + $0x3e8] sm:$0xff]  }
 0x740   : > { %14607 = vmatpush3.bf16.msra.mxu1 %v15724_v37  ;;  %14628 = vmatprep.subr.bf16.mxu0 %v15725_v13  ;;  %v15771_v37 = vld [vmem:[%s21025_s7 + $0x370] sm:$0xff]   ;;  %v15770_v13 = vld [vmem:[%s21025_s7 + $0x3a8] sm:$0xff]  }
 0x741   : > { %14608 = vmatprep.subr.bf16.mxu1 %v15727_v20  ;;  %v15772_v20 = vld [vmem:[%s21025_s7 + $0x330] sm:$0xff]  }
 0x743   : > { %14629 = vmatpush3.bf16.msra.mxu0 %v15726_v29  ;;  %v15773_v29 = vld [vmem:[%s21025_s7 + $0x3f0] sm:$0xff]  }
 0x744   : > { %14609 = vmatpush3.bf16.msra.mxu1 %v15728_v59  ;;  %14630 = vmatprep.subr.bf16.mxu0 %v15729_v61  ;;  %v15775_v59 = vld [vmem:[%s21025_s7 + $0x378] sm:$0xff]   ;;  %v15774_v61 = vld [vmem:[%s21025_s7 + $0x3b0] sm:$0xff]  }
 0x745   : > { %14610 = vmatprep.subr.bf16.mxu1 %v15731_v44  ;;  %v15776_v44 = vld [vmem:[%s21025_s7 + $0x338] sm:$0xff]  }
 0x747   : > { %14631 = vmatpush3.bf16.msra.mxu0 %v15730_v33  ;;  %v15777_v33 = vld [vmem:[%s21025_s7 + $0x3f8] sm:$0xff]  }
 0x748   : > { %14611 = vmatpush3.bf16.msra.mxu1 %v15732_v26  ;;  %14632 = vmatprep.subr.bf16.mxu0 %v15733_v57  ;;  %v15779_v26 = vld [vmem:[%s21025_s7 + $0x440] sm:$0xff]   ;;  %v9147_v57 = vcombine.high %v20148_v7, %v20148_v7 }
 0x749   : > { %14612 = vmatprep.subr.bf16.mxu1 %v15735_v45  ;;  %v15778_v45 = vld [vmem:[%s21025_s7 + $0x3b8] sm:$0xff]  }
 0x74b   : > { %14633 = vmatpush3.bf16.msra.mxu0 %v15734_v21  ;;  %v15780_v21 = vld [vmem:[%s21025_s7 + $0x400] sm:$0xff]  }
 0x74c   : > { %14613 = vmatpush3.bf16.msra.mxu1 %v15736_v24  ;;  %14634 = vmatprep.subr.bf16.mxu0 %v15737_v38  ;;  %v9253_v24 = vpack.c.bf16 %v20069_v8, %v20069_v8  ;;  %v15781_v38 = vld [vmem:[%s21025_s7 + $0x4c0] sm:$0xff]   ;;  %v9255_v8 = vpack.c.bf16 %v20082_v34, %v20082_v34  ;;  %v15786_v34 = vld [vmem:[%s21025_s7 + $0x488] sm:$0xff]  }
 0x74d   : > { %14614 = vmatprep.subr.bf16.mxu1 %v15739_v35  ;;  %v9148_v35 = vcombine.high %v20151_v28, %v20151_v28 }
 0x74f   : > { %14635 = vmatpush3.bf16.msra.mxu0 %v15738_v40  ;;  %v15783_v40 = vld [vmem:[%s21025_s7 + $0x448] sm:$0xff]  }
 0x750   : > { %14615 = vmatpush3.bf16.msra.mxu1 %v15740_v25  ;;  %14636 = vmatprep.subr.bf16.mxu0 %v15741_v39  ;;  %v9258_v25 = vpack.c.bf16 %v9147_v57, %v9147_v57  ;;  %v15782_v39 = vld [vmem:[%s21025_s7 + $0x480] sm:$0xff]   ;;  %v15822_v57 = vld [vmem:[%s21025_s7 + $0x590] sm:$0xff]  }
 0x751   : > { %14616 = vmatprep.subr.bf16.mxu1 %v15743_v0  ;;  %v15784_v0 = vld [vmem:[%s21025_s7 + $0x408] sm:$0xff]  }
 0x753   : > { %14637 = vmatpush3.bf16.msra.mxu0 %v15742_v42  ;;  %v15785_v42 = vld [vmem:[%s21025_s7 + $0x4c8] sm:$0xff]  }
 0x754   : > { %14617 = vmatpush3.bf16.msra.mxu1 %v15744_v56  ;;  %14638 = vmatprep.subr.bf16.mxu0 %v15745_v54  ;;  %v9260_v56 = vpack.c.bf16 %v9148_v35, %v9148_v35  ;;  %v15787_v54 = vld [vmem:[%s21025_s7 + $0x450] sm:$0xff]   ;;  %v15828_v35 = vld [vmem:[%s21025_s7 + $0x520] sm:$0xff]  }
 0x755   : > { %14646 = vmatprep.subr.bf16.mxu1 %v15747_v18  ;;  %v15788_v18 = vld [vmem:[%s21025_s7 + $0x410] sm:$0xff]  }
 0x757   : > { %14639 = vmatpush3.bf16.msra.mxu0 %v15746_v4  ;;  %11781 = vmatmul.mubr.bf16.vlgmr.msra.gmra.mrb[208].mxu1 %v9249_v60  ;;  %v15791_v4 = vld [vmem:[%s21025_s7 + $0x458] sm:$0xff]  }
 0x758   : > { %14647 = vmatpush3.bf16.msra.mxu1 %v15748_v27  ;;  %11860 = vmatprep.mubr.bf16.mxu1 %v9254_v11  ;;  %v15790_v27 = vld [vmem:[%s21025_s7 + $0x490] sm:$0xff]   ;;  %v15792_v60 = vld [vmem:[%s21025_s7 + $0x418] sm:$0xff]   ;;  %v15796_v11 = vld [vmem:[%s21025_s7 + $0x420] sm:$0xff]  }
 0x759   : > { %14668 = vmatprep.subr.bf16.mxu0 %v15749_v36  ;;  %14648 = vmatprep.subr.bf16.mxu1 %v15751_v63  ;;  %v15793_v36 = vld [vmem:[%s21025_s7 + $0x4d8] sm:$0xff]  }
 0x75a   : > { %11821 = vmatmul.mubr.bf16.vlgmr.msra.gmra.mrb[212].mxu0 %v9251_v23  ;;  %v15794_v63 = vld [vmem:[%s21025_s7 + $0x498] sm:$0xff]   ;;  %v15799_v23 = vld [vmem:[%s21025_s7 + $0x468] sm:$0xff]  }
 0x75b   : > { %14669 = vmatpush3.bf16.msra.mxu0 %v15750_v52  ;;  %11900 = vmatprep.mubr.bf16.mxu0 %v9256_v30  ;;  %v15797_v52 = vld [vmem:[%s21025_s7 + $0x4e0] sm:$0xff]   ;;  %v15801_v30 = vld [vmem:[%s21025_s7 + $0x4e8] sm:$0xff]  }
 0x75c   : > { %14649 = vmatpush3.bf16.msra.mxu1 %v15752_v19  ;;  %14670 = vmatprep.subr.bf16.mxu0 %v15753_v53  ;;  %v15798_v19 = vld [vmem:[%s21025_s7 + $0x4a0] sm:$0xff]   ;;  %v15800_v53 = vld [vmem:[%s21025_s7 + $0x428] sm:$0xff]  }
 0x75d   : > { %14650 = vmatprep.subr.bf16.mxu1 %v15755_v46  ;;  %v15803_v46 = vld [vmem:[%s21025_s7 + $0x470] sm:$0xff]  }
 0x75f   : > { %14671 = vmatpush3.bf16.msra.mxu0 %v15754_v10  ;;  %v15802_v10 = vld [vmem:[%s21025_s7 + $0x4a8] sm:$0xff]  }
 0x760   : > { %14651 = vmatpush3.bf16.msra.mxu1 %v15756_v62  ;;  %14672 = vmatprep.subr.bf16.mxu0 %v15757_v15  ;;  %v15804_v62 = vld [vmem:[%s21025_s7 + $0x430] sm:$0xff]  }
 0x761   : > { %14652 = vmatprep.subr.bf16.mxu1 %v15759_v12  ;;  %v15805_v15 = vld [vmem:[%s21025_s7 + $0x4f0] sm:$0xff]   ;;  %v15807_v12 = vld [vmem:[%s21025_s7 + $0x478] sm:$0xff]  }
 0x763   : > { %14673 = vmatpush3.bf16.msra.mxu0 %v15758_v58  ;;  %v15806_v58 = vld [vmem:[%s21025_s7 + $0x4b0] sm:$0xff]  }
 0x764   : > { %14653 = vmatpush3.bf16.msra.mxu1 %v15760_v32  ;;  %14674 = vmatprep.subr.bf16.mxu0 %v15761_v2  ;;  %v15808_v32 = vld [vmem:[%s21025_s7 + $0x438] sm:$0xff]  }
 0x765   : > { %14654 = vmatprep.subr.bf16.mxu1 %v15763_v43  ;;  %v15809_v2 = vld [vmem:[%s21025_s7 + $0x4f8] sm:$0xff]   ;;  %v15811_v43 = vld [vmem:[%s21025_s7 + $0x540] sm:$0xff]  }
 0x767   : > { %14675 = vmatpush3.bf16.msra.mxu0 %v15762_v48  ;;  %v9169_v48 = vcombine.high %v20111_v16, %v20111_v16 }
 0x768   : > { %14655 = vmatpush3.bf16.msra.mxu1 %v15764_v47  ;;  %14676 = vmatprep.subr.bf16.mxu0 %v15765_v1  ;;  %v15810_v47 = vld [vmem:[%s21025_s7 + $0x4b8] sm:$0xff]   ;;  %v15812_v1 = vld [vmem:[%s21025_s7 + $0x500] sm:$0xff]  }
 0x769   : > { %14656 = vmatprep.subr.bf16.mxu1 %v15767_v41  ;;  %v9257_v41 = vpack.c.bf16 %v20148_v7, %v20148_v7  ;;  %v9259_v7 = vpack.c.bf16 %v20151_v28, %v20151_v28  ;;  %v15818_v28 = vld [vmem:[%s21025_s7 + $0x588] sm:$0xff]  }
 0x76b   : > { %14677 = vmatpush3.bf16.msra.mxu0 %v15766_v3  ;;  %v15813_v3 = vld [vmem:[%s21025_s7 + $0x5c0] sm:$0xff]  }
 0x76c   : > { %14657 = vmatpush3.bf16.msra.mxu1 %v15768_v49  ;;  %14678 = vmatprep.subr.bf16.mxu0 %v15769_v9  ;;  %v9170_v49 = vcombine.high %v20131_v14, %v20131_v14  ;;  %v15815_v9 = vld [vmem:[%s21025_s7 + $0x548] sm:$0xff]  }
 0x76d   : > { %14658 = vmatprep.subr.bf16.mxu1 %v15771_v37  ;;  %v9262_v37 = vpack.c.bf16 %v9169_v48, %v9169_v48  ;;  %v15857_v48 = vld [vmem:[%s21025_s7 + $0x6d8] sm:$0xff]  }
 0x76f   : > { %14679 = vmatpush3.bf16.msra.mxu0 %v15770_v13  ;;  %v15814_v13 = vld [vmem:[%s21025_s7 + $0x580] sm:$0xff]  }
 0x770   : > { %14659 = vmatpush3.bf16.msra.mxu1 %v15772_v20  ;;  %14680 = vmatprep.subr.bf16.mxu0 %v15773_v29  ;;  %v15816_v20 = vld [vmem:[%s21025_s7 + $0x508] sm:$0xff]  }
 0x771   : > { %14660 = vmatprep.subr.bf16.mxu1 %v15775_v59  ;;  %v15817_v29 = vld [vmem:[%s21025_s7 + $0x5c8] sm:$0xff]   ;;  %v9264_v59 = vpack.c.bf16 %v9170_v49, %v9170_v49 }
 0x772   : > { %v15863_v49 = vld [vmem:[%s21025_s7 + $0x668] sm:$0xff]  }
 0x773   : > { %14681 = vmatpush3.bf16.msra.mxu0 %v15774_v61  ;;  %v15819_v61 = vld [vmem:[%s21025_s7 + $0x550] sm:$0xff]  }
 0x774   : > { %14661 = vmatpush3.bf16.msra.mxu1 %v15776_v44  ;;  %14682 = vmatprep.subr.bf16.mxu0 %v15777_v33  ;;  %v15820_v44 = vld [vmem:[%s21025_s7 + $0x510] sm:$0xff]  }
 0x775   : > { %14690 = vmatprep.subr.bf16.mxu1 %v15779_v26  ;;  %v15821_v33 = vld [vmem:[%s21025_s7 + $0x5d0] sm:$0xff]   ;;  %v15823_v26 = vld [vmem:[%s21025_s7 + $0x558] sm:$0xff]  }
 0x777   : > { %14683 = vmatpush3.bf16.msra.mxu0 %v15778_v45  ;;  %11861 = vmatmul.mubr.bf16.vlgmr.msra.gmra.mrb[212].mxu1 %v9253_v24  ;;  %v15824_v45 = vld [vmem:[%s21025_s7 + $0x518] sm:$0xff]   ;;  %v15827_v24 = vld [vmem:[%s21025_s7 + $0x560] sm:$0xff]  }
 0x778   : > { %14691 = vmatpush3.bf16.msra.mxu1 %v15780_v21  ;;  %11940 = vmatprep.mubr.bf16.mxu1 %v9258_v25  ;;  %v15825_v21 = vld [vmem:[%s21025_s7 + $0x5d8] sm:$0xff]   ;;  %v15831_v25 = vld [vmem:[%s21025_s7 + $0x568] sm:$0xff]  }
 0x779   : > { %14712 = vmatprep.subr.bf16.mxu0 %v15781_v38  ;;  %14692 = vmatprep.subr.bf16.mxu1 %v15783_v40  ;;  %v15826_v38 = vld [vmem:[%s21025_s7 + $0x598] sm:$0xff]   ;;  %v15829_v40 = vld [vmem:[%s21025_s7 + $0x5e0] sm:$0xff]  }
 0x77a   : > { %11901 = vmatmul.mubr.bf16.vlgmr.msra.gmra.mrb[216].mxu0 %v9255_v8  ;;  %v15832_v8 = vld [vmem:[%s21025_s7 + $0x528] sm:$0xff]  }
 0x77b   : > { %14713 = vmatpush3.bf16.msra.mxu0 %v15782_v39  ;;  %11980 = vmatprep.mubr.bf16.mxu0 %v9260_v56  ;;  %v15830_v39 = vld [vmem:[%s21025_s7 + $0x5a0] sm:$0xff]   ;;  %v15834_v56 = vld [vmem:[%s21025_s7 + $0x5a8] sm:$0xff]  }
 0x77c   : > { %14693 = vmatpush3.bf16.msra.mxu1 %v15784_v0  ;;  %14714 = vmatprep.subr.bf16.mxu0 %v15785_v42  ;;  %v15833_v0 = vld [vmem:[%s21025_s7 + $0x5e8] sm:$0xff]   ;;  %v15835_v42 = vld [vmem:[%s21025_s7 + $0x570] sm:$0xff]  }
 0x77d   : > { %14694 = vmatprep.subr.bf16.mxu1 %v15787_v54  ;;  %v15836_v54 = vld [vmem:[%s21025_s7 + $0x530] sm:$0xff]  }
 0x77f   : > { %14715 = vmatpush3.bf16.msra.mxu0 %v15786_v34  ;;  %v15837_v34 = vld [vmem:[%s21025_s7 + $0x5f0] sm:$0xff]  }
 0x780   : > { %14695 = vmatpush3.bf16.msra.mxu1 %v15788_v18  ;;  %14716 = vmatprep.subr.bf16.mxu0 %v15789_v5  ;;  %v15839_v18 = vld [vmem:[%s21025_s7 + $0x578] sm:$0xff]   ;;  %v15838_v5 = vld [vmem:[%s21025_s7 + $0x5b0] sm:$0xff]  }
 0x781   : > { %14696 = vmatprep.subr.bf16.mxu1 %v15791_v4  ;;  %v15840_v4 = vld [vmem:[%s21025_s7 + $0x538] sm:$0xff]  }
 0x783   : > { %14717 = vmatpush3.bf16.msra.mxu0 %v15790_v27  ;;  %v15841_v27 = vld [vmem:[%s21025_s7 + $0x5f8] sm:$0xff]  }
 0x784   : > { %14697 = vmatpush3.bf16.msra.mxu1 %v15792_v60  ;;  %14718 = vmatprep.subr.bf16.mxu0 %v15793_v36  ;;  %v15843_v60 = vld [vmem:[%s21025_s7 + $0x640] sm:$0xff]   ;;  %v9191_v36 = vcombine.high %v20137_v55, %v20137_v55 }
 0x785   : > { %14698 = vmatprep.subr.bf16.mxu1 %v15795_v51  ;;  %v15842_v51 = vld [vmem:[%s21025_s7 + $0x5b8] sm:$0xff]  }
 0x787   : > { %14719 = vmatpush3.bf16.msra.mxu0 %v15794_v63  ;;  %v15844_v63 = vld [vmem:[%s21025_s7 + $0x600] sm:$0xff]  }
 0x788   : > { %14699 = vmatpush3.bf16.msra.mxu1 %v15796_v11  ;;  %14720 = vmatprep.subr.bf16.mxu0 %v15797_v52  ;;  %v9261_v11 = vpack.c.bf16 %v20111_v16, %v20111_v16  ;;  %v15845_v52 = vld [vmem:[%s21025_s7 + $0x6c0] sm:$0xff]   ;;  %v9263_v16 = vpack.c.bf16 %v20131_v14, %v20131_v14  ;;  %v15850_v14 = vld [vmem:[%s21025_s7 + $0x688] sm:$0xff]  }
 0x789   : > { %14700 = vmatprep.subr.bf16.mxu1 %v15799_v23  ;;  %v9192_v23 = vcombine.high %v20157_v17, %v20157_v17 }
 0x78b   : > { %14721 = vmatpush3.bf16.msra.mxu0 %v15798_v19  ;;  %v15847_v19 = vld [vmem:[%s21025_s7 + $0x648] sm:$0xff]  }
 0x78c   : > { %14701 = vmatpush3.bf16.msra.mxu1 %v15800_v53  ;;  %14722 = vmatprep.subr.bf16.mxu0 %v15801_v30  ;;  %v9266_v53 = vpack.c.bf16 %v9191_v36, %v9191_v36  ;;  %v15846_v30 = vld [vmem:[%s21025_s7 + $0x680] sm:$0xff]   ;;  %v15890_v36 = vld [vmem:[%s21025_s7 + $0x798] sm:$0xff]  }
 0x78d   : > { %14702 = vmatprep.subr.bf16.mxu1 %v15803_v46  ;;  %v15848_v46 = vld [vmem:[%s21025_s7 + $0x608] sm:$0xff]  }
 0x78f   : > { %14723 = vmatpush3.bf16.msra.mxu0 %v15802_v10  ;;  %v15849_v10 = vld [vmem:[%s21025_s7 + $0x6c8] sm:$0xff]  }
 0x790   : > { %14703 = vmatpush3.bf16.msra.mxu1 %v15804_v62  ;;  %14724 = vmatprep.subr.bf16.mxu0 %v15805_v15  ;;  %v9268_v62 = vpack.c.bf16 %v9192_v23, %v9192_v23  ;;  %v15851_v15 = vld [vmem:[%s21025_s7 + $0x650] sm:$0xff]   ;;  %v15896_v23 = vld [vmem:[%s21025_s7 + $0x728] sm:$0xff]  }
 0x791   : > { %14704 = vmatprep.subr.bf16.mxu1 %v15807_v12  ;;  %v15852_v12 = vld [vmem:[%s21025_s7 + $0x610] sm:$0xff]  }
 0x793   : > { %14725 = vmatpush3.bf16.msra.mxu0 %v15806_v58  ;;  %v15853_v58 = vld [vmem:[%s21025_s7 + $0x6d0] sm:$0xff]  }
 0x794   : > { %14705 = vmatpush3.bf16.msra.mxu1 %v15808_v32  ;;  %14726 = vmatprep.subr.bf16.mxu0 %v15809_v2  ;;  %v15855_v32 = vld [vmem:[%s21025_s7 + $0x658] sm:$0xff]   ;;  %v15854_v2 = vld [vmem:[%s21025_s7 + $0x690] sm:$0xff]  }
 0x795   : > { %14734 = vmatprep.subr.bf16.mxu1 %v15811_v43  ;;  %v15856_v43 = vld [vmem:[%s21025_s7 + $0x618] sm:$0xff]  }
 0x797   : > { %14727 = vmatpush3.bf16.msra.mxu0 %v15810_v47  ;;  %11941 = vmatmul.mubr.bf16.vlgmr.msra.gmra.mrb[216].mxu1 %v9257_v41  ;;  %v15859_v47 = vld [vmem:[%s21025_s7 + $0x660] sm:$0xff]  }
 0x798   : > { %14735 = vmatpush3.bf16.msra.mxu1 %v15812_v1  ;;  %12020 = vmatprep.mubr.bf16.mxu1 %v9262_v37  ;;  %v15858_v1 = vld [vmem:[%s21025_s7 + $0x698] sm:$0xff]   ;;  %v15860_v41 = vld [vmem:[%s21025_s7 + $0x620] sm:$0xff]   ;;  %v15864_v37 = vld [vmem:[%s21025_s7 + $0x628] sm:$0xff]  }
 0x799   : > { %14756 = vmatprep.subr.bf16.mxu0 %v15813_v3  ;;  %14736 = vmatprep.subr.bf16.mxu1 %v15815_v9  ;;  %v15861_v3 = vld [vmem:[%s21025_s7 + $0x6e0] sm:$0xff]  }
 0x79a   : > { %11981 = vmatmul.mubr.bf16.vlgmr.msra.gmra.mrb[220].mxu0 %v9259_v7  ;;  %v15862_v9 = vld [vmem:[%s21025_s7 + $0x6a0] sm:$0xff]   ;;  %v15867_v7 = vld [vmem:[%s21025_s7 + $0x670] sm:$0xff]  }
 0x79b   : > { %14757 = vmatpush3.bf16.msra.mxu0 %v15814_v13  ;;  %12060 = vmatprep.mubr.bf16.mxu0 %v9264_v59  ;;  %v15865_v13 = vld [vmem:[%s21025_s7 + $0x6e8] sm:$0xff]   ;;  %v15869_v59 = vld [vmem:[%s21025_s7 + $0x6f0] sm:$0xff]  }
 0x79c   : > { %14737 = vmatpush3.bf16.msra.mxu1 %v15816_v20  ;;  %14758 = vmatprep.subr.bf16.mxu0 %v15817_v29  ;;  %v15866_v20 = vld [vmem:[%s21025_s7 + $0x6a8] sm:$0xff]   ;;  %v15868_v29 = vld [vmem:[%s21025_s7 + $0x630] sm:$0xff]  }
 0x79d   : > { %14738 = vmatprep.subr.bf16.mxu1 %v15819_v61  ;;  %v15871_v61 = vld [vmem:[%s21025_s7 + $0x678] sm:$0xff]  }
 0x79f   : > { %14759 = vmatpush3.bf16.msra.mxu0 %v15818_v28  ;;  %v15870_v28 = vld [vmem:[%s21025_s7 + $0x6b0] sm:$0xff]  }
 0x7a0   : > { %14739 = vmatpush3.bf16.msra.mxu1 %v15820_v44  ;;  %14760 = vmatprep.subr.bf16.mxu0 %v15821_v33  ;;  %v15872_v44 = vld [vmem:[%s21025_s7 + $0x638] sm:$0xff]  }
 0x7a1   : > { %14740 = vmatprep.subr.bf16.mxu1 %v15823_v26  ;;  %v15873_v33 = vld [vmem:[%s21025_s7 + $0x6f8] sm:$0xff]   ;;  %v15875_v26 = vld [vmem:[%s21025_s7 + $0x740] sm:$0xff]  }
 0x7a3   : > { %14761 = vmatpush3.bf16.msra.mxu0 %v15822_v57  ;;  %v9213_v57 = vcombine.high %v20163_v31, %v20163_v31 }
 0x7a4   : > { %14741 = vmatpush3.bf16.msra.mxu1 %v15824_v45  ;;  %14762 = vmatprep.subr.bf16.mxu0 %v15825_v21  ;;  %v15874_v45 = vld [vmem:[%s21025_s7 + $0x6b8] sm:$0xff]   ;;  %v15876_v21 = vld [vmem:[%s21025_s7 + $0x700] sm:$0xff]  }
 0x7a5   : > { %14742 = vmatprep.subr.bf16.mxu1 %v15827_v24  ;;  %v9265_v24 = vpack.c.bf16 %v20137_v55, %v20137_v55  ;;  %v9267_v55 = vpack.c.bf16 %v20157_v17, %v20157_v17  ;;  %v15882_v17 = vld [vmem:[%s21025_s7 + $0x788] sm:$0xff]  }
 0x7a7   : > { %14763 = vmatpush3.bf16.msra.mxu0 %v15826_v38  ;;  %v15877_v38 = vld [vmem:[%s21025_s7 + $0x7c0] sm:$0xff]  }
 0x7a8   : > { %14743 = vmatpush3.bf16.msra.mxu1 %v15828_v35  ;;  %14764 = vmatprep.subr.bf16.mxu0 %v15829_v40  ;;  %v9214_v35 = vcombine.high %v20182_v6, %v20182_v6  ;;  %v15879_v40 = vld [vmem:[%s21025_s7 + $0x748] sm:$0xff]  }
 0x7a9   : > { %14744 = vmatprep.subr.bf16.mxu1 %v15831_v25  ;;  %v9270_v25 = vpack.c.bf16 %v9213_v57, %v9213_v57  ;;  %v15912_v57 = vld [vmem:[%s21025_s7 + $0x808] sm:$0xff]  }
 0x7ab   : > { %14765 = vmatpush3.bf16.msra.mxu0 %v15830_v39  ;;  %v15878_v39 = vld [vmem:[%s21025_s7 + $0x780] sm:$0xff]  }
 0x7ac   : > { %14745 = vmatpush3.bf16.msra.mxu1 %v15832_v8  ;;  %14766 = vmatprep.subr.bf16.mxu0 %v15833_v0  ;;  %v15880_v8 = vld [vmem:[%s21025_s7 + $0x708] sm:$0xff]  }
 0x7ad   : > { %14746 = vmatprep.subr.bf16.mxu1 %v15835_v42  ;;  %v15881_v0 = vld [vmem:[%s21025_s7 + $0x7c8] sm:$0xff]   ;;  %v9272_v42 = vpack.c.bf16 %v9214_v35, %v9214_v35  ;;  %v15917_v35 = vld [vmem:[%s21025_s7 + $0x8d0] sm:$0xff]  }
 0x7af   : > { %14767 = vmatpush3.bf16.msra.mxu0 %v15834_v56  ;;  %v15883_v56 = vld [vmem:[%s21025_s7 + $0x750] sm:$0xff]  }
 0x7b0   : > { %14747 = vmatpush3.bf16.msra.mxu1 %v15836_v54  ;;  %14768 = vmatprep.subr.bf16.mxu0 %v15837_v34  ;;  %v15884_v54 = vld [vmem:[%s21025_s7 + $0x710] sm:$0xff]  }
 0x7b1   : > { %14748 = vmatprep.subr.bf16.mxu1 %v15839_v18  ;;  %v15885_v34 = vld [vmem:[%s21025_s7 + $0x7d0] sm:$0xff]   ;;  %v15887_v18 = vld [vmem:[%s21025_s7 + $0x758] sm:$0xff]  }
 0x7b3   : > { %14769 = vmatpush3.bf16.msra.mxu0 %v15838_v5  ;;  %v15886_v5 = vld [vmem:[%s21025_s7 + $0x790] sm:$0xff]  }
 0x7b4   : > { %14749 = vmatpush3.bf16.msra.mxu1 %v15840_v4  ;;  %14770 = vmatprep.subr.bf16.mxu0 %v15841_v27  ;;  %v15888_v4 = vld [vmem:[%s21025_s7 + $0x718] sm:$0xff]  }
 0x7b5   : > { %14778 = vmatprep.subr.bf16.mxu1 %v15843_v60  ;;  %v15889_v27 = vld [vmem:[%s21025_s7 + $0x7d8] sm:$0xff]   ;;  %v15891_v60 = vld [vmem:[%s21025_s7 + $0x760] sm:$0xff]  }
 0x7b7   : > { %14771 = vmatpush3.bf16.msra.mxu0 %v15842_v51  ;;  %12021 = vmatmul.mubr.bf16.vlgmr.msra.gmra.mrb[220].mxu1 %v9261_v11  ;;  %v15892_v51 = vld [vmem:[%s21025_s7 + $0x720] sm:$0xff]   ;;  %v15895_v11 = vld [vmem:[%s21025_s7 + $0x768] sm:$0xff]  }
 0x7b8   : > { %14779 = vmatpush3.bf16.msra.mxu1 %v15844_v63  ;;  %12100 = vmatprep.mubr.bf16.mxu1 %v9266_v53  ;;  %v15893_v63 = vld [vmem:[%s21025_s7 + $0x7e0] sm:$0xff]   ;;  %v15899_v53 = vld [vmem:[%s21025_s7 + $0x770] sm:$0xff]  }
 0x7b9   : > { %14800 = vmatprep.subr.bf16.mxu0 %v15845_v52  ;;  %14780 = vmatprep.subr.bf16.mxu1 %v15847_v19  ;;  %v15894_v52 = vld [vmem:[%s21025_s7 + $0x7a0] sm:$0xff]   ;;  %v15897_v19 = vld [vmem:[%s21025_s7 + $0x7e8] sm:$0xff]  }
 0x7ba   : > { %12061 = vmatmul.mubr.bf16.vlgmr.msra.gmra.mrb[224].mxu0 %v9263_v16  ;;  %v13070_v16 = vld [vmem:[%s21026_s8] ss:$0 sm:$0xff] }
 0x7bb   : > { %14801 = vmatpush3.bf16.msra.mxu0 %v15846_v30  ;;  %12140 = vmatprep.mubr.bf16.mxu0 %v9268_v62 }
 0x7bc   : > { %14781 = vmatpush3.bf16.msra.mxu1 %v15848_v46  ;;  %14802 = vmatprep.subr.bf16.mxu0 %v15849_v10  ;;  %v15898_v10 = vld [vmem:[%s21025_s7 + $0x7a8] sm:$0xff]  }
 0x7bd   : > { %14782 = vmatprep.subr.bf16.mxu1 %v15851_v15 }
 0x7bf   : > { %14803 = vmatpush3.bf16.msra.mxu0 %v15850_v14  ;;  %v15900_v14 = vld [vmem:[%s21025_s7 + $0x730] sm:$0xff]  }
 0x7c0   : > { %14783 = vmatpush3.bf16.msra.mxu1 %v15852_v12  ;;  %14804 = vmatprep.subr.bf16.mxu0 %v15853_v58  ;;  %v15901_v12 = vld [vmem:[%s21025_s7 + $0x7f0] sm:$0xff]  }
 0x7c1   : > { %14784 = vmatprep.subr.bf16.mxu1 %v15855_v32 }
 0x7c3   : > { %14805 = vmatpush3.bf16.msra.mxu0 %v15854_v2  ;;  %v15903_v2 = vld [vmem:[%s21025_s7 + $0x778] sm:$0xff]  }
 0x7c4   : > { %14785 = vmatpush3.bf16.msra.mxu1 %v15856_v43  ;;  %14806 = vmatprep.subr.bf16.mxu0 %v15857_v48 }
 0x7c5   : > { %14786 = vmatprep.subr.bf16.mxu1 %v15859_v47 }
 0x7c7   : > { %14807 = vmatpush3.bf16.msra.mxu0 %v15858_v1 }
 0x7c8   : > { %14787 = vmatpush3.bf16.msra.mxu1 %v15860_v41  ;;  %14808 = vmatprep.subr.bf16.mxu0 %v15861_v3  ;;  %v15902_v41 = vld [vmem:[%s21025_s7 + $0x7b0] sm:$0xff]  }
 0x7c9   : > { %14788 = vmatprep.subr.bf16.mxu1 %v15863_v49  ;;  %v15904_v49 = vld [vmem:[%s21025_s7 + $0x738] sm:$0xff]  }
 0x7cb   : > { %14809 = vmatpush3.bf16.msra.mxu0 %v15862_v9  ;;  %v15905_v9 = vld [vmem:[%s21025_s7 + $0x7f8] sm:$0xff]  }
 0x7cc   : > { %14789 = vmatpush3.bf16.msra.mxu1 %v15864_v37  ;;  %14810 = vmatprep.subr.bf16.mxu0 %v15865_v13  ;;  %v15907_v13 = vld [vmem:[%s21025_s7 + $0x840] sm:$0xff]  }
 0x7cd   : > { %14790 = vmatprep.subr.bf16.mxu1 %v15867_v7  ;;  %v9235_v7 = vcombine.high %v20191_v50, %v20191_v50 }
 0x7cf   : > { %14811 = vmatpush3.bf16.msra.mxu0 %v15866_v20  ;;  %v15906_v20 = vld [vmem:[%s21025_s7 + $0x7b8] sm:$0xff]  }
 0x7d0   : > { %14791 = vmatpush3.bf16.msra.mxu1 %v15868_v29  ;;  %14812 = vmatprep.subr.bf16.mxu0 %v15869_v59  ;;  %v15908_v29 = vld [vmem:[%s21025_s7 + $0x800] sm:$0xff]   ;;  %v9269_v59 = vpack.c.bf16 %v20163_v31, %v20163_v31  ;;  %v9271_v31 = vpack.c.bf16 %v20182_v6, %v20182_v6  ;;  %v15914_v6 = vld [vmem:[%s21025_s7 + $0x888] sm:$0xff]  }
 0x7d1   : > { %14792 = vmatprep.subr.bf16.mxu1 %v15871_v61  ;;  %v15909_v61 = vld [vmem:[%s21025_s7 + $0x8c0] sm:$0xff]  }
 0x7d3   : > { %14813 = vmatpush3.bf16.msra.mxu0 %v15870_v28  ;;  %v9236_v28 = vcombine.high %v20194_v22, %v20194_v22 }
 0x7d4   : > { %14793 = vmatpush3.bf16.msra.mxu1 %v15872_v44  ;;  %14814 = vmatprep.subr.bf16.mxu0 %v15873_v33  ;;  %v15911_v44 = vld [vmem:[%s21025_s7 + $0x848] sm:$0xff]   ;;  %v9274_v33 = vpack.c.bf16 %v9235_v7, %v9235_v7 }
 0x7d5   : > { %14822 = vmatprep.subr.bf16.mxu1 %v15875_v26  ;;  %v15910_v26 = vld [vmem:[%s21025_s7 + $0x880] sm:$0xff]  }
 0x7d7   : > { %14815 = vmatpush3.bf16.msra.mxu0 %v15874_v45  ;;  %12101 = vmatmul.mubr.bf16.vlgmr.msra.gmra.mrb[224].mxu1 %v9265_v24  ;;  %v15913_v45 = vld [vmem:[%s21025_s7 + $0x8c8] sm:$0xff]   ;;  %v15915_v24 = vld [vmem:[%s21025_s7 + $0x850] sm:$0xff]  }
 0x7d8   : > { %14823 = vmatpush3.bf16.msra.mxu1 %v15876_v21  ;;  %12180 = vmatprep.mubr.bf16.mxu1 %v9270_v25  ;;  %v9276_v21 = vpack.c.bf16 %v9236_v28, %v9236_v28  ;;  %v15918_v25 = vld [vmem:[%s21025_s7 + $0x890] sm:$0xff]  }
 0x7d9   : > { %14844 = vmatprep.subr.bf16.mxu0 %v15877_v38  ;;  %14824 = vmatprep.subr.bf16.mxu1 %v15879_v40  ;;  %v15916_v38 = vld [vmem:[%s21025_s7 + $0x810] sm:$0xff]   ;;  %v15919_v40 = vld [vmem:[%s21025_s7 + $0x858] sm:$0xff]  }
 0x7da   : > { %12141 = vmatmul.mubr.bf16.vlgmr.msra.gmra.mrb[228].mxu0 %v9267_v55  ;;  %v15921_v55 = vld [vmem:[%s21025_s7 + $0x8d8] sm:$0xff]  }
 0x7db   : > { %14845 = vmatpush3.bf16.msra.mxu0 %v15878_v39  ;;  %12220 = vmatprep.mubr.bf16.mxu0 %v9272_v42  ;;  %v15920_v39 = vld [vmem:[%s21025_s7 + $0x818] sm:$0xff]   ;;  %v15924_v42 = vld [vmem:[%s21025_s7 + $0x820] sm:$0xff]  }
 0x7dc   : > { %14825 = vmatpush3.bf16.msra.mxu1 %v15880_v8  ;;  %14846 = vmatprep.subr.bf16.mxu0 %v15881_v0  ;;  %v15923_v8 = vld [vmem:[%s21025_s7 + $0x860] sm:$0xff]   ;;  %v15922_v0 = vld [vmem:[%s21025_s7 + $0x898] sm:$0xff]  }
 0x7dd   : > { %14826 = vmatprep.subr.bf16.mxu1 %v15883_v56  ;;  %v15925_v56 = vld [vmem:[%s21025_s7 + $0x8e0] sm:$0xff]  }
 0x7df   : > { %14847 = vmatpush3.bf16.msra.mxu0 %v15882_v17  ;;  %v15927_v17 = vld [vmem:[%s21025_s7 + $0x868] sm:$0xff]  }
 0x7e0   : > { %14827 = vmatpush3.bf16.msra.mxu1 %v15884_v54  ;;  %14848 = vmatprep.subr.bf16.mxu0 %v15885_v34  ;;  %v15926_v54 = vld [vmem:[%s21025_s7 + $0x8a0] sm:$0xff]   ;;  %v15928_v34 = vld [vmem:[%s21025_s7 + $0x828] sm:$0xff]  }
 0x7e1   : > { %14828 = vmatprep.subr.bf16.mxu1 %v15887_v18  ;;  %v15929_v18 = vld [vmem:[%s21025_s7 + $0x8e8] sm:$0xff]  }
 0x7e3   : > { %14849 = vmatpush3.bf16.msra.mxu0 %v15886_v5  ;;  %v15931_v5 = vld [vmem:[%s21025_s7 + $0x870] sm:$0xff]  }
 0x7e4   : > { %14829 = vmatpush3.bf16.msra.mxu1 %v15888_v4  ;;  %14850 = vmatprep.subr.bf16.mxu0 %v15889_v27 }
 0x7e5   : > { %14830 = vmatprep.subr.bf16.mxu1 %v15891_v60  ;;  %v15930_v60 = vld [vmem:[%s21025_s7 + $0x8a8] sm:$0xff]  }
 0x7e7   : > { %14851 = vmatpush3.bf16.msra.mxu0 %v15890_v36 }
 0x7e8   : > { %14831 = vmatpush3.bf16.msra.mxu1 %v15892_v51  ;;  %14852 = vmatprep.subr.bf16.mxu0 %v15893_v63  ;;  %v15932_v63 = vld [vmem:[%s21025_s7 + $0x830] sm:$0xff]  }
 0x7e9   : > { %14832 = vmatprep.subr.bf16.mxu1 %v15895_v11  ;;  %v15933_v11 = vld [vmem:[%s21025_s7 + $0x8f0] sm:$0xff]  }
 0x7ea   : > { %v14530_v30 = vpop.f32.mrb[200].mxu1 }
 0x7eb   : > { %14853 = vmatpush3.bf16.msra.mxu0 %v15894_v52  ;;  %v14531_v46 = vpop.f32.mrb[201].mxu1 }
 0x7ec   : > { %v14532_v62 = vadd.f32 %v14531_v46, %v14530_v30  ;;  %14833 = vmatpush3.bf16.msra.mxu1 %v15896_v23  ;;  %v14533_v15 = vpop.f32.mrb[202].mxu1  ;;  %14854 = vmatprep.subr.bf16.mxu0 %v15897_v19  ;;  %v15935_v19 = vld [vmem:[%s21025_s7 + $0x878] sm:$0xff]  }
 0x7ed   : > { %v14552_v58 = vpop.f32.mrb[204].mxu0  ;;  %v14534_v32 = vpop.f32.mrb[203].mxu1  ;;  %14834 = vmatprep.subr.bf16.mxu1 %v15899_v53  ;;  %v15936_v15 = vld [vmem:[%s21025_s7 + $0x838] sm:$0xff]  }
 0x7ee   : > { %v11623_v43 = vadd.f32 %v14532_v62, %v13070_v16  ;;  %v14553_v48 = vpop.f32.mrb[205].mxu0  ;;  %v9273_v32 = vpack.c.bf16 %v20191_v50, %v20191_v50 }
 0x7ef   : > { %v14554_v47 = vadd.f32 %v14553_v48, %v14552_v58  ;;  %14855 = vmatpush3.bf16.msra.mxu0 %v15898_v10  ;;  %v14555_v1 = vpop.f32.mrb[206].mxu0  ;;  %v15934_v10 = vld [vmem:[%s21025_s7 + $0x8b0] sm:$0xff]   ;;  %v15938_v58 = vld [vmem:[%s21025_s7 + $0x8b8] sm:$0xff]  }
 0x7f0   : > { %v14556_v3 = vpop.f32.mrb[207].mxu0  ;;  %14835 = vmatpush3.bf16.msra.mxu1 %v15900_v14  ;;  %14856 = vmatprep.subr.bf16.mxu0 %v15901_v12  ;;  %v15937_v14 = vld [vmem:[%s21025_s7 + $0x8f8] sm:$0xff]  }
 0x7f1   : > { %v20857_v37 = vadd.f32 %v14554_v47, %v11623_v43  ;;  %14836 = vmatprep.subr.bf16.mxu1 %v15903_v2  ;;  %v9275_v2 = vpack.c.bf16 %v20194_v22, %v20194_v22 }
 0x7f3   : > { %14857 = vmatpush3.bf16.msra.mxu0 %v15902_v41 }
 0x7f4   : > { %14837 = vmatpush3.bf16.msra.mxu1 %v15904_v49  ;;  %14858 = vmatprep.subr.bf16.mxu0 %v15905_v9 }
 0x7f5   : > { %14866 = vmatprep.subr.bf16.mxu1 %v15907_v13 }
 0x7f7   : > { %14859 = vmatpush3.bf16.msra.mxu0 %v15906_v20  ;;  %12181 = vmatmul.mubr.bf16.vlgmr.msra.gmra.mrb[228].mxu1 %v9269_v59 }
 0x7f8   : > { %14867 = vmatpush3.bf16.msra.mxu1 %v15908_v29  ;;  %12260 = vmatprep.mubr.bf16.mxu1 %v9274_v33 }
 0x7f9   : > { %14888 = vmatprep.subr.bf16.mxu0 %v15909_v61  ;;  %14868 = vmatprep.subr.bf16.mxu1 %v15911_v44 }
 0x7fa   : > { %12221 = vmatmul.mubr.bf16.vlgmr.msra.gmra.mrb[232].mxu0 %v9271_v31 }
 0x7fb   : > { %14889 = vmatpush3.bf16.msra.mxu0 %v15910_v26  ;;  %12300 = vmatprep.mubr.bf16.mxu0 %v9276_v21 }
 0x7fc   : > { %14869 = vmatpush3.bf16.msra.mxu1 %v15912_v57  ;;  %14890 = vmatprep.subr.bf16.mxu0 %v15913_v45 }
 0x7fd   : > { %14870 = vmatprep.subr.bf16.mxu1 %v15915_v24 }
 0x7ff   : > { %14891 = vmatpush3.bf16.msra.mxu0 %v15914_v6 }
 0x800   : > { %14871 = vmatpush3.bf16.msra.mxu1 %v15916_v38  ;;  %14892 = vmatprep.subr.bf16.mxu0 %v15917_v35 }
 0x801   : > { %14872 = vmatprep.subr.bf16.mxu1 %v15919_v40 }
 0x803   : > { %14893 = vmatpush3.bf16.msra.mxu0 %v15918_v25 }
 0x804   : > { %14873 = vmatpush3.bf16.msra.mxu1 %v15920_v39  ;;  %14894 = vmatprep.subr.bf16.mxu0 %v15921_v55 }
 0x805   : > { %14874 = vmatprep.subr.bf16.mxu1 %v15923_v8 }
 0x807   : > { %14895 = vmatpush3.bf16.msra.mxu0 %v15922_v0 }
 0x808   : > { %14875 = vmatpush3.bf16.msra.mxu1 %v15924_v42  ;;  %14896 = vmatprep.subr.bf16.mxu0 %v15925_v56 }
 0x809   : > { %14876 = vmatprep.subr.bf16.mxu1 %v15927_v17 }
 0x80a   : > { %v14574_v4 = vpop.f32.mrb[204].mxu1 }
 0x80b   : > { %14897 = vmatpush3.bf16.msra.mxu0 %v15926_v54  ;;  %v14575_v27 = vpop.f32.mrb[205].mxu1 }
 0x80c   : > { %v14576_v36 = vadd.f32 %v14575_v27, %v14574_v4  ;;  %v14577_v51 = vpop.f32.mrb[206].mxu1  ;;  %14877 = vmatpush3.bf16.msra.mxu1 %v15928_v34  ;;  %14898 = vmatprep.subr.bf16.mxu0 %v15929_v18 }
 0x80d   : > { %v14596_v52 = vpop.f32.mrb[208].mxu0  ;;  %v14578_v23 = vpop.f32.mrb[207].mxu1  ;;  %14878 = vmatprep.subr.bf16.mxu1 %v15931_v5 }
 0x80e   : > { %v11703_v53 = vadd.f32 %v14576_v36, %v20857_v37  ;;  %v14597_v30 = vpop.f32.mrb[209].mxu0 }
 0x80f   : > { %v14598_v16 = vadd.f32 %v14597_v30, %v14596_v52  ;;  %v14599_v46 = vpop.f32.mrb[210].mxu0  ;;  %14899 = vmatpush3.bf16.msra.mxu0 %v15930_v60 }
 0x810   : > { %v14600_v62 = vpop.f32.mrb[211].mxu0  ;;  %14879 = vmatpush3.bf16.msra.mxu1 %v15932_v63  ;;  %14900 = vmatprep.subr.bf16.mxu0 %v15933_v11 }
 0x811   : > { %v11743_v12 = vadd.f32 %v14598_v16, %v11703_v53  ;;  %14880 = vmatprep.subr.bf16.mxu1 %v15935_v19 }
 0x813   : > { %14901 = vmatpush3.bf16.msra.mxu0 %v15934_v10 }
 0x814   : > { %14881 = vmatpush3.bf16.msra.mxu1 %v15936_v15  ;;  %14902 = vmatprep.subr.bf16.mxu0 %v15937_v14 }
 0x817   : > { %14903 = vmatpush3.bf16.msra.mxu0 %v15938_v58  ;;  %12261 = vmatmul.mubr.bf16.vlgmr.msra.gmra.mrb[232].mxu1 %v9273_v32 }
 0x81a   : > { %12301 = vmatmul.mubr.bf16.vlgmr.msra.gmra.mrb[236].mxu0 %v9275_v2 }
 0x82a   : > { %v14618_v43 = vpop.f32.mrb[208].mxu1 }
 0x82b   : > { %v14619_v48 = vpop.f32.mrb[209].mxu1 }
 0x82c   : > { %v14620_v47 = vadd.f32 %v14619_v48, %v14618_v43  ;;  %v14621_v1 = vpop.f32.mrb[210].mxu1 }
 0x82d   : > { %v14640_v41 = vpop.f32.mrb[212].mxu0  ;;  %v14622_v3 = vpop.f32.mrb[211].mxu1 }
 0x82e   : > { %v11783_v49 = vadd.f32 %v14620_v47, %v11743_v12  ;;  %v14641_v9 = vpop.f32.mrb[213].mxu0 }
 0x82f   : > { %v14642_v37 = vadd.f32 %v14641_v9, %v14640_v41  ;;  %v14643_v13 = vpop.f32.mrb[214].mxu0 }
 0x830   : > { %v14644_v7 = vpop.f32.mrb[215].mxu0 }
 0x831   : > { %v11823_v20 = vadd.f32 %v14642_v37, %v11783_v49 }
 0x84a   : > { %v14662_v29 = vpop.f32.mrb[212].mxu1 }
 0x84b   : > { %v14663_v50 = vpop.f32.mrb[213].mxu1 }
 0x84c   : > { %v14664_v59 = vadd.f32 %v14663_v50, %v14662_v29  ;;  %v14665_v61 = vpop.f32.mrb[214].mxu1 }
 0x84d   : > { %v14684_v28 = vpop.f32.mrb[216].mxu0  ;;  %v14666_v44 = vpop.f32.mrb[215].mxu1 }
 0x84e   : > { %v11863_v22 = vadd.f32 %v14664_v59, %v11823_v20  ;;  %v14685_v33 = vpop.f32.mrb[217].mxu0 }
 0x84f   : > { %v14686_v26 = vadd.f32 %v14685_v33, %v14684_v28  ;;  %v14687_v31 = vpop.f32.mrb[218].mxu0 }
 0x850   : > { %v14688_v57 = vpop.f32.mrb[219].mxu0 }
 0x851   : > { %v11903_v45 = vadd.f32 %v14686_v26, %v11863_v22 }
 0x86a   : > { %v14706_v21 = vpop.f32.mrb[216].mxu1 }
 0x86b   : > { %v14707_v24 = vpop.f32.mrb[217].mxu1 }
 0x86c   : > { %v14708_v6 = vadd.f32 %v14707_v24, %v14706_v21  ;;  %v14709_v38 = vpop.f32.mrb[218].mxu1 }
 0x86d   : > { %v14728_v35 = vpop.f32.mrb[220].mxu0  ;;  %v14710_v40 = vpop.f32.mrb[219].mxu1 }
 0x86e   : > { %v11943_v25 = vadd.f32 %v14708_v6, %v11903_v45  ;;  %v14729_v39 = vpop.f32.mrb[221].mxu0 }
 0x86f   : > { %v14730_v55 = vadd.f32 %v14729_v39, %v14728_v35  ;;  %v14731_v8 = vpop.f32.mrb[222].mxu0 }
 0x870   : > { %v14732_v0 = vpop.f32.mrb[223].mxu0 }
 0x871   : > { %v11983_v42 = vadd.f32 %v14730_v55, %v11943_v25 }
 0x88a   : > { %v14750_v56 = vpop.f32.mrb[220].mxu1 }
 0x88b   : > { %v14751_v17 = vpop.f32.mrb[221].mxu1 }
 0x88c   : > { %v14752_v54 = vadd.f32 %v14751_v17, %v14750_v56  ;;  %v14753_v34 = vpop.f32.mrb[222].mxu1 }
 0x88d   : > { %v14772_v18 = vpop.f32.mrb[224].mxu0  ;;  %v14754_v5 = vpop.f32.mrb[223].mxu1 }
 0x88e   : > { %v12023_v4 = vadd.f32 %v14752_v54, %v11983_v42  ;;  %v14773_v27 = vpop.f32.mrb[225].mxu0 }
 0x88f   : > { %v14774_v60 = vadd.f32 %v14773_v27, %v14772_v18  ;;  %v14775_v36 = vpop.f32.mrb[226].mxu0 }
 0x890   : > { %v14776_v51 = vpop.f32.mrb[227].mxu0 }
 0x891   : > { %v12063_v63 = vadd.f32 %v14774_v60, %v12023_v4 }
 0x8aa   : > { %v14794_v11 = vpop.f32.mrb[224].mxu1 }
 0x8ab   : > { %v14795_v52 = vpop.f32.mrb[225].mxu1 }
 0x8ac   : > { %v14796_v23 = vadd.f32 %v14795_v52, %v14794_v11  ;;  %v14797_v19 = vpop.f32.mrb[226].mxu1 }
 0x8ad   : > { %v14816_v53 = vpop.f32.mrb[228].mxu0  ;;  %v14798_v30 = vpop.f32.mrb[227].mxu1 }
 0x8ae   : > { %v12103_v16 = vadd.f32 %v14796_v23, %v12063_v63  ;;  %v14817_v46 = vpop.f32.mrb[229].mxu0 }
 0x8af   : > { %v14818_v10 = vadd.f32 %v14817_v46, %v14816_v53  ;;  %v14819_v62 = vpop.f32.mrb[230].mxu0 }
 0x8b0   : > { %v14820_v15 = vpop.f32.mrb[231].mxu0 }
 0x8b1   : > { %v12143_v14 = vadd.f32 %v14818_v10, %v12103_v16 }
 0x8ca   : > { %v14838_v12 = vpop.f32.mrb[228].mxu1 }
 0x8cb   : > { %v14839_v58 = vpop.f32.mrb[229].mxu1 }
 0x8cc   : > { %v14840_v32 = vadd.f32 %v14839_v58, %v14838_v12  ;;  %v14841_v2 = vpop.f32.mrb[230].mxu1 }
 0x8cd   : > { %v14860_v43 = vpop.f32.mrb[232].mxu0  ;;  %v14842_v48 = vpop.f32.mrb[231].mxu1 }
 0x8ce   : > { %v12183_v47 = vadd.f32 %v14840_v32, %v12143_v14  ;;  %v14861_v1 = vpop.f32.mrb[233].mxu0 }
 0x8cf   : > { %v14862_v41 = vadd.f32 %v14861_v1, %v14860_v43  ;;  %v14863_v3 = vpop.f32.mrb[234].mxu0 }
 0x8d0   : > { %v14864_v49 = vpop.f32.mrb[235].mxu0 }
 0x8d1   : > { %v12223_v9 = vadd.f32 %v14862_v41, %v12183_v47 }
 0x8ea   : > { %v14882_v37 = vpop.f32.mrb[232].mxu1 }
 0x8eb   : > { %v14883_v13 = vpop.f32.mrb[233].mxu1 }
 0x8ec   : > { %v14884_v7 = vadd.f32 %v14883_v13, %v14882_v37  ;;  %v14885_v20 = vpop.f32.mrb[234].mxu1 }
 0x8ed   : > { %v14904_v29 = vpop.f32.mrb[236].mxu0  ;;  %v14886_v50 = vpop.f32.mrb[235].mxu1 }
 0x8ee   : > { %v12263_v59 = vadd.f32 %v14884_v7, %v12223_v9  ;;  %v14905_v61 = vpop.f32.mrb[237].mxu0 }
 0x8ef   : > { %v14906_v28 = vadd.f32 %v14905_v61, %v14904_v29  ;;  %v14907_v44 = vpop.f32.mrb[238].mxu0 }
 0x8f0   : > { %v14908_v22 = vpop.f32.mrb[239].mxu0 }
 0x8f1   : > { %v12303_v33 = vadd.f32 %v14906_v28, %v12263_v59 }
 0x8f3   : > { %12308 = vst [vmem:[%s379_s30] sm:$0xf] %v12303_v33 }
 0x8f4   : > { %15972 = shalt.err (!%p15969_p3)
}
 0x8f5   : > { %s15973_s24 = scalar_lea.hbm %s20976_s15, 64  ;;  %s15977_s13 = scalar_lea.hbm %s21029_s11, 128 }
 0x8f6   : > { %p15974_p4 = scmp.ne.s32.totalorder %s20976_s15, %s15973_s24  ;;  %p15978_p9 = scmp.lt.u32.totalorder %s20976_s15, %s21029_s11 }
 0x8f7   : > { %p15979_p10 = scmp.lt.u32.totalorder %s15977_s13, %s15973_s24  ;;  %p15981_p12 = scmp.lt.u32.totalorder %s15973_s24, %s20976_s15 }
 0x8f8   : > { %p15975_p7 = pnand %p15974_p4, %p16125_p5 }
 0x8f9   : > { %p15980_p11 = por %p15979_p10, %p15978_p9 }
 0x8fa   : > { %p15976_p8 = pneg %p15975_p7 }
 0x8fb   : > { %p15982_p13 = por %p15981_p12, %p15980_p11 }
 0x8fd   : > { %p15983_p0 = pnand %p15982_p13, %p15976_p8 }
 0x8ff   : > { %15986 = shalt.err (!%p15983_p0)
}
 0x900   : > { %14980 = dma.vmem_to_hbm [thread:$0]  (%p16125_p5), %s20978_s12, 64, %s20976_s15, %s12310_s16  }
 0x901 PF: > { %p14986_p1 = scmp.ge.s32.totalorder %s16021_s20, 2  ;;  %s12335_s0 = sand.u32 1, %s16009_s17  }
 0x902   : > { %s12336_s22 = scalar_lea.sflag [#allocation6], %s12335_s0 }
 0x903   : > { %p14983_p2 = pnand %p14986_p1, %p16129_p6 }
 0x905   : > { %16004 = dma.done.wait (!%p14983_p2), %s12336_s22, 64  }
 0x906   : > { %16006 = vsyncadd (!%p14983_p2), %s12336_s22, 4294967232  ;;  %p21_p3 = scmp.ge.s32.totalorder %s16112_s23, 4   ;;  %s21328_s17 = smov %s16013_s18 }
 0x907   : > { %s21329_s18 = smov %s16017_s19  ;;  %s21330_s19 = smov %s16123_s26 }
 0x908   : > { %s21331_s20 = smov %s16112_s23  ;;  %23 = sbr.rel (!%p21_p3) target bundleno = 5 (0x5), region = 102 }
 0x90f   :  { %12341 = vsyncpa [#allocation6], 1 }
 0x910   :  { %12343 = vsyncpa [#allocation6 + $0x1], 1 }

</bundles_post_ra>
